<compile_context>
chip_gen: v6e
topology: v6e:2x2x1
jax: 0.10.0
libtpu: 0.0.40
codegen_flags: <defaults>
</compile_context>

<pallas_src>
import functools
import math

import jax
import jax.numpy as jnp
from jax.experimental import pallas as pl
from jax.experimental.pallas import tpu as pltpu

# (Cin, Cmid_after_2x2_deconv, Cout_after_1x1, has_bn_and_gelu)
STAGES = (
    (32, 64, 64, True),   # ConvT(32->64,g=32) + ConvT1x1(64->64) + BN + GELU   7 -> 14
    (64, 64, 32, True),   # ConvT(64->64,g=64) + ConvT1x1(64->32) + BN + GELU  14 -> 28
    (32, 32, 32, True),   # ConvT(32->32,g=32) + ConvT1x1(32->32) + BN + GELU  28 -> 56
    (32, 32, 16, True),   # ConvT(32->32,g=32) + ConvT1x1(32->16) + BN + GELU  56 -> 112
    (16, 3, 3, False),    # ConvT(16->3, bias=False)                          112 -> 224
)
LAST_COUT_PAD = 8  # pad final 3 channels -> 8 for lane-friendlier stores


# ----------------------------- Pallas kernels ------------------------------

def enc_matmul_kernel(a_ref, b_ref, bias_ref, o_ref):
    """One output-column tile of z = x_flat @ W + b (bf16 in, f32 out)."""
    o_ref[...] = (jnp.dot(a_ref[...], b_ref[...],
                          preferred_element_type=jnp.float32)
                  + bias_ref[...]).astype(o_ref.dtype)


def dec_stage_kernel(x_ref, w_ref, b_ref, o_ref, *, apply_act):
    """One row-tile of a decoder stage.

    x_ref: (tm, Cin)        bf16 pixel rows
    w_ref: (Cin, 4*Cout)    folded (deconv @ 1x1 @ BN) weight, 4 sub-pixels
                            concatenated along the lane dim
    b_ref: (1, 4*Cout)      folded bias (f32)
    o_ref: (tm, 4*Cout)     bf16 output
    """
    y = jnp.dot(x_ref[...], w_ref[...], preferred_element_type=jnp.float32)
    y = y + b_ref[...]
    if apply_act:
        # exact (erf) GELU, matching torch.nn.GELU default
        y = 0.5 * y * (1.0 + jax.lax.erf(y * (1.0 / math.sqrt(2.0))))
    o_ref[...] = y.astype(o_ref.dtype)


# ------------------------------- wrappers ----------------------------------

def encoder_matmul(a, b, bias, tn=256):
    """z = a @ b + bias, tiled over output columns (weight-bandwidth bound)."""
    M, K = a.shape
    _, Nout = b.shape
    assert Nout % tn == 0
    return pl.pallas_call(
        enc_matmul_kernel,
        out_shape=jax.ShapeDtypeStruct((M, Nout), jnp.float32),
        grid=(Nout // tn,),
        in_specs=[
            pl.BlockSpec((M, K), lambda j: (0, 0)),
            pl.BlockSpec((K, tn), lambda j: (0, j)),
            pl.BlockSpec((1, tn), lambda j: (0, j)),
        ],
        out_specs=pl.BlockSpec((M, tn), lambda j: (0, j)),
        compiler_params=pltpu.CompilerParams(
            dimension_semantics=("parallel",)),
    )(a, b, bias)


def _pick_row_tile(M, cap=2048):
    """Largest multiple-of-16 divisor of M that is <= cap (else full M).

    Exact division -> no ragged blocks; multiple of 16 keeps bf16 sublane
    packing happy; cap bounds per-step VMEM (safe for v7x's 64 MiB)."""
    if M <= cap:
        return M
    t = (cap // 16) * 16
    while t >= 16:
        if M % t == 0:
            return t
        t -= 16
    return M


def dec_stage(x, w, b, apply_act):
    """One decoder stage on flattened pixel rows: (M, Cin) -> (M, 4*Cout)."""
    M, cin = x.shape
    ncols = w.shape[1]            # 4 * Cout (padded for the last stage)
    tm = _pick_row_tile(M)
    kernel = functools.partial(dec_stage_kernel, apply_act=apply_act)
    return pl.pallas_call(
        kernel,
        out_shape=jax.ShapeDtypeStruct((M, ncols), jnp.bfloat16),
        grid=(M // tm,),
        in_specs=[
            pl.BlockSpec((tm, cin), lambda i: (i, 0)),
            pl.BlockSpec((cin, ncols), lambda i: (0, 0)),
            pl.BlockSpec((1, ncols), lambda i: (0, 0)),
        ],
        out_specs=pl.BlockSpec((tm, ncols), lambda i: (i, 0)),
        compiler_params=pltpu.CompilerParams(
            dimension_semantics=("parallel",)),
    )(x, w, b)


def coordinator_forward(x, params):
    N = x.shape[0]
    # TODO(synk): pretrained facebook/vit-mae-base encoder cannot be loaded
    # here; replaced by a deterministic synthetic linear encoder (Pallas
    # matmul) producing z of shape (N, 768), matching the CLS-token contract.
    x_flat = x.reshape(N, -1).astype(jnp.bfloat16)
    z = encoder_matmul(x_flat, params["enc_w"], params["enc_b"])  # (N, 768) f32

    # DecoderManual: concat learned trigger, reshape to (N, 32, 7, 7) NCHW,
    # then flatten to channels-last pixel rows (n, h, w) for the kernels.
    p = jnp.broadcast_to(params["p_trigger"], (N, params["p_trigger"].shape[1]))
    z_cube = jnp.concatenate([z, p], axis=1).reshape(N, 32, 7, 7)
    h = jnp.transpose(z_cube, (0, 2, 3, 1)).reshape(N * 49, 32)
    h = h.astype(jnp.bfloat16)

    # Each stage emits (M, 4*Cout); reinterpreting as (4*M, Cout) is a free
    # contiguous reshape (rows = pixels, order (..., ki, kj)), so the 2x2
    # sub-pixel interleave is deferred to a single unscramble at the end.
    for s, sp in enumerate(params["stages"]):
        out = dec_stage(h, sp["w"], sp["b"], apply_act=STAGES[s][3])
        coutp = out.shape[1] // 4
        h = out.reshape(out.shape[0] * 4, coutp)

    # h: (N*224*224, 8) rows ordered (n, h0, w0, i1, j1, ..., i5, j5),
    # columns = zero-padded channels.  One transpose -> NCHW, slicing padding.
    y = h.reshape(N, 7, 7, 2, 2, 2, 2, 2, 2, 2, 2, 2, 2, LAST_COUT_PAD)[..., :3]
    # axes: 0:n 1:h0 2:w0 3:i1 4:j1 5:i2 6:j2 7:i3 8:j3 9:i4 10:j4 11:i5 12:j5 13:c
    y = jnp.transpose(y, (0, 13, 1, 3, 5, 7, 9, 11, 2, 4, 6, 8, 10, 12))
    wrap = y.reshape(N, 3, 224, 224).astype(jnp.float32)
    return wrap, z


# ----------------------------- parameter init ------------------------------

def _grouped_dense(w):
    """(Cin, gout, 2, 2) grouped (groups=Cin) deconv -> 4 dense (Cin, Cin*gout)
    block-diagonal matrices, one per (ki, kj) sub-pixel (PyTorch channel order)."""
    cin, gout = w.shape[0], w.shape[1]
    eye = jnp.eye(cin, dtype=jnp.float32)
    mats = []
    for ki in range(2):
        for kj in range(2):
            blk = w[:, :, ki, kj]  # (Cin, gout)
            mats.append((eye[:, :, None] * blk[None, :, :]).reshape(cin, cin * gout))
    return mats


def init_params(key):
    keys = jax.random.split(key, 24)
    kit = iter(keys)
    K = 3 * 32 * 32
    params = {}
    enc_w = jax.random.uniform(
        next(kit), (K, 768), jnp.float32, -1.0 / math.sqrt(K), 1.0 / math.sqrt(K))
    params["enc_w"] = enc_w.astype(jnp.bfloat16)
    params["enc_b"] = jax.random.uniform(next(kit), (1, 768), jnp.float32, -0.01, 0.01)
    # p_trigger ~ U[0, 0.1], shape (1, src_dim - i_dim) = (1, 800)
    params["p_trigger"] = jax.random.uniform(
        next(kit), (1, 1568 - 768), jnp.float32, 0.0, 0.1)

    bn_eps = 1e-5
    stages = []
    for (cin, cmid, cout, act) in STAGES:
        if act:
            gout = cmid // cin
            w_up = jax.random.uniform(next(kit), (cin, gout, 2, 2), jnp.float32, -0.5, 0.5)
            b_up = jax.random.uniform(next(kit), (1, cmid), jnp.float32, -0.1, 0.1)
            w_pw = jax.random.uniform(
                next(kit), (cmid, cout), jnp.float32,
                -1.0 / math.sqrt(cmid), 1.0 / math.sqrt(cmid))
            # BatchNorm2d, inference-mode stats (mean=0, var=1, gamma=1, beta=0)
            scale = jnp.full((1, cout), 1.0 / math.sqrt(1.0 + bn_eps), jnp.float32)
            shift = jnp.zeros((1, cout), jnp.float32)
            # fold per sub-pixel k:  y_k = ((x @ Wup_k + b_up) @ Wpw) * scale + shift
            w_k = [(m @ w_pw) * scale for m in _grouped_dense(w_up)]   # 4 x (Cin, Cout)
            b_k = (b_up @ w_pw) * scale + shift                         # (1, Cout)
            w_cat = jnp.concatenate(w_k, axis=1)                        # (Cin, 4*Cout)
            b_cat = jnp.concatenate([b_k] * 4, axis=1)                  # (1, 4*Cout)
        else:
            # final full ConvTranspose2d(16, 3, 2, 2, bias=False); pad Cout 3 -> 8
            w_up = jax.random.uniform(
                next(kit), (cin, cout, 2, 2), jnp.float32,
                -1.0 / math.sqrt(cin), 1.0 / math.sqrt(cin))
            pad = LAST_COUT_PAD - cout
            w_k = [jnp.pad(w_up[:, :, ki, kj], ((0, 0), (0, pad)))
                   for ki in range(2) for kj in range(2)]
            w_cat = jnp.concatenate(w_k, axis=1)                        # (Cin, 4*8)
            b_cat = jnp.zeros((1, 4 * LAST_COUT_PAD), jnp.float32)
        stages.append(dict(w=w_cat.astype(jnp.bfloat16), b=b_cat))
    params["stages"] = stages
    return params


# --------------------------------- main -------------------------------------

if __name__ == "__main__":
    key = jax.random.PRNGKey(0)
    pkey, xkey = jax.random.split(key)
    params = init_params(pkey)

    # input image, NCHW like the PyTorch module (small spatial for the
    # synthetic encoder; decoder output spatial is fixed by the architecture).
    x = jax.random.normal(xkey, (2, 3, 32, 32), jnp.float32)

    fwd = jax.jit(lambda inp: coordinator_forward(inp, params))
    wrap, z = fwd(x)
    jax.block_until_ready((wrap, z))

    assert wrap.shape == (2, 3, 224, 224), wrap.shape
    assert z.shape == (2, 768), z.shape
    assert bool(jnp.all(jnp.isfinite(wrap))) and bool(jnp.all(jnp.isfinite(z)))
    print("KERNEL_OK")
</pallas_src>

<mosaic_0001>
module attributes {stable_mosaic.version = 11 : i64} {
  func.func @enc_matmul_kernel(%arg0: i32, %arg1: memref<2x3072xbf16, #tpu.memory_space<vmem>>, %arg2: memref<3072x256xbf16, #tpu.memory_space<vmem>>, %arg3: memref<1x256xf32, #tpu.memory_space<vmem>>, %arg4: memref<2x256xf32, #tpu.memory_space<vmem>>) attributes {dimension_semantics = [#tpu.dimension_semantics<parallel>], iteration_bounds = array<i64: 3>, scalar_prefetch = 0 : i64, scratch_operands = 0 : i64, tpu.core_type = #tpu.core_type<tc>, window_params = [{pipeline_mode = #tpu.pipeline_mode<synchronous>, transform_indices = @transform_0, window_bounds = array<i64: 2, 3072>}, {transform_indices = @transform_1, window_bounds = array<i64: 3072, 256>}, {transform_indices = @transform_2, window_bounds = array<i64: 1, 256>}, {transform_indices = @transform_3, window_bounds = array<i64: 2, 256>}]} {
    %c0 = arith.constant 0 : index
    %c0_0 = arith.constant 0 : index
    %0 = vector.load %arg1[%c0, %c0_0] : memref<2x3072xbf16, #tpu.memory_space<vmem>>, vector<2x3072xbf16>
    %c0_1 = arith.constant 0 : index
    %c0_2 = arith.constant 0 : index
    %1 = vector.load %arg2[%c0_1, %c0_2] : memref<3072x256xbf16, #tpu.memory_space<vmem>>, vector<3072x256xbf16>
    %cst = arith.constant dense<0.000000e+00> : vector<2x256xf32>
    %2 = tpu.matmul %0, %1, %cst {dimension_numbers = #tpu.dot_dimension_numbers<[1], [0], [0], [1], [0, 0, 1, 1], [], []>} : vector<2x3072xbf16>, vector<3072x256xbf16>, vector<2x256xf32> -> vector<2x256xf32>
    %c0_3 = arith.constant 0 : index
    %c0_4 = arith.constant 0 : index
    %3 = vector.load %arg3[%c0_3, %c0_4] : memref<1x256xf32, #tpu.memory_space<vmem>>, vector<1x256xf32>
    %4 = vector.broadcast %3 : vector<1x256xf32> to vector<2x256xf32>
    %5 = arith.addf %2, %4 : vector<2x256xf32>
    %c0_5 = arith.constant 0 : index
    %c0_6 = arith.constant 0 : index
    %6 = vector.load %arg4[%c0_5, %c0_6] : memref<2x256xf32, #tpu.memory_space<vmem>>, vector<2x256xf32>
    tpu.vector_store %arg4[%c0_5, %c0_6], %5 {strides = array<i32>} : memref<2x256xf32, #tpu.memory_space<vmem>>, vector<2x256xf32>,
    return
  }
  func.func @transform_0(%arg0: i32) -> (i32, i32) {
    %c0_i32 = arith.constant 0 : i32
    %c0_i32_0 = arith.constant 0 : i32
    %c0_i32_1 = arith.constant 0 : i32
    return %c0_i32, %c0_i32_0 : i32, i32
  }
  func.func @transform_1(%arg0: i32) -> (i32, i32) {
    %c0_i32 = arith.constant 0 : i32
    %c0_i32_0 = arith.constant 0 : i32
    return %c0_i32, %arg0 : i32, i32
  }
  func.func @transform_2(%arg0: i32) -> (i32, i32) {
    %c0_i32 = arith.constant 0 : i32
    %c0_i32_0 = arith.constant 0 : i32
    return %c0_i32, %arg0 : i32, i32
  }
  func.func @transform_3(%arg0: i32) -> (i32, i32) {
    %c0_i32 = arith.constant 0 : i32
    %c0_i32_0 = arith.constant 0 : i32
    return %c0_i32, %arg0 : i32, i32
  }
}

module attributes {stable_mosaic.version = 11 : i64} {
  func.func @dec_stage_kernel(%arg0: i32, %arg1: memref<98x32xbf16, #tpu.memory_space<vmem>>, %arg2: memref<32x256xbf16, #tpu.memory_space<vmem>>, %arg3: memref<1x256xf32, #tpu.memory_space<vmem>>, %arg4: memref<98x256xbf16, #tpu.memory_space<vmem>>) attributes {dimension_semantics = [#tpu.dimension_semantics<parallel>], iteration_bounds = array<i64: 1>, scalar_prefetch = 0 : i64, scratch_operands = 0 : i64, tpu.core_type = #tpu.core_type<tc>, window_params = [{transform_indices = @transform_0, window_bounds = array<i64: 98, 32>}, {pipeline_mode = #tpu.pipeline_mode<synchronous>, transform_indices = @transform_1, window_bounds = array<i64: 32, 256>}, {pipeline_mode = #tpu.pipeline_mode<synchronous>, transform_indices = @transform_2, window_bounds = array<i64: 1, 256>}, {transform_indices = @transform_3, window_bounds = array<i64: 98, 256>}]} {
    %c0 = arith.constant 0 : index
    %c0_0 = arith.constant 0 : index
    %0 = vector.load %arg1[%c0, %c0_0] : memref<98x32xbf16, #tpu.memory_space<vmem>>, vector<98x32xbf16>
    %c0_1 = arith.constant 0 : index
    %c0_2 = arith.constant 0 : index
    %1 = vector.load %arg2[%c0_1, %c0_2] : memref<32x256xbf16, #tpu.memory_space<vmem>>, vector<32x256xbf16>
    %cst = arith.constant dense<0.000000e+00> : vector<98x256xf32>
    %2 = tpu.matmul %0, %1, %cst {dimension_numbers = #tpu.dot_dimension_numbers<[1], [0], [0], [1], [0, 0, 1, 1], [], []>} : vector<98x32xbf16>, vector<32x256xbf16>, vector<98x256xf32> -> vector<98x256xf32>
    %c0_3 = arith.constant 0 : index
    %c0_4 = arith.constant 0 : index
    %3 = vector.load %arg3[%c0_3, %c0_4] : memref<1x256xf32, #tpu.memory_space<vmem>>, vector<1x256xf32>
    %4 = vector.broadcast %3 : vector<1x256xf32> to vector<98x256xf32>
    %5 = arith.addf %2, %4 : vector<98x256xf32>
    %cst_5 = arith.constant 5.000000e-01 : f32
    %6 = vector.broadcast %cst_5 : f32 to vector<98x256xf32>
    %7 = arith.mulf %6, %5 : vector<98x256xf32>
    %cst_6 = arith.constant 0.707106769 : f32
    %8 = vector.broadcast %cst_6 : f32 to vector<98x256xf32>
    %9 = arith.mulf %5, %8 : vector<98x256xf32>
    %10 = math.erf %9 : vector<98x256xf32>
    %cst_7 = arith.constant 1.000000e+00 : f32
    %11 = vector.broadcast %cst_7 : f32 to vector<98x256xf32>
    %12 = arith.addf %11, %10 : vector<98x256xf32>
    %13 = arith.mulf %7, %12 : vector<98x256xf32>
    %14 = arith.truncf %13 : vector<98x256xf32> to vector<98x256xbf16>
    %c0_8 = arith.constant 0 : index
    %c0_9 = arith.constant 0 : index
    %15 = vector.load %arg4[%c0_8, %c0_9] : memref<98x256xbf16, #tpu.memory_space<vmem>>, vector<98x256xbf16>
    tpu.vector_store %arg4[%c0_8, %c0_9], %14 {strides = array<i32>} : memref<98x256xbf16, #tpu.memory_space<vmem>>, vector<98x256xbf16>,
    return
  }
  func.func @transform_0(%arg0: i32) -> (i32, i32) {
    %c0_i32 = arith.constant 0 : i32
    %c0_i32_0 = arith.constant 0 : i32
    return %arg0, %c0_i32 : i32, i32
  }
  func.func @transform_1(%arg0: i32) -> (i32, i32) {
    %c0_i32 = arith.constant 0 : i32
    %c0_i32_0 = arith.constant 0 : i32
    %c0_i32_1 = arith.constant 0 : i32
    return %c0_i32, %c0_i32_0 : i32, i32
  }
  func.func @transform_2(%arg0: i32) -> (i32, i32) {
    %c0_i32 = arith.constant 0 : i32
    %c0_i32_0 = arith.constant 0 : i32
    %c0_i32_1 = arith.constant 0 : i32
    return %c0_i32, %c0_i32_0 : i32, i32
  }
  func.func @transform_3(%arg0: i32) -> (i32, i32) {
    %c0_i32 = arith.constant 0 : i32
    %c0_i32_0 = arith.constant 0 : i32
    return %arg0, %c0_i32 : i32, i32
  }
}

module attributes {stable_mosaic.version = 11 : i64} {
  func.func @dec_stage_kernel(%arg0: i32, %arg1: memref<392x64xbf16, #tpu.memory_space<vmem>>, %arg2: memref<64x128xbf16, #tpu.memory_space<vmem>>, %arg3: memref<1x128xf32, #tpu.memory_space<vmem>>, %arg4: memref<392x128xbf16, #tpu.memory_space<vmem>>) attributes {dimension_semantics = [#tpu.dimension_semantics<parallel>], iteration_bounds = array<i64: 1>, scalar_prefetch = 0 : i64, scratch_operands = 0 : i64, tpu.core_type = #tpu.core_type<tc>, window_params = [{transform_indices = @transform_0, window_bounds = array<i64: 392, 64>}, {pipeline_mode = #tpu.pipeline_mode<synchronous>, transform_indices = @transform_1, window_bounds = array<i64: 64, 128>}, {pipeline_mode = #tpu.pipeline_mode<synchronous>, transform_indices = @transform_2, window_bounds = array<i64: 1, 128>}, {transform_indices = @transform_3, window_bounds = array<i64: 392, 128>}]} {
    %c0 = arith.constant 0 : index
    %c0_0 = arith.constant 0 : index
    %0 = vector.load %arg1[%c0, %c0_0] : memref<392x64xbf16, #tpu.memory_space<vmem>>, vector<392x64xbf16>
    %c0_1 = arith.constant 0 : index
    %c0_2 = arith.constant 0 : index
    %1 = vector.load %arg2[%c0_1, %c0_2] : memref<64x128xbf16, #tpu.memory_space<vmem>>, vector<64x128xbf16>
    %cst = arith.constant dense<0.000000e+00> : vector<392x128xf32>
    %2 = tpu.matmul %0, %1, %cst {dimension_numbers = #tpu.dot_dimension_numbers<[1], [0], [0], [1], [0, 0, 1, 1], [], []>} : vector<392x64xbf16>, vector<64x128xbf16>, vector<392x128xf32> -> vector<392x128xf32>
    %c0_3 = arith.constant 0 : index
    %c0_4 = arith.constant 0 : index
    %3 = vector.load %arg3[%c0_3, %c0_4] : memref<1x128xf32, #tpu.memory_space<vmem>>, vector<1x128xf32>
    %4 = vector.broadcast %3 : vector<1x128xf32> to vector<392x128xf32>
    %5 = arith.addf %2, %4 : vector<392x128xf32>
    %cst_5 = arith.constant 5.000000e-01 : f32
    %6 = vector.broadcast %cst_5 : f32 to vector<392x128xf32>
    %7 = arith.mulf %6, %5 : vector<392x128xf32>
    %cst_6 = arith.constant 0.707106769 : f32
    %8 = vector.broadcast %cst_6 : f32 to vector<392x128xf32>
    %9 = arith.mulf %5, %8 : vector<392x128xf32>
    %10 = math.erf %9 : vector<392x128xf32>
    %cst_7 = arith.constant 1.000000e+00 : f32
    %11 = vector.broadcast %cst_7 : f32 to vector<392x128xf32>
    %12 = arith.addf %11, %10 : vector<392x128xf32>
    %13 = arith.mulf %7, %12 : vector<392x128xf32>
    %14 = arith.truncf %13 : vector<392x128xf32> to vector<392x128xbf16>
    %c0_8 = arith.constant 0 : index
    %c0_9 = arith.constant 0 : index
    %15 = vector.load %arg4[%c0_8, %c0_9] : memref<392x128xbf16, #tpu.memory_space<vmem>>, vector<392x128xbf16>
    tpu.vector_store %arg4[%c0_8, %c0_9], %14 {strides = array<i32>} : memref<392x128xbf16, #tpu.memory_space<vmem>>, vector<392x128xbf16>,
    return
  }
  func.func @transform_0(%arg0: i32) -> (i32, i32) {
    %c0_i32 = arith.constant 0 : i32
    %c0_i32_0 = arith.constant 0 : i32
    return %arg0, %c0_i32 : i32, i32
  }
  func.func @transform_1(%arg0: i32) -> (i32, i32) {
    %c0_i32 = arith.constant 0 : i32
    %c0_i32_0 = arith.constant 0 : i32
    %c0_i32_1 = arith.constant 0 : i32
    return %c0_i32, %c0_i32_0 : i32, i32
  }
  func.func @transform_2(%arg0: i32) -> (i32, i32) {
    %c0_i32 = arith.constant 0 : i32
    %c0_i32_0 = arith.constant 0 : i32
    %c0_i32_1 = arith.constant 0 : i32
    return %c0_i32, %c0_i32_0 : i32, i32
  }
  func.func @transform_3(%arg0: i32) -> (i32, i32) {
    %c0_i32 = arith.constant 0 : i32
    %c0_i32_0 = arith.constant 0 : i32
    return %arg0, %c0_i32 : i32, i32
  }
}

module attributes {stable_mosaic.version = 11 : i64} {
  func.func @dec_stage_kernel(%arg0: i32, %arg1: memref<1568x32xbf16, #tpu.memory_space<vmem>>, %arg2: memref<32x128xbf16, #tpu.memory_space<vmem>>, %arg3: memref<1x128xf32, #tpu.memory_space<vmem>>, %arg4: memref<1568x128xbf16, #tpu.memory_space<vmem>>) attributes {dimension_semantics = [#tpu.dimension_semantics<parallel>], iteration_bounds = array<i64: 1>, scalar_prefetch = 0 : i64, scratch_operands = 0 : i64, tpu.core_type = #tpu.core_type<tc>, window_params = [{transform_indices = @transform_0, window_bounds = array<i64: 1568, 32>}, {pipeline_mode = #tpu.pipeline_mode<synchronous>, transform_indices = @transform_1, window_bounds = array<i64: 32, 128>}, {pipeline_mode = #tpu.pipeline_mode<synchronous>, transform_indices = @transform_2, window_bounds = array<i64: 1, 128>}, {transform_indices = @transform_3, window_bounds = array<i64: 1568, 128>}]} {
    %c0 = arith.constant 0 : index
    %c0_0 = arith.constant 0 : index
    %0 = vector.load %arg1[%c0, %c0_0] : memref<1568x32xbf16, #tpu.memory_space<vmem>>, vector<1568x32xbf16>
    %c0_1 = arith.constant 0 : index
    %c0_2 = arith.constant 0 : index
    %1 = vector.load %arg2[%c0_1, %c0_2] : memref<32x128xbf16, #tpu.memory_space<vmem>>, vector<32x128xbf16>
    %cst = arith.constant dense<0.000000e+00> : vector<1568x128xf32>
    %2 = tpu.matmul %0, %1, %cst {dimension_numbers = #tpu.dot_dimension_numbers<[1], [0], [0], [1], [0, 0, 1, 1], [], []>} : vector<1568x32xbf16>, vector<32x128xbf16>, vector<1568x128xf32> -> vector<1568x128xf32>
    %c0_3 = arith.constant 0 : index
    %c0_4 = arith.constant 0 : index
    %3 = vector.load %arg3[%c0_3, %c0_4] : memref<1x128xf32, #tpu.memory_space<vmem>>, vector<1x128xf32>
    %4 = vector.broadcast %3 : vector<1x128xf32> to vector<1568x128xf32>
    %5 = arith.addf %2, %4 : vector<1568x128xf32>
    %cst_5 = arith.constant 5.000000e-01 : f32
    %6 = vector.broadcast %cst_5 : f32 to vector<1568x128xf32>
    %7 = arith.mulf %6, %5 : vector<1568x128xf32>
    %cst_6 = arith.constant 0.707106769 : f32
    %8 = vector.broadcast %cst_6 : f32 to vector<1568x128xf32>
    %9 = arith.mulf %5, %8 : vector<1568x128xf32>
    %10 = math.erf %9 : vector<1568x128xf32>
    %cst_7 = arith.constant 1.000000e+00 : f32
    %11 = vector.broadcast %cst_7 : f32 to vector<1568x128xf32>
    %12 = arith.addf %11, %10 : vector<1568x128xf32>
    %13 = arith.mulf %7, %12 : vector<1568x128xf32>
    %14 = arith.truncf %13 : vector<1568x128xf32> to vector<1568x128xbf16>
    %c0_8 = arith.constant 0 : index
    %c0_9 = arith.constant 0 : index
    %15 = vector.load %arg4[%c0_8, %c0_9] : memref<1568x128xbf16, #tpu.memory_space<vmem>>, vector<1568x128xbf16>
    tpu.vector_store %arg4[%c0_8, %c0_9], %14 {strides = array<i32>} : memref<1568x128xbf16, #tpu.memory_space<vmem>>, vector<1568x128xbf16>,
    return
  }
  func.func @transform_0(%arg0: i32) -> (i32, i32) {
    %c0_i32 = arith.constant 0 : i32
    %c0_i32_0 = arith.constant 0 : i32
    return %arg0, %c0_i32 : i32, i32
  }
  func.func @transform_1(%arg0: i32) -> (i32, i32) {
    %c0_i32 = arith.constant 0 : i32
    %c0_i32_0 = arith.constant 0 : i32
    %c0_i32_1 = arith.constant 0 : i32
    return %c0_i32, %c0_i32_0 : i32, i32
  }
  func.func @transform_2(%arg0: i32) -> (i32, i32) {
    %c0_i32 = arith.constant 0 : i32
    %c0_i32_0 = arith.constant 0 : i32
    %c0_i32_1 = arith.constant 0 : i32
    return %c0_i32, %c0_i32_0 : i32, i32
  }
  func.func @transform_3(%arg0: i32) -> (i32, i32) {
    %c0_i32 = arith.constant 0 : i32
    %c0_i32_0 = arith.constant 0 : i32
    return %arg0, %c0_i32 : i32, i32
  }
}

module attributes {stable_mosaic.version = 11 : i64} {
  func.func @dec_stage_kernel(%arg0: i32, %arg1: memref<1568x32xbf16, #tpu.memory_space<vmem>>, %arg2: memref<32x64xbf16, #tpu.memory_space<vmem>>, %arg3: memref<1x64xf32, #tpu.memory_space<vmem>>, %arg4: memref<1568x64xbf16, #tpu.memory_space<vmem>>) attributes {dimension_semantics = [#tpu.dimension_semantics<parallel>], iteration_bounds = array<i64: 4>, scalar_prefetch = 0 : i64, scratch_operands = 0 : i64, tpu.core_type = #tpu.core_type<tc>, window_params = [{transform_indices = @transform_0, window_bounds = array<i64: 1568, 32>}, {pipeline_mode = #tpu.pipeline_mode<synchronous>, transform_indices = @transform_1, window_bounds = array<i64: 32, 64>}, {pipeline_mode = #tpu.pipeline_mode<synchronous>, transform_indices = @transform_2, window_bounds = array<i64: 1, 64>}, {transform_indices = @transform_3, window_bounds = array<i64: 1568, 64>}]} {
    %c0 = arith.constant 0 : index
    %c0_0 = arith.constant 0 : index
    %0 = vector.load %arg1[%c0, %c0_0] : memref<1568x32xbf16, #tpu.memory_space<vmem>>, vector<1568x32xbf16>
    %c0_1 = arith.constant 0 : index
    %c0_2 = arith.constant 0 : index
    %1 = vector.load %arg2[%c0_1, %c0_2] : memref<32x64xbf16, #tpu.memory_space<vmem>>, vector<32x64xbf16>
    %cst = arith.constant dense<0.000000e+00> : vector<1568x64xf32>
    %2 = tpu.matmul %0, %1, %cst {dimension_numbers = #tpu.dot_dimension_numbers<[1], [0], [0], [1], [0, 0, 1, 1], [], []>} : vector<1568x32xbf16>, vector<32x64xbf16>, vector<1568x64xf32> -> vector<1568x64xf32>
    %c0_3 = arith.constant 0 : index
    %c0_4 = arith.constant 0 : index
    %3 = vector.load %arg3[%c0_3, %c0_4] : memref<1x64xf32, #tpu.memory_space<vmem>>, vector<1x64xf32>
    %4 = vector.broadcast %3 : vector<1x64xf32> to vector<1568x64xf32>
    %5 = arith.addf %2, %4 : vector<1568x64xf32>
    %cst_5 = arith.constant 5.000000e-01 : f32
    %6 = vector.broadcast %cst_5 : f32 to vector<1568x64xf32>
    %7 = arith.mulf %6, %5 : vector<1568x64xf32>
    %cst_6 = arith.constant 0.707106769 : f32
    %8 = vector.broadcast %cst_6 : f32 to vector<1568x64xf32>
    %9 = arith.mulf %5, %8 : vector<1568x64xf32>
    %10 = math.erf %9 : vector<1568x64xf32>
    %cst_7 = arith.constant 1.000000e+00 : f32
    %11 = vector.broadcast %cst_7 : f32 to vector<1568x64xf32>
    %12 = arith.addf %11, %10 : vector<1568x64xf32>
    %13 = arith.mulf %7, %12 : vector<1568x64xf32>
    %14 = arith.truncf %13 : vector<1568x64xf32> to vector<1568x64xbf16>
    %c0_8 = arith.constant 0 : index
    %c0_9 = arith.constant 0 : index
    %15 = vector.load %arg4[%c0_8, %c0_9] : memref<1568x64xbf16, #tpu.memory_space<vmem>>, vector<1568x64xbf16>
    tpu.vector_store %arg4[%c0_8, %c0_9], %14 {strides = array<i32>} : memref<1568x64xbf16, #tpu.memory_space<vmem>>, vector<1568x64xbf16>,
    return
  }
  func.func @transform_0(%arg0: i32) -> (i32, i32) {
    %c0_i32 = arith.constant 0 : i32
    %c0_i32_0 = arith.constant 0 : i32
    return %arg0, %c0_i32 : i32, i32
  }
  func.func @transform_1(%arg0: i32) -> (i32, i32) {
    %c0_i32 = arith.constant 0 : i32
    %c0_i32_0 = arith.constant 0 : i32
    %c0_i32_1 = arith.constant 0 : i32
    return %c0_i32, %c0_i32_0 : i32, i32
  }
  func.func @transform_2(%arg0: i32) -> (i32, i32) {
    %c0_i32 = arith.constant 0 : i32
    %c0_i32_0 = arith.constant 0 : i32
    %c0_i32_1 = arith.constant 0 : i32
    return %c0_i32, %c0_i32_0 : i32, i32
  }
  func.func @transform_3(%arg0: i32) -> (i32, i32) {
    %c0_i32 = arith.constant 0 : i32
    %c0_i32_0 = arith.constant 0 : i32
    return %arg0, %c0_i32 : i32, i32
  }
}

module attributes {stable_mosaic.version = 11 : i64} {
  func.func @dec_stage_kernel(%arg0: i32, %arg1: memref<1792x16xbf16, #tpu.memory_space<vmem>>, %arg2: memref<16x32xbf16, #tpu.memory_space<vmem>>, %arg3: memref<1x32xf32, #tpu.memory_space<vmem>>, %arg4: memref<1792x32xbf16, #tpu.memory_space<vmem>>) attributes {dimension_semantics = [#tpu.dimension_semantics<parallel>], iteration_bounds = array<i64: 14>, scalar_prefetch = 0 : i64, scratch_operands = 0 : i64, tpu.core_type = #tpu.core_type<tc>, window_params = [{transform_indices = @transform_0, window_bounds = array<i64: 1792, 16>}, {pipeline_mode = #tpu.pipeline_mode<synchronous>, transform_indices = @transform_1, window_bounds = array<i64: 16, 32>}, {pipeline_mode = #tpu.pipeline_mode<synchronous>, transform_indices = @transform_2, window_bounds = array<i64: 1, 32>}, {transform_indices = @transform_3, window_bounds = array<i64: 1792, 32>}]} {
    %c0 = arith.constant 0 : index
    %c0_0 = arith.constant 0 : index
    %0 = vector.load %arg1[%c0, %c0_0] : memref<1792x16xbf16, #tpu.memory_space<vmem>>, vector<1792x16xbf16>
    %c0_1 = arith.constant 0 : index
    %c0_2 = arith.constant 0 : index
    %1 = vector.load %arg2[%c0_1, %c0_2] : memref<16x32xbf16, #tpu.memory_space<vmem>>, vector<16x32xbf16>
    %cst = arith.constant dense<0.000000e+00> : vector<1792x32xf32>
    %2 = tpu.matmul %0, %1, %cst {dimension_numbers = #tpu.dot_dimension_numbers<[1], [0], [0], [1], [0, 0, 1, 1], [], []>} : vector<1792x16xbf16>, vector<16x32xbf16>, vector<1792x32xf32> -> vector<1792x32xf32>
    %c0_3 = arith.constant 0 : index
    %c0_4 = arith.constant 0 : index
    %3 = vector.load %arg3[%c0_3, %c0_4] : memref<1x32xf32, #tpu.memory_space<vmem>>, vector<1x32xf32>
    %4 = vector.broadcast %3 : vector<1x32xf32> to vector<1792x32xf32>
    %5 = arith.addf %2, %4 : vector<1792x32xf32>
    %6 = arith.truncf %5 : vector<1792x32xf32> to vector<1792x32xbf16>
    %c0_5 = arith.constant 0 : index
    %c0_6 = arith.constant 0 : index
    %7 = vector.load %arg4[%c0_5, %c0_6] : memref<1792x32xbf16, #tpu.memory_space<vmem>>, vector<1792x32xbf16>
    tpu.vector_store %arg4[%c0_5, %c0_6], %6 {strides = array<i32>} : memref<1792x32xbf16, #tpu.memory_space<vmem>>, vector<1792x32xbf16>,
    return
  }
  func.func @transform_0(%arg0: i32) -> (i32, i32) {
    %c0_i32 = arith.constant 0 : i32
    %c0_i32_0 = arith.constant 0 : i32
    return %arg0, %c0_i32 : i32, i32
  }
  func.func @transform_1(%arg0: i32) -> (i32, i32) {
    %c0_i32 = arith.constant 0 : i32
    %c0_i32_0 = arith.constant 0 : i32
    %c0_i32_1 = arith.constant 0 : i32
    return %c0_i32, %c0_i32_0 : i32, i32
  }
  func.func @transform_2(%arg0: i32) -> (i32, i32) {
    %c0_i32 = arith.constant 0 : i32
    %c0_i32_0 = arith.constant 0 : i32
    %c0_i32_1 = arith.constant 0 : i32
    return %c0_i32, %c0_i32_0 : i32, i32
  }
  func.func @transform_3(%arg0: i32) -> (i32, i32) {
    %c0_i32 = arith.constant 0 : i32
    %c0_i32_0 = arith.constant 0 : i32
    return %arg0, %c0_i32 : i32, i32
  }
}

</mosaic_0001>

<bundles_post_ra>
// kernel: _lambda_.7
= control target key start
LH: loop header
LB: loop body
LE: loop exit
PB: predicated region body
PF: predicated region fallthrough
CT: control target
= control target key end

     0   :  { %8 = vsyncpa [#allocation3], 0  ;;  %s825_s0 = inlined_call_operand.vmem [shape: bf16[98,32], index: 0, kind: input, shape index: {}]   ;;  %s826_s1 = inlined_call_operand.hbm [shape: bf16[32,256], index: 1, kind: input, shape index: {}]   ;;  %s827_s2 = inlined_call_operand.hbm [shape: f32[1,256], index: 2, kind: input, shape index: {}]   ;;  %s828_s3 = inlined_call_operand.vmem [shape: bf16[98,256], index: 3, kind: output, shape index: {}]  }
   0x1   :  { %9 = vsyncpa [#allocation5], 0  ;;  %s637_s12 = smov [#allocation2]  }
   0x2   :  { %s17_s13 = sshll.u32 %s637_s12, 4  ;;  %s18_s13 = int_to_ptr.vmem [resolvable:$true] %s17_s13 }
   0x3   :  { %s601_s14 = scalar_lea.vmem %s18_s13, 512  ;;  %p606_p1 = scmp.lt.s32.totalorder %s18_s13, %s18_s13 }
   0x4   :  { %p602_p0 = scmp.ne.s32.totalorder %s18_s13, %s601_s14  ;;  %p607_p2 = scmp.lt.s32.totalorder %s601_s14, %s601_s14 }
   0x6   :  { %p608_p3 = por %p607_p2, %p606_p1 }
   0x8   :  { %p609_p4 = pnand %p608_p3, %p602_p0 }
   0xa   :  { %612 = shalt.err (!%p609_p4)
}
   0xb   :  { %s638_s15 = smov 128   ;;  %s639_s16 = smov 8  }
   0xc   :  { %23 = dma.hbm_to_vmem [thread:$0]  %s826_s1, 512, %s18_s13, [#allocation3], %s638_s15, %s638_s15, %s639_s16  }
   0xd   :  { %s640_s19 = smov [#allocation4]  }
   0xe   :  { %s30_s20 = sshll.u32 %s640_s19, 4  ;;  %s31_s20 = int_to_ptr.vmem [resolvable:$true] %s30_s20 }
   0xf   :  { %s621_s21 = scalar_lea.vmem %s31_s20, 32  ;;  %p626_p6 = scmp.lt.s32.totalorder %s31_s20, %s31_s20 }
  0x10   :  { %p622_p5 = scmp.ne.s32.totalorder %s31_s20, %s621_s21  ;;  %p627_p7 = scmp.lt.s32.totalorder %s621_s21, %s621_s21 }
  0x12   :  { %p628_p8 = por %p627_p7, %p626_p6 }
  0x14   :  { %p629_p9 = pnand %p628_p8, %p622_p5 }
  0x16   :  { %632 = shalt.err (!%p629_p9)
}
  0x17   :  { %33 = dma.hbm_to_vmem [thread:$0]  %s827_s2, 32, %s31_s20, [#allocation5]  }
  0x18   :  { %633 = dma.done.wait [#allocation3], 512  }
  0x19   :  { %634 = vsyncadd [#allocation3], 4294966784 }
  0x1a   :  { %635 = dma.done.wait [#allocation5], 32  }
  0x1b   :  { %636 = vsyncadd [#allocation5], 4294967264  ;;  %v641_v0 = vmov 0   ;;  %v528_v1 = vld [vmem:[#allocation2 + $0x14] ss:$8 sps:$4 sm:$0xff]   ;;  %v534_v5 = vld [vmem:[%s825_s0] sm:$0xff]   ;;  %v60_v12 = vlaneseq }
  0x1c   :  { %177 = vmatprep.mubr.bf16.mxu0 %v641_v0  ;;  %217 = vmatprep.mubr.bf16.mxu1 %v641_v0  ;;  %v530_v2 = vld [vmem:[#allocation2 + $0x10] ss:$8 sps:$4 sm:$0xff]   ;;  %v531_v3 = vld [vmem:[#allocation2 + $0x4] ss:$8 sps:$4 sm:$0xff]   ;;  %v533_v4 = vld [vmem:[#allocation2] ss:$8 sps:$4 sm:$0xff]  }
  0x1d   :  { %157 = vmatprep.subr.bf16.mxu0 %v528_v1  ;;  %519 = vmatprep.subr.bf16.mxu1 %v528_v1  ;;  %v535_v6 = vld [vmem:[%s825_s0 + $0x20] sm:$0xff]   ;;  %vm123_vm0 = vcmask 261120   ;;  %v536_v7 = vld [vmem:[%s825_s0 + $0x8] sm:$0xff]   ;;  %v538_v9 = vld [vmem:[%s825_s0 + $0x10] sm:$0xff]   ;;  %v61_v13 = vshrl.u32 %v60_v12, 7 }
  0x1e   :  { %158 = vmatpush1.bf16.msra.mxu0 %v530_v2  ;;  %521 = vmatpush1.bf16.msra.mxu1 %v530_v2  ;;  %v537_v8 = vld [vmem:[%s825_s0 + $0x28] sm:$0xff]   ;;  %v539_v10 = vld [vmem:[%s825_s0 + $0x30] ss:$0 sps:$4 sm:$0x11]   ;;  %v540_v11 = vld [vmem:[%s825_s0 + $0x18] sm:$0xff]  }
  0x1f   :  { %159 = vmatprep.subr.bf16.mxu0 %v531_v3  ;;  %520 = vmatprep.subr.bf16.mxu1 %v531_v3  ;;  %v62_v14 = vsub.s32 0, %v61_v13  ;;  %v58_v15 = vld [vmem:[#allocation4] sm:$0x3]  ;;  %v66_v16 = vsub.s32 1, %v61_v13 }
  0x21   :  { %v696_v17 = vrot.slane %v58_v15, %v62_v14  ;;  %v698_v20 = vrot.slane %v58_v15, %v66_v16 }
  0x22   :  { %160 = vmatpush1.bf16.msra.mxu0 %v533_v4  ;;  %522 = vmatpush1.bf16.msra.mxu1 %v533_v4 }
  0x25   :  { %486 = vmatmul.mubr.msk.bf16.vlgmr.msra.gmra.mxu0 %vm123_vm0, %v534_v5  ;;  %490 = vmatmul.mubr.msk.bf16.vlgmr.msra.gmra.mxu1 %vm123_vm0, %v535_v6 }
  0x26   :  { %187 = vmatprep.mubr.bf16.mxu0 %v641_v0  ;;  %227 = vmatprep.mubr.bf16.mxu1 %v641_v0 }
  0x2d   :  { %487 = vmatmul.mubr.msk.bf16.gmra.mxu0 %vm123_vm0, %v536_v7  ;;  %491 = vmatmul.mubr.msk.bf16.gmra.mxu1 %vm123_vm0, %v537_v8 }
  0x2e   :  { %197 = vmatprep.mubr.bf16.mxu0 %v641_v0  ;;  %237 = vmatprep.mubr.bf16.mxu1 %v641_v0 }
  0x35   :  { %488 = vmatmul.mubr.msk.bf16.gmra.mxu0 %vm123_vm0, %v538_v9  ;;  %492 = vmatmul.mubr.msk.bf16.gmra.mxu1 %vm123_vm0, %v539_v10 }
  0x36   :  { %207 = vmatprep.mubr.bf16.mxu0 %v641_v0 }
  0x3d   :  { %489 = vmatmul.mubr.msk.bf16.gmra.mxu0 %vm123_vm0, %v540_v11 }
  0xe5   :  { %v179_v18 = vpop.f32.mrf.mxu0  ;;  %v219_v19 = vpop.f32.mrf.mxu1 }
  0xe6   :  { %v180_v21 = vadd.f32 %v179_v18, %v696_v17  ;;  %v220_v22 = vadd.f32 %v219_v19, %v696_v17 }
  0xe7   :  { %v181_v23 = vpop.f32.mrf.mxu0  ;;  %v221_v24 = vpop.f32.mrf.mxu1 }
  0xe8   :  { %v272_v25 = vmul.f32 0.70710677, %v180_v21  ;;  %v288_v26 = vmul.f32 0.70710677, %v220_v22  ;;  %v182_v27 = vadd.f32 %v181_v23, %v698_v20  ;;  %v222_v28 = vadd.f32 %v221_v24, %v698_v20 }
  0xe9   :  { %v183_v29 = vpop.f32.mrf.mxu0  ;;  %v223_v30 = vpop.f32.mrf.mxu1  ;;  %v246_v60 = vmul.f32 0.5, %v180_v21  ;;  %v262_v62 = vmul.f32 0.5, %v220_v22 }
  0xea   :  { %541 = verf.f32 %v272_v25  ;;  %v184_v31 = vadd.f32 %v183_v29, %v696_v17  ;;  %v224_v32 = vadd.f32 %v223_v30, %v696_v17  ;;  %v273_v33 = vmul.f32 0.70710677, %v182_v27 }
  0xeb   :  { %543 = verf.f32 %v288_v26  ;;  %v185_v34 = vpop.f32.mrf.mxu0  ;;  %v225_v35 = vpop.f32.mrf.mxu1  ;;  %v289_v36 = vmul.f32 0.70710677, %v222_v28  ;;  %v247_v7 = vmul.f32 0.5, %v182_v27  ;;  %v263_v8 = vmul.f32 0.5, %v222_v28 }
  0xec   :  { %v274_v37 = vmul.f32 0.70710677, %v184_v31  ;;  %545 = verf.f32 %v273_v33  ;;  %v290_v38 = vmul.f32 0.70710677, %v224_v32  ;;  %v186_v39 = vadd.f32 %v185_v34, %v698_v20 }
  0xed   :  { %v226_v40 = vadd.f32 %v225_v35, %v698_v20  ;;  %v189_v41 = vpop.f32.mrf.mxu0  ;;  %v229_v42 = vpop.f32.mrf.mxu1  ;;  %547 = verf.f32 %v289_v36  ;;  %v248_v14 = vmul.f32 0.5, %v184_v31  ;;  %v264_v18 = vmul.f32 0.5, %v224_v32 }
  0xee   :  { %v190_v43 = vadd.f32 %v189_v41, %v696_v17  ;;  %v230_v44 = vadd.f32 %v229_v42, %v696_v17  ;;  %549 = verf.f32 %v274_v37  ;;  %v275_v45 = vmul.f32 0.70710677, %v186_v39 }
  0xef   :  { %v191_v46 = vpop.f32.mrf.mxu0  ;;  %v231_v47 = vpop.f32.mrf.mxu1  ;;  %551 = verf.f32 %v290_v38  ;;  %v291_v48 = vmul.f32 0.70710677, %v226_v40  ;;  %v249_v19 = vmul.f32 0.5, %v186_v39  ;;  %v265_v25 = vmul.f32 0.5, %v226_v40 }
  0xf0   :  { %v276_v49 = vmul.f32 0.70710677, %v190_v43  ;;  %553 = verf.f32 %v275_v45  ;;  %v292_v50 = vmul.f32 0.70710677, %v230_v44  ;;  %v711_v51 = vadd.f32 %v191_v46, %v698_v20 }
  0xf1   :  { %v193_v52 = vpop.f32.mrf.mxu0  ;;  %v233_v53 = vpop.f32.mrf.mxu1  ;;  %555 = verf.f32 %v291_v48  ;;  %v714_v54 = vadd.f32 %v231_v47, %v698_v20  ;;  %v250_v26 = vmul.f32 0.5, %v190_v43  ;;  %v266_v30 = vmul.f32 0.5, %v230_v44 }
  0xf2   :  { %v717_v55 = vadd.f32 %v193_v52, %v696_v17  ;;  %v720_v56 = vadd.f32 %v233_v53, %v696_v17  ;;  %557 = verf.f32 %v276_v49  ;;  %v277_v57 = vmul.f32 0.70710677, %v711_v51 }
  0xf3   :  { %v195_v58 = vpop.f32.mrf.mxu0  ;;  %v235_v59 = vpop.f32.mrf.mxu1  ;;  %559 = verf.f32 %v292_v50  ;;  %v293_v61 = vmul.f32 0.70710677, %v714_v54  ;;  %v251_v53 = vmul.f32 0.5, %v711_v51 }
  0xf4   :  { %561 = verf.f32 %v277_v57  ;;  %v278_v63 = vmul.f32 0.70710677, %v717_v55  ;;  %v294_v0 = vmul.f32 0.70710677, %v720_v56  ;;  %v727_v3 = vadd.f32 %v195_v58, %v698_v20 }
  0xf5   :  { %v199_v1 = vpop.f32.mrf.mxu0  ;;  %v239_v2 = vpop.f32.mrf.mxu1  ;;  %563 = verf.f32 %v293_v61  ;;  %v730_v4 = vadd.f32 %v235_v59, %v698_v20 }
  0xf6   :  { %v733_v5 = vadd.f32 %v199_v1, %v696_v17  ;;  %565 = verf.f32 %v278_v63  ;;  %v736_v9 = vadd.f32 %v239_v2, %v696_v17  ;;  %v279_v15 = vmul.f32 0.70710677, %v727_v3 }
  0xf7   :  { %v542_v6 = vpop.eup %541  ;;  %v201_v10 = vpop.f32.mrf.mxu0  ;;  %567 = verf.f32 %v294_v0  ;;  %v295_v21 = vmul.f32 0.70710677, %v730_v4 }
  0xf8   :  { %v241_v11 = vpop.f32.mrf.mxu1  ;;  %v544_v12 = vpop.eup %543  ;;  %v324_v13 = vadd.f32 1.0, %v542_v6  ;;  %569 = verf.f32 %v279_v15  ;;  %v280_v27 = vmul.f32 0.70710677, %v733_v5  ;;  %v296_v31 = vmul.f32 0.70710677, %v736_v9 }
  0xf9   :  { %v340_v16 = vadd.f32 1.0, %v544_v12  ;;  %v203_v22 = vpop.f32.mrf.mxu0  ;;  %v546_v24 = vpop.eup %545  ;;  %571 = verf.f32 %v295_v21  ;;  %v743_v37 = vadd.f32 %v201_v10, %v698_v20  ;;  %v746_v42 = vadd.f32 %v241_v11, %v698_v20 }
  0xfa   :  { %v243_v23 = vpop.f32.mrf.mxu1  ;;  %v548_v28 = vpop.eup %547  ;;  %v325_v29 = vadd.f32 1.0, %v546_v24  ;;  %v350_v35 = vmul.f32 %v324_v13, %v246_v60  ;;  %573 = verf.f32 %v280_v27  ;;  %v750_v48 = vadd.f32 %v203_v22, %v696_v17 }
  0xfb   :  { %v205_v33 = vpop.f32.mrf.mxu0  ;;  %v550_v32 = vpop.eup %549  ;;  %v341_v36 = vadd.f32 1.0, %v548_v28  ;;  %v366_v39 = vmul.f32 %v340_v16, %v262_v62  ;;  %v281_v47 = vmul.f32 0.70710677, %v743_v37  ;;  %575 = verf.f32 %v296_v31 }
  0xfc   :  { %v244_v34 = vpop.f32.mrf.mxu1  ;;  %v552_v38 = vpop.eup %551  ;;  %v351_v40 = vmul.f32 %v325_v29, %v247_v7  ;;  %v326_v41 = vadd.f32 1.0, %v550_v32  ;;  %v297_v2 = vmul.f32 0.70710677, %v746_v42  ;;  %v762_v10 = vadd.f32 %v205_v33, %v698_v20 }
  0xfd   :  { %v209_v43 = vpop.f32.mrf.mxu0  ;;  %v554_v44 = vpop.eup %553  ;;  %v367_v45 = vmul.f32 %v341_v36, %v263_v8  ;;  %v342_v46 = vadd.f32 1.0, %v552_v38  ;;  %577 = verf.f32 %v281_v47  ;;  %v282_v8 = vmul.f32 0.70710677, %v750_v48 }
  0xfe   :  { %v556_v49 = vpop.eup %555  ;;  %v506_v50 = vpack.c.bf16 %v351_v40, %v350_v35  ;;  %v327_v52 = vadd.f32 1.0, %v554_v44  ;;  %v352_v59 = vmul.f32 %v326_v41, %v248_v14  ;;  %v267_v14 = vmul.f32 0.5, %v714_v54 }
  0xff   :  { %v558_v57 = vpop.eup %557  ;;  %v514_v58 = vpack.c.bf16 %v367_v45, %v366_v39  ;;  %v343_v60 = vadd.f32 1.0, %v556_v49  ;;  %v211_v61 = vpop.f32.mrf.mxu0  ;;  %v368_v63 = vmul.f32 %v342_v46, %v264_v18  ;;  %579 = verf.f32 %v297_v2 }
 0x100   :  { %v560_v62 = vpop.eup %559  ;;  %456 = vst [vmem:[%s828_s3] sm:$0xff] %v506_v50  ;;  %v353_v0 = vmul.f32 %v327_v52, %v249_v19  ;;  %v328_v1 = vadd.f32 1.0, %v558_v57  ;;  %v252_v19 = vmul.f32 0.5, %v717_v55  ;;  %581 = verf.f32 %v282_v8 }
 0x101   :  { %v562_v6 = vpop.eup %561  ;;  %464 = vst [vmem:[%s828_s3 + $0x40] sm:$0xff] %v514_v58  ;;  %v369_v51 = vmul.f32 %v343_v60, %v265_v25  ;;  %v344_v7 = vadd.f32 1.0, %v560_v62  ;;  %v213_v21 = vpop.f32.mrf.mxu0  ;;  %v283_v27 = vmul.f32 0.70710677, %v762_v10  ;;  %v774_v55 = vadd.f32 %v209_v43, %v696_v17 }
 0x102   :  { %v564_v11 = vpop.eup %563  ;;  %v507_v12 = vpack.c.bf16 %v353_v0, %v352_v59  ;;  %v329_v13 = vadd.f32 1.0, %v562_v6  ;;  %v354_v23 = vmul.f32 %v328_v1, %v250_v26  ;;  %v777_v29 = vadd.f32 %v211_v61, %v698_v20 }
 0x103   :  { %v566_v15 = vpop.eup %565  ;;  %v515_v16 = vpack.c.bf16 %v369_v51, %v368_v63  ;;  %v345_v18 = vadd.f32 1.0, %v564_v11  ;;  %v370_v24 = vmul.f32 %v344_v7, %v266_v30  ;;  %583 = verf.f32 %v283_v27  ;;  %v215_v39 = vpop.f32.mrf.mxu0 }
 0x104   :  { %v568_v22 = vpop.eup %567  ;;  %457 = vst [vmem:[%s828_s3 + $0x8] sm:$0xff] %v507_v12  ;;  %v355_v25 = vmul.f32 %v329_v13, %v251_v53  ;;  %v330_v28 = vadd.f32 1.0, %v566_v15  ;;  %v780_v26 = vadd.f32 %v213_v21, %v696_v17  ;;  %v268_v35 = vmul.f32 0.5, %v720_v56 }
 0x105   :  { %465 = vst [vmem:[%s828_s3 + $0x48] sm:$0xff] %v515_v16  ;;  %v371_v54 = vmul.f32 %v345_v18, %v267_v14  ;;  %v570_v31 = vpop.eup %569  ;;  %v346_v34 = vadd.f32 1.0, %v568_v22  ;;  %v253_v36 = vmul.f32 0.5, %v727_v3  ;;  %v269_v41 = vmul.f32 0.5, %v730_v4 }
 0x106   :  { %v508_v33 = vpack.c.bf16 %v355_v25, %v354_v23  ;;  %v572_v30 = vpop.eup %571  ;;  %v331_v38 = vadd.f32 1.0, %v570_v31  ;;  %v284_v44 = vmul.f32 0.70710677, %v774_v55  ;;  %v285_v17 = vmul.f32 0.70710677, %v777_v29 }
 0x107   :  { %v516_v32 = vpack.c.bf16 %v371_v54, %v370_v24  ;;  %v574_v40 = vpop.eup %573  ;;  %v347_v43 = vadd.f32 1.0, %v572_v30  ;;  %v356_v56 = vmul.f32 %v330_v28, %v252_v19  ;;  %v286_v45 = vmul.f32 0.70710677, %v780_v26 }
 0x108   :  { %458 = vst [vmem:[%s828_s3 + $0x10] sm:$0xff] %v508_v33  ;;  %v357_v3 = vmul.f32 %v331_v38, %v253_v36  ;;  %v372_v46 = vmul.f32 %v346_v34, %v268_v35  ;;  %585 = verf.f32 %v284_v44  ;;  %v216_v49 = vadd.f32 %v215_v39, %v698_v20  ;;  %v576_v50 = vpop.eup %575 }
 0x109   :  { %466 = vst [vmem:[%s828_s3 + $0x50] sm:$0xff] %v516_v32  ;;  %v373_v47 = vmul.f32 %v347_v43, %v269_v41  ;;  %v332_v52 = vadd.f32 1.0, %v574_v40  ;;  %587 = verf.f32 %v285_v17  ;;  %v254_v58 = vmul.f32 0.5, %v733_v5 }
 0x10a   :  { %v509_v4 = vpack.c.bf16 %v357_v3, %v356_v56  ;;  %v578_v53 = vpop.eup %577  ;;  %589 = verf.f32 %v286_v45  ;;  %v255_v59 = vmul.f32 0.5, %v743_v37  ;;  %v287_v61 = vmul.f32 0.70710677, %v216_v49 }
 0x10b   :  { %v517_v57 = vpack.c.bf16 %v373_v47, %v372_v46  ;;  %v333_v60 = vadd.f32 1.0, %v578_v53  ;;  %v348_v20 = vadd.f32 1.0, %v576_v50  ;;  %v358_v63 = vmul.f32 %v332_v52, %v254_v58 }
 0x10c   :  { %459 = vst [vmem:[%s828_s3 + $0x18] sm:$0xff] %v509_v4  ;;  %v580_v62 = vpop.eup %579  ;;  %591 = verf.f32 %v287_v61  ;;  %v270_v2 = vmul.f32 0.5, %v736_v9  ;;  %v271_v6 = vmul.f32 0.5, %v746_v42  ;;  %v256_v13 = vmul.f32 0.5, %v750_v48 }
 0x10d   :  { %467 = vst [vmem:[%s828_s3 + $0x58] sm:$0xff] %v517_v57  ;;  %v359_v0 = vmul.f32 %v333_v60, %v255_v59  ;;  %v582_v1 = vpop.eup %581  ;;  %v349_v51 = vadd.f32 1.0, %v580_v62  ;;  %v257_v14 = vmul.f32 0.5, %v762_v10  ;;  %v258_v23 = vmul.f32 0.5, %v774_v55 }
 0x10e   :  { %v374_v7 = vmul.f32 %v348_v20, %v270_v2  ;;  %v334_v8 = vadd.f32 1.0, %v582_v1  ;;  %v259_v24 = vmul.f32 0.5, %v777_v29  ;;  %v260_v31 = vmul.f32 0.5, %v780_v26 }
 0x10f   :  { %v510_v5 = vpack.c.bf16 %v359_v0, %v358_v63  ;;  %v375_v37 = vmul.f32 %v349_v51, %v271_v6  ;;  %v261_v33 = vmul.f32 0.5, %v216_v49 }
 0x110   :  { %v584_v11 = vpop.eup %583  ;;  %v360_v9 = vmul.f32 %v334_v8, %v256_v13 }
 0x111   :  { %460 = vst [vmem:[%s828_s3 + $0x20] sm:$0xff] %v510_v5  ;;  %v518_v12 = vpack.c.bf16 %v375_v37, %v374_v7  ;;  %v335_v15 = vadd.f32 1.0, %v584_v11 }
 0x113   :  { %468 = vst [vmem:[%s828_s3 + $0x60] sm:$0x11] %v518_v12  ;;  %v361_v42 = vmul.f32 %v335_v15, %v257_v14 }
 0x115   :  { %v586_v16 = vpop.eup %585  ;;  %v511_v19 = vpack.c.bf16 %v361_v42, %v360_v9 }
 0x116   :  { %v588_v18 = vpop.eup %587  ;;  %v336_v21 = vadd.f32 1.0, %v586_v16 }
 0x117   :  { %v590_v22 = vpop.eup %589  ;;  %v337_v25 = vadd.f32 1.0, %v588_v18  ;;  %461 = vst [vmem:[%s828_s3 + $0x28] sm:$0xff] %v511_v19 }
 0x118   :  { %v362_v48 = vmul.f32 %v336_v21, %v258_v23  ;;  %v338_v27 = vadd.f32 1.0, %v590_v22 }
 0x119   :  { %v363_v10 = vmul.f32 %v337_v25, %v259_v24  ;;  %v592_v54 = vpop.eup %591 }
 0x11a   :  { %v339_v34 = vadd.f32 1.0, %v592_v54  ;;  %v364_v55 = vmul.f32 %v338_v27, %v260_v31 }
 0x11b   :  { %v512_v28 = vpack.c.bf16 %v363_v10, %v362_v48 }
 0x11c   :  { %v365_v29 = vmul.f32 %v339_v34, %v261_v33 }
 0x11d   :  { %462 = vst [vmem:[%s828_s3 + $0x30] sm:$0xff] %v512_v28 }
 0x11e   :  { %v513_v30 = vpack.c.bf16 %v365_v29, %v364_v55 }
 0x120   :  { %463 = vst [vmem:[%s828_s3 + $0x38] sm:$0xff] %v513_v30 }
 0x121   :  { %473 = vsyncpa [#allocation3], 1 }
 0x122   :  { %474 = vsyncpa [#allocation5], 1 }

// kernel: _lambda_.8
= control target key start
LH: loop header
LB: loop body
LE: loop exit
PB: predicated region body
PF: predicated region fallthrough
CT: control target
= control target key end

     0   :  { %8 = vsyncpa [#allocation3], 0  ;;  %s2159_s0 = inlined_call_operand.vmem [shape: bf16[392,64], index: 0, kind: input, shape index: {}]   ;;  %s2160_s1 = inlined_call_operand.hbm [shape: bf16[64,128], index: 1, kind: input, shape index: {}]   ;;  %s2161_s2 = inlined_call_operand.hbm [shape: f32[1,128], index: 2, kind: input, shape index: {}]   ;;  %s2162_s3 = inlined_call_operand.vmem [shape: bf16[392,128], index: 3, kind: output, shape index: {}]  }
   0x1   :  { %9 = vsyncpa [#allocation5], 0  ;;  %s1675_s12 = smov [#allocation2]  }
   0x2   :  { %s17_s13 = sshll.u32 %s1675_s12, 4  ;;  %s18_s13 = int_to_ptr.vmem [resolvable:$true] %s17_s13 }
   0x3   :  { %s1639_s14 = scalar_lea.vmem %s18_s13, 512  ;;  %p1644_p1 = scmp.lt.s32.totalorder %s18_s13, %s18_s13 }
   0x4   :  { %p1640_p0 = scmp.ne.s32.totalorder %s18_s13, %s1639_s14  ;;  %p1645_p2 = scmp.lt.s32.totalorder %s1639_s14, %s1639_s14 }
   0x6   :  { %p1646_p3 = por %p1645_p2, %p1644_p1 }
   0x8   :  { %p1647_p4 = pnand %p1646_p3, %p1640_p0 }
   0xa   :  { %1650 = shalt.err (!%p1647_p4)
}
   0xb   :  { %s1676_s15 = smov 64   ;;  %s1677_s16 = smov 4  }
   0xc   :  { %23 = dma.hbm_to_vmem [thread:$0]  %s2160_s1, 512, %s18_s13, [#allocation3], %s1676_s15, %s1676_s15, %s1677_s16  }
   0xd   :  { %s1678_s19 = smov [#allocation4]  }
   0xe   :  { %s30_s20 = sshll.u32 %s1678_s19, 4  ;;  %s31_s20 = int_to_ptr.vmem [resolvable:$true] %s30_s20 }
   0xf   :  { %s1659_s21 = scalar_lea.vmem %s31_s20, 16  ;;  %s1663_s22 = scalar_lea.vmem %s31_s20, 32 }
  0x10   :  { %p1660_p5 = scmp.ne.s32.totalorder %s31_s20, %s1659_s21  ;;  %p1664_p6 = scmp.lt.s32.totalorder %s31_s20, %s31_s20 }
  0x11   :  { %p1665_p7 = scmp.lt.s32.totalorder %s1663_s22, %s1659_s21 }
  0x13   :  { %p1666_p8 = por %p1665_p7, %p1664_p6 }
  0x15   :  { %p1667_p9 = pnand %p1666_p8, %p1660_p5 }
  0x17   :  { %1670 = shalt.err (!%p1667_p9)
}
  0x18   :  { %33 = dma.hbm_to_vmem [thread:$0]  %s2161_s2, 16, %s31_s20, [#allocation5]  }
  0x19   :  { %1671 = dma.done.wait [#allocation3], 512  }
  0x1a   :  { %1672 = vsyncadd [#allocation3], 4294966784 }
  0x1b   :  { %1673 = dma.done.wait [#allocation5], 16  }
  0x1c   :  { %1674 = vsyncadd [#allocation5], 4294967280  ;;  %v1679_v0 = vmov 0.0   ;;  %vm1680_vm0 = vmmov 0   ;;  %v1504_v1 = vld [vmem:[#allocation2 + $0x18] sm:$0xff]   ;;  %v1505_v2 = vld [vmem:[#allocation2 + $0x10] sm:$0xff]  }
  0x1d   :  { %1382 = vmatprep.subr.bf16.mxu0 %v1679_v0  ;;  %1490 = vmatprep.subr.bf16.mxu1 %v1679_v0  ;;  %v1506_v3 = vld [vmem:[#allocation2 + $0x8] sm:$0xff]   ;;  %v1507_v4 = vld [vmem:[#allocation2] sm:$0xff]   ;;  %vm252_vm1 = vcmask 523264   ;;  %v1511_v8 = vld [vmem:[%s2159_s0 + $0x70] sm:$0xff]  }
  0x1e   :  { %1390 = vmatprep.mubr.msk.bf16.mxu0 %vm1680_vm0, %v1679_v0  ;;  %1442 = vmatprep.mubr.msk.bf16.mxu1 %vm1680_vm0, %v1679_v0  ;;  %v1508_v5 = vld [vmem:[%s2159_s0] sm:$0xff]   ;;  %v1509_v6 = vld [vmem:[%s2159_s0 + $0x68] sm:$0xff]   ;;  %v1512_v9 = vld [vmem:[%s2159_s0 + $0x10] sm:$0xff]  }
  0x1f   :  { %1383 = vmatpush3.bf16.msra.mxu0 %v1504_v1  ;;  %1494 = vmatpush3.bf16.msra.mxu1 %v1504_v1  ;;  %v1510_v7 = vld [vmem:[%s2159_s0 + $0x8] sm:$0xff]   ;;  %v1513_v10 = vld [vmem:[%s2159_s0 + $0x78] sm:$0xff]   ;;  %v1515_v12 = vld [vmem:[%s2159_s0 + $0x80] sm:$0xff]  }
  0x20   :  { %1384 = vmatprep.subr.bf16.mxu0 %v1679_v0  ;;  %1491 = vmatprep.subr.bf16.mxu1 %v1679_v0  ;;  %v1514_v11 = vld [vmem:[%s2159_s0 + $0x18] sm:$0xff]   ;;  %v1516_v13 = vld [vmem:[%s2159_s0 + $0x20] sm:$0xff]   ;;  %v1517_v14 = vld [vmem:[%s2159_s0 + $0x88] sm:$0xff]  }
  0x21   :  { %v1518_v15 = vld [vmem:[%s2159_s0 + $0x28] sm:$0xff]   ;;  %v1519_v16 = vld [vmem:[%s2159_s0 + $0x90] sm:$0xff]   ;;  %v1521_v18 = vld [vmem:[%s2159_s0 + $0x98] sm:$0xff]  }
  0x22   :  { %v1520_v17 = vld [vmem:[%s2159_s0 + $0x30] sm:$0xff]   ;;  %v1522_v19 = vld [vmem:[%s2159_s0 + $0x38] sm:$0xff]   ;;  %v1523_v20 = vld [vmem:[%s2159_s0 + $0xa0] sm:$0xff]  }
  0x23   :  { %1385 = vmatpush3.bf16.msra.mxu0 %v1505_v2  ;;  %1495 = vmatpush3.bf16.msra.mxu1 %v1505_v2  ;;  %v1524_v21 = vld [vmem:[%s2159_s0 + $0x40] sm:$0xff]   ;;  %v1525_v22 = vld [vmem:[%s2159_s0 + $0xa8] sm:$0xff]   ;;  %v1527_v24 = vld [vmem:[%s2159_s0 + $0xb0] sm:$0xff]  }
  0x24   :  { %1386 = vmatprep.subr.bf16.mxu0 %v1679_v0  ;;  %1492 = vmatprep.subr.bf16.mxu1 %v1679_v0  ;;  %v1526_v23 = vld [vmem:[%s2159_s0 + $0x48] sm:$0xff]   ;;  %v1528_v25 = vld [vmem:[%s2159_s0 + $0x50] sm:$0xff]   ;;  %v1529_v26 = vld [vmem:[%s2159_s0 + $0xb8] sm:$0xff]  }
  0x25   :  { %v1530_v27 = vld [vmem:[%s2159_s0 + $0x58] sm:$0xff]   ;;  %v1531_v28 = vld [vmem:[%s2159_s0 + $0xc0] ss:$0 sps:$4 sm:$0xff]  }
  0x26   :  { %v1532_v29 = vld [vmem:[%s2159_s0 + $0x60] sm:$0xff]  }
  0x27   :  { %1387 = vmatpush3.bf16.msra.mxu0 %v1506_v3  ;;  %1496 = vmatpush3.bf16.msra.mxu1 %v1506_v3  ;;  %v1865_v30 = vld [vmem:[#allocation4] ss:$0 sm:$0xff] }
  0x28   :  { %1388 = vmatprep.subr.bf16.mxu0 %v1679_v0  ;;  %1493 = vmatprep.subr.bf16.mxu1 %v1679_v0 }
  0x2b   :  { %1389 = vmatpush3.bf16.msra.mxu0 %v1507_v4  ;;  %1497 = vmatpush3.bf16.msra.mxu1 %v1507_v4 }
  0x2e   :  { %1391 = vmatmul.mubr.msk.bf16.vlgmr.msra.gmra.mxu0 %vm252_vm1, %v1508_v5  ;;  %1443 = vmatmul.mubr.msk.bf16.vlgmr.msra.gmra.mxu1 %vm252_vm1, %v1509_v6 }
  0x2f   :  { %1394 = vmatprep.mubr.msk.bf16.mxu0 %vm1680_vm0, %v1679_v0  ;;  %1446 = vmatprep.mubr.msk.bf16.mxu1 %vm1680_vm0, %v1679_v0 }
  0x36   :  { %1395 = vmatmul.mubr.msk.bf16.gmra.mxu0 %vm252_vm1, %v1510_v7  ;;  %1447 = vmatmul.mubr.msk.bf16.gmra.mxu1 %vm252_vm1, %v1511_v8 }
  0x37   :  { %1398 = vmatprep.mubr.msk.bf16.mxu0 %vm1680_vm0, %v1679_v0  ;;  %1450 = vmatprep.mubr.msk.bf16.mxu1 %vm1680_vm0, %v1679_v0 }
  0x3e   :  { %1399 = vmatmul.mubr.msk.bf16.gmra.mxu0 %vm252_vm1, %v1512_v9  ;;  %1451 = vmatmul.mubr.msk.bf16.gmra.mxu1 %vm252_vm1, %v1513_v10 }
  0x3f   :  { %1402 = vmatprep.mubr.msk.bf16.mxu0 %vm1680_vm0, %v1679_v0  ;;  %1454 = vmatprep.mubr.msk.bf16.mxu1 %vm1680_vm0, %v1679_v0 }
  0x46   :  { %1403 = vmatmul.mubr.msk.bf16.gmra.mxu0 %vm252_vm1, %v1514_v11  ;;  %1455 = vmatmul.mubr.msk.bf16.gmra.mxu1 %vm252_vm1, %v1515_v12 }
  0x47   :  { %1406 = vmatprep.mubr.msk.bf16.mxu0 %vm1680_vm0, %v1679_v0  ;;  %1458 = vmatprep.mubr.msk.bf16.mxu1 %vm1680_vm0, %v1679_v0 }
  0x4e   :  { %1407 = vmatmul.mubr.msk.bf16.gmra.mxu0 %vm252_vm1, %v1516_v13  ;;  %1459 = vmatmul.mubr.msk.bf16.gmra.mxu1 %vm252_vm1, %v1517_v14 }
  0x4f   :  { %1410 = vmatprep.mubr.msk.bf16.mxu0 %vm1680_vm0, %v1679_v0  ;;  %1462 = vmatprep.mubr.msk.bf16.mxu1 %vm1680_vm0, %v1679_v0 }
  0x56   :  { %1411 = vmatmul.mubr.msk.bf16.gmra.mxu0 %vm252_vm1, %v1518_v15  ;;  %1463 = vmatmul.mubr.msk.bf16.gmra.mxu1 %vm252_vm1, %v1519_v16 }
  0x57   :  { %1414 = vmatprep.mubr.msk.bf16.mxu0 %vm1680_vm0, %v1679_v0  ;;  %1466 = vmatprep.mubr.msk.bf16.mxu1 %vm1680_vm0, %v1679_v0 }
  0x5e   :  { %1415 = vmatmul.mubr.msk.bf16.gmra.mxu0 %vm252_vm1, %v1520_v17  ;;  %1467 = vmatmul.mubr.msk.bf16.gmra.mxu1 %vm252_vm1, %v1521_v18 }
  0x5f   :  { %1418 = vmatprep.mubr.msk.bf16.mxu0 %vm1680_vm0, %v1679_v0  ;;  %1470 = vmatprep.mubr.msk.bf16.mxu1 %vm1680_vm0, %v1679_v0 }
  0x66   :  { %1419 = vmatmul.mubr.msk.bf16.gmra.mxu0 %vm252_vm1, %v1522_v19  ;;  %1471 = vmatmul.mubr.msk.bf16.gmra.mxu1 %vm252_vm1, %v1523_v20 }
  0x67   :  { %1422 = vmatprep.mubr.msk.bf16.mxu0 %vm1680_vm0, %v1679_v0  ;;  %1474 = vmatprep.mubr.msk.bf16.mxu1 %vm1680_vm0, %v1679_v0 }
  0x6e   :  { %1423 = vmatmul.mubr.msk.bf16.gmra.mxu0 %vm252_vm1, %v1524_v21  ;;  %1475 = vmatmul.mubr.msk.bf16.gmra.mxu1 %vm252_vm1, %v1525_v22 }
  0x6f   :  { %1426 = vmatprep.mubr.msk.bf16.mxu0 %vm1680_vm0, %v1679_v0  ;;  %1478 = vmatprep.mubr.msk.bf16.mxu1 %vm1680_vm0, %v1679_v0 }
  0x76   :  { %1427 = vmatmul.mubr.msk.bf16.gmra.mxu0 %vm252_vm1, %v1526_v23  ;;  %1479 = vmatmul.mubr.msk.bf16.gmra.mxu1 %vm252_vm1, %v1527_v24 }
  0x77   :  { %1430 = vmatprep.mubr.msk.bf16.mxu0 %vm1680_vm0, %v1679_v0  ;;  %1482 = vmatprep.mubr.msk.bf16.mxu1 %vm1680_vm0, %v1679_v0 }
  0x7e   :  { %1431 = vmatmul.mubr.msk.bf16.gmra.mxu0 %vm252_vm1, %v1528_v25  ;;  %1483 = vmatmul.mubr.msk.bf16.gmra.mxu1 %vm252_vm1, %v1529_v26 }
  0x7f   :  { %1434 = vmatprep.mubr.msk.bf16.mxu0 %vm1680_vm0, %v1679_v0  ;;  %1486 = vmatprep.mubr.msk.bf16.mxu1 %vm1680_vm0, %v1679_v0 }
  0x86   :  { %1435 = vmatmul.mubr.msk.bf16.gmra.mxu0 %vm252_vm1, %v1530_v27  ;;  %1487 = vmatmul.mubr.msk.bf16.gmra.mxu1 %vm252_vm1, %v1531_v28 }
  0x87   :  { %1438 = vmatprep.mubr.msk.bf16.mxu0 %vm1680_vm0, %v1679_v0 }
  0x8e   :  { %1439 = vmatmul.mubr.msk.bf16.gmra.mxu0 %vm252_vm1, %v1532_v29 }
  0xee   :  { %v362_v31 = vpop.f32.mrf.mxu0  ;;  %v466_v32 = vpop.f32.mrf.mxu1 }
  0xef   :  { %v363_v33 = vadd.f32 %v1865_v30, %v362_v31  ;;  %v467_v34 = vadd.f32 %v1865_v30, %v466_v32 }
  0xf0   :  { %v1392_v35 = vpop.f32.mrf.mxu0  ;;  %v1444_v36 = vpop.f32.mrf.mxu1 }
  0xf1   :  { %v609_v37 = vmul.f32 0.70710677, %v363_v33  ;;  %v635_v38 = vmul.f32 0.70710677, %v467_v34  ;;  %v560_v15 = vmul.f32 0.5, %v363_v33  ;;  %v586_v20 = vmul.f32 0.5, %v467_v34 }
  0xf2   :  { %v365_v39 = vpop.f32.mrf.mxu0  ;;  %v469_v40 = vpop.f32.mrf.mxu1 }
  0xf3   :  { %1533 = verf.f32 %v609_v37  ;;  %v366_v41 = vadd.f32 %v1865_v30, %v365_v39  ;;  %v470_v42 = vadd.f32 %v1865_v30, %v469_v40 }
  0xf4   :  { %1535 = verf.f32 %v635_v38  ;;  %v1393_v43 = vpop.f32.mrf.mxu0  ;;  %v1445_v44 = vpop.f32.mrf.mxu1 }
  0xf5   :  { %v610_v45 = vmul.f32 0.70710677, %v366_v41  ;;  %v636_v46 = vmul.f32 0.70710677, %v470_v42  ;;  %v561_v21 = vmul.f32 0.5, %v366_v41  ;;  %v587_v25 = vmul.f32 0.5, %v470_v42 }
  0xf6   :  { %v370_v47 = vpop.f32.mrf.mxu0  ;;  %v474_v48 = vpop.f32.mrf.mxu1 }
  0xf7   :  { %1537 = verf.f32 %v610_v45  ;;  %v1872_v49 = vadd.f32 %v1865_v30, %v370_v47  ;;  %v1875_v50 = vadd.f32 %v1865_v30, %v474_v48 }
  0xf8   :  { %1539 = verf.f32 %v636_v46  ;;  %v1396_v51 = vpop.f32.mrf.mxu0  ;;  %v1448_v52 = vpop.f32.mrf.mxu1 }
  0xf9   :  { %v611_v53 = vmul.f32 0.70710677, %v1872_v49  ;;  %v637_v54 = vmul.f32 0.70710677, %v1875_v50  ;;  %v562_v52 = vmul.f32 0.5, %v1872_v49 }
  0xfa   :  { %v373_v55 = vpop.f32.mrf.mxu0  ;;  %v477_v56 = vpop.f32.mrf.mxu1 }
  0xfb   :  { %1541 = verf.f32 %v611_v53  ;;  %v1880_v57 = vadd.f32 %v1865_v30, %v373_v55  ;;  %v1883_v58 = vadd.f32 %v1865_v30, %v477_v56 }
  0xfc   :  { %1543 = verf.f32 %v637_v54  ;;  %v1397_v59 = vpop.f32.mrf.mxu0  ;;  %v1449_v60 = vpop.f32.mrf.mxu1 }
  0xfd   :  { %v612_v61 = vmul.f32 0.70710677, %v1880_v57  ;;  %v638_v62 = vmul.f32 0.70710677, %v1883_v58  ;;  %v588_v59 = vmul.f32 0.5, %v1875_v50  ;;  %v563_v60 = vmul.f32 0.5, %v1880_v57 }
  0xfe   :  { %v378_v63 = vpop.f32.mrf.mxu0  ;;  %v482_v0 = vpop.f32.mrf.mxu1 }
  0xff   :  { %1545 = verf.f32 %v612_v61  ;;  %v1888_v1 = vadd.f32 %v1865_v30, %v378_v63  ;;  %v1891_v2 = vadd.f32 %v1865_v30, %v482_v0  ;;  %v589_v0 = vmul.f32 0.5, %v1883_v58 }
 0x100   :  { %v1534_v3 = vpop.eup %1533  ;;  %1547 = verf.f32 %v638_v62  ;;  %v1400_v4 = vpop.f32.mrf.mxu0 }
 0x101   :  { %v1452_v5 = vpop.f32.mrf.mxu1  ;;  %v1536_v6 = vpop.eup %1535  ;;  %v613_v7 = vmul.f32 0.70710677, %v1888_v1  ;;  %v707_v8 = vadd.f32 1.0, %v1534_v3  ;;  %v639_v9 = vmul.f32 0.70710677, %v1891_v2 }
 0x102   :  { %v381_v10 = vpop.f32.mrf.mxu0  ;;  %v733_v16 = vadd.f32 1.0, %v1536_v6 }
 0x103   :  { %v485_v11 = vpop.f32.mrf.mxu1  ;;  %1549 = verf.f32 %v613_v7  ;;  %v1896_v12 = vadd.f32 %v1865_v30, %v381_v10  ;;  %v756_v24 = vmul.f32 %v707_v8, %v560_v15 }
 0x104   :  { %v1899_v13 = vadd.f32 %v1865_v30, %v485_v11  ;;  %v1538_v14 = vpop.eup %1537  ;;  %1551 = verf.f32 %v639_v9  ;;  %v1401_v17 = vpop.f32.mrf.mxu0  ;;  %v782_v35 = vmul.f32 %v733_v16, %v586_v20 }
 0x105   :  { %v1453_v18 = vpop.f32.mrf.mxu1  ;;  %v1540_v19 = vpop.eup %1539  ;;  %v708_v22 = vadd.f32 1.0, %v1538_v14  ;;  %v614_v23 = vmul.f32 0.70710677, %v1896_v12 }
 0x106   :  { %v734_v26 = vadd.f32 1.0, %v1540_v19  ;;  %v640_v27 = vmul.f32 0.70710677, %v1899_v13  ;;  %v386_v28 = vpop.f32.mrf.mxu0 }
 0x107   :  { %v490_v29 = vpop.f32.mrf.mxu1  ;;  %v757_v31 = vmul.f32 %v708_v22, %v561_v21  ;;  %1553 = verf.f32 %v614_v23  ;;  %v1904_v32 = vadd.f32 %v1865_v30, %v386_v28 }
 0x108   :  { %v1907_v33 = vadd.f32 %v1865_v30, %v490_v29  ;;  %v1542_v34 = vpop.eup %1541  ;;  %v783_v36 = vmul.f32 %v734_v26, %v587_v25  ;;  %1555 = verf.f32 %v640_v27  ;;  %v1404_v37 = vpop.f32.mrf.mxu0  ;;  %v590_v29 = vmul.f32 0.5, %v1891_v2 }
 0x109   :  { %v1456_v38 = vpop.f32.mrf.mxu1  ;;  %v1544_v39 = vpop.eup %1543  ;;  %v1213_v40 = vpack.c.bf16 %v757_v31, %v756_v24  ;;  %v615_v41 = vmul.f32 0.70710677, %v1904_v32  ;;  %v709_v43 = vadd.f32 1.0, %v1542_v34  ;;  %v564_v24 = vmul.f32 0.5, %v1888_v1 }
 0x10a   :  { %v1278_v42 = vpack.c.bf16 %v783_v36, %v782_v35  ;;  %v641_v44 = vmul.f32 0.70710677, %v1907_v33  ;;  %v389_v45 = vpop.f32.mrf.mxu0  ;;  %v735_v53 = vadd.f32 1.0, %v1544_v39  ;;  %v565_v31 = vmul.f32 0.5, %v1896_v12 }
 0x10b   :  { %v493_v46 = vpop.f32.mrf.mxu1  ;;  %1214 = vst [vmem:[%s2162_s3] sm:$0xff] %v1213_v40   ;;  %1557 = verf.f32 %v615_v41  ;;  %v1915_v47 = vadd.f32 %v1865_v30, %v389_v45  ;;  %v758_v63 = vmul.f32 %v709_v43, %v562_v52  ;;  %v591_v37 = vmul.f32 0.5, %v1899_v13 }
 0x10c   :  { %v1918_v48 = vadd.f32 %v1865_v30, %v493_v46  ;;  %v1546_v51 = vpop.eup %1545  ;;  %1342 = vst [vmem:[%s2162_s3 + $0x68] sm:$0xff] %v1278_v42   ;;  %1559 = verf.f32 %v641_v44  ;;  %v1405_v54 = vpop.f32.mrf.mxu0  ;;  %v784_v8 = vmul.f32 %v735_v53, %v588_v59 }
 0x10d   :  { %v1457_v55 = vpop.f32.mrf.mxu1  ;;  %v1548_v56 = vpop.eup %1547  ;;  %v710_v61 = vadd.f32 1.0, %v1546_v51  ;;  %v616_v62 = vmul.f32 0.70710677, %v1915_v47 }
 0x10e   :  { %v736_v3 = vadd.f32 1.0, %v1548_v56  ;;  %v642_v4 = vmul.f32 0.70710677, %v1918_v48  ;;  %v394_v5 = vpop.f32.mrf.mxu0 }
 0x10f   :  { %v498_v49 = vpop.f32.mrf.mxu1  ;;  %v759_v6 = vmul.f32 %v710_v61, %v563_v60  ;;  %1561 = verf.f32 %v616_v62  ;;  %v1930_v7 = vadd.f32 %v1865_v30, %v394_v5 }
 0x110   :  { %v1933_v50 = vadd.f32 %v1865_v30, %v498_v49  ;;  %v1550_v57 = vpop.eup %1549  ;;  %v785_v9 = vmul.f32 %v736_v3, %v589_v0  ;;  %1563 = verf.f32 %v642_v4  ;;  %v1408_v10 = vpop.f32.mrf.mxu0  ;;  %v592_v49 = vmul.f32 0.5, %v1907_v33 }
 0x111   :  { %v1460_v11 = vpop.f32.mrf.mxu1  ;;  %v1552_v58 = vpop.eup %1551  ;;  %v1218_v14 = vpack.c.bf16 %v759_v6, %v758_v63  ;;  %v617_v15 = vmul.f32 0.70710677, %v1930_v7  ;;  %v711_v17 = vadd.f32 1.0, %v1550_v57  ;;  %v566_v63 = vmul.f32 0.5, %v1904_v32 }
 0x112   :  { %v1283_v16 = vpack.c.bf16 %v785_v9, %v784_v8  ;;  %v643_v18 = vmul.f32 0.70710677, %v1933_v50  ;;  %v397_v19 = vpop.f32.mrf.mxu0  ;;  %v737_v25 = vadd.f32 1.0, %v1552_v58  ;;  %v567_v6 = vmul.f32 0.5, %v1915_v47 }
 0x113   :  { %v501_v20 = vpop.f32.mrf.mxu1  ;;  %1330 = vst [vmem:[%s2162_s3 + $0x8] sm:$0xff] %v1218_v14   ;;  %1565 = verf.f32 %v617_v15  ;;  %v1941_v21 = vadd.f32 %v1865_v30, %v397_v19  ;;  %v760_v36 = vmul.f32 %v711_v17, %v564_v24  ;;  %v593_v10 = vmul.f32 0.5, %v1918_v48 }
 0x114   :  { %v1944_v22 = vadd.f32 %v1865_v30, %v501_v20  ;;  %v1554_v23 = vpop.eup %1553  ;;  %1343 = vst [vmem:[%s2162_s3 + $0x70] sm:$0xff] %v1283_v16   ;;  %1567 = verf.f32 %v643_v18  ;;  %v1409_v26 = vpop.f32.mrf.mxu0  ;;  %v786_v43 = vmul.f32 %v737_v25, %v590_v29 }
 0x115   :  { %v1461_v27 = vpop.f32.mrf.mxu1  ;;  %v1556_v28 = vpop.eup %1555  ;;  %v712_v34 = vadd.f32 1.0, %v1554_v23  ;;  %v618_v35 = vmul.f32 0.70710677, %v1941_v21 }
 0x116   :  { %v738_v38 = vadd.f32 1.0, %v1556_v28  ;;  %v644_v39 = vmul.f32 0.70710677, %v1944_v22  ;;  %v402_v40 = vpop.f32.mrf.mxu0 }
 0x117   :  { %v506_v1 = vpop.f32.mrf.mxu1  ;;  %v761_v41 = vmul.f32 %v712_v34, %v565_v31  ;;  %1569 = verf.f32 %v618_v35  ;;  %v1956_v42 = vadd.f32 %v1865_v30, %v402_v40 }
 0x118   :  { %v1959_v2 = vadd.f32 %v1865_v30, %v506_v1  ;;  %v1558_v12 = vpop.eup %1557  ;;  %v787_v44 = vmul.f32 %v738_v38, %v591_v37  ;;  %1571 = verf.f32 %v644_v39  ;;  %v1412_v45 = vpop.f32.mrf.mxu0  ;;  %v594_v1 = vmul.f32 0.5, %v1933_v50 }
 0x119   :  { %v1464_v46 = vpop.f32.mrf.mxu1  ;;  %v1560_v13 = vpop.eup %1559  ;;  %v1223_v51 = vpack.c.bf16 %v761_v41, %v760_v36  ;;  %v619_v52 = vmul.f32 0.70710677, %v1956_v42  ;;  %v713_v54 = vadd.f32 1.0, %v1558_v12  ;;  %v568_v36 = vmul.f32 0.5, %v1930_v7 }
 0x11a   :  { %v1288_v53 = vpack.c.bf16 %v787_v44, %v786_v43  ;;  %v645_v55 = vmul.f32 0.70710677, %v1959_v2  ;;  %v405_v56 = vpop.f32.mrf.mxu0  ;;  %v739_v0 = vadd.f32 1.0, %v1560_v13  ;;  %v569_v41 = vmul.f32 0.5, %v1941_v21 }
 0x11b   :  { %v509_v59 = vpop.f32.mrf.mxu1  ;;  %1331 = vst [vmem:[%s2162_s3 + $0x10] sm:$0xff] %v1223_v51   ;;  %1573 = verf.f32 %v619_v52  ;;  %v1967_v60 = vadd.f32 %v1865_v30, %v405_v56  ;;  %v762_v9 = vmul.f32 %v713_v54, %v566_v63  ;;  %v595_v45 = vmul.f32 0.5, %v1944_v22 }
 0x11c   :  { %v1970_v61 = vadd.f32 %v1865_v30, %v509_v59  ;;  %v1562_v62 = vpop.eup %1561  ;;  %1344 = vst [vmem:[%s2162_s3 + $0x78] sm:$0xff] %v1288_v53   ;;  %1575 = verf.f32 %v645_v55  ;;  %v1413_v3 = vpop.f32.mrf.mxu0  ;;  %v788_v17 = vmul.f32 %v739_v0, %v592_v49 }
 0x11d   :  { %v1465_v4 = vpop.f32.mrf.mxu1  ;;  %v1564_v5 = vpop.eup %1563  ;;  %v714_v57 = vadd.f32 1.0, %v1562_v62  ;;  %v620_v8 = vmul.f32 0.70710677, %v1967_v60 }
 0x11e   :  { %v740_v11 = vadd.f32 1.0, %v1564_v5  ;;  %v646_v58 = vmul.f32 0.70710677, %v1970_v61  ;;  %v410_v14 = vpop.f32.mrf.mxu0 }
 0x11f   :  { %v514_v32 = vpop.f32.mrf.mxu1  ;;  %v763_v15 = vmul.f32 %v714_v57, %v567_v6  ;;  %1577 = verf.f32 %v620_v8  ;;  %v1982_v16 = vadd.f32 %v1865_v30, %v410_v14 }
 0x120   :  { %v1985_v33 = vadd.f32 %v1865_v30, %v514_v32  ;;  %v1566_v47 = vpop.eup %1565  ;;  %v789_v18 = vmul.f32 %v740_v11, %v593_v10  ;;  %1579 = verf.f32 %v646_v58  ;;  %v1416_v19 = vpop.f32.mrf.mxu0  ;;  %v596_v32 = vmul.f32 0.5, %v1959_v2 }
 0x121   :  { %v1468_v20 = vpop.f32.mrf.mxu1  ;;  %v1568_v48 = vpop.eup %1567  ;;  %v1228_v23 = vpack.c.bf16 %v763_v15, %v762_v9  ;;  %v621_v24 = vmul.f32 0.70710677, %v1982_v16  ;;  %v715_v26 = vadd.f32 1.0, %v1566_v47  ;;  %v570_v9 = vmul.f32 0.5, %v1956_v42 }
 0x122   :  { %v1293_v25 = vpack.c.bf16 %v789_v18, %v788_v17  ;;  %v647_v27 = vmul.f32 0.70710677, %v1985_v33  ;;  %v413_v28 = vpop.f32.mrf.mxu0  ;;  %v741_v37 = vadd.f32 1.0, %v1568_v48  ;;  %v571_v15 = vmul.f32 0.5, %v1967_v60 }
 0x123   :  { %v517_v29 = vpop.f32.mrf.mxu1  ;;  %1332 = vst [vmem:[%s2162_s3 + $0x18] sm:$0xff] %v1228_v23   ;;  %1581 = verf.f32 %v621_v24  ;;  %v1993_v31 = vadd.f32 %v1865_v30, %v413_v28  ;;  %v764_v44 = vmul.f32 %v715_v26, %v568_v36  ;;  %v597_v19 = vmul.f32 0.5, %v1970_v61 }
 0x124   :  { %v1996_v34 = vadd.f32 %v1865_v30, %v517_v29  ;;  %v1570_v35 = vpop.eup %1569  ;;  %1345 = vst [vmem:[%s2162_s3 + $0x80] sm:$0xff] %v1293_v25   ;;  %1583 = verf.f32 %v647_v27  ;;  %v1417_v38 = vpop.f32.mrf.mxu0  ;;  %v790_v54 = vmul.f32 %v741_v37, %v594_v1 }
 0x125   :  { %v1469_v39 = vpop.f32.mrf.mxu1  ;;  %v1572_v40 = vpop.eup %1571  ;;  %v716_v12 = vadd.f32 1.0, %v1570_v35  ;;  %v622_v43 = vmul.f32 0.70710677, %v1993_v31 }
 0x126   :  { %v742_v46 = vadd.f32 1.0, %v1572_v40  ;;  %v648_v13 = vmul.f32 0.70710677, %v1996_v34  ;;  %v418_v51 = vpop.f32.mrf.mxu0 }
 0x127   :  { %v522_v7 = vpop.f32.mrf.mxu1  ;;  %v765_v52 = vmul.f32 %v716_v12, %v569_v41  ;;  %1585 = verf.f32 %v622_v43  ;;  %v2008_v53 = vadd.f32 %v1865_v30, %v418_v51 }
 0x128   :  { %v2011_v50 = vadd.f32 %v1865_v30, %v522_v7  ;;  %v1574_v21 = vpop.eup %1573  ;;  %v791_v55 = vmul.f32 %v742_v46, %v595_v45  ;;  %1587 = verf.f32 %v648_v13  ;;  %v1420_v56 = vpop.f32.mrf.mxu0  ;;  %v598_v7 = vmul.f32 0.5, %v1985_v33 }
 0x129   :  { %v1472_v59 = vpop.f32.mrf.mxu1  ;;  %v1576_v22 = vpop.eup %1575  ;;  %v1233_v62 = vpack.c.bf16 %v765_v52, %v764_v44  ;;  %v623_v63 = vmul.f32 0.70710677, %v2008_v53  ;;  %v717_v3 = vadd.f32 1.0, %v1574_v21  ;;  %v572_v44 = vmul.f32 0.5, %v1982_v16 }
 0x12a   :  { %v1298_v0 = vpack.c.bf16 %v791_v55, %v790_v54  ;;  %v649_v4 = vmul.f32 0.70710677, %v2011_v50  ;;  %v421_v5 = vpop.f32.mrf.mxu0  ;;  %v743_v10 = vadd.f32 1.0, %v1576_v22  ;;  %v573_v52 = vmul.f32 0.5, %v1993_v31 }
 0x12b   :  { %v525_v49 = vpop.f32.mrf.mxu1  ;;  %1333 = vst [vmem:[%s2162_s3 + $0x20] sm:$0xff] %v1233_v62   ;;  %1589 = verf.f32 %v623_v63  ;;  %v2019_v6 = vadd.f32 %v1865_v30, %v421_v5  ;;  %v766_v18 = vmul.f32 %v717_v3, %v570_v9  ;;  %v599_v56 = vmul.f32 0.5, %v1996_v34 }
 0x12c   :  { %v2022_v57 = vadd.f32 %v1865_v30, %v525_v49  ;;  %v1578_v8 = vpop.eup %1577  ;;  %1346 = vst [vmem:[%s2162_s3 + $0x88] sm:$0xff] %v1298_v0   ;;  %1591 = verf.f32 %v649_v4  ;;  %v1421_v11 = vpop.f32.mrf.mxu0  ;;  %v792_v26 = vmul.f32 %v743_v10, %v596_v32 }
 0x12d   :  { %v1473_v58 = vpop.f32.mrf.mxu1  ;;  %v1580_v14 = vpop.eup %1579  ;;  %v718_v47 = vadd.f32 1.0, %v1578_v8  ;;  %v624_v17 = vmul.f32 0.70710677, %v2019_v6 }
 0x12e   :  { %v744_v20 = vadd.f32 1.0, %v1580_v14  ;;  %v650_v48 = vmul.f32 0.70710677, %v2022_v57  ;;  %v426_v23 = vpop.f32.mrf.mxu0 }
 0x12f   :  { %v530_v42 = vpop.f32.mrf.mxu1  ;;  %v767_v24 = vmul.f32 %v718_v47, %v571_v15  ;;  %1593 = verf.f32 %v624_v17  ;;  %v2034_v25 = vadd.f32 %v1865_v30, %v426_v23 }
 0x130   :  { %v2037_v2 = vadd.f32 %v1865_v30, %v530_v42  ;;  %v1582_v60 = vpop.eup %1581  ;;  %v793_v27 = vmul.f32 %v744_v20, %v597_v19  ;;  %1595 = verf.f32 %v650_v48  ;;  %v1424_v28 = vpop.f32.mrf.mxu0  ;;  %v600_v42 = vmul.f32 0.5, %v2011_v50 }
 0x131   :  { %v1476_v29 = vpop.f32.mrf.mxu1  ;;  %v1584_v61 = vpop.eup %1583  ;;  %v1238_v35 = vpack.c.bf16 %v767_v24, %v766_v18  ;;  %v625_v36 = vmul.f32 0.70710677, %v2034_v25  ;;  %v719_v38 = vadd.f32 1.0, %v1582_v60  ;;  %v574_v18 = vmul.f32 0.5, %v2008_v53 }
 0x132   :  { %v1303_v37 = vpack.c.bf16 %v793_v27, %v792_v26  ;;  %v651_v39 = vmul.f32 0.70710677, %v2037_v2  ;;  %v429_v40 = vpop.f32.mrf.mxu0  ;;  %v745_v45 = vadd.f32 1.0, %v1584_v61  ;;  %v575_v24 = vmul.f32 0.5, %v2019_v6 }
 0x133   :  { %v533_v1 = vpop.f32.mrf.mxu1  ;;  %1334 = vst [vmem:[%s2162_s3 + $0x28] sm:$0xff] %v1238_v35   ;;  %1597 = verf.f32 %v625_v36  ;;  %v2045_v41 = vadd.f32 %v1865_v30, %v429_v40  ;;  %v768_v55 = vmul.f32 %v719_v38, %v572_v44  ;;  %v601_v28 = vmul.f32 0.5, %v2022_v57 }
 0x134   :  { %v2048_v12 = vadd.f32 %v1865_v30, %v533_v1  ;;  %v1586_v43 = vpop.eup %1585  ;;  %1347 = vst [vmem:[%s2162_s3 + $0x90] sm:$0xff] %v1303_v37   ;;  %1599 = verf.f32 %v651_v39  ;;  %v1425_v46 = vpop.f32.mrf.mxu0  ;;  %v794_v3 = vmul.f32 %v745_v45, %v598_v7 }
 0x135   :  { %v1477_v13 = vpop.f32.mrf.mxu1  ;;  %v1588_v51 = vpop.eup %1587  ;;  %v720_v21 = vadd.f32 1.0, %v1586_v43  ;;  %v626_v54 = vmul.f32 0.70710677, %v2045_v41 }
 0x136   :  { %v746_v59 = vadd.f32 1.0, %v1588_v51  ;;  %v652_v22 = vmul.f32 0.70710677, %v2048_v12  ;;  %v434_v62 = vpop.f32.mrf.mxu0 }
 0x137   :  { %v538_v16 = vpop.f32.mrf.mxu1  ;;  %v769_v63 = vmul.f32 %v720_v21, %v573_v52  ;;  %1601 = verf.f32 %v626_v54  ;;  %v2060_v0 = vadd.f32 %v1865_v30, %v434_v62 }
 0x138   :  { %v2063_v33 = vadd.f32 %v1865_v30, %v538_v16  ;;  %v1590_v31 = vpop.eup %1589  ;;  %v795_v4 = vmul.f32 %v746_v59, %v599_v56  ;;  %1603 = verf.f32 %v652_v22  ;;  %v1428_v5 = vpop.f32.mrf.mxu0  ;;  %v602_v16 = vmul.f32 0.5, %v2037_v2 }
 0x139   :  { %v1480_v49 = vpop.f32.mrf.mxu1  ;;  %v1592_v34 = vpop.eup %1591  ;;  %v1243_v8 = vpack.c.bf16 %v769_v63, %v768_v55  ;;  %v627_v9 = vmul.f32 0.70710677, %v2060_v0  ;;  %v721_v11 = vadd.f32 1.0, %v1590_v31  ;;  %v576_v55 = vmul.f32 0.5, %v2034_v25 }
 0x13a   :  { %v1308_v10 = vpack.c.bf16 %v795_v4, %v794_v3  ;;  %v653_v58 = vmul.f32 0.70710677, %v2063_v33  ;;  %v437_v14 = vpop.f32.mrf.mxu0  ;;  %v747_v19 = vadd.f32 1.0, %v1592_v34  ;;  %v577_v63 = vmul.f32 0.5, %v2045_v41 }
 0x13b   :  { %v541_v32 = vpop.f32.mrf.mxu1  ;;  %1335 = vst [vmem:[%s2162_s3 + $0x30] sm:$0xff] %v1243_v8   ;;  %1605 = verf.f32 %v627_v9  ;;  %v2071_v15 = vadd.f32 %v1865_v30, %v437_v14  ;;  %v770_v27 = vmul.f32 %v721_v11, %v574_v18  ;;  %v603_v5 = vmul.f32 0.5, %v2048_v12 }
 0x13c   :  { %v2074_v47 = vadd.f32 %v1865_v30, %v541_v32  ;;  %v1594_v17 = vpop.eup %1593  ;;  %1348 = vst [vmem:[%s2162_s3 + $0x98] sm:$0xff] %v1308_v10   ;;  %1607 = verf.f32 %v653_v58  ;;  %v1429_v20 = vpop.f32.mrf.mxu0  ;;  %v796_v38 = vmul.f32 %v747_v19, %v600_v42 }
 0x13d   :  { %v1481_v48 = vpop.f32.mrf.mxu1  ;;  %v1596_v23 = vpop.eup %1595  ;;  %v722_v60 = vadd.f32 1.0, %v1594_v17  ;;  %v628_v26 = vmul.f32 0.70710677, %v2071_v15 }
 0x13e   :  { %v748_v29 = vadd.f32 1.0, %v1596_v23  ;;  %v654_v61 = vmul.f32 0.70710677, %v2074_v47  ;;  %v442_v35 = vpop.f32.mrf.mxu0 }
 0x13f   :  { %v546_v53 = vpop.f32.mrf.mxu1  ;;  %v771_v36 = vmul.f32 %v722_v60, %v575_v24  ;;  %1609 = verf.f32 %v628_v26  ;;  %v2086_v37 = vadd.f32 %v1865_v30, %v442_v35  ;;  %v579_v35 = vmul.f32 0.5, %v2071_v15 }
 0x140   :  { %v2089_v50 = vadd.f32 %v1865_v30, %v546_v53  ;;  %v1598_v6 = vpop.eup %1597  ;;  %v797_v39 = vmul.f32 %v748_v29, %v601_v28  ;;  %1611 = verf.f32 %v654_v61  ;;  %v1432_v40 = vpop.f32.mrf.mxu0  ;;  %v578_v61 = vmul.f32 0.5, %v2060_v0 }
 0x141   :  { %v1484_v1 = vpop.f32.mrf.mxu1  ;;  %v1600_v57 = vpop.eup %1599  ;;  %v1248_v43 = vpack.c.bf16 %v771_v36, %v770_v27  ;;  %v629_v44 = vmul.f32 0.70710677, %v2086_v37  ;;  %v723_v46 = vadd.f32 1.0, %v1598_v6  ;;  %v604_v6 = vmul.f32 0.5, %v2063_v33 }
 0x142   :  { %v1313_v45 = vpack.c.bf16 %v797_v39, %v796_v38  ;;  %v655_v13 = vmul.f32 0.70710677, %v2089_v50  ;;  %v445_v51 = vpop.f32.mrf.mxu0  ;;  %v749_v56 = vadd.f32 1.0, %v1600_v57  ;;  %v605_v38 = vmul.f32 0.5, %v2074_v47 }
 0x143   :  { %v549_v7 = vpop.f32.mrf.mxu1  ;;  %1336 = vst [vmem:[%s2162_s3 + $0x38] sm:$0xff] %v1248_v43   ;;  %1613 = verf.f32 %v629_v44  ;;  %v2097_v52 = vadd.f32 %v1865_v30, %v445_v51  ;;  %v772_v4 = vmul.f32 %v723_v46, %v576_v55 }
 0x144   :  { %v2100_v21 = vadd.f32 %v1865_v30, %v549_v7  ;;  %v1602_v54 = vpop.eup %1601  ;;  %1349 = vst [vmem:[%s2162_s3 + $0xa0] sm:$0xff] %v1313_v45   ;;  %1615 = verf.f32 %v655_v13  ;;  %v1433_v59 = vpop.f32.mrf.mxu0  ;;  %v798_v11 = vmul.f32 %v749_v56, %v602_v16 }
 0x145   :  { %v1485_v22 = vpop.f32.mrf.mxu1  ;;  %v1604_v62 = vpop.eup %1603  ;;  %v724_v31 = vadd.f32 1.0, %v1602_v54  ;;  %v630_v3 = vmul.f32 0.70710677, %v2097_v52  ;;  %v581_v16 = vmul.f32 0.5, %v2097_v52 }
 0x146   :  { %v750_v49 = vadd.f32 1.0, %v1604_v62  ;;  %v656_v34 = vmul.f32 0.70710677, %v2100_v21  ;;  %v450_v8 = vpop.f32.mrf.mxu0  ;;  %v580_v62 = vmul.f32 0.5, %v2086_v37 }
 0x147   :  { %v554_v25 = vpop.f32.mrf.mxu1  ;;  %v773_v9 = vmul.f32 %v724_v31, %v577_v63  ;;  %1617 = verf.f32 %v630_v3  ;;  %v2112_v10 = vadd.f32 %v1865_v30, %v450_v8  ;;  %v606_v3 = vmul.f32 0.5, %v2089_v50 }
 0x148   :  { %v2115_v2 = vadd.f32 %v1865_v30, %v554_v25  ;;  %v1606_v41 = vpop.eup %1605  ;;  %v799_v58 = vmul.f32 %v750_v49, %v603_v5  ;;  %1619 = verf.f32 %v656_v34  ;;  %v1436_v14 = vpop.f32.mrf.mxu0 }
 0x149   :  { %v1488_v32 = vpop.f32.mrf.mxu1  ;;  %v1608_v12 = vpop.eup %1607  ;;  %v1253_v17 = vpack.c.bf16 %v773_v9, %v772_v4  ;;  %v631_v18 = vmul.f32 0.70710677, %v2112_v10  ;;  %v725_v42 = vadd.f32 1.0, %v1606_v41  ;;  %v607_v4 = vmul.f32 0.5, %v2100_v21 }
 0x14a   :  { %v1318_v19 = vpack.c.bf16 %v799_v58, %v798_v11  ;;  %v657_v20 = vmul.f32 0.70710677, %v2115_v2  ;;  %v453_v48 = vpop.f32.mrf.mxu0  ;;  %v751_v26 = vadd.f32 1.0, %v1608_v12  ;;  %v608_v37 = vmul.f32 0.5, %v2115_v2 }
 0x14b   :  { %v557_v23 = vpop.f32.mrf.mxu1  ;;  %1337 = vst [vmem:[%s2162_s3 + $0x40] sm:$0xff] %v1253_v17   ;;  %1621 = verf.f32 %v631_v18  ;;  %v454_v24 = vadd.f32 %v1865_v30, %v453_v48  ;;  %v774_v1 = vmul.f32 %v725_v42, %v578_v61  ;;  %v582_v14 = vmul.f32 0.5, %v2112_v10 }
 0x14c   :  { %v1610_v60 = vpop.eup %1609  ;;  %1350 = vst [vmem:[%s2162_s3 + $0xa8] sm:$0xff] %v1318_v19   ;;  %1623 = verf.f32 %v657_v20  ;;  %v1437_v27 = vpop.f32.mrf.mxu0  ;;  %v800_v45 = vmul.f32 %v751_v26, %v604_v6 }
 0x14d   :  { %v1489_v28 = vpop.f32.mrf.mxu1  ;;  %v1612_v29 = vpop.eup %1611  ;;  %v726_v53 = vadd.f32 1.0, %v1610_v60  ;;  %v632_v36 = vmul.f32 0.70710677, %v454_v24  ;;  %v583_v32 = vmul.f32 0.5, %v454_v24 }
 0x14e   :  { %v752_v39 = vadd.f32 1.0, %v1612_v29  ;;  %v458_v40 = vpop.f32.mrf.mxu0 }
 0x14f   :  { %v775_v57 = vmul.f32 %v726_v53, %v579_v35  ;;  %1625 = verf.f32 %v632_v36  ;;  %v459_v43 = vadd.f32 %v1865_v30, %v458_v40 }
 0x150   :  { %v1614_v44 = vpop.eup %1613  ;;  %v801_v46 = vmul.f32 %v752_v39, %v605_v38  ;;  %v1440_v13 = vpop.f32.mrf.mxu0 }
 0x151   :  { %v1616_v0 = vpop.eup %1615  ;;  %v1258_v51 = vpack.c.bf16 %v775_v57, %v774_v1  ;;  %v633_v15 = vmul.f32 0.70710677, %v459_v43  ;;  %v727_v33 = vadd.f32 1.0, %v1614_v44  ;;  %v584_v42 = vmul.f32 0.5, %v459_v43 }
 0x152   :  { %v1323_v7 = vpack.c.bf16 %v801_v46, %v800_v45  ;;  %v461_v54 = vpop.f32.mrf.mxu0  ;;  %v753_v56 = vadd.f32 1.0, %v1616_v0 }
 0x153   :  { %1338 = vst [vmem:[%s2162_s3 + $0x48] sm:$0xff] %v1258_v51   ;;  %1627 = verf.f32 %v633_v15  ;;  %v462_v47 = vadd.f32 %v1865_v30, %v461_v54  ;;  %v776_v30 = vmul.f32 %v727_v33, %v580_v62 }
 0x154   :  { %v1618_v55 = vpop.eup %1617  ;;  %1351 = vst [vmem:[%s2162_s3 + $0xb0] sm:$0xff] %v1323_v7   ;;  %v1441_v59 = vpop.f32.mrf.mxu0  ;;  %v802_v8 = vmul.f32 %v753_v56, %v606_v3 }
 0x155   :  { %v1620_v22 = vpop.eup %1619  ;;  %v728_v63 = vadd.f32 1.0, %v1618_v55  ;;  %v634_v31 = vmul.f32 0.70710677, %v462_v47  ;;  %v585_v60 = vmul.f32 0.5, %v462_v47 }
 0x156   :  { %v754_v5 = vadd.f32 1.0, %v1620_v22 }
 0x157   :  { %v777_v49 = vmul.f32 %v728_v63, %v581_v16  ;;  %1629 = verf.f32 %v634_v31 }
 0x158   :  { %v1622_v34 = vpop.eup %1621  ;;  %v803_v25 = vmul.f32 %v754_v5, %v607_v4 }
 0x159   :  { %v1624_v9 = vpop.eup %1623  ;;  %v1263_v41 = vpack.c.bf16 %v777_v49, %v776_v30  ;;  %v729_v50 = vadd.f32 1.0, %v1622_v34 }
 0x15a   :  { %v1328_v11 = vpack.c.bf16 %v803_v25, %v802_v8  ;;  %v755_v58 = vadd.f32 1.0, %v1624_v9 }
 0x15b   :  { %1339 = vst [vmem:[%s2162_s3 + $0x50] sm:$0xff] %v1263_v41   ;;  %v778_v18 = vmul.f32 %v729_v50, %v582_v14 }
 0x15c   :  { %v1626_v52 = vpop.eup %1625  ;;  %1352 = vst [vmem:[%s2162_s3 + $0xb8] sm:$0xff] %v1328_v11   ;;  %v804_v21 = vmul.f32 %v755_v58, %v608_v37 }
 0x15d   :  { %v730_v12 = vadd.f32 1.0, %v1626_v52 }
 0x15e   :  { %v1209_v17 = vpack.c.bf16 %v804_v21, %v804_v21 }
 0x15f   :  { %v779_v19 = vmul.f32 %v730_v12, %v583_v32 }
 0x160   :  { %v1628_v2 = vpop.eup %1627  ;;  %1050 = vst [vmem:[%s2162_s3 + $0xc0] sm:$0xf] %v1209_v17 }
 0x161   :  { %v1268_v20 = vpack.c.bf16 %v779_v19, %v778_v18  ;;  %v731_v48 = vadd.f32 1.0, %v1628_v2 }
 0x163   :  { %1340 = vst [vmem:[%s2162_s3 + $0x58] sm:$0xff] %v1268_v20   ;;  %v780_v24 = vmul.f32 %v731_v48, %v584_v42 }
 0x164   :  { %v1630_v23 = vpop.eup %1629 }
 0x165   :  { %v732_v10 = vadd.f32 1.0, %v1630_v23 }
 0x167   :  { %v781_v26 = vmul.f32 %v732_v10, %v585_v60 }
 0x169   :  { %v1273_v27 = vpack.c.bf16 %v781_v26, %v780_v24 }
 0x16b   :  { %1341 = vst [vmem:[%s2162_s3 + $0x60] sm:$0xff] %v1273_v27  }
 0x16c   :  { %1055 = vsyncpa [#allocation3], 1 }
 0x16d   :  { %1056 = vsyncpa [#allocation5], 1 }

// kernel: _lambda_.6
= control target key start
LH: loop header
LB: loop body
LE: loop exit
PB: predicated region body
PF: predicated region fallthrough
CT: control target
= control target key end

     0   :  { %8 = vsyncpa [#allocation3], 0  ;;  %s5079_s0 = inlined_call_operand.vmem [shape: bf16[2,3072], index: 0, kind: input, shape index: {}]   ;;  %s5080_s1 = inlined_call_operand.hbm [shape: bf16[3072,768], index: 1, kind: input, shape index: {}]   ;;  %s5081_s2 = inlined_call_operand.hbm [shape: f32[1,768], index: 2, kind: input, shape index: {}]   ;;  %s5082_s3 = inlined_call_operand.vmem [shape: f32[2,768], index: 3, kind: output, shape index: {}]  }
   0x1   :  { %10 = vsyncpa [#allocation3 + $0x1], 0 }
   0x2   :  { %11 = vsyncpa [#allocation5], 0 }
   0x3   :  { %13 = vsyncpa [#allocation5 + $0x1], 0  ;;  %s4472_s12 = smov 0   ;;  %s4474_s13 = smov 0  }
   0x4   :  { %s4476_s14 = smov 0   ;;  %s4478_s15 = smov 0  }
   0x5 LB: > { %s3319_s16 = sadd.s32 4294967295, %s4444_s15   ;;  %s4492_s17 = sadd.s32 1, %s4444_s15   ;;  %s4444_s15 = sphi %s4478_s15, %s5092_s15   ;;  %s4440_s14 = sphi %s4476_s14, %s5091_s14   ;;  %s4436_s13 = sphi %s4474_s13, %s5090_s13   ;;  %s4432_s12 = sphi %s4472_s12, %s5089_s12  }
   0x6   : > { %s44_s18 = ssub.s32 %s4444_s15, %s4492_s17  ;;  %s47_s19 = sadd.s32 1, %s4440_s14 }
   0x7   : > { %p45_p0 = scmp.eq.s32.totalorder %s44_s18, 0  ;;  %p54_p1 = scmp.ne.s32.totalorder %s4440_s14, %s4436_s13 }
   0x8   : > { %p55_p2 = scmp.eq.s32.totalorder %s4444_s15, 0  ;;  %p60_p3 = scmp.ne.s32.totalorder %s4436_s13, %s4432_s12 }
   0x9   : > { %s4502_s20 = scalar_select %p45_p0, %s4440_s14, %s47_s19  }
   0xa   : > { %p56_p4 = por %p55_p2, %p54_p1  ;;  %p61_p5 = scmp.eq.s32.totalorder %s3319_s16, 0 }
   0xb   : > { %p3734_p6 = scmp.lt.s32.totalorder %s4444_s15, 3  ;;  %s4512_s22 = sand.u32 1, %s4440_s14  }
   0xc   : > { %p4507_p7 = por %p61_p5, %p60_p3  ;;  %s3721_s23 = smul.u32 3072, %s4512_s22 }
   0xd   : > { %s3719_s24 = sshll.u32 %s4444_s15, 7  ;;  %p4516_p8 = pnand %p3734_p6, %p56_p4 }
   0xe   : > { %s5084_s21 = scalar_select %p4507_p7, 1, 0 }
   0xf   : > { %s4523_s28 = scalar_lea.hbm %s5080_s1, %s3719_s24  ;;  %s143_s29 = scalar_lea.vmem [#allocation2], %s3721_s23 }
  0x10   : > { %s150_s30 = sshll.u32 %s143_s29, 4  ;;  %s140_s4 = scalar_lea.sflag [#allocation3], %s4512_s22  ;;  %s4525_s30 = int_to_ptr.vmem [resolvable:$true] %s150_s30 }
  0x11   : > { %s4350_s5 = scalar_lea.hbm %s4523_s28, 49152  ;;  %p4352_p10 = pneg %p4516_p8 }
  0x12   : > { %p4351_p9 = scmp.ne.s32.totalorder %s4523_s28, %s4350_s5  ;;  %s4355_s8 = scalar_lea.hbm %s5080_s1, 147456 }
  0x13   : > { %p4356_p13 = scmp.lt.s32.totalorder %s4523_s28, %s5080_s1  ;;  %p4357_p0 = scmp.lt.s32.totalorder %s4355_s8, %s4350_s5 }
  0x14   : > { %p4353_p11 = pnand %p4352_p10, %p4351_p9 }
  0x15   : > { %p4358_p1 = por %p4357_p0, %p4356_p13 }
  0x16   : > { %p4354_p12 = pneg %p4353_p11 }
  0x18   : > { %p4359_p2 = pnand %p4358_p1, %p4354_p12 }
  0x1a   : > { %4362 = shalt.err (!%p4359_p2)
}
  0x1b   : > { %s4363_s11 = scalar_lea.vmem %s4525_s30, 49152  ;;  %s4446_s12 = smov [#allocation2]  }
  0x1c   : > { %p4364_p3 = scmp.ne.s32.totalorder %s4525_s30, %s4363_s11  ;;  %s4368_s18 = sshll.u32 %s4446_s12, 4  ;;  %s4369_s18 = int_to_ptr.vmem [resolvable:$false] %s4368_s18 }
  0x1d   : > { %s4370_s19 = scalar_lea.vmem %s4369_s18, 98304  ;;  %p4371_p6 = scmp.lt.s32.totalorder %s4525_s30, %s4369_s18 }
  0x1e   : > { %p4366_p4 = pnand %p4364_p3, %p4352_p10  ;;  %p4372_p9 = scmp.lt.s32.totalorder %s4370_s19, %s4363_s11 }
  0x20   : > { %p4367_p5 = pneg %p4366_p4  ;;  %p4373_p11 = por %p4372_p9, %p4371_p6 }
  0x22   : > { %p4374_p13 = pnand %p4373_p11, %p4367_p5 }
  0x24   : > { %4377 = shalt.err (!%p4374_p13)
}
  0x25   : > { %s4447_s23 = smov 384   ;;  %s4448_s24 = smov 128  }
  0x26   : > { %s4449_s26 = smov 8   ;;  %p3328_p12 = scmp.ge.s32.totalorder %s4444_s15, 1 }
  0x27   : > { %3730 = dma.hbm_to_vmem [thread:$0]  (!%p4516_p8), %s4523_s28, 49152, %s4525_s30, %s140_s4, %s4447_s23, %s4448_s24, %s4449_s26  }
  0x28   : > { %p177_p0 = scmp.lt.s32.totalorder %s4444_s15, 4  ;;  %s3325_s27 = sshll.u32 %s4512_s22, 1 }
  0x29   : > { %s3720_s5 = sshll.u32 %s4444_s15, 5  ;;  %s164_s6 = scalar_lea.vmem [#allocation4], %s3325_s27 }
  0x2a   : > { %p4557_p1 = pnand %p3328_p12, %p177_p0  ;;  %s172_s7 = sshll.u32 %s164_s6, 4  ;;  %s173_s7 = int_to_ptr.vmem [resolvable:$true] %s172_s7 }
  0x2b   : > { %s170_s10 = scalar_lea.hbm %s5081_s2, %s3720_s5  ;;  %s161_s11 = scalar_lea.sflag [#allocation5], %s4512_s22 }
  0x2c   : > { %s5086_s29 = scalar_select %p4557_p1, 1, 0 }
  0x2d   : > { %s4378_s12 = scalar_lea.hbm %s170_s10, 32  ;;  %s4383_s4 = scalar_lea.hbm %s5081_s2, 96 }
  0x2e   : > { %p4379_p2 = scmp.ne.s32.totalorder %s170_s10, %s4378_s12  ;;  %p4384_p5 = scmp.lt.s32.totalorder %s170_s10, %s5081_s2 }
  0x2f   : > { %p4385_p6 = scmp.lt.s32.totalorder %s4383_s4, %s4378_s12 }
  0x30   : > { %p4381_p3 = pnand %p4379_p2, %p4352_p10 }
  0x31   : > { %p4386_p9 = por %p4385_p6, %p4384_p5 }
  0x32   : > { %p4382_p4 = pneg %p4381_p3 }
  0x34   : > { %p4387_p11 = pnand %p4386_p9, %p4382_p4 }
  0x36   : > { %4390 = shalt.err (!%p4387_p11)
}
  0x37   : > { %s4391_s23 = scalar_lea.vmem %s173_s7, 32  ;;  %s4450_s22 = smov [#allocation4]  }
  0x38   : > { %p4392_p13 = scmp.ne.s32.totalorder %s173_s7, %s4391_s23  ;;  %s4396_s24 = sshll.u32 %s4450_s22, 4  ;;  %s4397_s24 = int_to_ptr.vmem [resolvable:$false] %s4396_s24 }
  0x39   : > { %s4398_s26 = scalar_lea.vmem %s4397_s24, 64  ;;  %p4399_p2 = scmp.lt.s32.totalorder %s173_s7, %s4397_s24 }
  0x3a   : > { %p4394_p12 = pnand %p4392_p13, %p4352_p10  ;;  %p4400_p3 = scmp.lt.s32.totalorder %s4398_s26, %s4391_s23 }
  0x3c   : > { %p4395_p0 = pneg %p4394_p12  ;;  %p4401_p7 = por %p4400_p3, %p4399_p2 }
  0x3e   : > { %p4402_p1 = pnand %p4401_p7, %p4395_p0 }
  0x40   : > { %4405 = shalt.err (!%p4402_p1)
}
  0x41   : > { %3733 = dma.hbm_to_vmem [thread:$0]  (!%p4516_p8), %s170_s10, 32, %s173_s7, %s161_s11  }
  0x42   : > { %p5087_p4 = scmp.ne.s32.totalorder %s5086_s29, 0 }
  0x43   : > { %s183_s27 = sand.u32 (!%p5087_p4), 1, %s4436_s13   ;;  %p5088_p10 = scmp.ne.s32.totalorder (!%p5087_p4), %s5084_s21, 0 }
  0x44   : > { %181 = sbr.rel (%p5087_p4) target bundleno = 664 (0x298), region = 32  ;;  %s184_s6 = scalar_lea.sflag (!%p5087_p4), [#allocation3], %s183_s27 }
  0x45   : > { %s3722_s5 = smul.u32 (!%p5087_p4), 3072, %s183_s27 }
  0x47   : > { %s4583_s8 = scalar_lea.vmem (!%p5087_p4), [#allocation2], %s3722_s5 }
  0x49   : > { %4423 = dma.done.wait (%p5088_p10), %s184_s6, 49152  }
  0x4a   : > { %4425 = vsyncadd (%p5088_p10), %s184_s6, 4294918144  ;;  %s3329_s9 = sshll.u32 %s183_s27, 1  ;;  %s193_s12 = scalar_lea.sflag [#allocation5], %s183_s27 }
  0x4b   : > { %s4589_s25 = scalar_lea.vmem [#allocation4], %s3329_s9 }
  0x4c   : > { %4427 = dma.done.wait (%p5088_p10), %s193_s12, 32  }
  0x4d   : > { %4429 = vsyncadd (%p5088_p10), %s193_s12, 4294967264  ;;  %v3771_v0 = vld [vmem:[%s4583_s8 + $0x74] ss:$8 sps:$4 sm:$0xff]   ;;  %v3775_v2 = vld [vmem:[%s4583_s8 + $0x70] ss:$8 sps:$4 sm:$0xff]   ;;  %v621_v36 = vlaneseq  ;;  %s3330_s30 = sshll.u32 %s3319_s16, 1 }
  0x4e   : > { %v3773_v1 = vld [vmem:[%s4583_s8 + $0x174] ss:$8 sps:$4 sm:$0xff]   ;;  %2725 = vmatprep.subr.bf16.mxu0 %v3771_v0  ;;  %v3776_v3 = vld [vmem:[%s4583_s8 + $0x170] ss:$8 sps:$4 sm:$0xff]   ;;  %v3777_v4 = vld [vmem:[%s4583_s8 + $0x64] ss:$8 sps:$4 sm:$0xff]  }
  0x4f   : > { %2766 = vmatprep.subr.bf16.mxu1 %v3773_v1  ;;  %2726 = vmatpush1.bf16.msra.mxu0 %v3775_v2  ;;  %v3779_v5 = vld [vmem:[%s4583_s8 + $0x164] ss:$8 sps:$4 sm:$0xff]   ;;  %v3781_v6 = vld [vmem:[%s4583_s8 + $0x60] ss:$8 sps:$4 sm:$0xff]   ;;  %v3783_v8 = vld [vmem:[%s4583_s8 + $0x54] ss:$8 sps:$4 sm:$0xff]  }
  0x50   : > { %2767 = vmatpush1.bf16.msra.mxu1 %v3776_v3  ;;  %2727 = vmatprep.subr.bf16.mxu0 %v3777_v4  ;;  %v3782_v7 = vld [vmem:[%s4583_s8 + $0x160] ss:$8 sps:$4 sm:$0xff]   ;;  %v3785_v9 = vld [vmem:[%s4583_s8 + $0x154] ss:$8 sps:$4 sm:$0xff]   ;;  %v3787_v10 = vld [vmem:[%s4583_s8 + $0x50] ss:$8 sps:$4 sm:$0xff]  }
  0x51   : > { %2768 = vmatprep.subr.bf16.mxu1 %v3779_v5  ;;  %v3788_v11 = vld [vmem:[%s4583_s8 + $0x150] ss:$8 sps:$4 sm:$0xff]   ;;  %v3789_v12 = vld [vmem:[%s4583_s8 + $0x44] ss:$8 sps:$4 sm:$0xff]   ;;  %v3793_v14 = vld [vmem:[%s4583_s8 + $0x40] ss:$8 sps:$4 sm:$0xff]  }
  0x52   : > { %v3791_v13 = vld [vmem:[%s4583_s8 + $0x144] ss:$8 sps:$4 sm:$0xff]   ;;  %v3794_v15 = vld [vmem:[%s4583_s8 + $0x140] ss:$8 sps:$4 sm:$0xff]   ;;  %v3795_v16 = vld [vmem:[%s4583_s8 + $0x34] ss:$8 sps:$4 sm:$0xff]  }
  0x53   : > { %2728 = vmatpush1.bf16.msra.mxu0 %v3781_v6  ;;  %v3797_v17 = vld [vmem:[%s4583_s8 + $0x134] ss:$8 sps:$4 sm:$0xff]   ;;  %v3799_v18 = vld [vmem:[%s4583_s8 + $0x30] ss:$8 sps:$4 sm:$0xff]   ;;  %v3801_v20 = vld [vmem:[%s4583_s8 + $0x24] ss:$8 sps:$4 sm:$0xff]  }
  0x54   : > { %2769 = vmatpush1.bf16.msra.mxu1 %v3782_v7  ;;  %2729 = vmatprep.subr.bf16.mxu0 %v3783_v8  ;;  %v3800_v19 = vld [vmem:[%s4583_s8 + $0x130] ss:$8 sps:$4 sm:$0xff]   ;;  %v3803_v21 = vld [vmem:[%s4583_s8 + $0x124] ss:$8 sps:$4 sm:$0xff]   ;;  %v3805_v22 = vld [vmem:[%s4583_s8 + $0x20] ss:$8 sps:$4 sm:$0xff]  }
  0x55   : > { %2770 = vmatprep.subr.bf16.mxu1 %v3785_v9  ;;  %v3806_v23 = vld [vmem:[%s4583_s8 + $0x120] ss:$8 sps:$4 sm:$0xff]   ;;  %v3807_v24 = vld [vmem:[%s4583_s8 + $0x14] ss:$8 sps:$4 sm:$0xff]   ;;  %v3811_v26 = vld [vmem:[%s4583_s8 + $0x10] ss:$8 sps:$4 sm:$0xff]  }
  0x56   : > { %v3809_v25 = vld [vmem:[%s4583_s8 + $0x114] ss:$8 sps:$4 sm:$0xff]   ;;  %v3812_v27 = vld [vmem:[%s4583_s8 + $0x110] ss:$8 sps:$4 sm:$0xff]   ;;  %v3813_v28 = vld [vmem:[%s4583_s8 + $0x4] ss:$8 sps:$4 sm:$0xff]  }
  0x57   : > { %2730 = vmatpush1.bf16.msra.mxu0 %v3787_v10  ;;  %v3815_v29 = vld [vmem:[%s4583_s8 + $0x104] ss:$8 sps:$4 sm:$0xff]   ;;  %v3817_v30 = vld [vmem:[%s4583_s8] ss:$8 sps:$4 sm:$0xff]   ;;  %v3819_v32 = vld [vmem:[%s4583_s8 + $0xf4] ss:$8 sps:$4 sm:$0xff]  }
  0x58   : > { %2771 = vmatpush1.bf16.msra.mxu1 %v3788_v11  ;;  %2731 = vmatprep.subr.bf16.mxu0 %v3789_v12  ;;  %v3818_v31 = vld [vmem:[%s4583_s8 + $0x100] ss:$8 sps:$4 sm:$0xff]   ;;  %v3821_v33 = vld [vmem:[%s4583_s8 + $0x1f4] ss:$8 sps:$4 sm:$0xff]   ;;  %v3823_v34 = vld [vmem:[%s4583_s8 + $0xf0] ss:$8 sps:$4 sm:$0xff]  }
  0x59   : > { %2772 = vmatprep.subr.bf16.mxu1 %v3791_v13  ;;  %v3824_v35 = vld [vmem:[%s4583_s8 + $0x1f0] ss:$8 sps:$4 sm:$0xff]   ;;  %v4451_v37 = vmov 1966171168   ;;  %v3825_v39 = vld [vmem:[%s4583_s8 + $0xe4] ss:$8 sps:$4 sm:$0xff]  }
  0x5a   : > { %v636_v38 = vunpack.c.l.s4 %v4451_v37  ;;  %v3827_v40 = vld [vmem:[%s4583_s8 + $0x1e4] ss:$8 sps:$4 sm:$0xff]   ;;  %v3829_v41 = vld [vmem:[%s4583_s8 + $0xe0] ss:$8 sps:$4 sm:$0xff]   ;;  %v4634_v42 = vshrl.u32 %v621_v36, 7  ;;  %p227_p7 = scmp.lt.s32.totalorder %s3330_s30, 5 }
  0x5b   : > { %2732 = vmatpush1.bf16.msra.mxu0 %v3793_v14  ;;  %v3830_v44 = vld [vmem:[%s4583_s8 + $0x1e0] ss:$8 sps:$4 sm:$0xff]   ;;  %v3831_v45 = vld [vmem:[%s4583_s8 + $0xd4] ss:$8 sps:$4 sm:$0xff]   ;;  %v3835_v47 = vld [vmem:[%s4583_s8 + $0xd0] ss:$8 sps:$4 sm:$0xff]  }
  0x5c   : > { %2773 = vmatpush1.bf16.msra.mxu1 %v3794_v15  ;;  %2733 = vmatprep.subr.bf16.mxu0 %v3795_v16  ;;  %v637_v43 = vunpack.c.0.s8 %v636_v38  ;;  %v3833_v46 = vld [vmem:[%s4583_s8 + $0x1d4] ss:$8 sps:$4 sm:$0xff]   ;;  %v3836_v48 = vld [vmem:[%s4583_s8 + $0x1d0] ss:$8 sps:$4 sm:$0xff]   ;;  %v3837_v50 = vld [vmem:[%s4583_s8 + $0xc4] ss:$8 sps:$4 sm:$0xff]  }
  0x5d   : > { %2774 = vmatprep.subr.bf16.mxu1 %v3797_v17  ;;  %v3839_v51 = vld [vmem:[%s4583_s8 + $0x1c4] ss:$8 sps:$4 sm:$0xff]   ;;  %v3841_v53 = vld [vmem:[%s4583_s8 + $0xc0] ss:$8 sps:$4 sm:$0xff]   ;;  %v3843_v56 = vld [vmem:[%s4583_s8 + $0xb4] ss:$8 sps:$4 sm:$0xff]  }
  0x5e   : > { %v4642_v49 = vsub.s32 %v637_v43, %v4634_v42  ;;  %v232_v52 = vld [vmem:[%s5079_s0] sm:$0xff]  ;;  %v3845_v57 = vld [vmem:[%s4583_s8 + $0x1b4] ss:$8 sps:$4 sm:$0xff]   ;;  %v3847_v59 = vld [vmem:[%s4583_s8 + $0xb0] ss:$8 sps:$4 sm:$0xff]   ;;  %s5094_s30 = smov (!%p227_p7, %s3330_s30), 5 }
  0x5f   : > { %2734 = vmatpush1.bf16.msra.mxu0 %v3799_v18  ;;  %v3842_v55 = vld [vmem:[%s4583_s8 + $0x1c0] ss:$8 sps:$4 sm:$0xff]   ;;  %v3848_v61 = vld [vmem:[%s4583_s8 + $0x1b0] ss:$8 sps:$4 sm:$0xff]   ;;  %v3849_v62 = vld [vmem:[%s4583_s8 + $0xa4] ss:$8 sps:$4 sm:$0xff]   ;;  %v634_v1 = vcombine.high %v232_v52, %v232_v52 }
  0x60   : > { %2775 = vmatpush1.bf16.msra.mxu1 %v3800_v19  ;;  %2735 = vmatprep.subr.bf16.mxu0 %v3801_v20  ;;  %v641_v54 = vrot.slane %v232_v52, %v4642_v49  ;;  %v3851_v63 = vld [vmem:[%s4583_s8 + $0x1a4] ss:$8 sps:$4 sm:$0xff]   ;;  %v3853_v2 = vld [vmem:[%s4583_s8 + $0xa0] ss:$8 sps:$4 sm:$0xff]   ;;  %v3855_v4 = vld [vmem:[%s4583_s8 + $0x94] ss:$8 sps:$4 sm:$0xff]  }
  0x61   : > { %2776 = vmatprep.subr.bf16.mxu1 %v3803_v21  ;;  %v3854_v3 = vld [vmem:[%s4583_s8 + $0x1a0] ss:$8 sps:$4 sm:$0xff]   ;;  %v3857_v5 = vld [vmem:[%s4583_s8 + $0x194] ss:$8 sps:$4 sm:$0xff]   ;;  %v4664_v6 = vrot.slane %v634_v1, %v4642_v49  ;;  %v3859_v7 = vld [vmem:[%s4583_s8 + $0x90] ss:$8 sps:$4 sm:$0xff]  }
  0x62   : > { %v649_v58 = vcombine.high %v641_v54, %v641_v54  ;;  %v3860_v8 = vld [vmem:[%s4583_s8 + $0x190] ss:$8 sps:$4 sm:$0xff]   ;;  %v3861_v9 = vld [vmem:[%s4583_s8 + $0x84] ss:$8 sps:$4 sm:$0xff]   ;;  %v3865_v12 = vld [vmem:[%s4583_s8 + $0x80] ss:$8 sps:$4 sm:$0xff]   ;;  %v657_v13 = vrot.slane %v641_v54, %v4642_v49 }
  0x63   : > { %2736 = vmatpush1.bf16.msra.mxu0 %v3805_v22  ;;  %v3863_v10 = vld [vmem:[%s4583_s8 + $0x184] ss:$8 sps:$4 sm:$0xff]   ;;  %v650_v11 = vcombine.high %v4664_v6, %v4664_v6  ;;  %v3866_v14 = vld [vmem:[%s4583_s8 + $0x180] ss:$8 sps:$4 sm:$0xff]   ;;  %v3870_v15 = vld [vmem:[%s4583_s8 + $0x274] ss:$8 sps:$4 sm:$0xff]  }
  0x64   : > { %2777 = vmatpush1.bf16.msra.mxu1 %v3806_v23  ;;  %2737 = vmatprep.subr.bf16.mxu0 %v3807_v24  ;;  %v671_v60 = vrot.slane %v649_v58, %v4642_v49  ;;  %v3873_v16 = vld [vmem:[%s4583_s8 + $0x374] ss:$8 sps:$4 sm:$0xff]   ;;  %v679_v18 = vcombine.high %v657_v13, %v657_v13  ;;  %v3868_v19 = vld [vmem:[%s4583_s8 + $0x270] ss:$8 sps:$4 sm:$0xff]   ;;  %v3876_v21 = vld [vmem:[%s4583_s8 + $0x264] ss:$8 sps:$4 sm:$0xff]  }
  0x65   : > { %2778 = vmatprep.subr.bf16.mxu1 %v3809_v25  ;;  %v678_v17 = vrot.slane %v650_v11, %v4642_v49  ;;  %v3871_v20 = vld [vmem:[%s4583_s8 + $0x370] ss:$8 sps:$4 sm:$0xff]   ;;  %v3879_v22 = vld [vmem:[%s4583_s8 + $0x364] ss:$8 sps:$4 sm:$0xff]   ;;  %v3874_v24 = vld [vmem:[%s4583_s8 + $0x260] ss:$8 sps:$4 sm:$0xff]  }
  0x66   : > { %v681_v0 = vcombine.high %v671_v60, %v671_v60  ;;  %2757 = vmatprep.mubr.bf16.mxu0 %v671_v60  ;;  %v3877_v25 = vld [vmem:[%s4583_s8 + $0x360] ss:$8 sps:$4 sm:$0xff]   ;;  %v3892_v36 = vld [vmem:[%s4583_s8 + $0x230] ss:$8 sps:$4 sm:$0xff]   ;;  %v3900_v38 = vld [vmem:[%s4583_s8 + $0x224] ss:$8 sps:$4 sm:$0xff]  }
  0x67   : > { %2738 = vmatpush1.bf16.msra.mxu0 %v3811_v26  ;;  %v682_v23 = vcombine.high %v678_v17, %v678_v17  ;;  %v3882_v26 = vld [vmem:[%s4583_s8 + $0x254] ss:$8 sps:$4 sm:$0xff]   ;;  %v3895_v37 = vld [vmem:[%s4583_s8 + $0x330] ss:$8 sps:$4 sm:$0xff]   ;;  %v3922_v58 = vld [vmem:[%s4583_s8 + $0x2e0] ss:$8 sps:$4 sm:$0xff]  }
  0x68   : > { %2779 = vmatpush1.bf16.msra.mxu1 %v3812_v27  ;;  %2739 = vmatprep.subr.bf16.mxu0 %v3813_v28  ;;  %v3885_v27 = vld [vmem:[%s4583_s8 + $0x354] ss:$8 sps:$4 sm:$0xff]   ;;  %v3880_v28 = vld [vmem:[%s4583_s8 + $0x250] ss:$8 sps:$4 sm:$0xff]   ;;  %v3939_v1 = vld [vmem:[%s4583_s8 + $0x3c4] ss:$8 sps:$4 sm:$0xff]  }
  0x69   : > { %2780 = vmatprep.subr.bf16.mxu1 %v3815_v29  ;;  %2798 = vmatprep.mubr.bf16.mxu1 %v681_v0  ;;  %v3883_v29 = vld [vmem:[%s4583_s8 + $0x350] ss:$8 sps:$4 sm:$0xff]   ;;  %v3906_v43 = vld [vmem:[%s4583_s8 + $0x214] ss:$8 sps:$4 sm:$0xff]   ;;  %v3936_v0 = vld [vmem:[%s4583_s8 + $0x2c4] ss:$8 sps:$4 sm:$0xff]  }
  0x6a   : > { %v3918_v52 = vld [vmem:[%s4583_s8 + $0x2f4] ss:$8 sps:$4 sm:$0xff]   ;;  %v3916_v54 = vld [vmem:[%s4583_s8 + $0x2f0] ss:$8 sps:$4 sm:$0xff]   ;;  %v3946_v11 = vld [vmem:[%s4583_s8 + $0x2a0] ss:$8 sps:$4 sm:$0xff]  }
  0x6b   : > { %2740 = vmatpush1.bf16.msra.mxu0 %v3817_v30  ;;  %v3888_v30 = vld [vmem:[%s4583_s8 + $0x244] ss:$8 sps:$4 sm:$0xff]   ;;  %v3930_v60 = vld [vmem:[%s4583_s8 + $0x2d4] ss:$8 sps:$4 sm:$0xff]   ;;  %s3331_s4 = sshll.u32 %s5094_s30, 1 }
  0x6c   : > { %2781 = vmatpush1.bf16.msra.mxu1 %v3818_v31  ;;  %2741 = vmatprep.subr.bf16.mxu0 %v3819_v32  ;;  %v3891_v31 = vld [vmem:[%s4583_s8 + $0x344] ss:$8 sps:$4 sm:$0xff]   ;;  %v3886_v32 = vld [vmem:[%s4583_s8 + $0x240] ss:$8 sps:$4 sm:$0xff]   ;;  %s230_s15 = scalar_lea.vmem %s5082_s3, %s3331_s4 }
  0x6d   : > { %2782 = vmatprep.subr.bf16.mxu1 %v3821_v33  ;;  %v3889_v33 = vld [vmem:[%s4583_s8 + $0x340] ss:$8 sps:$4 sm:$0xff]  }
  0x6f   : > { %2742 = vmatpush2.bf16.msra.mxu0 %v3823_v34  ;;  %v3894_v34 = vld [vmem:[%s4583_s8 + $0x234] ss:$8 sps:$4 sm:$0xff]  }
  0x70   : > { %2783 = vmatpush2.bf16.msra.mxu1 %v3824_v35  ;;  %2743 = vmatprep.subr.bf16.mxu0 %v3825_v39  ;;  %v3897_v35 = vld [vmem:[%s4583_s8 + $0x334] ss:$8 sps:$4 sm:$0xff]   ;;  %v3903_v39 = vld [vmem:[%s4583_s8 + $0x324] ss:$8 sps:$4 sm:$0xff]  }
  0x71   : > { %2784 = vmatprep.subr.bf16.mxu1 %v3827_v40  ;;  %v3898_v40 = vld [vmem:[%s4583_s8 + $0x220] ss:$8 sps:$4 sm:$0xff]  }
  0x73   : > { %2744 = vmatpush2.bf16.msra.mxu0 %v3829_v41  ;;  %v3901_v41 = vld [vmem:[%s4583_s8 + $0x320] ss:$8 sps:$4 sm:$0xff]  }
  0x74   : > { %2785 = vmatpush2.bf16.msra.mxu1 %v3830_v44  ;;  %2745 = vmatprep.subr.bf16.mxu0 %v3831_v45  ;;  %v3909_v44 = vld [vmem:[%s4583_s8 + $0x314] ss:$8 sps:$4 sm:$0xff]   ;;  %v3904_v45 = vld [vmem:[%s4583_s8 + $0x210] ss:$8 sps:$4 sm:$0xff]  }
  0x75   : > { %2786 = vmatprep.subr.bf16.mxu1 %v3833_v46  ;;  %v3907_v46 = vld [vmem:[%s4583_s8 + $0x310] ss:$8 sps:$4 sm:$0xff]  }
  0x77   : > { %2746 = vmatpush2.bf16.msra.mxu0 %v3835_v47  ;;  %v3912_v47 = vld [vmem:[%s4583_s8 + $0x204] ss:$8 sps:$4 sm:$0xff]  }
  0x78   : > { %2787 = vmatpush2.bf16.msra.mxu1 %v3836_v48  ;;  %2747 = vmatprep.subr.bf16.mxu0 %v3837_v50  ;;  %v3915_v48 = vld [vmem:[%s4583_s8 + $0x304] ss:$8 sps:$4 sm:$0xff]   ;;  %v3910_v50 = vld [vmem:[%s4583_s8 + $0x200] ss:$8 sps:$4 sm:$0xff]  }
  0x79   : > { %2788 = vmatprep.subr.bf16.mxu1 %v3839_v51  ;;  %v3913_v51 = vld [vmem:[%s4583_s8 + $0x300] ss:$8 sps:$4 sm:$0xff]  }
  0x7b   : > { %2748 = vmatpush2.bf16.msra.mxu0 %v3841_v53  ;;  %v3921_v53 = vld [vmem:[%s4583_s8 + $0x3f4] ss:$8 sps:$4 sm:$0xff]  }
  0x7c   : > { %2789 = vmatpush2.bf16.msra.mxu1 %v3842_v55  ;;  %2749 = vmatprep.subr.bf16.mxu0 %v3843_v56  ;;  %v3919_v55 = vld [vmem:[%s4583_s8 + $0x3f0] ss:$8 sps:$4 sm:$0xff]   ;;  %v3924_v56 = vld [vmem:[%s4583_s8 + $0x2e4] ss:$8 sps:$4 sm:$0xff]  }
  0x7d   : > { %2790 = vmatprep.subr.bf16.mxu1 %v3845_v57  ;;  %v3927_v57 = vld [vmem:[%s4583_s8 + $0x3e4] ss:$8 sps:$4 sm:$0xff]  }
  0x7f   : > { %2750 = vmatpush2.bf16.msra.mxu0 %v3847_v59  ;;  %v3925_v59 = vld [vmem:[%s4583_s8 + $0x3e0] ss:$8 sps:$4 sm:$0xff]  }
  0x80   : > { %2791 = vmatpush2.bf16.msra.mxu1 %v3848_v61  ;;  %2751 = vmatprep.subr.bf16.mxu0 %v3849_v62  ;;  %v3933_v61 = vld [vmem:[%s4583_s8 + $0x3d4] ss:$8 sps:$4 sm:$0xff]   ;;  %v3928_v62 = vld [vmem:[%s4583_s8 + $0x2d0] ss:$8 sps:$4 sm:$0xff]  }
  0x81   : > { %2792 = vmatprep.subr.bf16.mxu1 %v3851_v63  ;;  %v3931_v63 = vld [vmem:[%s4583_s8 + $0x3d0] ss:$8 sps:$4 sm:$0xff]  }
  0x83   : > { %2752 = vmatpush2.bf16.msra.mxu0 %v3853_v2  ;;  %v3934_v2 = vld [vmem:[%s4583_s8 + $0x2c0] ss:$8 sps:$4 sm:$0xff]  }
  0x84   : > { %2793 = vmatpush2.bf16.msra.mxu1 %v3854_v3  ;;  %2753 = vmatprep.subr.bf16.mxu0 %v3855_v4  ;;  %v3937_v3 = vld [vmem:[%s4583_s8 + $0x3c0] ss:$8 sps:$4 sm:$0xff]   ;;  %v3942_v4 = vld [vmem:[%s4583_s8 + $0x2b4] ss:$8 sps:$4 sm:$0xff]  }
  0x85   : > { %2794 = vmatprep.subr.bf16.mxu1 %v3857_v5  ;;  %v3945_v5 = vld [vmem:[%s4583_s8 + $0x3b4] ss:$8 sps:$4 sm:$0xff]  }
  0x87   : > { %2754 = vmatpush2.bf16.msra.mxu0 %v3859_v7  ;;  %v3940_v7 = vld [vmem:[%s4583_s8 + $0x2b0] ss:$8 sps:$4 sm:$0xff]  }
  0x88   : > { %2795 = vmatpush2.bf16.msra.mxu1 %v3860_v8  ;;  %2755 = vmatprep.subr.bf16.mxu0 %v3861_v9  ;;  %v3943_v8 = vld [vmem:[%s4583_s8 + $0x3b0] ss:$8 sps:$4 sm:$0xff]   ;;  %v3948_v9 = vld [vmem:[%s4583_s8 + $0x2a4] ss:$8 sps:$4 sm:$0xff]  }
  0x89   : > { %2796 = vmatprep.subr.bf16.mxu1 %v3863_v10  ;;  %v3951_v10 = vld [vmem:[%s4583_s8 + $0x3a4] ss:$8 sps:$4 sm:$0xff]  }
  0x8b   : > { %2756 = vmatpush2.bf16.msra.mxu0 %v3865_v12  ;;  %v3949_v12 = vld [vmem:[%s4583_s8 + $0x3a0] ss:$8 sps:$4 sm:$0xff]  }
  0x8c   : > { %2797 = vmatpush2.bf16.msra.mxu1 %v3866_v14  ;;  %2807 = vmatprep.subr.bf16.mxu0 %v3870_v15  ;;  %v3957_v14 = vld [vmem:[%s4583_s8 + $0x394] ss:$8 sps:$4 sm:$0xff]   ;;  %v3952_v15 = vld [vmem:[%s4583_s8 + $0x290] ss:$8 sps:$4 sm:$0xff]  }
  0x8d   : > { %2848 = vmatprep.subr.bf16.mxu1 %v3873_v16  ;;  %v3955_v16 = vld [vmem:[%s4583_s8 + $0x390] ss:$8 sps:$4 sm:$0xff]  }
  0x8e   : > { %2758 = vmatmul.mubr.bf16.vlgmr.msra.gmra.mxu0 %v657_v13  ;;  %v3954_v13 = vld [vmem:[%s4583_s8 + $0x294] ss:$8 sps:$4 sm:$0xff]  }
  0x8f   : > { %2799 = vmatmul.mubr.bf16.vlgmr.msra.gmra.mxu1 %v679_v18  ;;  %2808 = vmatpush1.bf16.msra.mxu0 %v3868_v19  ;;  %v3963_v18 = vld [vmem:[%s4583_s8 + $0x384] ss:$8 sps:$4 sm:$0xff]   ;;  %v3958_v19 = vld [vmem:[%s4583_s8 + $0x280] ss:$8 sps:$4 sm:$0xff]  }
  0x90   : > { %2849 = vmatpush1.bf16.msra.mxu1 %v3871_v20  ;;  %2809 = vmatprep.subr.bf16.mxu0 %v3876_v21  ;;  %v664_v20 = vrot.slane %v4664_v6, %v4642_v49  ;;  %v3961_v21 = vld [vmem:[%s4583_s8 + $0x380] ss:$8 sps:$4 sm:$0xff]  }
  0x91   : > { %2850 = vmatprep.subr.bf16.mxu1 %v3879_v22  ;;  %2839 = vmatprep.mubr.bf16.mxu0 %v678_v17  ;;  %v3960_v17 = vld [vmem:[%s4583_s8 + $0x284] ss:$8 sps:$4 sm:$0xff]   ;;  %v3966_v22 = vld [vmem:[%s4583_s8 + $0x474] ss:$8 sps:$4 sm:$0xff]  }
  0x92   : > { %2880 = vmatprep.mubr.bf16.mxu1 %v682_v23  ;;  %v3969_v23 = vld [vmem:[%s4583_s8 + $0x574] ss:$8 sps:$4 sm:$0xff]   ;;  %v4749_v6 = vld [vmem:[%s5079_s0 + $0x8] sm:$0xff] }
  0x93   : > { %2810 = vmatpush1.bf16.msra.mxu0 %v3874_v24  ;;  %v680_v24 = vcombine.high %v664_v20, %v664_v20 }
  0x94   : > { %2851 = vmatpush1.bf16.msra.mxu1 %v3877_v25  ;;  %2811 = vmatprep.subr.bf16.mxu0 %v3882_v26  ;;  %v3964_v25 = vld [vmem:[%s4583_s8 + $0x470] ss:$8 sps:$4 sm:$0xff]  }
  0x95   : > { %2852 = vmatprep.subr.bf16.mxu1 %v3885_v27  ;;  %v3967_v26 = vld [vmem:[%s4583_s8 + $0x570] ss:$8 sps:$4 sm:$0xff]   ;;  %v3972_v27 = vld [vmem:[%s4583_s8 + $0x464] ss:$8 sps:$4 sm:$0xff]  }
  0x97   : > { %2812 = vmatpush1.bf16.msra.mxu0 %v3880_v28  ;;  %v3975_v28 = vld [vmem:[%s4583_s8 + $0x564] ss:$8 sps:$4 sm:$0xff]  }
  0x98   : > { %2853 = vmatpush1.bf16.msra.mxu1 %v3883_v29  ;;  %2813 = vmatprep.subr.bf16.mxu0 %v3888_v30  ;;  %v4755_v29 = vrot.slane %v4749_v6, %v4642_v49 }
  0x99   : > { %2854 = vmatprep.subr.bf16.mxu1 %v3891_v31  ;;  %v3970_v31 = vld [vmem:[%s4583_s8 + $0x460] ss:$8 sps:$4 sm:$0xff]  }
  0x9a   : > { %v698_v30 = vcombine.high %v4755_v29, %v4755_v29 }
  0x9b   : > { %2814 = vmatpush1.bf16.msra.mxu0 %v3886_v32  ;;  %v3973_v32 = vld [vmem:[%s4583_s8 + $0x560] ss:$8 sps:$4 sm:$0xff]  }
  0x9c   : > { %2855 = vmatpush1.bf16.msra.mxu1 %v3889_v33  ;;  %2815 = vmatprep.subr.bf16.mxu0 %v3894_v34  ;;  %v3978_v33 = vld [vmem:[%s4583_s8 + $0x454] ss:$8 sps:$4 sm:$0xff]  }
  0x9d   : > { %2856 = vmatprep.subr.bf16.mxu1 %v3897_v35  ;;  %v3981_v34 = vld [vmem:[%s4583_s8 + $0x554] ss:$8 sps:$4 sm:$0xff]   ;;  %v720_v35 = vrot.slane %v698_v30, %v4642_v49 }
  0x9f   : > { %2816 = vmatpush1.bf16.msra.mxu0 %v3892_v36  ;;  %v730_v36 = vcombine.high %v720_v35, %v720_v35 }
  0xa0   : > { %2857 = vmatpush1.bf16.msra.mxu1 %v3895_v37  ;;  %2817 = vmatprep.subr.bf16.mxu0 %v3900_v38  ;;  %v3976_v37 = vld [vmem:[%s4583_s8 + $0x450] ss:$8 sps:$4 sm:$0xff]  }
  0xa1   : > { %2858 = vmatprep.subr.bf16.mxu1 %v3903_v39  ;;  %v3979_v38 = vld [vmem:[%s4583_s8 + $0x550] ss:$8 sps:$4 sm:$0xff]   ;;  %v3984_v39 = vld [vmem:[%s4583_s8 + $0x444] ss:$8 sps:$4 sm:$0xff]  }
  0xa3   : > { %2818 = vmatpush1.bf16.msra.mxu0 %v3898_v40  ;;  %v3987_v40 = vld [vmem:[%s4583_s8 + $0x544] ss:$8 sps:$4 sm:$0xff]  }
  0xa4   : > { %2859 = vmatpush1.bf16.msra.mxu1 %v3901_v41  ;;  %2819 = vmatprep.subr.bf16.mxu0 %v3906_v43  ;;  %v3982_v41 = vld [vmem:[%s4583_s8 + $0x440] ss:$8 sps:$4 sm:$0xff]  }
  0xa5   : > { %2860 = vmatprep.subr.bf16.mxu1 %v3909_v44  ;;  %v3985_v43 = vld [vmem:[%s4583_s8 + $0x540] ss:$8 sps:$4 sm:$0xff]   ;;  %v3990_v44 = vld [vmem:[%s4583_s8 + $0x434] ss:$8 sps:$4 sm:$0xff]  }
  0xa7   : > { %2820 = vmatpush1.bf16.msra.mxu0 %v3904_v45  ;;  %v3993_v45 = vld [vmem:[%s4583_s8 + $0x534] ss:$8 sps:$4 sm:$0xff]  }
  0xa8   : > { %2861 = vmatpush1.bf16.msra.mxu1 %v3907_v46  ;;  %2821 = vmatprep.subr.bf16.mxu0 %v3912_v47  ;;  %v3988_v46 = vld [vmem:[%s4583_s8 + $0x430] ss:$8 sps:$4 sm:$0xff]  }
  0xa9   : > { %2862 = vmatprep.subr.bf16.mxu1 %v3915_v48  ;;  %v3991_v47 = vld [vmem:[%s4583_s8 + $0x530] ss:$8 sps:$4 sm:$0xff]   ;;  %v3996_v48 = vld [vmem:[%s4583_s8 + $0x424] ss:$8 sps:$4 sm:$0xff]  }
  0xab   : > { %2822 = vmatpush1.bf16.msra.mxu0 %v3910_v50  ;;  %v3999_v50 = vld [vmem:[%s4583_s8 + $0x524] ss:$8 sps:$4 sm:$0xff]  }
  0xac   : > { %2863 = vmatpush1.bf16.msra.mxu1 %v3913_v51  ;;  %2823 = vmatprep.subr.bf16.mxu0 %v3918_v52  ;;  %v3994_v51 = vld [vmem:[%s4583_s8 + $0x420] ss:$8 sps:$4 sm:$0xff]  }
  0xad   : > { %2864 = vmatprep.subr.bf16.mxu1 %v3921_v53  ;;  %v3997_v52 = vld [vmem:[%s4583_s8 + $0x520] ss:$8 sps:$4 sm:$0xff]   ;;  %v4002_v53 = vld [vmem:[%s4583_s8 + $0x414] ss:$8 sps:$4 sm:$0xff]  }
  0xaf   : > { %2824 = vmatpush2.bf16.msra.mxu0 %v3916_v54  ;;  %v4005_v54 = vld [vmem:[%s4583_s8 + $0x514] ss:$8 sps:$4 sm:$0xff]  }
  0xb0   : > { %2865 = vmatpush2.bf16.msra.mxu1 %v3919_v55  ;;  %2825 = vmatprep.subr.bf16.mxu0 %v3924_v56  ;;  %v4000_v55 = vld [vmem:[%s4583_s8 + $0x410] ss:$8 sps:$4 sm:$0xff]  }
  0xb1   : > { %2866 = vmatprep.subr.bf16.mxu1 %v3927_v57  ;;  %v4003_v56 = vld [vmem:[%s4583_s8 + $0x510] ss:$8 sps:$4 sm:$0xff]   ;;  %v4008_v57 = vld [vmem:[%s4583_s8 + $0x404] ss:$8 sps:$4 sm:$0xff]  }
  0xb3   : > { %2826 = vmatpush2.bf16.msra.mxu0 %v3922_v58  ;;  %v4011_v58 = vld [vmem:[%s4583_s8 + $0x504] ss:$8 sps:$4 sm:$0xff]  }
  0xb4   : > { %2867 = vmatpush2.bf16.msra.mxu1 %v3925_v59  ;;  %2827 = vmatprep.subr.bf16.mxu0 %v3930_v60  ;;  %v4006_v59 = vld [vmem:[%s4583_s8 + $0x400] ss:$8 sps:$4 sm:$0xff]  }
  0xb5   : > { %2868 = vmatprep.subr.bf16.mxu1 %v3933_v61  ;;  %v4009_v60 = vld [vmem:[%s4583_s8 + $0x500] ss:$8 sps:$4 sm:$0xff]   ;;  %v4014_v61 = vld [vmem:[%s4583_s8 + $0x4f4] ss:$8 sps:$4 sm:$0xff]  }
  0xb7   : > { %2828 = vmatpush2.bf16.msra.mxu0 %v3928_v62  ;;  %v4017_v62 = vld [vmem:[%s4583_s8 + $0x5f4] ss:$8 sps:$4 sm:$0xff]  }
  0xb8   : > { %2869 = vmatpush2.bf16.msra.mxu1 %v3931_v63  ;;  %2829 = vmatprep.subr.bf16.mxu0 %v3936_v0  ;;  %v4012_v63 = vld [vmem:[%s4583_s8 + $0x4f0] ss:$8 sps:$4 sm:$0xff]  }
  0xb9   : > { %2870 = vmatprep.subr.bf16.mxu1 %v3939_v1  ;;  %v4015_v0 = vld [vmem:[%s4583_s8 + $0x5f0] ss:$8 sps:$4 sm:$0xff]   ;;  %v4020_v1 = vld [vmem:[%s4583_s8 + $0x4e4] ss:$8 sps:$4 sm:$0xff]  }
  0xbb   : > { %2830 = vmatpush2.bf16.msra.mxu0 %v3934_v2  ;;  %v4023_v2 = vld [vmem:[%s4583_s8 + $0x5e4] ss:$8 sps:$4 sm:$0xff]  }
  0xbc   : > { %2871 = vmatpush2.bf16.msra.mxu1 %v3937_v3  ;;  %2831 = vmatprep.subr.bf16.mxu0 %v3942_v4  ;;  %v4018_v3 = vld [vmem:[%s4583_s8 + $0x4e0] ss:$8 sps:$4 sm:$0xff]  }
  0xbd   : > { %2872 = vmatprep.subr.bf16.mxu1 %v3945_v5  ;;  %v4021_v4 = vld [vmem:[%s4583_s8 + $0x5e0] ss:$8 sps:$4 sm:$0xff]   ;;  %v4026_v5 = vld [vmem:[%s4583_s8 + $0x4d4] ss:$8 sps:$4 sm:$0xff]  }
  0xbf   : > { %2832 = vmatpush2.bf16.msra.mxu0 %v3940_v7  ;;  %v4029_v7 = vld [vmem:[%s4583_s8 + $0x5d4] ss:$8 sps:$4 sm:$0xff]  }
  0xc0   : > { %2873 = vmatpush2.bf16.msra.mxu1 %v3943_v8  ;;  %2833 = vmatprep.subr.bf16.mxu0 %v3948_v9  ;;  %v4024_v8 = vld [vmem:[%s4583_s8 + $0x4d0] ss:$8 sps:$4 sm:$0xff]  }
  0xc1   : > { %2874 = vmatprep.subr.bf16.mxu1 %v3951_v10  ;;  %v4027_v9 = vld [vmem:[%s4583_s8 + $0x5d0] ss:$8 sps:$4 sm:$0xff]   ;;  %v4032_v10 = vld [vmem:[%s4583_s8 + $0x4c4] ss:$8 sps:$4 sm:$0xff]  }
  0xc3   : > { %2834 = vmatpush2.bf16.msra.mxu0 %v3946_v11  ;;  %v4035_v11 = vld [vmem:[%s4583_s8 + $0x5c4] ss:$8 sps:$4 sm:$0xff]  }
  0xc4   : > { %2875 = vmatpush2.bf16.msra.mxu1 %v3949_v12  ;;  %2835 = vmatprep.subr.bf16.mxu0 %v3954_v13  ;;  %v4030_v12 = vld [vmem:[%s4583_s8 + $0x4c0] ss:$8 sps:$4 sm:$0xff]  }
  0xc5   : > { %2876 = vmatprep.subr.bf16.mxu1 %v3957_v14  ;;  %v4033_v13 = vld [vmem:[%s4583_s8 + $0x5c0] ss:$8 sps:$4 sm:$0xff]   ;;  %v4038_v14 = vld [vmem:[%s4583_s8 + $0x4b4] ss:$8 sps:$4 sm:$0xff]  }
  0xc7   : > { %2836 = vmatpush2.bf16.msra.mxu0 %v3952_v15  ;;  %v4041_v15 = vld [vmem:[%s4583_s8 + $0x5b4] ss:$8 sps:$4 sm:$0xff]  }
  0xc8   : > { %2877 = vmatpush2.bf16.msra.mxu1 %v3955_v16  ;;  %2837 = vmatprep.subr.bf16.mxu0 %v3960_v17  ;;  %v4036_v16 = vld [vmem:[%s4583_s8 + $0x4b0] ss:$8 sps:$4 sm:$0xff]  }
  0xc9   : > { %2878 = vmatprep.subr.bf16.mxu1 %v3963_v18  ;;  %v4039_v17 = vld [vmem:[%s4583_s8 + $0x5b0] ss:$8 sps:$4 sm:$0xff]   ;;  %v4044_v18 = vld [vmem:[%s4583_s8 + $0x4a4] ss:$8 sps:$4 sm:$0xff]  }
  0xcb   : > { %2838 = vmatpush2.bf16.msra.mxu0 %v3958_v19  ;;  %v4047_v19 = vld [vmem:[%s4583_s8 + $0x5a4] ss:$8 sps:$4 sm:$0xff]  }
  0xcc   : > { %2879 = vmatpush2.bf16.msra.mxu1 %v3961_v21  ;;  %2889 = vmatprep.subr.bf16.mxu0 %v3966_v22  ;;  %v4042_v21 = vld [vmem:[%s4583_s8 + $0x4a0] ss:$8 sps:$4 sm:$0xff]  }
  0xcd   : > { %2930 = vmatprep.subr.bf16.mxu1 %v3969_v23  ;;  %v4045_v22 = vld [vmem:[%s4583_s8 + $0x5a0] ss:$8 sps:$4 sm:$0xff]   ;;  %v4050_v23 = vld [vmem:[%s4583_s8 + $0x494] ss:$8 sps:$4 sm:$0xff]  }
  0xce   : > { %2840 = vmatmul.mubr.bf16.vlgmr.msra.gmra.mxu0 %v664_v20  ;;  %v683_v20 = vcombine.high %v4749_v6, %v4749_v6  ;;  %v4051_v6 = vld [vmem:[%s4583_s8 + $0x590] ss:$8 sps:$4 sm:$0xff]  }
  0xcf   : > { %2881 = vmatmul.mubr.bf16.vlgmr.msra.gmra.mxu1 %v680_v24  ;;  %2890 = vmatpush1.bf16.msra.mxu0 %v3964_v25  ;;  %v4053_v24 = vld [vmem:[%s4583_s8 + $0x594] ss:$8 sps:$4 sm:$0xff]  }
  0xd0   : > { %2931 = vmatpush1.bf16.msra.mxu1 %v3967_v26  ;;  %2891 = vmatprep.subr.bf16.mxu0 %v3972_v27  ;;  %v4815_v25 = vrot.slane %v683_v20, %v4642_v49  ;;  %v4048_v26 = vld [vmem:[%s4583_s8 + $0x490] ss:$8 sps:$4 sm:$0xff]   ;;  %v4056_v27 = vld [vmem:[%s4583_s8 + $0x484] ss:$8 sps:$4 sm:$0xff]  }
  0xd1   : > { %2932 = vmatprep.subr.bf16.mxu1 %v3975_v28  ;;  %2921 = vmatprep.mubr.bf16.mxu0 %v720_v35  ;;  %v4059_v28 = vld [vmem:[%s4583_s8 + $0x584] ss:$8 sps:$4 sm:$0xff]   ;;  %v4065_v35 = vld [vmem:[%s4583_s8 + $0x774] ss:$8 sps:$4 sm:$0xff]  }
  0xd2   : > { %2962 = vmatprep.mubr.bf16.mxu1 %v730_v36  ;;  %v699_v30 = vcombine.high %v4815_v25, %v4815_v25  ;;  %v4131_v20 = vld [vmem:[%s4583_s8 + $0x7c4] ss:$8 sps:$4 sm:$0xff]  }
  0xd3   : > { %2892 = vmatpush1.bf16.msra.mxu0 %v3970_v31  ;;  %v4054_v31 = vld [vmem:[%s4583_s8 + $0x480] ss:$8 sps:$4 sm:$0xff]  }
  0xd4   : > { %2933 = vmatpush1.bf16.msra.mxu1 %v3973_v32  ;;  %2893 = vmatprep.subr.bf16.mxu0 %v3978_v33  ;;  %v706_v32 = vrot.slane %v4755_v29, %v4642_v49  ;;  %v4057_v33 = vld [vmem:[%s4583_s8 + $0x580] ss:$8 sps:$4 sm:$0xff]   ;;  %v727_v36 = vrot.slane %v699_v30, %v4642_v49  ;;  %v4068_v29 = vld [vmem:[%s4583_s8 + $0x664] ss:$8 sps:$4 sm:$0xff]  }
  0xd5   : > { %2934 = vmatprep.subr.bf16.mxu1 %v3981_v34  ;;  %v4062_v34 = vld [vmem:[%s4583_s8 + $0x674] ss:$8 sps:$4 sm:$0xff]   ;;  %v4138_v30 = vld [vmem:[%s4583_s8 + $0x6a0] ss:$8 sps:$4 sm:$0xff]  }
  0xd7   : > { %2894 = vmatpush1.bf16.msra.mxu0 %v3976_v37  ;;  %v728_v37 = vcombine.high %v706_v32, %v706_v32 }
  0xd8   : > { %2935 = vmatpush1.bf16.msra.mxu1 %v3979_v38  ;;  %2895 = vmatprep.subr.bf16.mxu0 %v3984_v39  ;;  %v4060_v38 = vld [vmem:[%s4583_s8 + $0x670] ss:$8 sps:$4 sm:$0xff]  }
  0xd9   : > { %2936 = vmatprep.subr.bf16.mxu1 %v3987_v40  ;;  %v4063_v39 = vld [vmem:[%s4583_s8 + $0x770] ss:$8 sps:$4 sm:$0xff]   ;;  %v4071_v40 = vld [vmem:[%s4583_s8 + $0x764] ss:$8 sps:$4 sm:$0xff]  }
  0xdb   : > { %2896 = vmatpush1.bf16.msra.mxu0 %v3982_v41  ;;  %v731_v41 = vcombine.high %v727_v36, %v727_v36 }
  0xdc   : > { %2937 = vmatpush1.bf16.msra.mxu1 %v3985_v43  ;;  %2897 = vmatprep.subr.bf16.mxu0 %v3990_v44  ;;  %v4066_v43 = vld [vmem:[%s4583_s8 + $0x660] ss:$8 sps:$4 sm:$0xff]  }
  0xdd   : > { %2938 = vmatprep.subr.bf16.mxu1 %v3993_v45  ;;  %v4069_v44 = vld [vmem:[%s4583_s8 + $0x760] ss:$8 sps:$4 sm:$0xff]   ;;  %v4074_v45 = vld [vmem:[%s4583_s8 + $0x654] ss:$8 sps:$4 sm:$0xff]  }
  0xdf   : > { %2898 = vmatpush1.bf16.msra.mxu0 %v3988_v46  ;;  %v4077_v46 = vld [vmem:[%s4583_s8 + $0x754] ss:$8 sps:$4 sm:$0xff]  }
  0xe0   : > { %2939 = vmatpush1.bf16.msra.mxu1 %v3991_v47  ;;  %2899 = vmatprep.subr.bf16.mxu0 %v3996_v48  ;;  %v4072_v47 = vld [vmem:[%s4583_s8 + $0x650] ss:$8 sps:$4 sm:$0xff]  }
  0xe1   : > { %2940 = vmatprep.subr.bf16.mxu1 %v3999_v50  ;;  %v4075_v48 = vld [vmem:[%s4583_s8 + $0x750] ss:$8 sps:$4 sm:$0xff]   ;;  %v4080_v50 = vld [vmem:[%s4583_s8 + $0x644] ss:$8 sps:$4 sm:$0xff]  }
  0xe3   : > { %2900 = vmatpush1.bf16.msra.mxu0 %v3994_v51  ;;  %v4083_v51 = vld [vmem:[%s4583_s8 + $0x744] ss:$8 sps:$4 sm:$0xff]  }
  0xe4   : > { %2941 = vmatpush1.bf16.msra.mxu1 %v3997_v52  ;;  %2901 = vmatprep.subr.bf16.mxu0 %v4002_v53  ;;  %v4078_v52 = vld [vmem:[%s4583_s8 + $0x640] ss:$8 sps:$4 sm:$0xff]  }
  0xe5   : > { %2942 = vmatprep.subr.bf16.mxu1 %v4005_v54  ;;  %v4081_v53 = vld [vmem:[%s4583_s8 + $0x740] ss:$8 sps:$4 sm:$0xff]   ;;  %v4086_v54 = vld [vmem:[%s4583_s8 + $0x634] ss:$8 sps:$4 sm:$0xff]  }
  0xe7   : > { %2902 = vmatpush1.bf16.msra.mxu0 %v4000_v55  ;;  %v4089_v55 = vld [vmem:[%s4583_s8 + $0x734] ss:$8 sps:$4 sm:$0xff]  }
  0xe8   : > { %2943 = vmatpush1.bf16.msra.mxu1 %v4003_v56  ;;  %2903 = vmatprep.subr.bf16.mxu0 %v4008_v57  ;;  %v4084_v56 = vld [vmem:[%s4583_s8 + $0x630] ss:$8 sps:$4 sm:$0xff]  }
  0xe9   : > { %2944 = vmatprep.subr.bf16.mxu1 %v4011_v58  ;;  %v4087_v57 = vld [vmem:[%s4583_s8 + $0x730] ss:$8 sps:$4 sm:$0xff]   ;;  %v4092_v58 = vld [vmem:[%s4583_s8 + $0x624] ss:$8 sps:$4 sm:$0xff]  }
  0xeb   : > { %2904 = vmatpush1.bf16.msra.mxu0 %v4006_v59  ;;  %v4095_v59 = vld [vmem:[%s4583_s8 + $0x724] ss:$8 sps:$4 sm:$0xff]  }
  0xec   : > { %2945 = vmatpush1.bf16.msra.mxu1 %v4009_v60  ;;  %2905 = vmatprep.subr.bf16.mxu0 %v4014_v61  ;;  %v4090_v60 = vld [vmem:[%s4583_s8 + $0x620] ss:$8 sps:$4 sm:$0xff]  }
  0xed   : > { %2946 = vmatprep.subr.bf16.mxu1 %v4017_v62  ;;  %v4093_v61 = vld [vmem:[%s4583_s8 + $0x720] ss:$8 sps:$4 sm:$0xff]   ;;  %v4098_v62 = vld [vmem:[%s4583_s8 + $0x614] ss:$8 sps:$4 sm:$0xff]  }
  0xef   : > { %2906 = vmatpush2.bf16.msra.mxu0 %v4012_v63  ;;  %v4101_v63 = vld [vmem:[%s4583_s8 + $0x714] ss:$8 sps:$4 sm:$0xff]  }
  0xf0   : > { %2947 = vmatpush2.bf16.msra.mxu1 %v4015_v0  ;;  %2907 = vmatprep.subr.bf16.mxu0 %v4020_v1  ;;  %v4096_v0 = vld [vmem:[%s4583_s8 + $0x610] ss:$8 sps:$4 sm:$0xff]  }
  0xf1   : > { %2948 = vmatprep.subr.bf16.mxu1 %v4023_v2  ;;  %v4099_v1 = vld [vmem:[%s4583_s8 + $0x710] ss:$8 sps:$4 sm:$0xff]   ;;  %v4104_v2 = vld [vmem:[%s4583_s8 + $0x604] ss:$8 sps:$4 sm:$0xff]  }
  0xf3   : > { %2908 = vmatpush2.bf16.msra.mxu0 %v4018_v3  ;;  %v4107_v3 = vld [vmem:[%s4583_s8 + $0x704] ss:$8 sps:$4 sm:$0xff]  }
  0xf4   : > { %2949 = vmatpush2.bf16.msra.mxu1 %v4021_v4  ;;  %2909 = vmatprep.subr.bf16.mxu0 %v4026_v5  ;;  %v4102_v4 = vld [vmem:[%s4583_s8 + $0x600] ss:$8 sps:$4 sm:$0xff]  }
  0xf5   : > { %2950 = vmatprep.subr.bf16.mxu1 %v4029_v7  ;;  %v4105_v5 = vld [vmem:[%s4583_s8 + $0x700] ss:$8 sps:$4 sm:$0xff]   ;;  %v4110_v7 = vld [vmem:[%s4583_s8 + $0x6f4] ss:$8 sps:$4 sm:$0xff]  }
  0xf7   : > { %2910 = vmatpush2.bf16.msra.mxu0 %v4024_v8  ;;  %v4113_v8 = vld [vmem:[%s4583_s8 + $0x7f4] ss:$8 sps:$4 sm:$0xff]  }
  0xf8   : > { %2951 = vmatpush2.bf16.msra.mxu1 %v4027_v9  ;;  %2911 = vmatprep.subr.bf16.mxu0 %v4032_v10  ;;  %v4108_v9 = vld [vmem:[%s4583_s8 + $0x6f0] ss:$8 sps:$4 sm:$0xff]  }
  0xf9   : > { %2952 = vmatprep.subr.bf16.mxu1 %v4035_v11  ;;  %v4111_v10 = vld [vmem:[%s4583_s8 + $0x7f0] ss:$8 sps:$4 sm:$0xff]   ;;  %v4116_v11 = vld [vmem:[%s4583_s8 + $0x6e4] ss:$8 sps:$4 sm:$0xff]  }
  0xfb   : > { %2912 = vmatpush2.bf16.msra.mxu0 %v4030_v12  ;;  %v4119_v12 = vld [vmem:[%s4583_s8 + $0x7e4] ss:$8 sps:$4 sm:$0xff]  }
  0xfc   : > { %2953 = vmatpush2.bf16.msra.mxu1 %v4033_v13  ;;  %2913 = vmatprep.subr.bf16.mxu0 %v4038_v14  ;;  %v4114_v13 = vld [vmem:[%s4583_s8 + $0x6e0] ss:$8 sps:$4 sm:$0xff]  }
  0xfd   : > { %2954 = vmatprep.subr.bf16.mxu1 %v4041_v15  ;;  %v4117_v14 = vld [vmem:[%s4583_s8 + $0x7e0] ss:$8 sps:$4 sm:$0xff]   ;;  %v4122_v15 = vld [vmem:[%s4583_s8 + $0x6d4] ss:$8 sps:$4 sm:$0xff]  }
  0xff   : > { %2914 = vmatpush2.bf16.msra.mxu0 %v4036_v16  ;;  %v4125_v16 = vld [vmem:[%s4583_s8 + $0x7d4] ss:$8 sps:$4 sm:$0xff]  }
 0x100   : > { %2955 = vmatpush2.bf16.msra.mxu1 %v4039_v17  ;;  %2915 = vmatprep.subr.bf16.mxu0 %v4044_v18  ;;  %v4120_v17 = vld [vmem:[%s4583_s8 + $0x6d0] ss:$8 sps:$4 sm:$0xff]  }
 0x101   : > { %2956 = vmatprep.subr.bf16.mxu1 %v4047_v19  ;;  %v4123_v18 = vld [vmem:[%s4583_s8 + $0x7d0] ss:$8 sps:$4 sm:$0xff]   ;;  %v4128_v19 = vld [vmem:[%s4583_s8 + $0x6c4] ss:$8 sps:$4 sm:$0xff]  }
 0x103   : > { %2916 = vmatpush2.bf16.msra.mxu0 %v4042_v21  ;;  %v4126_v21 = vld [vmem:[%s4583_s8 + $0x6c0] ss:$8 sps:$4 sm:$0xff]  }
 0x104   : > { %2957 = vmatpush2.bf16.msra.mxu1 %v4045_v22  ;;  %2917 = vmatprep.subr.bf16.mxu0 %v4050_v23  ;;  %v4129_v22 = vld [vmem:[%s4583_s8 + $0x7c0] ss:$8 sps:$4 sm:$0xff]   ;;  %v4134_v23 = vld [vmem:[%s4583_s8 + $0x6b4] ss:$8 sps:$4 sm:$0xff]  }
 0x105   : > { %2958 = vmatprep.subr.bf16.mxu1 %v4053_v24  ;;  %v4137_v24 = vld [vmem:[%s4583_s8 + $0x7b4] ss:$8 sps:$4 sm:$0xff]  }
 0x107   : > { %2918 = vmatpush2.bf16.msra.mxu0 %v4048_v26  ;;  %v4132_v26 = vld [vmem:[%s4583_s8 + $0x6b0] ss:$8 sps:$4 sm:$0xff]  }
 0x108   : > { %2959 = vmatpush2.bf16.msra.mxu1 %v4051_v6  ;;  %2919 = vmatprep.subr.bf16.mxu0 %v4056_v27  ;;  %v4135_v6 = vld [vmem:[%s4583_s8 + $0x7b0] ss:$8 sps:$4 sm:$0xff]   ;;  %v4140_v27 = vld [vmem:[%s4583_s8 + $0x6a4] ss:$8 sps:$4 sm:$0xff]  }
 0x109   : > { %2960 = vmatprep.subr.bf16.mxu1 %v4059_v28  ;;  %v4143_v28 = vld [vmem:[%s4583_s8 + $0x7a4] ss:$8 sps:$4 sm:$0xff]  }
 0x10b   : > { %2920 = vmatpush2.bf16.msra.mxu0 %v4054_v31  ;;  %v4141_v31 = vld [vmem:[%s4583_s8 + $0x7a0] ss:$8 sps:$4 sm:$0xff]  }
 0x10c   : > { %2961 = vmatpush2.bf16.msra.mxu1 %v4057_v33  ;;  %2971 = vmatprep.subr.bf16.mxu0 %v4062_v34  ;;  %v4146_v33 = vld [vmem:[%s4583_s8 + $0x694] ss:$8 sps:$4 sm:$0xff]  }
 0x10d   : > { %3012 = vmatprep.subr.bf16.mxu1 %v4065_v35  ;;  %v4149_v34 = vld [vmem:[%s4583_s8 + $0x794] ss:$8 sps:$4 sm:$0xff]  }
 0x10e   : > { %2922 = vmatmul.mubr.bf16.vlgmr.msra.gmra.mxu0 %v706_v32  ;;  %v4887_v32 = vld [vmem:[%s5079_s0 + $0x10] sm:$0xff] }
 0x10f   : > { %2963 = vmatmul.mubr.bf16.vlgmr.msra.gmra.mxu1 %v728_v37  ;;  %2972 = vmatpush1.bf16.msra.mxu0 %v4060_v38  ;;  %v4893_v35 = vrot.slane %v4887_v32, %v4642_v49  ;;  %v4147_v37 = vld [vmem:[%s4583_s8 + $0x790] ss:$8 sps:$4 sm:$0xff]   ;;  %v4152_v38 = vld [vmem:[%s4583_s8 + $0x684] ss:$8 sps:$4 sm:$0xff]  }
 0x110   : > { %3013 = vmatpush1.bf16.msra.mxu1 %v4063_v39  ;;  %2973 = vmatprep.subr.bf16.mxu0 %v4068_v29  ;;  %v4155_v39 = vld [vmem:[%s4583_s8 + $0x784] ss:$8 sps:$4 sm:$0xff]   ;;  %v4150_v29 = vld [vmem:[%s4583_s8 + $0x680] ss:$8 sps:$4 sm:$0xff]  }
 0x111   : > { %3014 = vmatprep.subr.bf16.mxu1 %v4071_v40  ;;  %3003 = vmatprep.mubr.bf16.mxu0 %v727_v36  ;;  %v4144_v36 = vld [vmem:[%s4583_s8 + $0x690] ss:$8 sps:$4 sm:$0xff]   ;;  %v747_v40 = vcombine.high %v4893_v35, %v4893_v35 }
 0x112   : > { %3044 = vmatprep.mubr.bf16.mxu1 %v731_v41  ;;  %v4153_v41 = vld [vmem:[%s4583_s8 + $0x780] ss:$8 sps:$4 sm:$0xff]  }
 0x113   : > { %2974 = vmatpush1.bf16.msra.mxu0 %v4066_v43  ;;  %v619_v43 = vld [vmem:[%s4589_s25] sm:$0x3] }
 0x114   : > { %3015 = vmatpush1.bf16.msra.mxu1 %v4069_v44  ;;  %2975 = vmatprep.subr.bf16.mxu0 %v4074_v45  ;;  %v713_v44 = vrot.slane %v4815_v25, %v4642_v49  ;;  %v623_v45 = vsub.s32 0, %v4634_v42 }
 0x115   : > { %3016 = vmatprep.subr.bf16.mxu1 %v4077_v46  ;;  %v4159_v46 = vld [vmem:[%s4583_s8 + $0x874] ss:$8 sps:$4 sm:$0xff]  }
 0x116   : > { %v624_v25 = vrot.slane %v619_v43, %v623_v45  ;;  %v4217_v45 = vld [vmem:[%s4583_s8 + $0x8d0] ss:$8 sps:$4 sm:$0xff]  }
 0x117   : > { %2976 = vmatpush1.bf16.msra.mxu0 %v4072_v47  ;;  %v4162_v47 = vld [vmem:[%s4583_s8 + $0x974] ss:$8 sps:$4 sm:$0xff]  }
 0x118   : > { %3017 = vmatpush1.bf16.msra.mxu1 %v4075_v48  ;;  %2977 = vmatprep.subr.bf16.mxu0 %v4080_v50  ;;  %v627_v48 = vsub.s32 1, %v4634_v42  ;;  %v769_v50 = vrot.slane %v747_v40, %v4642_v49  ;;  %v4211_v40 = vld [vmem:[%s4583_s8 + $0x8e0] ss:$8 sps:$4 sm:$0xff]  }
 0x119   : > { %3018 = vmatprep.subr.bf16.mxu1 %v4083_v51  ;;  %v729_v51 = vcombine.high %v713_v44, %v713_v44 }
 0x11b   : > { %2978 = vmatpush1.bf16.msra.mxu0 %v4078_v52  ;;  %v4157_v52 = vld [vmem:[%s4583_s8 + $0x870] ss:$8 sps:$4 sm:$0xff]  }
 0x11c   : > { %3019 = vmatpush1.bf16.msra.mxu1 %v4081_v53  ;;  %2979 = vmatprep.subr.bf16.mxu0 %v4086_v54  ;;  %v4160_v53 = vld [vmem:[%s4583_s8 + $0x970] ss:$8 sps:$4 sm:$0xff]   ;;  %v4165_v54 = vld [vmem:[%s4583_s8 + $0x864] ss:$8 sps:$4 sm:$0xff]  }
 0x11d   : > { %3020 = vmatprep.subr.bf16.mxu1 %v4089_v55  ;;  %v4168_v55 = vld [vmem:[%s4583_s8 + $0x964] ss:$8 sps:$4 sm:$0xff]  }
 0x11f   : > { %2980 = vmatpush1.bf16.msra.mxu0 %v4084_v56  ;;  %v628_v56 = vrot.slane %v619_v43, %v627_v48  ;;  %v4219_v43 = vld [vmem:[%s4583_s8 + $0x8d4] ss:$8 sps:$4 sm:$0xff]   ;;  %v4228_v48 = vld [vmem:[%s4583_s8 + $0x9c4] ss:$8 sps:$4 sm:$0xff]  }
 0x120   : > { %3021 = vmatpush1.bf16.msra.mxu1 %v4087_v57  ;;  %2981 = vmatprep.subr.bf16.mxu0 %v4092_v58  ;;  %v779_v57 = vcombine.high %v769_v50, %v769_v50 }
 0x121   : > { %3022 = vmatprep.subr.bf16.mxu1 %v4095_v59 }
 0x123   : > { %2982 = vmatpush1.bf16.msra.mxu0 %v4090_v60  ;;  %v4163_v60 = vld [vmem:[%s4583_s8 + $0x860] ss:$8 sps:$4 sm:$0xff]  }
 0x124   : > { %3023 = vmatpush1.bf16.msra.mxu1 %v4093_v61  ;;  %2983 = vmatprep.subr.bf16.mxu0 %v4098_v62  ;;  %v4166_v61 = vld [vmem:[%s4583_s8 + $0x960] ss:$8 sps:$4 sm:$0xff]  }
 0x125   : > { %3024 = vmatprep.subr.bf16.mxu1 %v4101_v63 }
 0x127   : > { %2984 = vmatpush1.bf16.msra.mxu0 %v4096_v0  ;;  %v4171_v0 = vld [vmem:[%s4583_s8 + $0x854] ss:$8 sps:$4 sm:$0xff]  }
 0x128   : > { %3025 = vmatpush1.bf16.msra.mxu1 %v4099_v1  ;;  %2985 = vmatprep.subr.bf16.mxu0 %v4104_v2  ;;  %v4174_v1 = vld [vmem:[%s4583_s8 + $0x954] ss:$8 sps:$4 sm:$0xff]  }
 0x129   : > { %3026 = vmatprep.subr.bf16.mxu1 %v4107_v3 }
 0x12b   : > { %2986 = vmatpush1.bf16.msra.mxu0 %v4102_v4 }
 0x12c   : > { %3027 = vmatpush1.bf16.msra.mxu1 %v4105_v5  ;;  %2987 = vmatprep.subr.bf16.mxu0 %v4110_v7 }
 0x12d   : > { %3028 = vmatprep.subr.bf16.mxu1 %v4113_v8  ;;  %v4169_v8 = vld [vmem:[%s4583_s8 + $0x850] ss:$8 sps:$4 sm:$0xff]  }
 0x12f   : > { %2988 = vmatpush2.bf16.msra.mxu0 %v4108_v9  ;;  %v4172_v9 = vld [vmem:[%s4583_s8 + $0x950] ss:$8 sps:$4 sm:$0xff]  }
 0x130   : > { %3029 = vmatpush2.bf16.msra.mxu1 %v4111_v10  ;;  %2989 = vmatprep.subr.bf16.mxu0 %v4116_v11 }
 0x131   : > { %3030 = vmatprep.subr.bf16.mxu1 %v4119_v12  ;;  %v4177_v12 = vld [vmem:[%s4583_s8 + $0x844] ss:$8 sps:$4 sm:$0xff]  }
 0x133   : > { %2990 = vmatpush2.bf16.msra.mxu0 %v4114_v13  ;;  %v4180_v13 = vld [vmem:[%s4583_s8 + $0x944] ss:$8 sps:$4 sm:$0xff]  }
 0x134   : > { %3031 = vmatpush2.bf16.msra.mxu1 %v4117_v14  ;;  %2991 = vmatprep.subr.bf16.mxu0 %v4122_v15  ;;  %v4175_v14 = vld [vmem:[%s4583_s8 + $0x840] ss:$8 sps:$4 sm:$0xff]  }
 0x135   : > { %3032 = vmatprep.subr.bf16.mxu1 %v4125_v16  ;;  %v4178_v15 = vld [vmem:[%s4583_s8 + $0x940] ss:$8 sps:$4 sm:$0xff]   ;;  %v4183_v16 = vld [vmem:[%s4583_s8 + $0x834] ss:$8 sps:$4 sm:$0xff]  }
 0x137   : > { %2992 = vmatpush2.bf16.msra.mxu0 %v4120_v17  ;;  %v4186_v17 = vld [vmem:[%s4583_s8 + $0x934] ss:$8 sps:$4 sm:$0xff]  }
 0x138   : > { %3033 = vmatpush2.bf16.msra.mxu1 %v4123_v18  ;;  %2993 = vmatprep.subr.bf16.mxu0 %v4128_v19  ;;  %v4181_v18 = vld [vmem:[%s4583_s8 + $0x830] ss:$8 sps:$4 sm:$0xff]  }
 0x139   : > { %3034 = vmatprep.subr.bf16.mxu1 %v4131_v20  ;;  %v4184_v19 = vld [vmem:[%s4583_s8 + $0x930] ss:$8 sps:$4 sm:$0xff]   ;;  %v4189_v20 = vld [vmem:[%s4583_s8 + $0x824] ss:$8 sps:$4 sm:$0xff]  }
 0x13b   : > { %2994 = vmatpush2.bf16.msra.mxu0 %v4126_v21  ;;  %v4192_v21 = vld [vmem:[%s4583_s8 + $0x924] ss:$8 sps:$4 sm:$0xff]  }
 0x13c   : > { %3035 = vmatpush2.bf16.msra.mxu1 %v4129_v22  ;;  %2995 = vmatprep.subr.bf16.mxu0 %v4134_v23  ;;  %v4187_v22 = vld [vmem:[%s4583_s8 + $0x820] ss:$8 sps:$4 sm:$0xff]  }
 0x13d   : > { %3036 = vmatprep.subr.bf16.mxu1 %v4137_v24  ;;  %v4190_v23 = vld [vmem:[%s4583_s8 + $0x920] ss:$8 sps:$4 sm:$0xff]   ;;  %v4195_v24 = vld [vmem:[%s4583_s8 + $0x814] ss:$8 sps:$4 sm:$0xff]  }
 0x13f   : > { %2996 = vmatpush2.bf16.msra.mxu0 %v4132_v26  ;;  %v4198_v26 = vld [vmem:[%s4583_s8 + $0x914] ss:$8 sps:$4 sm:$0xff]  }
 0x140   : > { %3037 = vmatpush2.bf16.msra.mxu1 %v4135_v6  ;;  %2997 = vmatprep.subr.bf16.mxu0 %v4140_v27  ;;  %v4193_v6 = vld [vmem:[%s4583_s8 + $0x810] ss:$8 sps:$4 sm:$0xff]  }
 0x141   : > { %3038 = vmatprep.subr.bf16.mxu1 %v4143_v28  ;;  %v4196_v27 = vld [vmem:[%s4583_s8 + $0x910] ss:$8 sps:$4 sm:$0xff]   ;;  %v4201_v28 = vld [vmem:[%s4583_s8 + $0x804] ss:$8 sps:$4 sm:$0xff]  }
 0x143   : > { %2998 = vmatpush2.bf16.msra.mxu0 %v4138_v30  ;;  %v4204_v30 = vld [vmem:[%s4583_s8 + $0x904] ss:$8 sps:$4 sm:$0xff]  }
 0x144   : > { %3039 = vmatpush2.bf16.msra.mxu1 %v4141_v31  ;;  %2999 = vmatprep.subr.bf16.mxu0 %v4146_v33  ;;  %v4199_v31 = vld [vmem:[%s4583_s8 + $0x800] ss:$8 sps:$4 sm:$0xff]  }
 0x145   : > { %3040 = vmatprep.subr.bf16.mxu1 %v4149_v34  ;;  %v4202_v33 = vld [vmem:[%s4583_s8 + $0x900] ss:$8 sps:$4 sm:$0xff]   ;;  %v4207_v34 = vld [vmem:[%s4583_s8 + $0x8f4] ss:$8 sps:$4 sm:$0xff]  }
 0x147   : > { %3000 = vmatpush2.bf16.msra.mxu0 %v4144_v36  ;;  %v4210_v36 = vld [vmem:[%s4583_s8 + $0x9f4] ss:$8 sps:$4 sm:$0xff]  }
 0x148   : > { %3041 = vmatpush2.bf16.msra.mxu1 %v4147_v37  ;;  %3001 = vmatprep.subr.bf16.mxu0 %v4152_v38  ;;  %v4205_v37 = vld [vmem:[%s4583_s8 + $0x8f0] ss:$8 sps:$4 sm:$0xff]  }
 0x149   : > { %3042 = vmatprep.subr.bf16.mxu1 %v4155_v39  ;;  %v4208_v38 = vld [vmem:[%s4583_s8 + $0x9f0] ss:$8 sps:$4 sm:$0xff]   ;;  %v4213_v39 = vld [vmem:[%s4583_s8 + $0x8e4] ss:$8 sps:$4 sm:$0xff]  }
 0x14b   : > { %3002 = vmatpush2.bf16.msra.mxu0 %v4150_v29  ;;  %v4216_v29 = vld [vmem:[%s4583_s8 + $0x9e4] ss:$8 sps:$4 sm:$0xff]  }
 0x14c   : > { %3043 = vmatpush2.bf16.msra.mxu1 %v4153_v41  ;;  %3053 = vmatprep.subr.bf16.mxu0 %v4159_v46  ;;  %v4214_v41 = vld [vmem:[%s4583_s8 + $0x9e0] ss:$8 sps:$4 sm:$0xff]   ;;  %v4220_v46 = vld [vmem:[%s4583_s8 + $0x9d0] ss:$8 sps:$4 sm:$0xff]  }
 0x14d   : > { %3094 = vmatprep.subr.bf16.mxu1 %v4162_v47  ;;  %v4225_v47 = vld [vmem:[%s4583_s8 + $0x8c4] ss:$8 sps:$4 sm:$0xff]  }
 0x14e   : > { %v2759_v58 = vpop.f32.mrf.mxu0  ;;  %3004 = vmatmul.mubr.bf16.vlgmr.msra.gmra.mxu0 %v713_v44  ;;  %v4222_v44 = vld [vmem:[%s4583_s8 + $0x9d4] ss:$8 sps:$4 sm:$0xff]  }
 0x14f   : > { %v2800_v42 = vpop.f32.mrf.mxu1  ;;  %3045 = vmatmul.mubr.bf16.vlgmr.msra.gmra.mxu1 %v729_v51  ;;  %v2760_v59 = vadd.f32 %v2759_v58, %v624_v25  ;;  %3054 = vmatpush1.bf16.msra.mxu0 %v4157_v52  ;;  %v4226_v51 = vld [vmem:[%s4583_s8 + $0x9c0] ss:$8 sps:$4 sm:$0xff]   ;;  %v4231_v52 = vld [vmem:[%s4583_s8 + $0x8b4] ss:$8 sps:$4 sm:$0xff]  }
 0x150   : > { %3095 = vmatpush1.bf16.msra.mxu1 %v4160_v53  ;;  %v2761_v62 = vpop.f32.mrf.mxu0  ;;  %3055 = vmatprep.subr.bf16.mxu0 %v4165_v54  ;;  %v4234_v25 = vld [vmem:[%s4583_s8 + $0x9b4] ss:$8 sps:$4 sm:$0xff]   ;;  %v4229_v53 = vld [vmem:[%s4583_s8 + $0x8b0] ss:$8 sps:$4 sm:$0xff]   ;;  %v4235_v58 = vld [vmem:[%s4583_s8 + $0x8a0] ss:$8 sps:$4 sm:$0xff]  }
 0x151   : > { %v2802_v63 = vpop.f32.mrf.mxu1  ;;  %3096 = vmatprep.subr.bf16.mxu1 %v4168_v55  ;;  %v4919_v2 = vadd.f32 %v2800_v42, %v2760_v59  ;;  %v2762_v3 = vadd.f32 %v2761_v62, %v628_v56  ;;  %3085 = vmatprep.mubr.bf16.mxu0 %v769_v50  ;;  %v4223_v50 = vld [vmem:[%s4583_s8 + $0x8c0] ss:$8 sps:$4 sm:$0xff]   ;;  %v4232_v54 = vld [vmem:[%s4583_s8 + $0x9b0] ss:$8 sps:$4 sm:$0xff]   ;;  %v4237_v55 = vld [vmem:[%s4583_s8 + $0x8a4] ss:$8 sps:$4 sm:$0xff]  }
 0x152   : > { %3126 = vmatprep.mubr.bf16.mxu1 %v779_v57  ;;  %v2763_v4 = vpop.f32.mrf.mxu0  ;;  %v4240_v56 = vld [vmem:[%s4583_s8 + $0x9a4] ss:$8 sps:$4 sm:$0xff]   ;;  %v732_v57 = vcombine.high %v4887_v32, %v4887_v32  ;;  %v4238_v42 = vld [vmem:[%s4583_s8 + $0x9a0] ss:$8 sps:$4 sm:$0xff]   ;;  %v4243_v59 = vld [vmem:[%s4583_s8 + $0x894] ss:$8 sps:$4 sm:$0xff]  }
 0x153   : > { %v2804_v5 = vpop.f32.mrf.mxu1  ;;  %v4921_v7 = vadd.f32 %v2802_v63, %v2762_v3  ;;  %3056 = vmatpush1.bf16.msra.mxu0 %v4163_v60  ;;  %v4246_v60 = vld [vmem:[%s4583_s8 + $0x994] ss:$8 sps:$4 sm:$0xff]   ;;  %v4241_v32 = vld [vmem:[%s4583_s8 + $0x890] ss:$8 sps:$4 sm:$0xff]   ;;  %v4249_v63 = vld [vmem:[%s4583_s8 + $0x884] ss:$8 sps:$4 sm:$0xff]   ;;  %v755_v3 = vrot.slane %v4893_v35, %v4642_v49 }
 0x154   : > { %3097 = vmatpush1.bf16.msra.mxu1 %v4166_v61  ;;  %v2764_v10 = vpop.f32.mrf.mxu0  ;;  %3057 = vmatprep.subr.bf16.mxu0 %v4171_v0  ;;  %v4974_v61 = vrot.slane %v732_v57, %v4642_v49  ;;  %v4244_v62 = vld [vmem:[%s4583_s8 + $0x990] ss:$8 sps:$4 sm:$0xff]   ;;  %v4252_v0 = vld [vmem:[%s4583_s8 + $0x984] ss:$8 sps:$4 sm:$0xff]   ;;  %v4247_v4 = vld [vmem:[%s4583_s8 + $0x880] ss:$8 sps:$4 sm:$0xff]  }
 0x155   : > { %v2805_v11 = vpop.f32.mrf.mxu1  ;;  %3098 = vmatprep.subr.bf16.mxu1 %v4174_v1  ;;  %v4250_v5 = vld [vmem:[%s4583_s8 + $0x980] ss:$8 sps:$4 sm:$0xff]   ;;  %v4261_v35 = vld [vmem:[%s4583_s8 + $0xa64] ss:$8 sps:$4 sm:$0xff]   ;;  %v4301_v57 = vld [vmem:[%s4583_s8 + $0xaf0] ss:$8 sps:$4 sm:$0xff]  }
 0x156   : > { %v748_v1 = vcombine.high %v4974_v61, %v4974_v61  ;;  %v777_v11 = vcombine.high %v755_v3, %v755_v3 }
 0x157   : > { %3058 = vmatpush1.bf16.msra.mxu0 %v4169_v8  ;;  %v4255_v8 = vld [vmem:[%s4583_s8 + $0xa74] ss:$8 sps:$4 sm:$0xff]  }
 0x158   : > { %3099 = vmatpush1.bf16.msra.mxu1 %v4172_v9  ;;  %3059 = vmatprep.subr.bf16.mxu0 %v4177_v12  ;;  %v4258_v9 = vld [vmem:[%s4583_s8 + $0xb74] ss:$8 sps:$4 sm:$0xff]   ;;  %v776_v10 = vrot.slane %v748_v1, %v4642_v49  ;;  %v4253_v12 = vld [vmem:[%s4583_s8 + $0xa70] ss:$8 sps:$4 sm:$0xff]  }
 0x159   : > { %3100 = vmatprep.subr.bf16.mxu1 %v4180_v13  ;;  %v4256_v13 = vld [vmem:[%s4583_s8 + $0xb70] ss:$8 sps:$4 sm:$0xff]  }
 0x15a   : > { %v4316_v1 = vld [vmem:[%s4583_s8 + $0xbd0] ss:$8 sps:$4 sm:$0xff]  }
 0x15b   : > { %3060 = vmatpush1.bf16.msra.mxu0 %v4175_v14  ;;  %v4264_v14 = vld [vmem:[%s4583_s8 + $0xb64] ss:$8 sps:$4 sm:$0xff]  }
 0x15c   : > { %3101 = vmatpush1.bf16.msra.mxu1 %v4178_v15  ;;  %3061 = vmatprep.subr.bf16.mxu0 %v4183_v16  ;;  %v780_v15 = vcombine.high %v776_v10, %v776_v10 }
 0x15d   : > { %3102 = vmatprep.subr.bf16.mxu1 %v4186_v17 }
 0x15f   : > { %3062 = vmatpush1.bf16.msra.mxu0 %v4181_v18 }
 0x160   : > { %3103 = vmatpush1.bf16.msra.mxu1 %v4184_v19  ;;  %3063 = vmatprep.subr.bf16.mxu0 %v4189_v20  ;;  %v4259_v19 = vld [vmem:[%s4583_s8 + $0xa60] ss:$8 sps:$4 sm:$0xff]  }
 0x161   : > { %3104 = vmatprep.subr.bf16.mxu1 %v4192_v21  ;;  %v4262_v20 = vld [vmem:[%s4583_s8 + $0xb60] ss:$8 sps:$4 sm:$0xff]  }
 0x163   : > { %3064 = vmatpush1.bf16.msra.mxu0 %v4187_v22 }
 0x164   : > { %3105 = vmatpush1.bf16.msra.mxu1 %v4190_v23  ;;  %3065 = vmatprep.subr.bf16.mxu0 %v4195_v24  ;;  %v4267_v23 = vld [vmem:[%s4583_s8 + $0xa54] ss:$8 sps:$4 sm:$0xff]  }
 0x165   : > { %3106 = vmatprep.subr.bf16.mxu1 %v4198_v26  ;;  %v4270_v24 = vld [vmem:[%s4583_s8 + $0xb54] ss:$8 sps:$4 sm:$0xff]  }
 0x167   : > { %3066 = vmatpush1.bf16.msra.mxu0 %v4193_v6 }
 0x168   : > { %3107 = vmatpush1.bf16.msra.mxu1 %v4196_v27  ;;  %3067 = vmatprep.subr.bf16.mxu0 %v4201_v28 }
 0x169   : > { %3108 = vmatprep.subr.bf16.mxu1 %v4204_v30  ;;  %v4265_v30 = vld [vmem:[%s4583_s8 + $0xa50] ss:$8 sps:$4 sm:$0xff]  }
 0x16b   : > { %3068 = vmatpush1.bf16.msra.mxu0 %v4199_v31  ;;  %v4268_v31 = vld [vmem:[%s4583_s8 + $0xb50] ss:$8 sps:$4 sm:$0xff]  }
 0x16c   : > { %3109 = vmatpush1.bf16.msra.mxu1 %v4202_v33  ;;  %3069 = vmatprep.subr.bf16.mxu0 %v4207_v34 }
 0x16d   : > { %3110 = vmatprep.subr.bf16.mxu1 %v4210_v36  ;;  %v4276_v36 = vld [vmem:[%s4583_s8 + $0xb44] ss:$8 sps:$4 sm:$0xff]  }
 0x16f   : > { %3070 = vmatpush2.bf16.msra.mxu0 %v4205_v37  ;;  %v4271_v37 = vld [vmem:[%s4583_s8 + $0xa40] ss:$8 sps:$4 sm:$0xff]  }
 0x170   : > { %3111 = vmatpush2.bf16.msra.mxu1 %v4208_v38  ;;  %3071 = vmatprep.subr.bf16.mxu0 %v4213_v39  ;;  %v4274_v38 = vld [vmem:[%s4583_s8 + $0xb40] ss:$8 sps:$4 sm:$0xff]   ;;  %v4279_v39 = vld [vmem:[%s4583_s8 + $0xa34] ss:$8 sps:$4 sm:$0xff]  }
 0x171   : > { %3112 = vmatprep.subr.bf16.mxu1 %v4216_v29  ;;  %v4282_v29 = vld [vmem:[%s4583_s8 + $0xb34] ss:$8 sps:$4 sm:$0xff]  }
 0x173   : > { %3072 = vmatpush2.bf16.msra.mxu0 %v4211_v40  ;;  %v4277_v40 = vld [vmem:[%s4583_s8 + $0xa30] ss:$8 sps:$4 sm:$0xff]  }
 0x174   : > { %3113 = vmatpush2.bf16.msra.mxu1 %v4214_v41  ;;  %3073 = vmatprep.subr.bf16.mxu0 %v4219_v43  ;;  %v4280_v41 = vld [vmem:[%s4583_s8 + $0xb30] ss:$8 sps:$4 sm:$0xff]   ;;  %v4285_v43 = vld [vmem:[%s4583_s8 + $0xa24] ss:$8 sps:$4 sm:$0xff]  }
 0x175   : > { %3114 = vmatprep.subr.bf16.mxu1 %v4222_v44  ;;  %v4288_v44 = vld [vmem:[%s4583_s8 + $0xb24] ss:$8 sps:$4 sm:$0xff]  }
 0x177   : > { %3074 = vmatpush2.bf16.msra.mxu0 %v4217_v45  ;;  %v4283_v45 = vld [vmem:[%s4583_s8 + $0xa20] ss:$8 sps:$4 sm:$0xff]  }
 0x178   : > { %3115 = vmatpush2.bf16.msra.mxu1 %v4220_v46  ;;  %3075 = vmatprep.subr.bf16.mxu0 %v4225_v47  ;;  %v4286_v46 = vld [vmem:[%s4583_s8 + $0xb20] ss:$8 sps:$4 sm:$0xff]   ;;  %v4291_v47 = vld [vmem:[%s4583_s8 + $0xa14] ss:$8 sps:$4 sm:$0xff]  }
 0x179   : > { %3116 = vmatprep.subr.bf16.mxu1 %v4228_v48  ;;  %v4294_v48 = vld [vmem:[%s4583_s8 + $0xb14] ss:$8 sps:$4 sm:$0xff]  }
 0x17b   : > { %3076 = vmatpush2.bf16.msra.mxu0 %v4223_v50  ;;  %v4289_v50 = vld [vmem:[%s4583_s8 + $0xa10] ss:$8 sps:$4 sm:$0xff]  }
 0x17c   : > { %3117 = vmatpush2.bf16.msra.mxu1 %v4226_v51  ;;  %3077 = vmatprep.subr.bf16.mxu0 %v4231_v52  ;;  %v4292_v51 = vld [vmem:[%s4583_s8 + $0xb10] ss:$8 sps:$4 sm:$0xff]   ;;  %v4297_v52 = vld [vmem:[%s4583_s8 + $0xa04] ss:$8 sps:$4 sm:$0xff]  }
 0x17d   : > { %3118 = vmatprep.subr.bf16.mxu1 %v4234_v25  ;;  %v4300_v25 = vld [vmem:[%s4583_s8 + $0xb04] ss:$8 sps:$4 sm:$0xff]  }
 0x17f   : > { %3078 = vmatpush2.bf16.msra.mxu0 %v4229_v53  ;;  %v4295_v53 = vld [vmem:[%s4583_s8 + $0xa00] ss:$8 sps:$4 sm:$0xff]  }
 0x180   : > { %3119 = vmatpush2.bf16.msra.mxu1 %v4232_v54  ;;  %3079 = vmatprep.subr.bf16.mxu0 %v4237_v55  ;;  %v4298_v54 = vld [vmem:[%s4583_s8 + $0xb00] ss:$8 sps:$4 sm:$0xff]   ;;  %v4303_v55 = vld [vmem:[%s4583_s8 + $0xaf4] ss:$8 sps:$4 sm:$0xff]  }
 0x181   : > { %3120 = vmatprep.subr.bf16.mxu1 %v4240_v56  ;;  %v4306_v56 = vld [vmem:[%s4583_s8 + $0xbf4] ss:$8 sps:$4 sm:$0xff]  }
 0x183   : > { %3080 = vmatpush2.bf16.msra.mxu0 %v4235_v58  ;;  %v4304_v58 = vld [vmem:[%s4583_s8 + $0xbf0] ss:$8 sps:$4 sm:$0xff]  }
 0x184   : > { %3121 = vmatpush2.bf16.msra.mxu1 %v4238_v42  ;;  %3081 = vmatprep.subr.bf16.mxu0 %v4243_v59  ;;  %v4309_v42 = vld [vmem:[%s4583_s8 + $0xae4] ss:$8 sps:$4 sm:$0xff]  }
 0x185   : > { %3122 = vmatprep.subr.bf16.mxu1 %v4246_v60  ;;  %v4312_v59 = vld [vmem:[%s4583_s8 + $0xbe4] ss:$8 sps:$4 sm:$0xff]   ;;  %v4307_v60 = vld [vmem:[%s4583_s8 + $0xae0] ss:$8 sps:$4 sm:$0xff]  }
 0x187   : > { %3082 = vmatpush2.bf16.msra.mxu0 %v4241_v32  ;;  %v4310_v32 = vld [vmem:[%s4583_s8 + $0xbe0] ss:$8 sps:$4 sm:$0xff]  }
 0x188   : > { %3123 = vmatpush2.bf16.msra.mxu1 %v4244_v62  ;;  %3083 = vmatprep.subr.bf16.mxu0 %v4249_v63  ;;  %v4315_v62 = vld [vmem:[%s4583_s8 + $0xad4] ss:$8 sps:$4 sm:$0xff]  }
 0x189   : > { %3124 = vmatprep.subr.bf16.mxu1 %v4252_v0  ;;  %v4318_v63 = vld [vmem:[%s4583_s8 + $0xbd4] ss:$8 sps:$4 sm:$0xff]   ;;  %v4313_v0 = vld [vmem:[%s4583_s8 + $0xad0] ss:$8 sps:$4 sm:$0xff]  }
 0x18b   : > { %3084 = vmatpush2.bf16.msra.mxu0 %v4247_v4  ;;  %v4324_v4 = vld [vmem:[%s4583_s8 + $0xbc4] ss:$8 sps:$4 sm:$0xff]  }
 0x18c   : > { %3125 = vmatpush2.bf16.msra.mxu1 %v4250_v5  ;;  %3135 = vmatprep.subr.bf16.mxu0 %v4255_v8  ;;  %v4319_v5 = vld [vmem:[%s4583_s8 + $0xac0] ss:$8 sps:$4 sm:$0xff]  }
 0x18d   : > { %3176 = vmatprep.subr.bf16.mxu1 %v4258_v9  ;;  %v4322_v8 = vld [vmem:[%s4583_s8 + $0xbc0] ss:$8 sps:$4 sm:$0xff]   ;;  %v4327_v9 = vld [vmem:[%s4583_s8 + $0xab4] ss:$8 sps:$4 sm:$0xff]  }
 0x18e   : > { %v2841_v16 = vpop.f32.mrf.mxu0  ;;  %3086 = vmatmul.mubr.bf16.vlgmr.msra.gmra.mxu0 %v755_v3  ;;  %v4321_v3 = vld [vmem:[%s4583_s8 + $0xac4] ss:$8 sps:$4 sm:$0xff]  }
 0x18f   : > { %v2882_v17 = vpop.f32.mrf.mxu1  ;;  %3127 = vmatmul.mubr.bf16.vlgmr.msra.gmra.mxu1 %v777_v11  ;;  %v2842_v18 = vadd.f32 %v2841_v16, %v4919_v2  ;;  %3136 = vmatpush1.bf16.msra.mxu0 %v4253_v12  ;;  %v4325_v11 = vld [vmem:[%s4583_s8 + $0xab0] ss:$8 sps:$4 sm:$0xff]   ;;  %v4339_v16 = vld [vmem:[%s4583_s8 + $0xa94] ss:$8 sps:$4 sm:$0xff]  }
 0x190   : > { %3177 = vmatpush1.bf16.msra.mxu1 %v4256_v13  ;;  %v2843_v21 = vpop.f32.mrf.mxu0  ;;  %3137 = vmatprep.subr.bf16.mxu0 %v4261_v35  ;;  %v4328_v12 = vld [vmem:[%s4583_s8 + $0xbb0] ss:$8 sps:$4 sm:$0xff]   ;;  %v4333_v13 = vld [vmem:[%s4583_s8 + $0xaa4] ss:$8 sps:$4 sm:$0xff]  }
 0x191   : > { %v2884_v22 = vpop.f32.mrf.mxu1  ;;  %3178 = vmatprep.subr.bf16.mxu1 %v4264_v14  ;;  %v4998_v26 = vadd.f32 %v2882_v17, %v2842_v18  ;;  %v2844_v6 = vadd.f32 %v2843_v21, %v4921_v7  ;;  %3167 = vmatprep.mubr.bf16.mxu0 %v776_v10  ;;  %v4273_v7 = vld [vmem:[%s4583_s8 + $0xa44] ss:$8 sps:$4 sm:$0xff]   ;;  %v4330_v10 = vld [vmem:[%s4583_s8 + $0xbb4] ss:$8 sps:$4 sm:$0xff]   ;;  %v4331_v14 = vld [vmem:[%s4583_s8 + $0xaa0] ss:$8 sps:$4 sm:$0xff]  }
 0x192   : > { %3208 = vmatprep.mubr.bf16.mxu1 %v780_v15  ;;  %v2845_v2 = vpop.f32.mrf.mxu0  ;;  %v4336_v35 = vld [vmem:[%s4583_s8 + $0xba4] ss:$8 sps:$4 sm:$0xff]   ;;  %v4334_v15 = vld [vmem:[%s4583_s8 + $0xba0] ss:$8 sps:$4 sm:$0xff]   ;;  %v4342_v17 = vld [vmem:[%s4583_s8 + $0xb94] ss:$8 sps:$4 sm:$0xff]  }
 0x193   : > { %v2886_v27 = vpop.f32.mrf.mxu1  ;;  %v5001_v28 = vadd.f32 %v2884_v22, %v2844_v6  ;;  %3138 = vmatpush1.bf16.msra.mxu0 %v4259_v19  ;;  %v4337_v18 = vld [vmem:[%s4583_s8 + $0xa90] ss:$8 sps:$4 sm:$0xff]   ;;  %v4348_v21 = vld [vmem:[%s4583_s8 + $0xb84] ss:$8 sps:$4 sm:$0xff]   ;;  %v762_v22 = vrot.slane %v4974_v61, %v4642_v49 }
 0x194   : > { %3179 = vmatpush1.bf16.msra.mxu1 %v4262_v20  ;;  %v2846_v33 = vpop.f32.mrf.mxu0  ;;  %3139 = vmatprep.subr.bf16.mxu0 %v4267_v23  ;;  %v4340_v19 = vld [vmem:[%s4583_s8 + $0xb90] ss:$8 sps:$4 sm:$0xff]   ;;  %v4345_v20 = vld [vmem:[%s4583_s8 + $0xa84] ss:$8 sps:$4 sm:$0xff]   ;;  %v4343_v23 = vld [vmem:[%s4583_s8 + $0xa80] ss:$8 sps:$4 sm:$0xff]  }
 0x195   : > { %v2887_v34 = vpop.f32.mrf.mxu1  ;;  %3180 = vmatprep.subr.bf16.mxu1 %v4270_v24  ;;  %v4346_v24 = vld [vmem:[%s4583_s8 + $0xb80] ss:$8 sps:$4 sm:$0xff]   ;;  %v778_v6 = vcombine.high %v762_v22, %v762_v22 }
 0x197   : > { %3140 = vmatpush1.bf16.msra.mxu0 %v4265_v30 }
 0x198   : > { %3181 = vmatpush1.bf16.msra.mxu1 %v4268_v31  ;;  %3141 = vmatprep.subr.bf16.mxu0 %v4273_v7 }
 0x199   : > { %3182 = vmatprep.subr.bf16.mxu1 %v4276_v36 }
 0x19b   : > { %3142 = vmatpush1.bf16.msra.mxu0 %v4271_v37 }
 0x19c   : > { %3183 = vmatpush1.bf16.msra.mxu1 %v4274_v38  ;;  %3143 = vmatprep.subr.bf16.mxu0 %v4279_v39 }
 0x19d   : > { %3184 = vmatprep.subr.bf16.mxu1 %v4282_v29 }
 0x19f   : > { %3144 = vmatpush1.bf16.msra.mxu0 %v4277_v40 }
 0x1a0   : > { %3185 = vmatpush1.bf16.msra.mxu1 %v4280_v41  ;;  %3145 = vmatprep.subr.bf16.mxu0 %v4285_v43 }
 0x1a1   : > { %3186 = vmatprep.subr.bf16.mxu1 %v4288_v44 }
 0x1a3   : > { %3146 = vmatpush1.bf16.msra.mxu0 %v4283_v45 }
 0x1a4   : > { %3187 = vmatpush1.bf16.msra.mxu1 %v4286_v46  ;;  %3147 = vmatprep.subr.bf16.mxu0 %v4291_v47 }
 0x1a5   : > { %3188 = vmatprep.subr.bf16.mxu1 %v4294_v48 }
 0x1a7   : > { %3148 = vmatpush1.bf16.msra.mxu0 %v4289_v50 }
 0x1a8   : > { %3189 = vmatpush1.bf16.msra.mxu1 %v4292_v51  ;;  %3149 = vmatprep.subr.bf16.mxu0 %v4297_v52 }
 0x1a9   : > { %3190 = vmatprep.subr.bf16.mxu1 %v4300_v25 }
 0x1ab   : > { %3150 = vmatpush1.bf16.msra.mxu0 %v4295_v53 }
 0x1ac   : > { %3191 = vmatpush1.bf16.msra.mxu1 %v4298_v54  ;;  %3151 = vmatprep.subr.bf16.mxu0 %v4303_v55 }
 0x1ad   : > { %3192 = vmatprep.subr.bf16.mxu1 %v4306_v56 }
 0x1af   : > { %3152 = vmatpush2.bf16.msra.mxu0 %v4301_v57 }
 0x1b0   : > { %3193 = vmatpush2.bf16.msra.mxu1 %v4304_v58  ;;  %3153 = vmatprep.subr.bf16.mxu0 %v4309_v42 }
 0x1b1   : > { %3194 = vmatprep.subr.bf16.mxu1 %v4312_v59 }
 0x1b3   : > { %3154 = vmatpush2.bf16.msra.mxu0 %v4307_v60 }
 0x1b4   : > { %3195 = vmatpush2.bf16.msra.mxu1 %v4310_v32  ;;  %3155 = vmatprep.subr.bf16.mxu0 %v4315_v62 }
 0x1b5   : > { %3196 = vmatprep.subr.bf16.mxu1 %v4318_v63 }
 0x1b7   : > { %3156 = vmatpush2.bf16.msra.mxu0 %v4313_v0 }
 0x1b8   : > { %3197 = vmatpush2.bf16.msra.mxu1 %v4316_v1  ;;  %3157 = vmatprep.subr.bf16.mxu0 %v4321_v3 }
 0x1b9   : > { %3198 = vmatprep.subr.bf16.mxu1 %v4324_v4 }
 0x1bb   : > { %3158 = vmatpush2.bf16.msra.mxu0 %v4319_v5 }
 0x1bc   : > { %3199 = vmatpush2.bf16.msra.mxu1 %v4322_v8  ;;  %3159 = vmatprep.subr.bf16.mxu0 %v4327_v9 }
 0x1bd   : > { %3200 = vmatprep.subr.bf16.mxu1 %v4330_v10 }
 0x1bf   : > { %3160 = vmatpush2.bf16.msra.mxu0 %v4325_v11 }
 0x1c0   : > { %3201 = vmatpush2.bf16.msra.mxu1 %v4328_v12  ;;  %3161 = vmatprep.subr.bf16.mxu0 %v4333_v13 }
 0x1c1   : > { %3202 = vmatprep.subr.bf16.mxu1 %v4336_v35 }
 0x1c3   : > { %3162 = vmatpush2.bf16.msra.mxu0 %v4331_v14 }
 0x1c4   : > { %3203 = vmatpush2.bf16.msra.mxu1 %v4334_v15  ;;  %3163 = vmatprep.subr.bf16.mxu0 %v4339_v16 }
 0x1c5   : > { %3204 = vmatprep.subr.bf16.mxu1 %v4342_v17 }
 0x1c7   : > { %3164 = vmatpush2.bf16.msra.mxu0 %v4337_v18 }
 0x1c8   : > { %3205 = vmatpush2.bf16.msra.mxu1 %v4340_v19  ;;  %3165 = vmatprep.subr.bf16.mxu0 %v4345_v20 }
 0x1c9   : > { %3206 = vmatprep.subr.bf16.mxu1 %v4348_v21 }
 0x1cb   : > { %3166 = vmatpush2.bf16.msra.mxu0 %v4343_v23 }
 0x1cc   : > { %3207 = vmatpush2.bf16.msra.mxu1 %v4346_v24 }
 0x1ce   : > { %v2923_v2 = vpop.f32.mrf.mxu0  ;;  %3168 = vmatmul.mubr.bf16.vlgmr.msra.gmra.mxu0 %v762_v22 }
 0x1cf   : > { %v2964_v27 = vpop.f32.mrf.mxu1  ;;  %3209 = vmatmul.mubr.bf16.vlgmr.msra.gmra.mxu1 %v778_v6  ;;  %v2924_v30 = vadd.f32 %v2923_v2, %v4998_v26 }
 0x1d0   : > { %v2925_v31 = vpop.f32.mrf.mxu0 }
 0x1d1   : > { %v2966_v33 = vpop.f32.mrf.mxu1  ;;  %v2965_v34 = vadd.f32 %v2964_v27, %v2924_v30  ;;  %v2926_v49 = vadd.f32 %v2925_v31, %v5001_v28 }
 0x1d2   : > { %v2927_v61 = vpop.f32.mrf.mxu0 }
 0x1d3   : > { %v2968_v7 = vpop.f32.mrf.mxu1  ;;  %v2967_v36 = vadd.f32 %v2966_v33, %v2926_v49 }
 0x1d4   : > { %v2928_v37 = vpop.f32.mrf.mxu0 }
 0x1d5   : > { %v2969_v38 = vpop.f32.mrf.mxu1 }
 0x20e   : > { %v3005_v39 = vpop.f32.mrf.mxu0 }
 0x20f   : > { %v3046_v29 = vpop.f32.mrf.mxu1  ;;  %v3006_v40 = vadd.f32 %v3005_v39, %v2965_v34 }
 0x210   : > { %v3007_v41 = vpop.f32.mrf.mxu0 }
 0x211   : > { %v3048_v43 = vpop.f32.mrf.mxu1  ;;  %v3047_v44 = vadd.f32 %v3046_v29, %v3006_v40  ;;  %v3008_v45 = vadd.f32 %v3007_v41, %v2967_v36 }
 0x212   : > { %v3009_v46 = vpop.f32.mrf.mxu0 }
 0x213   : > { %v3050_v26 = vpop.f32.mrf.mxu1  ;;  %v3049_v47 = vadd.f32 %v3048_v43, %v3008_v45 }
 0x214   : > { %v3010_v48 = vpop.f32.mrf.mxu0 }
 0x215   : > { %v3051_v50 = vpop.f32.mrf.mxu1 }
 0x24e   : > { %v3087_v51 = vpop.f32.mrf.mxu0 }
 0x24f   : > { %v3128_v28 = vpop.f32.mrf.mxu1  ;;  %v3088_v52 = vadd.f32 %v3087_v51, %v3047_v44 }
 0x250   : > { %v3089_v25 = vpop.f32.mrf.mxu0 }
 0x251   : > { %v3130_v53 = vpop.f32.mrf.mxu1  ;;  %v3129_v54 = vadd.f32 %v3128_v28, %v3088_v52  ;;  %v3090_v42 = vadd.f32 %v3089_v25, %v3049_v47 }
 0x252   : > { %v3091_v55 = vpop.f32.mrf.mxu0 }
 0x253   : > { %v3132_v56 = vpop.f32.mrf.mxu1  ;;  %v3131_v32 = vadd.f32 %v3130_v53, %v3090_v42 }
 0x254   : > { %v3092_v57 = vpop.f32.mrf.mxu0 }
 0x255   : > { %v3133_v58 = vpop.f32.mrf.mxu1 }
 0x28e   : > { %v3169_v59 = vpop.f32.mrf.mxu0 }
 0x28f   : > { %v3210_v60 = vpop.f32.mrf.mxu1  ;;  %v3170_v62 = vadd.f32 %v3169_v59, %v3129_v54 }
 0x290   : > { %v3171_v63 = vpop.f32.mrf.mxu0 }
 0x291   : > { %v3212_v0 = vpop.f32.mrf.mxu1  ;;  %v3172_v1 = vadd.f32 %v3171_v63, %v3131_v32  ;;  %v3211_v5 = vadd.f32 %v3210_v60, %v3170_v62 }
 0x292   : > { %v3173_v3 = vpop.f32.mrf.mxu0 }
 0x293   : > { %v3214_v4 = vpop.f32.mrf.mxu1  ;;  %v3213_v8 = vadd.f32 %v3212_v0, %v3172_v1 }
 0x294   : > { %v3174_v9 = vpop.f32.mrf.mxu0 }
 0x295   : > { %v3215_v10 = vpop.f32.mrf.mxu1  ;;  %v3219_v11 = vcombine.low %v3211_v5, %v3213_v8 }
 0x297   : > { %3716 = vst.sshfl [vmem:[%s230_s15] sm:$0x33 pattern:$0x76325410] %v3219_v11 }
 0x298 PF: > { %p16_p8 = scmp.ge.s32.totalorder %s4492_s17, 5   ;;  %s5089_s12 = smov %s4436_s13 }
 0x299   : > { %s5090_s13 = smov %s4440_s14  ;;  %s5091_s14 = smov %s4502_s20 }
 0x29a   : > { %s5092_s15 = smov %s4492_s17  ;;  %18 = sbr.rel (!%p16_p8) target bundleno = 5 (0x5), region = 85 }
 0x29f   :  { %3251 = vsyncpa [#allocation3], 1 }
 0x2a0   :  { %3253 = vsyncpa [#allocation3 + $0x1], 1 }
 0x2a1   :  { %3254 = vsyncpa [#allocation5], 1 }
 0x2a2   :  { %3256 = vsyncpa [#allocation5 + $0x1], 1 }

// kernel: _lambda_.9
= control target key start
LH: loop header
LB: loop body
LE: loop exit
PB: predicated region body
PF: predicated region fallthrough
CT: control target
= control target key end

     0   :  { %8 = vsyncpa [#allocation3], 0  ;;  %s8020_s0 = inlined_call_operand.vmem [shape: bf16[1568,32], index: 0, kind: input, shape index: {}]   ;;  %s8021_s1 = inlined_call_operand.hbm [shape: bf16[32,128], index: 1, kind: input, shape index: {}]   ;;  %s8022_s2 = inlined_call_operand.hbm [shape: f32[1,128], index: 2, kind: input, shape index: {}]   ;;  %s8023_s3 = inlined_call_operand.vmem [shape: bf16[1568,128], index: 3, kind: output, shape index: {}]  }
   0x1   :  { %9 = vsyncpa [#allocation5], 0  ;;  %s5853_s12 = smov [#allocation2]  }
   0x2   :  { %s17_s13 = sshll.u32 %s5853_s12, 4  ;;  %s18_s13 = int_to_ptr.vmem [resolvable:$true] %s17_s13 }
   0x3   :  { %s5817_s14 = scalar_lea.vmem %s18_s13, 256  ;;  %p5822_p1 = scmp.lt.s32.totalorder %s18_s13, %s18_s13 }
   0x4   :  { %p5818_p0 = scmp.ne.s32.totalorder %s18_s13, %s5817_s14  ;;  %p5823_p2 = scmp.lt.s32.totalorder %s5817_s14, %s5817_s14 }
   0x6   :  { %p5824_p3 = por %p5823_p2, %p5822_p1 }
   0x8   :  { %p5825_p4 = pnand %p5824_p3, %p5818_p0 }
   0xa   :  { %5828 = shalt.err (!%p5825_p4)
}
   0xb   :  { %s5854_s15 = smov 64   ;;  %s5855_s16 = smov 4  }
   0xc   :  { %23 = dma.hbm_to_vmem [thread:$0]  %s8021_s1, 256, %s18_s13, [#allocation3], %s5854_s15, %s5854_s15, %s5855_s16  }
   0xd   :  { %s5856_s19 = smov [#allocation4]  }
   0xe   :  { %s30_s20 = sshll.u32 %s5856_s19, 4  ;;  %s31_s20 = int_to_ptr.vmem [resolvable:$true] %s30_s20 }
   0xf   :  { %s5837_s21 = scalar_lea.vmem %s31_s20, 16  ;;  %s5841_s22 = scalar_lea.vmem %s31_s20, 32 }
  0x10   :  { %p5838_p5 = scmp.ne.s32.totalorder %s31_s20, %s5837_s21  ;;  %p5842_p6 = scmp.lt.s32.totalorder %s31_s20, %s31_s20 }
  0x11   :  { %p5843_p7 = scmp.lt.s32.totalorder %s5841_s22, %s5837_s21 }
  0x13   :  { %p5844_p8 = por %p5843_p7, %p5842_p6 }
  0x15   :  { %p5845_p9 = pnand %p5844_p8, %p5838_p5 }
  0x17   :  { %5848 = shalt.err (!%p5845_p9)
}
  0x18   :  { %33 = dma.hbm_to_vmem [thread:$0]  %s8022_s2, 16, %s31_s20, [#allocation5]  }
  0x19   :  { %5849 = dma.done.wait [#allocation3], 256  }
  0x1a   :  { %5850 = vsyncadd [#allocation3], 4294967040 }
  0x1b   :  { %5851 = dma.done.wait [#allocation5], 16  }
  0x1c   :  { %5852 = vsyncadd [#allocation5], 4294967280  ;;  %v5314_v0 = vld [vmem:[#allocation2 + $0x8] sm:$0xff]   ;;  %v5315_v1 = vld [vmem:[#allocation2] sm:$0xff]   ;;  %vm750_vm0 = vcmask 261120  }
  0x1d   :  { %5106 = vmatprep.subr.bf16.mxu0 %v5314_v0  ;;  %5306 = vmatprep.subr.bf16.mxu1 %v5314_v0  ;;  %v5316_v2 = vld [vmem:[%s8020_s0] sm:$0xff]   ;;  %v5317_v3 = vld [vmem:[%s8020_s0 + $0x190] sm:$0xff]   ;;  %v5318_v4 = vld [vmem:[%s8020_s0 + $0x8] sm:$0xff]  }
  0x1e   :  { %5107 = vmatpush3.bf16.msra.mxu0 %v5314_v0  ;;  %5308 = vmatpush3.bf16.msra.mxu1 %v5314_v0  ;;  %v5319_v5 = vld [vmem:[%s8020_s0 + $0x198] sm:$0xff]   ;;  %v5320_v6 = vld [vmem:[%s8020_s0 + $0x10] sm:$0xff]   ;;  %v5321_v7 = vld [vmem:[%s8020_s0 + $0x1a0] sm:$0xff]  }
  0x1f   :  { %5108 = vmatprep.subr.bf16.mxu0 %v5315_v1  ;;  %5307 = vmatprep.subr.bf16.mxu1 %v5315_v1  ;;  %v5322_v8 = vld [vmem:[%s8020_s0 + $0x18] sm:$0xff]   ;;  %v5323_v9 = vld [vmem:[%s8020_s0 + $0x1a8] sm:$0xff]   ;;  %v5324_v10 = vld [vmem:[%s8020_s0 + $0x20] sm:$0xff]  }
  0x20   :  { %5110 = vmatprep.mubr.msk.bf16.mxu0 %vm750_vm0, %v5316_v2  ;;  %5210 = vmatprep.mubr.msk.bf16.mxu1 %vm750_vm0, %v5317_v3  ;;  %v5325_v11 = vld [vmem:[%s8020_s0 + $0x1b0] sm:$0xff]   ;;  %v5326_v12 = vld [vmem:[%s8020_s0 + $0x28] sm:$0xff]   ;;  %v5327_v13 = vld [vmem:[%s8020_s0 + $0x1b8] sm:$0xff]  }
  0x21   :  { %v5328_v14 = vld [vmem:[%s8020_s0 + $0x30] sm:$0xff]   ;;  %v5329_v15 = vld [vmem:[%s8020_s0 + $0x1c0] sm:$0xff]   ;;  %v5330_v16 = vld [vmem:[%s8020_s0 + $0x38] sm:$0xff]  }
  0x22   :  { %5109 = vmatpush3.bf16.msra.mxu0 %v5315_v1  ;;  %5309 = vmatpush3.bf16.msra.mxu1 %v5315_v1  ;;  %v5331_v17 = vld [vmem:[%s8020_s0 + $0x1c8] sm:$0xff]   ;;  %v5332_v18 = vld [vmem:[%s8020_s0 + $0x40] sm:$0xff]   ;;  %v5333_v19 = vld [vmem:[%s8020_s0 + $0x1d0] sm:$0xff]  }
  0x23   :  { %v5334_v20 = vld [vmem:[%s8020_s0 + $0x48] sm:$0xff]   ;;  %v5335_v21 = vld [vmem:[%s8020_s0 + $0x1d8] sm:$0xff]   ;;  %v5336_v22 = vld [vmem:[%s8020_s0 + $0x50] sm:$0xff]  }
  0x24   :  { %v5337_v23 = vld [vmem:[%s8020_s0 + $0x1e0] sm:$0xff]   ;;  %v5338_v24 = vld [vmem:[%s8020_s0 + $0x58] sm:$0xff]   ;;  %v5339_v25 = vld [vmem:[%s8020_s0 + $0x1e8] sm:$0xff]  }
  0x25   :  { %5111 = vmatmul.mubr.msk.bf16.vlgmr.msra.gmra.mxu0 %vm750_vm0, %v5318_v4  ;;  %5211 = vmatmul.mubr.msk.bf16.vlgmr.msra.gmra.mxu1 %vm750_vm0, %v5319_v5  ;;  %v5340_v26 = vld [vmem:[%s8020_s0 + $0x60] sm:$0xff]   ;;  %v5341_v27 = vld [vmem:[%s8020_s0 + $0x1f0] sm:$0xff]   ;;  %v5342_v28 = vld [vmem:[%s8020_s0 + $0x68] sm:$0xff]  }
  0x26   :  { %5114 = vmatprep.mubr.msk.bf16.mxu0 %vm750_vm0, %v5320_v6  ;;  %5214 = vmatprep.mubr.msk.bf16.mxu1 %vm750_vm0, %v5321_v7  ;;  %v5343_v29 = vld [vmem:[%s8020_s0 + $0x1f8] sm:$0xff]   ;;  %v5344_v30 = vld [vmem:[%s8020_s0 + $0x70] sm:$0xff]   ;;  %v5345_v31 = vld [vmem:[%s8020_s0 + $0x200] sm:$0xff]  }
  0x27   :  { %v5346_v32 = vld [vmem:[%s8020_s0 + $0x78] sm:$0xff]   ;;  %v5347_v33 = vld [vmem:[%s8020_s0 + $0x208] sm:$0xff]   ;;  %v5348_v34 = vld [vmem:[%s8020_s0 + $0x80] sm:$0xff]  }
  0x28   :  { %v5349_v35 = vld [vmem:[%s8020_s0 + $0x210] sm:$0xff]   ;;  %v5350_v36 = vld [vmem:[%s8020_s0 + $0x88] sm:$0xff]   ;;  %v5351_v37 = vld [vmem:[%s8020_s0 + $0x218] sm:$0xff]  }
  0x29   :  { %v5352_v38 = vld [vmem:[%s8020_s0 + $0x90] sm:$0xff]   ;;  %v5353_v39 = vld [vmem:[%s8020_s0 + $0x220] sm:$0xff]   ;;  %v5354_v40 = vld [vmem:[%s8020_s0 + $0x98] sm:$0xff]  }
  0x2a   :  { %v5355_v41 = vld [vmem:[%s8020_s0 + $0x228] sm:$0xff]   ;;  %v5356_v42 = vld [vmem:[%s8020_s0 + $0xa0] sm:$0xff]   ;;  %v5357_v43 = vld [vmem:[%s8020_s0 + $0x230] sm:$0xff]  }
  0x2b   :  { %v5358_v44 = vld [vmem:[%s8020_s0 + $0xa8] sm:$0xff]   ;;  %v5359_v45 = vld [vmem:[%s8020_s0 + $0x238] sm:$0xff]   ;;  %v5360_v46 = vld [vmem:[%s8020_s0 + $0xb0] sm:$0xff]  }
  0x2c   :  { %v5361_v47 = vld [vmem:[%s8020_s0 + $0x240] sm:$0xff]   ;;  %v5362_v48 = vld [vmem:[%s8020_s0 + $0xb8] sm:$0xff]   ;;  %v5363_v49 = vld [vmem:[%s8020_s0 + $0x248] sm:$0xff]  }
  0x2d   :  { %5115 = vmatmul.mubr.msk.bf16.gmra.mxu0 %vm750_vm0, %v5322_v8  ;;  %5215 = vmatmul.mubr.msk.bf16.gmra.mxu1 %vm750_vm0, %v5323_v9  ;;  %v5364_v50 = vld [vmem:[%s8020_s0 + $0xc0] sm:$0xff]   ;;  %v5365_v51 = vld [vmem:[%s8020_s0 + $0x250] sm:$0xff]   ;;  %v5366_v52 = vld [vmem:[%s8020_s0 + $0xc8] sm:$0xff]  }
  0x2e   :  { %5118 = vmatprep.mubr.msk.bf16.mxu0 %vm750_vm0, %v5324_v10  ;;  %5218 = vmatprep.mubr.msk.bf16.mxu1 %vm750_vm0, %v5325_v11  ;;  %v5367_v53 = vld [vmem:[%s8020_s0 + $0x258] sm:$0xff]   ;;  %v5368_v54 = vld [vmem:[%s8020_s0 + $0xd0] sm:$0xff]   ;;  %v5369_v55 = vld [vmem:[%s8020_s0 + $0x260] sm:$0xff]  }
  0x2f   :  { %v5370_v56 = vld [vmem:[%s8020_s0 + $0xd8] sm:$0xff]   ;;  %v5371_v57 = vld [vmem:[%s8020_s0 + $0x268] sm:$0xff]   ;;  %v5372_v58 = vld [vmem:[%s8020_s0 + $0xe0] sm:$0xff]  }
  0x30   :  { %v5373_v59 = vld [vmem:[%s8020_s0 + $0x270] sm:$0xff]   ;;  %v5374_v60 = vld [vmem:[%s8020_s0 + $0xe8] sm:$0xff]   ;;  %v5375_v61 = vld [vmem:[%s8020_s0 + $0x278] sm:$0xff]  }
  0x31   :  { %v5376_v62 = vld [vmem:[%s8020_s0 + $0xf0] sm:$0xff]   ;;  %v5377_v63 = vld [vmem:[%s8020_s0 + $0x280] sm:$0xff]   ;;  %v5378_v0 = vld [vmem:[%s8020_s0 + $0xf8] sm:$0xff]  }
  0x32   :  { %v5379_v1 = vld [vmem:[%s8020_s0 + $0x288] sm:$0xff]   ;;  %v5380_v2 = vld [vmem:[%s8020_s0 + $0x100] sm:$0xff]   ;;  %v5381_v3 = vld [vmem:[%s8020_s0 + $0x290] sm:$0xff]  }
  0x33   :  { %v5382_v4 = vld [vmem:[%s8020_s0 + $0x108] sm:$0xff]   ;;  %v5383_v5 = vld [vmem:[%s8020_s0 + $0x298] sm:$0xff]   ;;  %v5384_v6 = vld [vmem:[%s8020_s0 + $0x110] sm:$0xff]  }
  0x34   :  { %v5385_v7 = vld [vmem:[%s8020_s0 + $0x2a0] sm:$0xff]   ;;  %v5386_v8 = vld [vmem:[%s8020_s0 + $0x118] sm:$0xff]   ;;  %v5387_v9 = vld [vmem:[%s8020_s0 + $0x2a8] sm:$0xff]  }
  0x35   :  { %5119 = vmatmul.mubr.msk.bf16.gmra.mxu0 %vm750_vm0, %v5326_v12  ;;  %5219 = vmatmul.mubr.msk.bf16.gmra.mxu1 %vm750_vm0, %v5327_v13  ;;  %v5388_v10 = vld [vmem:[%s8020_s0 + $0x120] sm:$0xff]   ;;  %v5389_v11 = vld [vmem:[%s8020_s0 + $0x2b0] sm:$0xff]   ;;  %v5390_v12 = vld [vmem:[%s8020_s0 + $0x128] sm:$0xff]  }
  0x36   :  { %5122 = vmatprep.mubr.msk.bf16.mxu0 %vm750_vm0, %v5328_v14  ;;  %5222 = vmatprep.mubr.msk.bf16.mxu1 %vm750_vm0, %v5329_v15  ;;  %v5391_v13 = vld [vmem:[%s8020_s0 + $0x2b8] sm:$0xff]   ;;  %v5392_v14 = vld [vmem:[%s8020_s0 + $0x130] sm:$0xff]   ;;  %v5393_v15 = vld [vmem:[%s8020_s0 + $0x2c0] sm:$0xff]  }
  0x3d   :  { %5123 = vmatmul.mubr.msk.bf16.gmra.mxu0 %vm750_vm0, %v5330_v16  ;;  %5223 = vmatmul.mubr.msk.bf16.gmra.mxu1 %vm750_vm0, %v5331_v17  ;;  %v5394_v16 = vld [vmem:[%s8020_s0 + $0x138] sm:$0xff]   ;;  %v5395_v17 = vld [vmem:[%s8020_s0 + $0x2c8] sm:$0xff]  }
  0x3e   :  { %5126 = vmatprep.mubr.msk.bf16.mxu0 %vm750_vm0, %v5332_v18  ;;  %5226 = vmatprep.mubr.msk.bf16.mxu1 %vm750_vm0, %v5333_v19  ;;  %v5396_v18 = vld [vmem:[%s8020_s0 + $0x140] sm:$0xff]   ;;  %v5397_v19 = vld [vmem:[%s8020_s0 + $0x2d0] sm:$0xff]  }
  0x45   :  { %5127 = vmatmul.mubr.msk.bf16.gmra.mxu0 %vm750_vm0, %v5334_v20  ;;  %5227 = vmatmul.mubr.msk.bf16.gmra.mxu1 %vm750_vm0, %v5335_v21  ;;  %v5398_v20 = vld [vmem:[%s8020_s0 + $0x148] sm:$0xff]   ;;  %v5399_v21 = vld [vmem:[%s8020_s0 + $0x2d8] sm:$0xff]  }
  0x46   :  { %5130 = vmatprep.mubr.msk.bf16.mxu0 %vm750_vm0, %v5336_v22  ;;  %5230 = vmatprep.mubr.msk.bf16.mxu1 %vm750_vm0, %v5337_v23  ;;  %v5400_v22 = vld [vmem:[%s8020_s0 + $0x150] sm:$0xff]   ;;  %v5401_v23 = vld [vmem:[%s8020_s0 + $0x2e0] sm:$0xff]  }
  0x4d   :  { %5131 = vmatmul.mubr.msk.bf16.gmra.mxu0 %vm750_vm0, %v5338_v24  ;;  %5231 = vmatmul.mubr.msk.bf16.gmra.mxu1 %vm750_vm0, %v5339_v25  ;;  %v5402_v24 = vld [vmem:[%s8020_s0 + $0x158] sm:$0xff]   ;;  %v5403_v25 = vld [vmem:[%s8020_s0 + $0x2e8] sm:$0xff]  }
  0x4e   :  { %5134 = vmatprep.mubr.msk.bf16.mxu0 %vm750_vm0, %v5340_v26  ;;  %5234 = vmatprep.mubr.msk.bf16.mxu1 %vm750_vm0, %v5341_v27  ;;  %v5404_v26 = vld [vmem:[%s8020_s0 + $0x160] sm:$0xff]   ;;  %v5405_v27 = vld [vmem:[%s8020_s0 + $0x2f0] sm:$0xff]  }
  0x55   :  { %5135 = vmatmul.mubr.msk.bf16.gmra.mxu0 %vm750_vm0, %v5342_v28  ;;  %5235 = vmatmul.mubr.msk.bf16.gmra.mxu1 %vm750_vm0, %v5343_v29  ;;  %v5406_v28 = vld [vmem:[%s8020_s0 + $0x168] sm:$0xff]   ;;  %v5407_v29 = vld [vmem:[%s8020_s0 + $0x2f8] sm:$0xff]  }
  0x56   :  { %5138 = vmatprep.mubr.msk.bf16.mxu0 %vm750_vm0, %v5344_v30  ;;  %5238 = vmatprep.mubr.msk.bf16.mxu1 %vm750_vm0, %v5345_v31  ;;  %v5408_v30 = vld [vmem:[%s8020_s0 + $0x170] sm:$0xff]   ;;  %v5409_v31 = vld [vmem:[%s8020_s0 + $0x300] sm:$0xff]  }
  0x5d   :  { %5139 = vmatmul.mubr.msk.bf16.gmra.mxu0 %vm750_vm0, %v5346_v32  ;;  %5239 = vmatmul.mubr.msk.bf16.gmra.mxu1 %vm750_vm0, %v5347_v33  ;;  %v5410_v32 = vld [vmem:[%s8020_s0 + $0x178] sm:$0xff]   ;;  %v5411_v33 = vld [vmem:[%s8020_s0 + $0x308] sm:$0xff]  }
  0x5e   :  { %5142 = vmatprep.mubr.msk.bf16.mxu0 %vm750_vm0, %v5348_v34  ;;  %5242 = vmatprep.mubr.msk.bf16.mxu1 %vm750_vm0, %v5349_v35  ;;  %v5412_v34 = vld [vmem:[%s8020_s0 + $0x180] sm:$0xff]   ;;  %v5413_v35 = vld [vmem:[%s8020_s0 + $0x188] sm:$0xff]  }
  0x65   :  { %5143 = vmatmul.mubr.msk.bf16.gmra.mxu0 %vm750_vm0, %v5350_v36  ;;  %5243 = vmatmul.mubr.msk.bf16.gmra.mxu1 %vm750_vm0, %v5351_v37  ;;  %v6274_v36 = vld [vmem:[#allocation4] ss:$0 sm:$0xff] }
  0x66   :  { %5146 = vmatprep.mubr.msk.bf16.mxu0 %vm750_vm0, %v5352_v38  ;;  %5246 = vmatprep.mubr.msk.bf16.mxu1 %vm750_vm0, %v5353_v39 }
  0x6d   :  { %5147 = vmatmul.mubr.msk.bf16.gmra.mxu0 %vm750_vm0, %v5354_v40  ;;  %5247 = vmatmul.mubr.msk.bf16.gmra.mxu1 %vm750_vm0, %v5355_v41 }
  0x6e   :  { %5150 = vmatprep.mubr.msk.bf16.mxu0 %vm750_vm0, %v5356_v42  ;;  %5250 = vmatprep.mubr.msk.bf16.mxu1 %vm750_vm0, %v5357_v43 }
  0x75   :  { %5151 = vmatmul.mubr.msk.bf16.gmra.mxu0 %vm750_vm0, %v5358_v44  ;;  %5251 = vmatmul.mubr.msk.bf16.gmra.mxu1 %vm750_vm0, %v5359_v45 }
  0x76   :  { %5154 = vmatprep.mubr.msk.bf16.mxu0 %vm750_vm0, %v5360_v46  ;;  %5254 = vmatprep.mubr.msk.bf16.mxu1 %vm750_vm0, %v5361_v47 }
  0x7d   :  { %5155 = vmatmul.mubr.msk.bf16.gmra.mxu0 %vm750_vm0, %v5362_v48  ;;  %5255 = vmatmul.mubr.msk.bf16.gmra.mxu1 %vm750_vm0, %v5363_v49 }
  0x7e   :  { %5158 = vmatprep.mubr.msk.bf16.mxu0 %vm750_vm0, %v5364_v50  ;;  %5258 = vmatprep.mubr.msk.bf16.mxu1 %vm750_vm0, %v5365_v51 }
  0x85   :  { %5159 = vmatmul.mubr.msk.bf16.gmra.mxu0 %vm750_vm0, %v5366_v52  ;;  %5259 = vmatmul.mubr.msk.bf16.gmra.mxu1 %vm750_vm0, %v5367_v53 }
  0x86   :  { %5162 = vmatprep.mubr.msk.bf16.mxu0 %vm750_vm0, %v5368_v54  ;;  %5262 = vmatprep.mubr.msk.bf16.mxu1 %vm750_vm0, %v5369_v55 }
  0x8d   :  { %5163 = vmatmul.mubr.msk.bf16.gmra.mxu0 %vm750_vm0, %v5370_v56  ;;  %5263 = vmatmul.mubr.msk.bf16.gmra.mxu1 %vm750_vm0, %v5371_v57 }
  0x8e   :  { %5166 = vmatprep.mubr.msk.bf16.mxu0 %vm750_vm0, %v5372_v58  ;;  %5266 = vmatprep.mubr.msk.bf16.mxu1 %vm750_vm0, %v5373_v59 }
  0x95   :  { %5167 = vmatmul.mubr.msk.bf16.gmra.mxu0 %vm750_vm0, %v5374_v60  ;;  %5267 = vmatmul.mubr.msk.bf16.gmra.mxu1 %vm750_vm0, %v5375_v61 }
  0x96   :  { %5170 = vmatprep.mubr.msk.bf16.mxu0 %vm750_vm0, %v5376_v62  ;;  %5270 = vmatprep.mubr.msk.bf16.mxu1 %vm750_vm0, %v5377_v63 }
  0x9d   :  { %5171 = vmatmul.mubr.msk.bf16.gmra.mxu0 %vm750_vm0, %v5378_v0  ;;  %5271 = vmatmul.mubr.msk.bf16.gmra.mxu1 %vm750_vm0, %v5379_v1 }
  0x9e   :  { %5174 = vmatprep.mubr.msk.bf16.mxu0 %vm750_vm0, %v5380_v2  ;;  %5274 = vmatprep.mubr.msk.bf16.mxu1 %vm750_vm0, %v5381_v3 }
  0xa5   :  { %5175 = vmatmul.mubr.msk.bf16.gmra.mxu0 %vm750_vm0, %v5382_v4  ;;  %5275 = vmatmul.mubr.msk.bf16.gmra.mxu1 %vm750_vm0, %v5383_v5 }
  0xa6   :  { %5178 = vmatprep.mubr.msk.bf16.mxu0 %vm750_vm0, %v5384_v6  ;;  %5278 = vmatprep.mubr.msk.bf16.mxu1 %vm750_vm0, %v5385_v7 }
  0xad   :  { %5179 = vmatmul.mubr.msk.bf16.gmra.mxu0 %vm750_vm0, %v5386_v8  ;;  %5279 = vmatmul.mubr.msk.bf16.gmra.mxu1 %vm750_vm0, %v5387_v9 }
  0xae   :  { %5182 = vmatprep.mubr.msk.bf16.mxu0 %vm750_vm0, %v5388_v10  ;;  %5282 = vmatprep.mubr.msk.bf16.mxu1 %vm750_vm0, %v5389_v11 }
  0xb5   :  { %5183 = vmatmul.mubr.msk.bf16.gmra.mxu0 %vm750_vm0, %v5390_v12  ;;  %5283 = vmatmul.mubr.msk.bf16.gmra.mxu1 %vm750_vm0, %v5391_v13 }
  0xb6   :  { %5186 = vmatprep.mubr.msk.bf16.mxu0 %vm750_vm0, %v5392_v14  ;;  %5286 = vmatprep.mubr.msk.bf16.mxu1 %vm750_vm0, %v5393_v15 }
  0xbd   :  { %5187 = vmatmul.mubr.msk.bf16.gmra.mxu0 %vm750_vm0, %v5394_v16  ;;  %5287 = vmatmul.mubr.msk.bf16.gmra.mxu1 %vm750_vm0, %v5395_v17 }
  0xbe   :  { %5190 = vmatprep.mubr.msk.bf16.mxu0 %vm750_vm0, %v5396_v18  ;;  %5290 = vmatprep.mubr.msk.bf16.mxu1 %vm750_vm0, %v5397_v19 }
  0xc5   :  { %5191 = vmatmul.mubr.msk.bf16.gmra.mxu0 %vm750_vm0, %v5398_v20  ;;  %5291 = vmatmul.mubr.msk.bf16.gmra.mxu1 %vm750_vm0, %v5399_v21 }
  0xc6   :  { %5194 = vmatprep.mubr.msk.bf16.mxu0 %vm750_vm0, %v5400_v22  ;;  %5294 = vmatprep.mubr.msk.bf16.mxu1 %vm750_vm0, %v5401_v23 }
  0xcd   :  { %5195 = vmatmul.mubr.msk.bf16.gmra.mxu0 %vm750_vm0, %v5402_v24  ;;  %5295 = vmatmul.mubr.msk.bf16.gmra.mxu1 %vm750_vm0, %v5403_v25 }
  0xce   :  { %5198 = vmatprep.mubr.msk.bf16.mxu0 %vm750_vm0, %v5404_v26  ;;  %5298 = vmatprep.mubr.msk.bf16.mxu1 %vm750_vm0, %v5405_v27 }
  0xd5   :  { %5199 = vmatmul.mubr.msk.bf16.gmra.mxu0 %vm750_vm0, %v5406_v28  ;;  %5299 = vmatmul.mubr.msk.bf16.gmra.mxu1 %vm750_vm0, %v5407_v29 }
  0xd6   :  { %5202 = vmatprep.mubr.msk.bf16.mxu0 %vm750_vm0, %v5408_v30  ;;  %5302 = vmatprep.mubr.msk.bf16.mxu1 %vm750_vm0, %v5409_v31 }
  0xdd   :  { %5203 = vmatmul.mubr.msk.bf16.gmra.mxu0 %vm750_vm0, %v5410_v32  ;;  %5303 = vmatmul.mubr.msk.bf16.gmra.mxu1 %vm750_vm0, %v5411_v33 }
  0xde   :  { %5206 = vmatprep.mubr.msk.bf16.mxu0 %vm750_vm0, %v5412_v34 }
  0xe5   :  { %v5112_v37 = vpop.f32.mrf.mxu0  ;;  %5207 = vmatmul.mubr.msk.bf16.gmra.mxu0 %vm750_vm0, %v5413_v35  ;;  %v5212_v38 = vpop.f32.mrf.mxu1 }
  0xe6   :  { %v1088_v39 = vadd.f32 %v5112_v37, %v6274_v36  ;;  %v1488_v40 = vadd.f32 %v5212_v38, %v6274_v36 }
  0xe7   :  { %v1079_v41 = vpop.f32.mrf.mxu0  ;;  %v1479_v42 = vpop.f32.mrf.mxu1 }
  0xe8   :  { %v2060_v43 = vmul.f32 0.70710677, %v1088_v39  ;;  %v2160_v44 = vmul.f32 0.70710677, %v1488_v40  ;;  %v1080_v45 = vadd.f32 %v6274_v36, %v1079_v41  ;;  %v1480_v46 = vadd.f32 %v6274_v36, %v1479_v42 }
  0xe9   :  { %v5113_v47 = vpop.f32.mrf.mxu0  ;;  %v5213_v48 = vpop.f32.mrf.mxu1  ;;  %v1864_v14 = vmul.f32 0.5, %v1088_v39  ;;  %v1964_v16 = vmul.f32 0.5, %v1488_v40 }
  0xea   :  { %5414 = verf.f32 %v2060_v43  ;;  %v1091_v49 = vadd.f32 %v5113_v47, %v6274_v36  ;;  %v1491_v50 = vadd.f32 %v5213_v48, %v6274_v36  ;;  %v2058_v51 = vmul.f32 0.70710677, %v1080_v45 }
  0xeb   :  { %5416 = verf.f32 %v2160_v44  ;;  %v1082_v52 = vpop.f32.mrf.mxu0  ;;  %v1482_v53 = vpop.f32.mrf.mxu1  ;;  %v2158_v54 = vmul.f32 0.70710677, %v1480_v46  ;;  %v1862_v21 = vmul.f32 0.5, %v1080_v45  ;;  %v6297_v25 = vmul.f32 0.5, %v1480_v46 }
  0xec   :  { %v2061_v55 = vmul.f32 0.70710677, %v1091_v49  ;;  %5418 = verf.f32 %v2058_v51  ;;  %v2161_v56 = vmul.f32 0.70710677, %v1491_v50  ;;  %v1083_v57 = vadd.f32 %v6274_v36, %v1082_v52 }
  0xed   :  { %v1483_v58 = vadd.f32 %v6274_v36, %v1482_v53  ;;  %v5116_v59 = vpop.f32.mrf.mxu0  ;;  %v5216_v60 = vpop.f32.mrf.mxu1  ;;  %5420 = verf.f32 %v2158_v54  ;;  %v1865_v26 = vmul.f32 0.5, %v1091_v49  ;;  %v1965_v31 = vmul.f32 0.5, %v1491_v50 }
  0xee   :  { %v1104_v61 = vadd.f32 %v5116_v59, %v6274_v36  ;;  %v1504_v62 = vadd.f32 %v5216_v60, %v6274_v36  ;;  %5422 = verf.f32 %v2061_v55  ;;  %v2059_v63 = vmul.f32 0.70710677, %v1083_v57 }
  0xef   :  { %v1095_v0 = vpop.f32.mrf.mxu0  ;;  %v1495_v1 = vpop.f32.mrf.mxu1  ;;  %5424 = verf.f32 %v2161_v56  ;;  %v2159_v2 = vmul.f32 0.70710677, %v1483_v58  ;;  %v1863_v35 = vmul.f32 0.5, %v1083_v57  ;;  %v1963_v37 = vmul.f32 0.5, %v1483_v58 }
  0xf0   :  { %v2064_v3 = vmul.f32 0.70710677, %v1104_v61  ;;  %5426 = verf.f32 %v2059_v63  ;;  %v2164_v4 = vmul.f32 0.70710677, %v1504_v62  ;;  %v1096_v5 = vadd.f32 %v6274_v36, %v1095_v0 }
  0xf1   :  { %v5117_v6 = vpop.f32.mrf.mxu0  ;;  %v5217_v7 = vpop.f32.mrf.mxu1  ;;  %5428 = verf.f32 %v2159_v2  ;;  %v1496_v8 = vadd.f32 %v6274_v36, %v1495_v1  ;;  %v6307_v43 = vmul.f32 0.5, %v1104_v61  ;;  %v6309_v44 = vmul.f32 0.5, %v1504_v62 }
  0xf2   :  { %v1107_v9 = vadd.f32 %v5117_v6, %v6274_v36  ;;  %v1507_v10 = vadd.f32 %v5217_v7, %v6274_v36  ;;  %5430 = verf.f32 %v2064_v3  ;;  %v2062_v11 = vmul.f32 0.70710677, %v1096_v5 }
  0xf3   :  { %v1098_v12 = vpop.f32.mrf.mxu0  ;;  %v1498_v13 = vpop.f32.mrf.mxu1  ;;  %5432 = verf.f32 %v2164_v4  ;;  %v2162_v15 = vmul.f32 0.70710677, %v1496_v8  ;;  %v6311_v46 = vmul.f32 0.5, %v1096_v5  ;;  %v6313_v47 = vmul.f32 0.5, %v1496_v8 }
  0xf4   :  { %5434 = verf.f32 %v2062_v11  ;;  %v2065_v17 = vmul.f32 0.70710677, %v1107_v9  ;;  %v2165_v18 = vmul.f32 0.70710677, %v1507_v10  ;;  %v6292_v22 = vadd.f32 %v6274_v36, %v1098_v12 }
  0xf5   :  { %v5120_v19 = vpop.f32.mrf.mxu0  ;;  %v5220_v20 = vpop.f32.mrf.mxu1  ;;  %5436 = verf.f32 %v2162_v15  ;;  %v6295_v23 = vadd.f32 %v6274_v36, %v1498_v13  ;;  %v6320_v53 = vmul.f32 0.5, %v1107_v9  ;;  %v6326_v59 = vmul.f32 0.5, %v1507_v10 }
  0xf6   :  { %5438 = verf.f32 %v2065_v17  ;;  %v6300_v27 = vadd.f32 %v5120_v19, %v6274_v36  ;;  %v2063_v32 = vmul.f32 0.70710677, %v6292_v22  ;;  %v6304_v33 = vadd.f32 %v5220_v20, %v6274_v36 }
  0xf7   :  { %v5415_v24 = vpop.eup %5414  ;;  %v1111_v28 = vpop.f32.mrf.mxu0  ;;  %5440 = verf.f32 %v2165_v18  ;;  %v2163_v38 = vmul.f32 0.70710677, %v6295_v23 }
  0xf8   :  { %v1511_v29 = vpop.f32.mrf.mxu1  ;;  %v5417_v30 = vpop.eup %5416  ;;  %v2452_v34 = vadd.f32 1.0, %v5415_v24  ;;  %5442 = verf.f32 %v2063_v32  ;;  %v2068_v48 = vmul.f32 0.70710677, %v6300_v27  ;;  %v2168_v54 = vmul.f32 0.70710677, %v6304_v33 }
  0xf9   :  { %v5121_v39 = vpop.f32.mrf.mxu0  ;;  %v5419_v41 = vpop.eup %5418  ;;  %v2552_v42 = vadd.f32 1.0, %v5417_v30  ;;  %5444 = verf.f32 %v2163_v38  ;;  %v6324_v55 = vadd.f32 %v6274_v36, %v1111_v28  ;;  %v6329_v60 = vadd.f32 %v6274_v36, %v1511_v29 }
  0xfa   :  { %v5221_v40 = vpop.f32.mrf.mxu1  ;;  %v5421_v45 = vpop.eup %5420  ;;  %v2450_v52 = vadd.f32 1.0, %v5419_v41  ;;  %v2648_v57 = vmul.f32 %v2452_v34, %v1864_v14  ;;  %v6336_v3 = vadd.f32 %v5121_v39, %v6274_v36  ;;  %5446 = verf.f32 %v2068_v48 }
  0xfb   :  { %v6316_v49 = vpop.f32.mrf.mxu0  ;;  %v5423_v51 = vpop.eup %5422  ;;  %v2748_v0 = vmul.f32 %v2552_v42, %v1964_v16  ;;  %v2550_v1 = vadd.f32 1.0, %v5421_v45  ;;  %v2066_v7 = vmul.f32 0.70710677, %v6324_v55  ;;  %5448 = verf.f32 %v2168_v54 }
  0xfc   :  { %v6318_v50 = vpop.f32.mrf.mxu1  ;;  %v5425_v56 = vpop.eup %5424  ;;  %v2453_v58 = vadd.f32 1.0, %v5423_v51  ;;  %v2646_v11 = vmul.f32 %v2450_v52, %v1862_v21  ;;  %v2166_v18 = vmul.f32 0.70710677, %v6329_v60  ;;  %v2069_v21 = vmul.f32 0.70710677, %v6336_v3 }
  0xfd   :  { %v6331_v61 = vpop.f32.mrf.mxu0  ;;  %v5427_v63 = vpop.eup %5426  ;;  %v2553_v2 = vadd.f32 1.0, %v5425_v56  ;;  %5450 = verf.f32 %v2066_v7  ;;  %v6354_v34 = vadd.f32 %v5221_v40, %v6274_v36  ;;  %v1867_v39 = vmul.f32 0.5, %v6292_v22 }
  0xfe   :  { %v6333_v62 = vpop.f32.mrf.mxu1  ;;  %v5429_v4 = vpop.eup %5428  ;;  %v2649_v5 = vmul.f32 %v2453_v58, %v1865_v26  ;;  %v2451_v6 = vadd.f32 1.0, %v5427_v63  ;;  %v2746_v26 = vmul.f32 %v2550_v1, %v6297_v25  ;;  %v1967_v41 = vmul.f32 0.5, %v6295_v23 }
  0xff   :  { %v6339_v8 = vpop.f32.mrf.mxu0  ;;  %v5431_v10 = vpop.eup %5430  ;;  %v2749_v12 = vmul.f32 %v2553_v2, %v1965_v31  ;;  %v2551_v13 = vadd.f32 1.0, %v5429_v4  ;;  %5452 = verf.f32 %v2069_v21  ;;  %v2169_v48 = vmul.f32 0.70710677, %v6354_v34 }
 0x100   :  { %v6341_v9 = vpop.f32.mrf.mxu1  ;;  %v5433_v14 = vpop.eup %5432  ;;  %v4427_v15 = vpack.c.bf16 %v2649_v5, %v2648_v57  ;;  %v2647_v16 = vmul.f32 %v2451_v6, %v1863_v35  ;;  %v2456_v17 = vadd.f32 1.0, %v5431_v10  ;;  %5454 = verf.f32 %v2166_v18 }
 0x101   :  { %v6344_v19 = vpop.f32.mrf.mxu0  ;;  %v5435_v24 = vpop.eup %5434  ;;  %v4677_v28 = vpack.c.bf16 %v2749_v12, %v2748_v0  ;;  %v2747_v29 = vmul.f32 %v2551_v13, %v1963_v37  ;;  %v2556_v32 = vadd.f32 1.0, %v5433_v14  ;;  %v1115_v54 = vadd.f32 %v6274_v36, %v6316_v49 }
 0x102   :  { %v6346_v20 = vpop.f32.mrf.mxu1  ;;  %v5437_v30 = vpop.eup %5436  ;;  %4909 = vst [vmem:[%s8023_s3 + $0x8] sm:$0xff] %v4427_v15   ;;  %v4422_v31 = vpack.c.bf16 %v2647_v16, %v2646_v11  ;;  %v2652_v40 = vmul.f32 %v2456_v17, %v6307_v43  ;;  %v2454_v22 = vadd.f32 1.0, %v5435_v24  ;;  %v1515_v43 = vadd.f32 %v6274_v36, %v6318_v50 }
 0x103   :  { %v6356_v35 = vpop.f32.mrf.mxu0  ;;  %v5439_v25 = vpop.eup %5438  ;;  %4959 = vst [vmem:[%s8023_s3 + $0x198] sm:$0xff] %v4677_v28   ;;  %v4672_v37 = vpack.c.bf16 %v2747_v29, %v2746_v26  ;;  %v2752_v57 = vmul.f32 %v2556_v32, %v6309_v44  ;;  %v2554_v58 = vadd.f32 1.0, %v5437_v30  ;;  %5456 = verf.f32 %v2169_v48 }
 0x104   :  { %v6358_v38 = vpop.f32.mrf.mxu1  ;;  %v5441_v42 = vpop.eup %5440  ;;  %4423 = vst [vmem:[%s8023_s3] sm:$0xff] %v4422_v31   ;;  %v2457_v45 = vadd.f32 1.0, %v5439_v25  ;;  %v2067_v6 = vmul.f32 0.70710677, %v1115_v54  ;;  %v1136_v49 = vadd.f32 %v6331_v61, %v6274_v36  ;;  %v2167_v10 = vmul.f32 0.70710677, %v1515_v43 }
 0x105   :  { %v6370_v51 = vpop.f32.mrf.mxu0  ;;  %4958 = vst [vmem:[%s8023_s3 + $0x190] sm:$0xff] %v4672_v37   ;;  %v2557_v23 = vadd.f32 1.0, %v5441_v42  ;;  %v5443_v56 = vpop.eup %5442  ;;  %v6392_v44 = vadd.f32 %v6333_v62, %v6274_v36  ;;  %v2650_v12 = vmul.f32 %v2454_v22, %v6311_v46  ;;  %v2750_v14 = vmul.f32 %v2554_v58, %v6313_v47 }
 0x106   :  { %v6372_v52 = vpop.f32.mrf.mxu1  ;;  %v2653_v63 = vmul.f32 %v2457_v45, %v6320_v53  ;;  %v5445_v2 = vpop.eup %5444  ;;  %v2455_v5 = vadd.f32 1.0, %v5443_v56  ;;  %5458 = verf.f32 %v2067_v6  ;;  %v1872_v15 = vmul.f32 0.5, %v6300_v27 }
 0x107   :  { %v6383_v0 = vpop.f32.mrf.mxu0  ;;  %v2753_v4 = vmul.f32 %v2557_v23, %v6326_v59  ;;  %v2555_v7 = vadd.f32 1.0, %v5445_v2  ;;  %5460 = verf.f32 %v2167_v10  ;;  %v5447_v17 = vpop.eup %5446  ;;  %v1972_v47 = vmul.f32 0.5, %v6304_v33 }
 0x108   :  { %v6385_v1 = vpop.f32.mrf.mxu1  ;;  %v4437_v50 = vpack.c.bf16 %v2653_v63, %v2652_v40  ;;  %v2651_v59 = vmul.f32 %v2455_v5, %v1867_v39  ;;  %v6413_v18 = vmul.f32 0.5, %v6324_v55  ;;  %v2072_v24 = vmul.f32 0.70710677, %v1136_v49  ;;  %v5449_v26 = vpop.eup %5448 }
 0x109   :  { %v6394_v53 = vpop.f32.mrf.mxu0  ;;  %v4687_v13 = vpack.c.bf16 %v2753_v4, %v2752_v57  ;;  %v2751_v61 = vmul.f32 %v2555_v7, %v1967_v41  ;;  %v6416_v27 = vmul.f32 0.5, %v6329_v60  ;;  %v2172_v29 = vmul.f32 0.70710677, %v6392_v44 }
 0x10a   :  { %v6396_v11 = vpop.f32.mrf.mxu1  ;;  %4911 = vst [vmem:[%s8023_s3 + $0x18] sm:$0xff] %v4437_v50   ;;  %v4432_v46 = vpack.c.bf16 %v2651_v59, %v2650_v12  ;;  %v6421_v21 = vadd.f32 %v6274_v36, %v6339_v8  ;;  %v1873_v33 = vmul.f32 0.5, %v6336_v3  ;;  %v1973_v55 = vmul.f32 0.5, %v6354_v34 }
 0x10b   :  { %v6404_v62 = vpop.f32.mrf.mxu0  ;;  %4961 = vst [vmem:[%s8023_s3 + $0x1a8] sm:$0xff] %v4687_v13   ;;  %v4682_v28 = vpack.c.bf16 %v2751_v61, %v2750_v14  ;;  %v6434_v60 = vadd.f32 %v6274_v36, %v6341_v9  ;;  %v6438_v8 = vadd.f32 %v6344_v19, %v6274_v36  ;;  %v2460_v32 = vadd.f32 1.0, %v5447_v17  ;;  %v5451_v9 = vpop.eup %5450 }
 0x10c   :  { %v6406_v16 = vpop.f32.mrf.mxu1  ;;  %4910 = vst [vmem:[%s8023_s3 + $0x10] sm:$0xff] %v4432_v46   ;;  %v6443_v25 = vmul.f32 0.5, %v1115_v54  ;;  %5462 = verf.f32 %v2072_v24  ;;  %v2070_v3 = vmul.f32 0.70710677, %v6421_v21  ;;  %v2560_v39 = vadd.f32 1.0, %v5449_v26  ;;  %v5453_v42 = vpop.eup %5452 }
 0x10d   :  { %v6423_v30 = vpop.f32.mrf.mxu0  ;;  %4960 = vst [vmem:[%s8023_s3 + $0x1a0] sm:$0xff] %v4682_v28   ;;  %v1971_v41 = vmul.f32 0.5, %v1515_v43  ;;  %5464 = verf.f32 %v2172_v29  ;;  %v2170_v19 = vmul.f32 0.70710677, %v6434_v60  ;;  %v6451_v40 = vmul.f32 0.5, %v1136_v49  ;;  %v5455_v54 = vpop.eup %5454 }
 0x10e   :  { %v6425_v31 = vpop.f32.mrf.mxu1  ;;  %5466 = verf.f32 %v2070_v3  ;;  %v2073_v45 = vmul.f32 0.70710677, %v6438_v8  ;;  %v6456_v48 = vadd.f32 %v6346_v20, %v6274_v36  ;;  %v2461_v56 = vadd.f32 1.0, %v5453_v42 }
 0x10f   :  { %v6446_v37 = vpop.f32.mrf.mxu0  ;;  %5468 = verf.f32 %v2170_v19  ;;  %v6464_v43 = vadd.f32 %v6274_v36, %v6356_v35  ;;  %v6468_v57 = vadd.f32 %v6274_v36, %v6358_v38  ;;  %v2656_v58 = vmul.f32 %v2460_v32, %v1872_v15 }
 0x110   :  { %v6448_v34 = vpop.f32.mrf.mxu1  ;;  %5470 = verf.f32 %v2073_v45  ;;  %v2173_v20 = vmul.f32 0.70710677, %v6456_v48  ;;  %v6473_v63 = vadd.f32 %v6370_v51, %v6274_v36  ;;  %v5457_v5 = vpop.eup %5456  ;;  %v2756_v6 = vmul.f32 %v2560_v39, %v1972_v47 }
 0x111   :  { %v6458_v22 = vpop.f32.mrf.mxu0  ;;  %v2458_v35 = vadd.f32 1.0, %v5451_v9  ;;  %v2657_v49 = vmul.f32 %v2461_v56, %v1873_v33  ;;  %v2071_v50 = vmul.f32 0.70710677, %v6464_v43  ;;  %v2558_v38 = vadd.f32 1.0, %v5455_v54 }
 0x112   :  { %v6460_v23 = vpop.f32.mrf.mxu1  ;;  %v2561_v7 = vadd.f32 1.0, %v5457_v5  ;;  %5472 = verf.f32 %v2173_v20  ;;  %v2171_v10 = vmul.f32 0.70710677, %v6468_v57  ;;  %v2076_v59 = vmul.f32 0.70710677, %v6473_v63 }
 0x113   :  { %v6475_v2 = vpop.f32.mrf.mxu0  ;;  %v4447_v51 = vpack.c.bf16 %v2657_v49, %v2656_v58  ;;  %5474 = verf.f32 %v2071_v50  ;;  %v6488_v14 = vadd.f32 %v6372_v52, %v6274_v36  ;;  %v5459_v61 = vpop.eup %5458  ;;  %v6492_v17 = vadd.f32 %v6274_v36, %v6383_v0 }
 0x114   :  { %v6477_v4 = vpop.f32.mrf.mxu1  ;;  %v2757_v15 = vmul.f32 %v2561_v7, %v1973_v55  ;;  %5476 = verf.f32 %v2171_v10  ;;  %v6496_v46 = vadd.f32 %v6274_v36, %v6385_v1  ;;  %v5461_v26 = vpop.eup %5460  ;;  %v2459_v52 = vadd.f32 1.0, %v5459_v61 }
 0x115   :  { %v6481_v12 = vpop.f32.mrf.mxu0  ;;  %4913 = vst [vmem:[%s8023_s3 + $0x28] sm:$0xff] %v4447_v51   ;;  %v6506_v28 = vmul.f32 0.5, %v6392_v44  ;;  %v6509_v0 = vmul.f32 0.5, %v6421_v21  ;;  %v2176_v29 = vmul.f32 0.70710677, %v6488_v14  ;;  %v2559_v33 = vadd.f32 1.0, %v5461_v26 }
 0x116   :  { %v6483_v13 = vpop.f32.mrf.mxu1  ;;  %v4697_v1 = vpack.c.bf16 %v2757_v15, %v2756_v6  ;;  %5478 = verf.f32 %v2076_v59  ;;  %v2074_v55 = vmul.f32 0.70710677, %v6492_v17  ;;  %v2654_v9 = vmul.f32 %v2458_v35, %v6413_v18 }
 0x117   :  { %v6498_v47 = vpop.f32.mrf.mxu0  ;;  %v2655_v39 = vmul.f32 %v2459_v52, %v6443_v25  ;;  %5480 = verf.f32 %v2176_v29  ;;  %v2174_v44 = vmul.f32 0.70710677, %v6496_v46  ;;  %v2754_v21 = vmul.f32 %v2558_v38, %v6416_v27 }
 0x118   :  { %v6500_v24 = vpop.f32.mrf.mxu1  ;;  %4963 = vst [vmem:[%s8023_s3 + $0x1b8] sm:$0xff] %v4697_v1   ;;  %v2755_v19 = vmul.f32 %v2559_v33, %v1971_v41  ;;  %v6526_v42 = vadd.f32 %v6394_v53, %v6274_v36  ;;  %v6530_v45 = vadd.f32 %v6396_v11, %v6274_v36  ;;  %v1974_v27 = vmul.f32 0.5, %v6434_v60 }
 0x119   :  { %v6513_v32 = vpop.f32.mrf.mxu0  ;;  %v5463_v54 = vpop.eup %5462  ;;  %v4442_v56 = vpack.c.bf16 %v2655_v39, %v2654_v9  ;;  %5482 = verf.f32 %v2074_v55  ;;  %v6539_v41 = vadd.f32 %v6274_v36, %v6404_v62  ;;  %v1877_v20 = vmul.f32 0.5, %v6438_v8 }
 0x11a   :  { %v6515_v3 = vpop.f32.mrf.mxu1  ;;  %v5465_v58 = vpop.eup %5464  ;;  %v4692_v53 = vpack.c.bf16 %v2755_v19, %v2754_v21  ;;  %v1977_v11 = vmul.f32 0.5, %v6456_v48  ;;  %v2077_v5 = vmul.f32 0.70710677, %v6526_v42  ;;  %v1875_v62 = vmul.f32 0.5, %v6464_v43 }
 0x11b   :  { %v6532_v18 = vpop.f32.mrf.mxu0  ;;  %v5467_v49 = vpop.eup %5466  ;;  %4912 = vst [vmem:[%s8023_s3 + $0x20] sm:$0xff] %v4442_v56   ;;  %v1975_v60 = vmul.f32 0.5, %v6468_v57  ;;  %5484 = verf.f32 %v2174_v44  ;;  %v2177_v8 = vmul.f32 0.70710677, %v6530_v45  ;;  %v2464_v48 = vadd.f32 1.0, %v5463_v54 }
 0x11c   :  { %v6534_v25 = vpop.f32.mrf.mxu1  ;;  %v5469_v50 = vpop.eup %5468  ;;  %4962 = vst [vmem:[%s8023_s3 + $0x1b0] sm:$0xff] %v4692_v53   ;;  %v6558_v38 = vmul.f32 0.5, %v6473_v63  ;;  %5486 = verf.f32 %v2077_v5  ;;  %v2075_v7 = vmul.f32 0.70710677, %v6539_v41  ;;  %v2564_v51 = vadd.f32 1.0, %v5465_v58 }
 0x11d   :  { %v6544_v6 = vpop.f32.mrf.mxu0  ;;  %v5471_v57 = vpop.eup %5470  ;;  %5488 = verf.f32 %v2177_v8  ;;  %v1547_v59 = vadd.f32 %v6274_v36, %v6406_v16  ;;  %v6569_v61 = vadd.f32 %v6423_v30, %v6274_v36  ;;  %v2462_v15 = vadd.f32 1.0, %v5467_v49 }
 0x11e   :  { %v6546_v35 = vpop.f32.mrf.mxu1  ;;  %v2465_v63 = vadd.f32 1.0, %v5471_v57  ;;  %v6572_v26 = vmul.f32 0.5, %v6488_v14  ;;  %5490 = verf.f32 %v2075_v7  ;;  %v2562_v33 = vadd.f32 1.0, %v5469_v50 }
 0x11f   :  { %v6561_v10 = vpop.f32.mrf.mxu0  ;;  %v5473_v1 = vpop.eup %5472  ;;  %v6579_v55 = vmul.f32 0.5, %v6492_v17  ;;  %v2175_v16 = vmul.f32 0.70710677, %v1547_v59  ;;  %v6583_v30 = vadd.f32 %v6425_v31, %v6274_v36  ;;  %v2660_v39 = vmul.f32 %v2464_v48, %v6451_v40 }
 0x120   :  { %v6563_v43 = vpop.f32.mrf.mxu1  ;;  %v5475_v9 = vpop.eup %5474  ;;  %v2661_v14 = vmul.f32 %v2465_v63, %v1877_v20  ;;  %v2565_v44 = vadd.f32 1.0, %v5473_v1  ;;  %v2080_v21 = vmul.f32 0.70710677, %v6569_v61  ;;  %v2760_v17 = vmul.f32 %v2564_v51, %v6506_v28 }
 0x121   :  { %v6574_v52 = vpop.f32.mrf.mxu0  ;;  %v5477_v56 = vpop.eup %5476  ;;  %v2463_v58 = vadd.f32 1.0, %v5475_v9  ;;  %5492 = verf.f32 %v2175_v16  ;;  %v6594_v31 = vadd.f32 %v6274_v36, %v6446_v37  ;;  %v2658_v53 = vmul.f32 %v2462_v15, %v6509_v0 }
 0x122   :  { %v6576_v29 = vpop.f32.mrf.mxu1  ;;  %v4457_v40 = vpack.c.bf16 %v2661_v14, %v2660_v39  ;;  %v2761_v20 = vmul.f32 %v2565_v44, %v1977_v11  ;;  %v2563_v5 = vadd.f32 1.0, %v5477_v56  ;;  %v2758_v48 = vmul.f32 %v2562_v33, %v1974_v27 }
 0x123   :  { %v6587_v19 = vpop.f32.mrf.mxu0  ;;  %v5479_v50 = vpop.eup %5478  ;;  %v2659_v7 = vmul.f32 %v2463_v58, %v1875_v62  ;;  %5494 = verf.f32 %v2080_v21  ;;  %v2180_v28 = vmul.f32 0.70710677, %v6583_v30  ;;  %v2078_v11 = vmul.f32 0.70710677, %v6594_v31 }
 0x124   :  { %v6589_v54 = vpop.f32.mrf.mxu1  ;;  %v5481_v57 = vpop.eup %5480  ;;  %4915 = vst [vmem:[%s8023_s3 + $0x38] sm:$0xff] %v4457_v40   ;;  %v4707_v37 = vpack.c.bf16 %v2761_v20, %v2760_v17  ;;  %v2759_v0 = vmul.f32 %v2563_v5, %v1975_v60  ;;  %v6608_v51 = vadd.f32 %v6274_v36, %v6448_v34  ;;  %v6615_v63 = vmul.f32 0.5, %v6496_v46 }
 0x125   :  { %v6597_v49 = vpop.f32.mrf.mxu0  ;;  %v4452_v62 = vpack.c.bf16 %v2659_v7, %v2658_v53  ;;  %v1881_v1 = vmul.f32 0.5, %v6526_v42  ;;  %v6620_v33 = vadd.f32 %v6458_v22, %v6274_v36  ;;  %v2468_v16 = vadd.f32 1.0, %v5479_v50 }
 0x126   :  { %v6599_v8 = vpop.f32.mrf.mxu1  ;;  %v5483_v60 = vpop.eup %5482  ;;  %4965 = vst [vmem:[%s8023_s3 + $0x1c8] sm:$0xff] %v4707_v37   ;;  %v4702_v34 = vpack.c.bf16 %v2759_v0, %v2758_v48  ;;  %v1981_v9 = vmul.f32 0.5, %v6530_v45  ;;  %v1879_v39 = vmul.f32 0.5, %v6539_v41  ;;  %v2568_v22 = vadd.f32 1.0, %v5481_v57 }
 0x127   :  { %v6610_v15 = vpop.f32.mrf.mxu0  ;;  %4914 = vst [vmem:[%s8023_s3 + $0x30] sm:$0xff] %v4452_v62   ;;  %v1979_v42 = vmul.f32 0.5, %v1547_v59  ;;  %5496 = verf.f32 %v2180_v28  ;;  %v2178_v44 = vmul.f32 0.70710677, %v6608_v51  ;;  %v2081_v45 = vmul.f32 0.70710677, %v6620_v33 }
 0x128   :  { %v6612_v27 = vpop.f32.mrf.mxu1  ;;  %v5485_v21 = vpop.eup %5484  ;;  %4964 = vst [vmem:[%s8023_s3 + $0x1c0] sm:$0xff] %v4702_v34   ;;  %5498 = verf.f32 %v2078_v11  ;;  %v1571_v41 = vadd.f32 %v6460_v23, %v6274_v36  ;;  %v6643_v56 = vadd.f32 %v6274_v36, %v6475_v2  ;;  %v2466_v53 = vadd.f32 1.0, %v5483_v60 }
 0x129   :  { %v6627_v14 = vpop.f32.mrf.mxu0  ;;  %v5487_v58 = vpop.eup %5486  ;;  %5500 = verf.f32 %v2178_v44  ;;  %v6651_v40 = vadd.f32 %v6274_v36, %v6477_v4  ;;  %v6655_v20 = vadd.f32 %v6481_v12, %v6274_v36  ;;  %v2664_v5 = vmul.f32 %v2468_v16, %v6558_v38 }
 0x12a   :  { %v6629_v46 = vpop.f32.mrf.mxu1  ;;  %v5489_v23 = vpop.eup %5488  ;;  %v2469_v2 = vadd.f32 1.0, %v5487_v58  ;;  %5502 = verf.f32 %v2081_v45  ;;  %v2181_v50 = vmul.f32 0.70710677, %v1571_v41  ;;  %v2764_v57 = vmul.f32 %v2568_v22, %v6572_v26 }
 0x12b   :  { %v6645_v17 = vpop.f32.mrf.mxu0  ;;  %v5491_v28 = vpop.eup %5490  ;;  %v2566_v37 = vadd.f32 1.0, %v5485_v21  ;;  %v2569_v4 = vadd.f32 1.0, %v5489_v23  ;;  %v2079_v0 = vmul.f32 0.70710677, %v6643_v56  ;;  %v2179_v62 = vmul.f32 0.70710677, %v6651_v40 }
 0x12c   :  { %v6647_v59 = vpop.f32.mrf.mxu1  ;;  %v2665_v11 = vmul.f32 %v2469_v2, %v1881_v1  ;;  %v2467_v12 = vadd.f32 1.0, %v5491_v28  ;;  %5504 = verf.f32 %v2181_v50  ;;  %v2662_v34 = vmul.f32 %v2466_v53, %v6579_v55 }
 0x12d   :  { %v6658_v48 = vpop.f32.mrf.mxu0  ;;  %v2765_v16 = vmul.f32 %v2569_v4, %v1981_v9  ;;  %5506 = verf.f32 %v2079_v0  ;;  %v2084_v44 = vmul.f32 0.70710677, %v6655_v20  ;;  %v1584_v1 = vadd.f32 %v6483_v13, %v6274_v36 }
 0x12e   :  { %v6660_v7 = vpop.f32.mrf.mxu1  ;;  %v5493_v26 = vpop.eup %5492  ;;  %v4467_v22 = vpack.c.bf16 %v2665_v11, %v2664_v5  ;;  %v2663_v21 = vmul.f32 %v2467_v12, %v1879_v39  ;;  %5508 = verf.f32 %v2179_v62  ;;  %v1884_v50 = vmul.f32 0.5, %v6569_v61 }
 0x12f   :  { %v6665_v38 = vpop.f32.mrf.mxu0  ;;  %v4717_v23 = vpack.c.bf16 %v2765_v16, %v2764_v57  ;;  %v2567_v2 = vadd.f32 1.0, %v5493_v26  ;;  %v6680_v55 = vadd.f32 %v6274_v36, %v6498_v47  ;;  %v1984_v13 = vmul.f32 0.5, %v6583_v30 }
 0x130   :  { %v6667_v60 = vpop.f32.mrf.mxu1  ;;  %v5495_v9 = vpop.eup %5494  ;;  %4917 = vst [vmem:[%s8023_s3 + $0x48] sm:$0xff] %v4467_v22   ;;  %v4462_v39 = vpack.c.bf16 %v2663_v21, %v2662_v34  ;;  %v6687_v53 = vmul.f32 0.5, %v6594_v31  ;;  %v2184_v5 = vmul.f32 0.70710677, %v1584_v1  ;;  %v2762_v61 = vmul.f32 %v2566_v37, %v6615_v63 }
 0x131   :  { %v6673_v45 = vpop.f32.mrf.mxu0  ;;  %4967 = vst [vmem:[%s8023_s3 + $0x1d8] sm:$0xff] %v4717_v23   ;;  %v2763_v47 = vmul.f32 %v2567_v2, %v1979_v42  ;;  %v6698_v4 = vmul.f32 0.5, %v6608_v51  ;;  %v2082_v30 = vmul.f32 0.70710677, %v6680_v55  ;;  %v1885_v31 = vmul.f32 0.5, %v6620_v33 }
 0x132   :  { %v6675_v58 = vpop.f32.mrf.mxu1  ;;  %4916 = vst [vmem:[%s8023_s3 + $0x40] sm:$0xff] %v4462_v39   ;;  %5510 = verf.f32 %v2084_v44  ;;  %v6707_v63 = vadd.f32 %v6274_v36, %v6500_v24  ;;  %v6711_v37 = vadd.f32 %v6513_v32, %v6274_v36  ;;  %v1985_v0 = vmul.f32 0.5, %v1571_v41 }
 0x133   :  { %v6689_v28 = vpop.f32.mrf.mxu0  ;;  %v4712_v51 = vpack.c.bf16 %v2763_v47, %v2762_v61  ;;  %5512 = verf.f32 %v2184_v5  ;;  %v6717_v11 = vadd.f32 %v6515_v3, %v6274_v36  ;;  %v2472_v33 = vadd.f32 1.0, %v5495_v9 }
 0x134   :  { %v6691_v57 = vpop.f32.mrf.mxu1  ;;  %v5497_v12 = vpop.eup %5496  ;;  %v1883_v62 = vmul.f32 0.5, %v6643_v56  ;;  %5514 = verf.f32 %v2082_v30  ;;  %v2182_v24 = vmul.f32 0.70710677, %v6707_v63  ;;  %v1983_v41 = vmul.f32 0.5, %v6651_v40 }
 0x135   :  { %v6713_v42 = vpop.f32.mrf.mxu0  ;;  %v5499_v16 = vpop.eup %5498  ;;  %4966 = vst [vmem:[%s8023_s3 + $0x1d0] sm:$0xff] %v4712_v51   ;;  %v2085_v3 = vmul.f32 0.70710677, %v6711_v37  ;;  %v2185_v44 = vmul.f32 0.70710677, %v6717_v11  ;;  %v6733_v56 = vadd.f32 %v6274_v36, %v6532_v18  ;;  %v6736_v22 = vmul.f32 0.5, %v6655_v20 }
 0x136   :  { %v6721_v34 = vpop.f32.mrf.mxu1  ;;  %v5501_v26 = vpop.eup %5500  ;;  %5516 = verf.f32 %v2182_v24  ;;  %v6740_v21 = vadd.f32 %v6274_v36, %v6534_v25  ;;  %v6744_v40 = vadd.f32 %v6544_v6, %v6274_v36  ;;  %v2572_v9 = vadd.f32 1.0, %v5497_v12 }
 0x137   :  { %v6723_v32 = vpop.f32.mrf.mxu0  ;;  %v5503_v2 = vpop.eup %5502  ;;  %v6748_v39 = vmul.f32 0.5, %v1584_v1  ;;  %5518 = verf.f32 %v2085_v3  ;;  %v2083_v18 = vmul.f32 0.70710677, %v6733_v56  ;;  %v2668_v20 = vmul.f32 %v2472_v33, %v1884_v50 }
 0x138   :  { %v2473_v5 = vadd.f32 1.0, %v5503_v2  ;;  %5520 = verf.f32 %v2185_v44  ;;  %v2183_v61 = vmul.f32 0.70710677, %v6740_v21  ;;  %v6752_v25 = vpop.f32.mrf.mxu1  ;;  %v2470_v30 = vadd.f32 1.0, %v5499_v16 }
 0x139   :  { %v6746_v23 = vpop.f32.mrf.mxu0  ;;  %v5505_v6 = vpop.eup %5504  ;;  %v2570_v51 = vadd.f32 1.0, %v5501_v26  ;;  %5522 = verf.f32 %v2083_v18  ;;  %v2088_v12 = vmul.f32 0.70710677, %v6744_v40  ;;  %v6759_v50 = vadd.f32 %v6546_v35, %v6274_v36 }
 0x13a   :  { %v5507_v1 = vpop.eup %5506  ;;  %v2669_v24 = vmul.f32 %v2473_v5, %v1885_v31  ;;  %v2573_v3 = vadd.f32 1.0, %v5505_v6  ;;  %5524 = verf.f32 %v2183_v61  ;;  %v2768_v44 = vmul.f32 %v2572_v9, %v1984_v13  ;;  %v6769_v5 = vpop.f32.mrf.mxu1 }
 0x13b   :  { %v6754_v47 = vpop.f32.mrf.mxu0  ;;  %v5509_v33 = vpop.eup %5508  ;;  %v2471_v2 = vadd.f32 1.0, %v5507_v1  ;;  %v6767_v16 = vadd.f32 %v6274_v36, %v6563_v43  ;;  %5526 = verf.f32 %v2088_v12  ;;  %v2666_v35 = vmul.f32 %v2470_v30, %v6687_v53 }
 0x13c   :  { %8024 = vst [vmem:[#allocation8_spill] sm:$0xff] %v6754_v47  ;;  %v6763_v47 = vadd.f32 %v6274_v36, %v6561_v10  ;;  %v4477_v26 = vpack.c.bf16 %v2669_v24, %v2668_v20  ;;  %v2769_v18 = vmul.f32 %v2573_v3, %v1985_v0  ;;  %v2571_v31 = vadd.f32 1.0, %v5509_v33  ;;  %v6795_v1 = vpop.f32.mrf.mxu1 }
 0x13d   :  { %v6771_v61 = vpop.f32.mrf.mxu0  ;;  %v2667_v13 = vmul.f32 %v2471_v2, %v1883_v62  ;;  %v6775_v9 = vmul.f32 0.5, %v6680_v55  ;;  %v2188_v10 = vmul.f32 0.70710677, %v6759_v50  ;;  %v2766_v6 = vmul.f32 %v2570_v51, %v6698_v4  ;;  %v6789_v51 = vld [vmem:[#allocation4] ss:$0 sm:$0xff] }
 0x13e   :  { %4919 = vst [vmem:[%s8023_s3 + $0x58] sm:$0xff] %v4477_v26   ;;  %v4727_v36 = vpack.c.bf16 %v2769_v18, %v2768_v44  ;;  %v2767_v43 = vmul.f32 %v2571_v31, %v1983_v41  ;;  %v2086_v0 = vmul.f32 0.70710677, %v6763_v47  ;;  %v1986_v53 = vmul.f32 0.5, %v6707_v63 }
 0x13f   :  { %v5511_v20 = vpop.eup %5510  ;;  %v4472_v12 = vpack.c.bf16 %v2667_v13, %v2666_v35  ;;  %5528 = verf.f32 %v2188_v10  ;;  %v2186_v55 = vmul.f32 0.70710677, %v6767_v16  ;;  %v1889_v30 = vmul.f32 0.5, %v6711_v37  ;;  %v6797_v63 = vpop.f32.mrf.mxu0 }
 0x140   :  { %v5513_v62 = vpop.eup %5512  ;;  %4969 = vst [vmem:[%s8023_s3 + $0x1e8] sm:$0xff] %v4727_v36   ;;  %v4722_v4 = vpack.c.bf16 %v2767_v43, %v2766_v6  ;;  %5530 = verf.f32 %v2086_v0  ;;  %v6793_v41 = vadd.f32 %v6789_v51, %v6574_v52  ;;  %8025 = vst [vmem:[#allocation9_spill] sm:$0xff] %v6797_v63  ;;  %v1989_v3 = vmul.f32 0.5, %v6717_v11 }
 0x141   :  { %v5515_v24 = vpop.eup %5514  ;;  %4918 = vst [vmem:[%s8023_s3 + $0x50] sm:$0xff] %v4472_v12   ;;  %5532 = verf.f32 %v2186_v55  ;;  %v6805_v37 = vadd.f32 %v6789_v51, %v6576_v29  ;;  %v6809_v52 = vadd.f32 %v6789_v51, %v6587_v19  ;;  %v1887_v33 = vmul.f32 0.5, %v6733_v56  ;;  %v6828_v6 = vpop.f32.mrf.mxu0 }
 0x142   :  { %4968 = vst [vmem:[%s8023_s3 + $0x1e0] sm:$0xff] %v4722_v4   ;;  %v1987_v44 = vmul.f32 0.5, %v6740_v21  ;;  %v2089_v2 = vmul.f32 0.70710677, %v6793_v41  ;;  %v6819_v11 = vadd.f32 %v6789_v51, %v6589_v54  ;;  %v2476_v26 = vadd.f32 1.0, %v5511_v20  ;;  %v6826_v21 = vpop.f32.mrf.mxu1  ;;  %8027 = vst [vmem:[#allocation11_spill] sm:$0xff] %v6828_v6 }
 0x143   :  { %v5517_v29 = vpop.eup %5516  ;;  %v2576_v18 = vadd.f32 1.0, %v5513_v62  ;;  %v6822_v19 = vmul.f32 0.5, %v6744_v40  ;;  %v2189_v31 = vmul.f32 0.70710677, %v6805_v37  ;;  %v2474_v13 = vadd.f32 1.0, %v5515_v24  ;;  %8026 = vst [vmem:[#allocation10_spill] sm:$0xff] %v6826_v21 }
 0x144   :  { %v5519_v35 = vpop.eup %5518  ;;  %v2574_v10 = vadd.f32 1.0, %v5517_v29  ;;  %5534 = verf.f32 %v2089_v2  ;;  %v2087_v56 = vmul.f32 0.70710677, %v6809_v52  ;;  %v2187_v43 = vmul.f32 0.70710677, %v6819_v11 }
 0x145   :  { %v5521_v54 = vpop.eup %5520  ;;  %v2477_v36 = vadd.f32 1.0, %v5519_v35  ;;  %5536 = verf.f32 %v2189_v31  ;;  %v6833_v40 = vadd.f32 %v6789_v51, %v6597_v49  ;;  %v6836_v12 = vmul.f32 0.5, %v6759_v50  ;;  %v6847_v50 = vpop.f32.mrf.mxu0 }
 0x146   :  { %v5523_v0 = vpop.eup %5522  ;;  %v2577_v20 = vadd.f32 1.0, %v5521_v54  ;;  %5538 = verf.f32 %v2087_v56  ;;  %v6840_v55 = vadd.f32 %v6789_v51, %v6599_v8  ;;  %v2672_v4 = vmul.f32 %v2476_v26, %v6736_v22  ;;  %v6845_v54 = vpop.f32.mrf.mxu1 }
 0x147   :  { %v5525_v62 = vpop.eup %5524  ;;  %v2673_v24 = vmul.f32 %v2477_v36, %v1889_v30  ;;  %v2475_v2 = vadd.f32 1.0, %v5523_v0  ;;  %5540 = verf.f32 %v2187_v43  ;;  %v2772_v29 = vmul.f32 %v2576_v18, %v6748_v39 }
 0x148   :  { %v2773_v49 = vmul.f32 %v2577_v20, %v1989_v3  ;;  %v2575_v31 = vadd.f32 1.0, %v5525_v62  ;;  %v2092_v35 = vmul.f32 0.70710677, %v6833_v40  ;;  %v5527_v56 = vpop.eup %5526  ;;  %v2670_v8 = vmul.f32 %v2474_v13, %v6775_v9  ;;  %v6871_v13 = vpop.f32.mrf.mxu1 }
 0x149   :  { %v2770_v6 = vmul.f32 %v2574_v10, %v1986_v53  ;;  %v4487_v63 = vpack.c.bf16 %v2673_v24, %v2672_v4  ;;  %v2671_v21 = vmul.f32 %v2475_v2, %v1887_v33  ;;  %v2192_v26 = vmul.f32 0.70710677, %v6840_v55 }
 0x14a   :  { %v4737_v22 = vpack.c.bf16 %v2773_v49, %v2772_v29  ;;  %v2771_v30 = vmul.f32 %v2575_v31, %v1987_v44  ;;  %v6853_v39 = vadd.f32 %v6789_v51, %v6610_v15  ;;  %v1890_v18 = vmul.f32 0.5, %v6763_v47  ;;  %v6873_v47 = vpop.f32.mrf.mxu0  ;;  %v6896_v2 = vpop.f32.mrf.mxu1 }
 0x14b   :  { %4921 = vst [vmem:[%s8023_s3 + $0x68] sm:$0xff] %v4487_v63   ;;  %v4482_v3 = vpack.c.bf16 %v2671_v21, %v2670_v8  ;;  %5542 = verf.f32 %v2092_v35  ;;  %v6861_v9 = vadd.f32 %v6789_v51, %v6612_v27  ;;  %v2480_v15 = vadd.f32 1.0, %v5527_v56 }
 0x14c   :  { %v5529_v53 = vpop.eup %5528  ;;  %4971 = vst [vmem:[%s8023_s3 + $0x1f8] sm:$0xff] %v4737_v22   ;;  %v4732_v33 = vpack.c.bf16 %v2771_v30, %v2770_v6  ;;  %v2090_v44 = vmul.f32 0.70710677, %v6853_v39  ;;  %v6869_v63 = vadd.f32 %v6789_v51, %v6627_v14  ;;  %v1990_v27 = vmul.f32 0.5, %v6767_v16 }
 0x14d   :  { %v5531_v10 = vpop.eup %5530  ;;  %4920 = vst [vmem:[%s8023_s3 + $0x60] sm:$0xff] %v4482_v3   ;;  %v1893_v21 = vmul.f32 0.5, %v6793_v41  ;;  %v2190_v6 = vmul.f32 0.70710677, %v6861_v9  ;;  %v6883_v36 = vadd.f32 %v6789_v51, %v6629_v46  ;;  %v1993_v43 = vmul.f32 0.5, %v6805_v37  ;;  %v6898_v37 = vpop.f32.mrf.mxu0 }
 0x14e   :  { %v5533_v14 = vpop.eup %5532  ;;  %4970 = vst [vmem:[%s8023_s3 + $0x1f0] sm:$0xff] %v4732_v33   ;;  %v1891_v0 = vmul.f32 0.5, %v6809_v52  ;;  %5544 = verf.f32 %v2192_v26  ;;  %v2093_v16 = vmul.f32 0.70710677, %v6869_v63  ;;  %v2580_v20 = vadd.f32 1.0, %v5529_v53 }
 0x14f   :  { %v2478_v41 = vadd.f32 1.0, %v5531_v10  ;;  %v1991_v62 = vmul.f32 0.5, %v6819_v11  ;;  %5546 = verf.f32 %v2090_v44  ;;  %v2676_v46 = vmul.f32 %v2480_v15, %v6822_v19  ;;  %v6911_v15 = vpop.f32.mrf.mxu0 }
 0x150   :  { %5548 = verf.f32 %v2093_v16  ;;  %v2193_v4 = vmul.f32 0.70710677, %v6883_v36  ;;  %v1211_v24 = vadd.f32 %v6789_v51, %v6645_v17  ;;  %v2578_v29 = vadd.f32 1.0, %v5533_v14 }
 0x151   :  { %v5535_v52 = vpop.eup %5534  ;;  %5550 = verf.f32 %v2190_v6  ;;  %v1611_v49 = vadd.f32 %v6789_v51, %v6647_v59  ;;  %v1232_v11 = vadd.f32 %v6789_v51, %v6658_v48  ;;  %v6906_v17 = vadd.f32 %v6789_v51, %v6660_v7  ;;  %v6909_v48 = vpop.f32.mrf.mxu1 }
 0x152   :  { %v5537_v19 = vpop.eup %5536  ;;  %v2481_v31 = vadd.f32 1.0, %v5535_v52  ;;  %5552 = verf.f32 %v2193_v4  ;;  %v2091_v35 = vmul.f32 0.70710677, %v1211_v24  ;;  %v2776_v8 = vmul.f32 %v2580_v20, %v6836_v12 }
 0x153   :  { %v5539_v56 = vpop.eup %5538  ;;  %v2674_v22 = vmul.f32 %v2478_v41, %v1890_v18  ;;  %v2581_v30 = vadd.f32 1.0, %v5537_v19  ;;  %v2191_v26 = vmul.f32 0.70710677, %v1611_v49  ;;  %v2096_v33 = vmul.f32 0.70710677, %v1232_v11 }
 0x154   :  { %v5541_v3 = vpop.eup %5540  ;;  %v2677_v53 = vmul.f32 %v2481_v31, %v1893_v21  ;;  %v2479_v59 = vadd.f32 1.0, %v5539_v56  ;;  %5554 = verf.f32 %v2091_v35  ;;  %v2774_v44 = vmul.f32 %v2578_v29, %v1990_v27 }
 0x155   :  { %v2777_v10 = vmul.f32 %v2581_v30, %v1993_v43  ;;  %v2579_v6 = vadd.f32 1.0, %v5541_v3  ;;  %5556 = verf.f32 %v2191_v26  ;;  %v2196_v12 = vmul.f32 0.70710677, %v6906_v17 }
 0x156   :  { %v4497_v7 = vpack.c.bf16 %v2677_v53, %v2676_v46  ;;  %v2675_v14 = vmul.f32 %v2479_v59, %v1891_v0  ;;  %5558 = verf.f32 %v2096_v33  ;;  %v6916_v21 = vadd.f32 %v6789_v51, %v6665_v38  ;;  %v6931_v38 = vpop.f32.mrf.mxu1  ;;  %v6933_v46 = vpop.f32.mrf.mxu0 }
 0x157   :  { %v4747_v18 = vpack.c.bf16 %v2777_v10, %v2776_v8  ;;  %v2775_v16 = vmul.f32 %v2579_v6, %v1991_v62  ;;  %v6920_v20 = vadd.f32 %v6789_v51, %v6667_v60  ;;  %v1896_v43 = vmul.f32 0.5, %v6833_v40 }
 0x158   :  { %v5543_v41 = vpop.eup %5542  ;;  %4923 = vst [vmem:[%s8023_s3 + $0x78] sm:$0xff] %v4497_v7   ;;  %v4492_v27 = vpack.c.bf16 %v2675_v14, %v2674_v22  ;;  %v1996_v0 = vmul.f32 0.5, %v6840_v55  ;;  %v6929_v62 = vadd.f32 %v6789_v51, %v6673_v45  ;;  %v1894_v4 = vmul.f32 0.5, %v6853_v39  ;;  %v6965_v8 = vpop.f32.mrf.mxu1 }
 0x159   :  { %4973 = vst [vmem:[%s8023_s3 + $0x208] sm:$0xff] %v4747_v18   ;;  %v4742_v60 = vpack.c.bf16 %v2775_v16, %v2774_v44  ;;  %v6940_v52 = vmul.f32 0.5, %v6861_v9  ;;  %v2094_v40 = vmul.f32 0.70710677, %v6916_v21  ;;  %v1897_v45 = vmul.f32 0.5, %v6869_v63  ;;  %v6967_v22 = vpop.f32.mrf.mxu0 }
 0x15a   :  { %4922 = vst [vmem:[%s8023_s3 + $0x70] sm:$0xff] %v4492_v27   ;;  %v1997_v55 = vmul.f32 0.5, %v6883_v36  ;;  %5560 = verf.f32 %v2196_v12  ;;  %v2194_v29 = vmul.f32 0.70710677, %v6920_v20  ;;  %v2484_v39 = vadd.f32 1.0, %v5543_v41  ;;  %v6979_v14 = vpop.f32.mrf.mxu1 }
 0x15b   :  { %v5545_v19 = vpop.eup %5544  ;;  %4972 = vst [vmem:[%s8023_s3 + $0x200] sm:$0xff] %v4742_v60   ;;  %5562 = verf.f32 %v2094_v40  ;;  %v2097_v9 = vmul.f32 0.70710677, %v6929_v62  ;;  %v6955_v31 = vadd.f32 %v6789_v51, %v6675_v58  ;;  %v1895_v63 = vmul.f32 0.5, %v1211_v24  ;;  %v6981_v12 = vpop.f32.mrf.mxu0 }
 0x15c   :  { %v5547_v35 = vpop.eup %5546  ;;  %5564 = verf.f32 %v2194_v29  ;;  %v6959_v36 = vadd.f32 %v6789_v51, %v6689_v28  ;;  %v6963_v56 = vadd.f32 %v6789_v51, %v6691_v57  ;;  %v1995_v26 = vmul.f32 0.5, %v1611_v49 }
 0x15d   :  { %v5549_v30 = vpop.eup %5548  ;;  %v6969_v3 = vmul.f32 0.5, %v1232_v11  ;;  %5566 = verf.f32 %v2097_v9  ;;  %v2197_v58 = vmul.f32 0.70710677, %v6955_v31  ;;  %v2584_v53 = vadd.f32 1.0, %v5545_v19 }
 0x15e   :  { %v5551_v24 = vpop.eup %5550  ;;  %v2485_v59 = vadd.f32 1.0, %v5549_v30  ;;  %v6973_v28 = vmul.f32 0.5, %v6906_v17  ;;  %v2095_v57 = vmul.f32 0.70710677, %v6959_v36  ;;  %v2680_v44 = vmul.f32 %v2484_v39, %v1896_v43  ;;  %v7002_v30 = vpop.f32.mrf.mxu0 }
 0x15f   :  { %v5553_v33 = vpop.eup %5552  ;;  %v2482_v10 = vadd.f32 1.0, %v5547_v35  ;;  %5568 = verf.f32 %v2197_v58  ;;  %v2195_v6 = vmul.f32 0.70710677, %v6963_v56  ;;  %v1248_v7 = vadd.f32 %v6789_v51, %v6713_v42 }
 0x160   :  { %v2681_v49 = vmul.f32 %v2485_v59, %v1897_v45  ;;  %v2585_v11 = vadd.f32 1.0, %v5553_v33  ;;  %5570 = verf.f32 %v2095_v57  ;;  %v2582_v18 = vadd.f32 1.0, %v5551_v24 }
 0x161   :  { %v5555_v17 = vpop.eup %5554  ;;  %5572 = verf.f32 %v2195_v6  ;;  %v6985_v16 = vadd.f32 %v6789_v51, %v6721_v34  ;;  %v6989_v41 = vadd.f32 %v6789_v51, %v6723_v32  ;;  %v2780_v43 = vmul.f32 %v2584_v53, %v1996_v0 }
 0x162   :  { %v5557_v27 = vpop.eup %5556  ;;  %v4507_v60 = vpack.c.bf16 %v2681_v49, %v2680_v44  ;;  %v2781_v40 = vmul.f32 %v2585_v11, %v1997_v55  ;;  %v2483_v42 = vadd.f32 1.0, %v5555_v17  ;;  %v2100_v19 = vmul.f32 0.70710677, %v1248_v7  ;;  %v7000_v55 = vpop.f32.mrf.mxu1  ;;  %v8028_v44 = vld [vmem:[#allocation8_spill] sm:$0xff] }
 0x163   :  { %v5559_v45 = vpop.eup %5558  ;;  %v2583_v29 = vadd.f32 1.0, %v5557_v27  ;;  %v2200_v39 = vmul.f32 0.70710677, %v6985_v16  ;;  %v6994_v9 = vadd.f32 %v6789_v51, %v6752_v25  ;;  %v2678_v34 = vmul.f32 %v2482_v10, %v1894_v4  ;;  %v7033_v49 = vpop.f32.mrf.mxu0 }
 0x164   :  { %4925 = vst [vmem:[%s8023_s3 + $0x88] sm:$0xff] %v4507_v60   ;;  %v4757_v32 = vpack.c.bf16 %v2781_v40, %v2780_v43  ;;  %v2679_v35 = vmul.f32 %v2483_v42, %v1895_v63  ;;  %v1898_v0 = vmul.f32 0.5, %v6916_v21  ;;  %v2778_v58 = vmul.f32 %v2582_v18, %v6940_v52 }
 0x165   :  { %v2779_v24 = vmul.f32 %v2583_v29, %v1995_v26  ;;  %5574 = verf.f32 %v2100_v19  ;;  %v2098_v25 = vmul.f32 0.70710677, %v6989_v41  ;;  %v2488_v53 = vadd.f32 1.0, %v5559_v45 }
 0x166   :  { %4975 = vst [vmem:[%s8023_s3 + $0x218] sm:$0xff] %v4757_v32   ;;  %v4502_v4 = vpack.c.bf16 %v2679_v35, %v2678_v34  ;;  %v1998_v63 = vmul.f32 0.5, %v6920_v20  ;;  %5576 = verf.f32 %v2200_v39  ;;  %v2198_v57 = vmul.f32 0.70710677, %v6994_v9 }
 0x167   :  { %v5561_v21 = vpop.eup %5560  ;;  %v4752_v59 = vpack.c.bf16 %v2779_v24, %v2778_v58  ;;  %5578 = verf.f32 %v2098_v25  ;;  %v7013_v52 = vadd.f32 %v6789_v51, %v6746_v23  ;;  %v1901_v33 = vmul.f32 0.5, %v6929_v62  ;;  %v7031_v23 = vpop.f32.mrf.mxu1  ;;  %v8029_v24 = vld [vmem:[#allocation10_spill] sm:$0xff] }
 0x168   :  { %v5563_v26 = vpop.eup %5562  ;;  %4924 = vst [vmem:[%s8023_s3 + $0x80] sm:$0xff] %v4502_v4   ;;  %v7021_v20 = vadd.f32 %v6789_v51, %v6769_v5  ;;  %v7025_v10 = vadd.f32 %v6789_v51, %v8028_v44  ;;  %v7029_v6 = vadd.f32 %v6789_v51, %v6795_v1  ;;  %v2001_v5 = vmul.f32 0.5, %v6955_v31  ;;  %v8030_v4 = vld [vmem:[#allocation9_spill] sm:$0xff] }
 0x169   :  { %v5565_v11 = vpop.eup %5564  ;;  %4974 = vst [vmem:[%s8023_s3 + $0x210] sm:$0xff] %v4752_v59   ;;  %v1899_v62 = vmul.f32 0.5, %v6959_v36  ;;  %5580 = verf.f32 %v2198_v57  ;;  %v2101_v17 = vmul.f32 0.70710677, %v7013_v52  ;;  %v2684_v1 = vmul.f32 %v2488_v53, %v6969_v3  ;;  %v7048_v39 = vpop.f32.mrf.mxu1 }
 0x16a   :  { %v5567_v18 = vpop.eup %5566  ;;  %v1999_v27 = vmul.f32 0.5, %v6963_v56  ;;  %v7043_v43 = vmul.f32 0.5, %v1248_v7  ;;  %v2201_v60 = vmul.f32 0.70710677, %v7021_v20  ;;  %v2588_v40 = vadd.f32 1.0, %v5561_v21  ;;  %v7050_v3 = vpop.f32.mrf.mxu0 }
 0x16b   :  { %v2489_v42 = vadd.f32 1.0, %v5567_v18  ;;  %5582 = verf.f32 %v2101_v17  ;;  %v2099_v45 = vmul.f32 0.70710677, %v7025_v10  ;;  %v2486_v29 = vadd.f32 1.0, %v5563_v26  ;;  %v7067_v17 = vpop.f32.mrf.mxu1 }
 0x16c   :  { %v5569_v31 = vpop.eup %5568  ;;  %v2586_v36 = vadd.f32 1.0, %v5565_v11  ;;  %5584 = verf.f32 %v2201_v60  ;;  %v2199_v19 = vmul.f32 0.70710677, %v7029_v6  ;;  %v7054_v32 = vadd.f32 %v6789_v51, %v6771_v61  ;;  %v7069_v18 = vpop.f32.mrf.mxu0 }
 0x16d   :  { %v5571_v56 = vpop.eup %5570  ;;  %v2685_v7 = vmul.f32 %v2489_v42, %v1901_v33  ;;  %v2589_v34 = vadd.f32 1.0, %v5569_v31  ;;  %5586 = verf.f32 %v2099_v45  ;;  %v7058_v25 = vadd.f32 %v6789_v51, %v8029_v24 }
 0x16e   :  { %v5573_v35 = vpop.eup %5572  ;;  %v2487_v58 = vadd.f32 1.0, %v5571_v56  ;;  %5588 = verf.f32 %v2199_v19  ;;  %v7062_v53 = vadd.f32 %v6789_v51, %v8030_v4  ;;  %v2784_v21 = vmul.f32 %v2588_v40, %v6973_v28  ;;  %v8031_v40 = vld [vmem:[#allocation11_spill] sm:$0xff] }
 0x16f   :  { %v4517_v59 = vpack.c.bf16 %v2685_v7, %v2684_v1  ;;  %v2785_v57 = vmul.f32 %v2589_v34, %v2001_v5  ;;  %v2587_v26 = vadd.f32 1.0, %v5573_v35  ;;  %v2682_v33 = vmul.f32 %v2486_v29, %v1898_v0  ;;  %v7098_v34 = vpop.f32.mrf.mxu1 }
 0x170   :  { %v2683_v44 = vmul.f32 %v2487_v58, %v1899_v62  ;;  %v2104_v61 = vmul.f32 0.70710677, %v7054_v32  ;;  %v2204_v11 = vmul.f32 0.70710677, %v7058_v25  ;;  %v2782_v60 = vmul.f32 %v2586_v36, %v1998_v63 }
 0x171   :  { %4927 = vst [vmem:[%s8023_s3 + $0x98] sm:$0xff] %v4517_v59   ;;  %v4767_v42 = vpack.c.bf16 %v2785_v57, %v2784_v21  ;;  %v2783_v28 = vmul.f32 %v2587_v26, %v1999_v27  ;;  %v2102_v5 = vmul.f32 0.70710677, %v7062_v53  ;;  %v7077_v62 = vadd.f32 %v6789_v51, %v6845_v54 }
 0x172   :  { %v5575_v1 = vpop.eup %5574  ;;  %v4512_v0 = vpack.c.bf16 %v2683_v44, %v2682_v33  ;;  %5590 = verf.f32 %v2104_v61  ;;  %v7081_v45 = vadd.f32 %v6789_v51, %v8031_v40  ;;  %v2004_v27 = vmul.f32 0.5, %v6985_v16  ;;  %v7100_v16 = vpop.f32.mrf.mxu0 }
 0x173   :  { %v5577_v63 = vpop.eup %5576  ;;  %4977 = vst [vmem:[%s8023_s3 + $0x228] sm:$0xff] %v4767_v42   ;;  %v4762_v31 = vpack.c.bf16 %v2783_v28, %v2782_v60  ;;  %5592 = verf.f32 %v2204_v11  ;;  %v7089_v29 = vadd.f32 %v6789_v51, %v6871_v13  ;;  %v1902_v54 = vmul.f32 0.5, %v6989_v41  ;;  %v7122_v44 = vpop.f32.mrf.mxu1 }
 0x174   :  { %v5579_v36 = vpop.eup %5578  ;;  %4926 = vst [vmem:[%s8023_s3 + $0x90] sm:$0xff] %v4512_v0   ;;  %v2002_v19 = vmul.f32 0.5, %v6994_v9  ;;  %v1905_v56 = vmul.f32 0.5, %v7013_v52  ;;  %v2202_v7 = vmul.f32 0.70710677, %v7077_v62  ;;  %v2492_v13 = vadd.f32 1.0, %v5575_v1 }
 0x175   :  { %4976 = vst [vmem:[%s8023_s3 + $0x220] sm:$0xff] %v4762_v31   ;;  %v2005_v35 = vmul.f32 0.5, %v7021_v20  ;;  %5594 = verf.f32 %v2102_v5  ;;  %v2105_v41 = vmul.f32 0.70710677, %v7081_v45  ;;  %v2592_v9 = vadd.f32 1.0, %v5577_v63 }
 0x176   :  { %v5581_v58 = vpop.eup %5580  ;;  %v2490_v24 = vadd.f32 1.0, %v5579_v36  ;;  %5596 = verf.f32 %v2202_v7  ;;  %v2205_v52 = vmul.f32 0.70710677, %v7089_v29  ;;  %v1903_v4 = vmul.f32 0.5, %v7025_v10  ;;  %v7124_v10 = vpop.f32.mrf.mxu0 }
 0x177   :  { %v2003_v21 = vmul.f32 0.5, %v7029_v6  ;;  %5598 = verf.f32 %v2105_v41  ;;  %v7112_v59 = vadd.f32 %v6789_v51, %v6847_v50  ;;  %v2590_v20 = vadd.f32 1.0, %v5581_v58  ;;  %v7134_v7 = vpop.f32.mrf.mxu1 }
 0x178   :  { %v5583_v57 = vpop.eup %5582  ;;  %5600 = verf.f32 %v2205_v52  ;;  %v7116_v26 = vadd.f32 %v6789_v51, %v6896_v2  ;;  %v7120_v33 = vadd.f32 %v6789_v51, %v6873_v47  ;;  %v2688_v61 = vmul.f32 %v2492_v13, %v7043_v43 }
 0x179   :  { %v5585_v6 = vpop.eup %5584  ;;  %v2493_v50 = vadd.f32 1.0, %v5583_v57  ;;  %v2103_v11 = vmul.f32 0.70710677, %v7112_v59  ;;  %v7130_v60 = vadd.f32 %v6789_v51, %v6909_v48  ;;  %v2788_v42 = vmul.f32 %v2592_v9, %v2004_v27  ;;  %v7136_v48 = vpop.f32.mrf.mxu0 }
 0x17a   :  { %v5587_v2 = vpop.eup %5586  ;;  %v2686_v28 = vmul.f32 %v2490_v24, %v1902_v54  ;;  %v2593_v5 = vadd.f32 1.0, %v5585_v6  ;;  %v2203_v47 = vmul.f32 0.70710677, %v7116_v26  ;;  %v2108_v63 = vmul.f32 0.70710677, %v7120_v33 }
 0x17b   :  { %v5589_v1 = vpop.eup %5588  ;;  %v2689_v0 = vmul.f32 %v2493_v50, %v1905_v56  ;;  %v2491_v40 = vadd.f32 1.0, %v5587_v2  ;;  %5602 = verf.f32 %v2103_v11  ;;  %v2786_v43 = vmul.f32 %v2590_v20, %v2002_v19  ;;  %v7164_v20 = vpop.f32.mrf.mxu1 }
 0x17c   :  { %v2789_v31 = vmul.f32 %v2593_v5, %v2005_v35  ;;  %v2591_v36 = vadd.f32 1.0, %v5589_v1  ;;  %5604 = verf.f32 %v2203_v47  ;;  %v2208_v54 = vmul.f32 0.70710677, %v7130_v60 }
 0x17d   :  { %v4527_v13 = vpack.c.bf16 %v2689_v0, %v2688_v61  ;;  %v2687_v27 = vmul.f32 %v2491_v40, %v1903_v4  ;;  %5606 = verf.f32 %v2108_v63  ;;  %v7141_v56 = vadd.f32 %v6789_v51, %v6898_v37  ;;  %v7190_v1 = vpop.f32.mrf.mxu1 }
 0x17e   :  { %v4777_v41 = vpack.c.bf16 %v2789_v31, %v2788_v42  ;;  %v2787_v58 = vmul.f32 %v2591_v36, %v2003_v21  ;;  %v7145_v19 = vadd.f32 %v6789_v51, %v6931_v38  ;;  %5608 = verf.f32 %v2208_v54 }
 0x17f   :  { %v5591_v35 = vpop.eup %5590  ;;  %4929 = vst [vmem:[%s8023_s3 + $0xa8] sm:$0xff] %v4527_v13   ;;  %v4522_v9 = vpack.c.bf16 %v2687_v27, %v2686_v28  ;;  %v7152_v24 = vadd.f32 %v6789_v51, %v6911_v15  ;;  %v7156_v52 = vadd.f32 %v6789_v51, %v6965_v8  ;;  %v1908_v4 = vmul.f32 0.5, %v7054_v32  ;;  %v7166_v15 = vpop.f32.mrf.mxu0 }
 0x180   :  { %v5593_v37 = vpop.eup %5592  ;;  %4979 = vst [vmem:[%s8023_s3 + $0x238] sm:$0xff] %v4777_v41   ;;  %v4772_v38 = vpack.c.bf16 %v2787_v58, %v2786_v43  ;;  %v2008_v21 = vmul.f32 0.5, %v7058_v25  ;;  %v2106_v57 = vmul.f32 0.70710677, %v7141_v56  ;;  %v1906_v8 = vmul.f32 0.5, %v7062_v53 }
 0x181   :  { %4928 = vst [vmem:[%s8023_s3 + $0xa0] sm:$0xff] %v4522_v9   ;;  %v2006_v6 = vmul.f32 0.5, %v7077_v62  ;;  %v1909_v61 = vmul.f32 0.5, %v7081_v45  ;;  %v2206_v32 = vmul.f32 0.70710677, %v7145_v19  ;;  %v2496_v25 = vadd.f32 1.0, %v5591_v35  ;;  %v7192_v0 = vpop.f32.mrf.mxu0 }
 0x182   :  { %v5595_v50 = vpop.eup %5594  ;;  %4978 = vst [vmem:[%s8023_s3 + $0x230] sm:$0xff] %v4772_v38   ;;  %v2009_v11 = vmul.f32 0.5, %v7089_v29  ;;  %5610 = verf.f32 %v2106_v57  ;;  %v2109_v2 = vmul.f32 0.70710677, %v7152_v24  ;;  %v2596_v28 = vadd.f32 1.0, %v5593_v37 }
 0x183   :  { %v5597_v42 = vpop.eup %5596  ;;  %v1907_v53 = vmul.f32 0.5, %v7112_v59  ;;  %5612 = verf.f32 %v2206_v32  ;;  %v2209_v62 = vmul.f32 0.70710677, %v7156_v52  ;;  %v2007_v5 = vmul.f32 0.5, %v7116_v26  ;;  %v7211_v9 = vpop.f32.mrf.mxu0 }
 0x184   :  { %v5599_v45 = vpop.eup %5598  ;;  %v7184_v47 = vmul.f32 0.5, %v7120_v33  ;;  %5614 = verf.f32 %v2109_v2  ;;  %v7188_v29 = vadd.f32 %v6789_v51, %v6933_v46  ;;  %v7196_v63 = vadd.f32 %v6789_v51, %v6979_v14 }
 0x185   :  { %v5601_v40 = vpop.eup %5600  ;;  %v2497_v59 = vadd.f32 1.0, %v5599_v45  ;;  %5616 = verf.f32 %v2209_v62  ;;  %v7200_v26 = vadd.f32 %v6789_v51, %v6967_v22  ;;  %v2692_v33 = vmul.f32 %v2496_v25, %v1908_v4  ;;  %v7209_v22 = vpop.f32.mrf.mxu1 }
 0x186   :  { %v2494_v43 = vadd.f32 1.0, %v5595_v50  ;;  %v2597_v31 = vadd.f32 1.0, %v5601_v40  ;;  %v2107_v46 = vmul.f32 0.70710677, %v7188_v29  ;;  %v2792_v36 = vmul.f32 %v2596_v28, %v2008_v21 }
 0x187   :  { %v2594_v13 = vadd.f32 1.0, %v5597_v42  ;;  %v2693_v27 = vmul.f32 %v2497_v59, %v1909_v61  ;;  %v2207_v54 = vmul.f32 0.70710677, %v7196_v63  ;;  %v2112_v14 = vmul.f32 0.70710677, %v7200_v26 }
 0x188   :  { %v5603_v41 = vpop.eup %5602  ;;  %v2793_v58 = vmul.f32 %v2597_v31, %v2009_v11  ;;  %5618 = verf.f32 %v2107_v46  ;;  %v7207_v35 = vadd.f32 %v6789_v51, %v7000_v55  ;;  %v7215_v21 = vadd.f32 %v6789_v51, %v6981_v12 }
 0x189   :  { %v5605_v37 = vpop.eup %5604  ;;  %v4537_v38 = vpack.c.bf16 %v2693_v27, %v2692_v33  ;;  %v2495_v4 = vadd.f32 1.0, %v5603_v41  ;;  %5620 = verf.f32 %v2207_v54  ;;  %v2012_v50 = vmul.f32 0.5, %v7130_v60 }
 0x18a   :  { %v5607_v57 = vpop.eup %5606  ;;  %v4787_v61 = vpack.c.bf16 %v2793_v58, %v2792_v36  ;;  %v2595_v32 = vadd.f32 1.0, %v5605_v37  ;;  %5622 = verf.f32 %v2112_v14  ;;  %v2690_v55 = vmul.f32 %v2494_v43, %v1906_v8 }
 0x18b   :  { %v2790_v25 = vmul.f32 %v2594_v13, %v2006_v6  ;;  %4931 = vst [vmem:[%s8023_s3 + $0xb8] sm:$0xff] %v4537_v38   ;;  %v2691_v11 = vmul.f32 %v2495_v4, %v1907_v53  ;;  %v2212_v2 = vmul.f32 0.70710677, %v7207_v35  ;;  %v5609_v42 = vpop.eup %5608  ;;  %v2110_v28 = vmul.f32 0.70710677, %v7215_v21  ;;  %v7234_v6 = vpop.f32.mrf.mxu1 }
 0x18c   :  { %4981 = vst [vmem:[%s8023_s3 + $0x248] sm:$0xff] %v4787_v61   ;;  %v2791_v12 = vmul.f32 %v2595_v32, %v2007_v5  ;;  %v7228_v60 = vadd.f32 %v6789_v51, %v7031_v23  ;;  %v7232_v8 = vadd.f32 %v6789_v51, %v7002_v30  ;;  %v7236_v53 = vpop.f32.mrf.mxu0  ;;  %v1910_v45 = vmul.f32 0.5, %v7141_v56 }
 0x18d   :  { %v4532_v62 = vpack.c.bf16 %v2691_v11, %v2690_v55  ;;  %v2010_v40 = vmul.f32 0.5, %v7145_v19  ;;  %v1913_v5 = vmul.f32 0.5, %v7152_v24  ;;  %v2500_v33 = vadd.f32 1.0, %v5607_v57  ;;  %v7262_v13 = vpop.f32.mrf.mxu1 }
 0x18e   :  { %v4782_v59 = vpack.c.bf16 %v2791_v12, %v2790_v25  ;;  %5624 = verf.f32 %v2212_v2  ;;  %v2210_v23 = vmul.f32 0.70710677, %v7228_v60  ;;  %v2600_v30 = vadd.f32 1.0, %v5609_v42 }
 0x18f   :  { %v5611_v43 = vpop.eup %5610  ;;  %4930 = vst [vmem:[%s8023_s3 + $0xb0] sm:$0xff] %v4532_v62   ;;  %5626 = verf.f32 %v2110_v28  ;;  %v2113_v31 = vmul.f32 0.70710677, %v7232_v8  ;;  %v7248_v56 = vadd.f32 %v6789_v51, %v7048_v39  ;;  %v2013_v24 = vmul.f32 0.5, %v7156_v52  ;;  %v7264_v39 = vpop.f32.mrf.mxu0 }
 0x190   :  { %v5613_v19 = vpop.eup %5612  ;;  %4980 = vst [vmem:[%s8023_s3 + $0x240] sm:$0xff] %v4782_v59   ;;  %5628 = verf.f32 %v2210_v23  ;;  %v7256_v46 = vadd.f32 %v6789_v51, %v7033_v49  ;;  %v7260_v36 = vadd.f32 %v6789_v51, %v7067_v17  ;;  %v1911_v54 = vmul.f32 0.5, %v7188_v29  ;;  %v7277_v32 = vpop.f32.mrf.mxu1 }
 0x191   :  { %v5615_v27 = vpop.eup %5614  ;;  %v2011_v41 = vmul.f32 0.5, %v7196_v63  ;;  %5630 = verf.f32 %v2113_v31  ;;  %v2213_v52 = vmul.f32 0.70710677, %v7248_v56  ;;  %v2696_v49 = vmul.f32 %v2500_v33, %v7184_v47  ;;  %v7279_v47 = vpop.f32.mrf.mxu0 }
 0x192   :  { %v5617_v58 = vpop.eup %5616  ;;  %v2501_v14 = vadd.f32 1.0, %v5615_v27  ;;  %v7271_v37 = vmul.f32 0.5, %v7200_v26  ;;  %v2111_v17 = vmul.f32 0.70710677, %v7256_v46  ;;  %v2796_v38 = vmul.f32 %v2600_v30, %v2012_v50 }
 0x193   :  { %v2498_v4 = vadd.f32 1.0, %v5611_v43  ;;  %v2601_v57 = vadd.f32 1.0, %v5617_v58  ;;  %5632 = verf.f32 %v2213_v52  ;;  %v2211_v29 = vmul.f32 0.70710677, %v7260_v36  ;;  %v7305_v30 = vpop.f32.mrf.mxu0 }
 0x194   :  { %v2697_v61 = vmul.f32 %v2501_v14, %v1913_v5  ;;  %5634 = verf.f32 %v2111_v17  ;;  %v1312_v63 = vadd.f32 %v6789_v51, %v7050_v3  ;;  %v2598_v26 = vadd.f32 1.0, %v5613_v19 }
 0x195   :  { %v5619_v55 = vpop.eup %5618  ;;  %v2797_v25 = vmul.f32 %v2601_v57, %v2013_v24  ;;  %v7283_v50 = vadd.f32 %v6789_v51, %v7098_v34  ;;  %v7287_v11 = vadd.f32 %v6789_v51, %v7069_v18  ;;  %5636 = verf.f32 %v2211_v29 }
 0x196   :  { %v5621_v2 = vpop.eup %5620  ;;  %v4547_v42 = vpack.c.bf16 %v2697_v61, %v2696_v49  ;;  %v2499_v12 = vadd.f32 1.0, %v5619_v55  ;;  %v7291_v3 = vadd.f32 %v6789_v51, %v7122_v44  ;;  %v7294_v59 = vmul.f32 0.5, %v7207_v35  ;;  %v7303_v44 = vpop.f32.mrf.mxu1 }
 0x197   :  { %v5623_v28 = vpop.eup %5622  ;;  %v4797_v62 = vpack.c.bf16 %v2797_v25, %v2796_v38  ;;  %v2599_v5 = vadd.f32 1.0, %v5621_v2  ;;  %v2116_v34 = vmul.f32 0.70710677, %v1312_v63  ;;  %v2694_v33 = vmul.f32 %v2498_v4, %v1910_v45 }
 0x198   :  { %4933 = vst [vmem:[%s8023_s3 + $0xc8] sm:$0xff] %v4547_v42   ;;  %v2695_v18 = vmul.f32 %v2499_v12, %v1911_v54  ;;  %v7300_v23 = vmul.f32 0.5, %v7215_v21  ;;  %v2216_v43 = vmul.f32 0.70710677, %v7283_v50  ;;  %v2794_v31 = vmul.f32 %v2598_v26, %v2010_v40  ;;  %v7329_v14 = vpop.f32.mrf.mxu1 }
 0x199   :  { %4983 = vst [vmem:[%s8023_s3 + $0x258] sm:$0xff] %v4797_v62   ;;  %v2795_v35 = vmul.f32 %v2599_v5, %v2011_v41  ;;  %5638 = verf.f32 %v2116_v34  ;;  %v2114_v45 = vmul.f32 0.70710677, %v7287_v11  ;;  %v2504_v24 = vadd.f32 1.0, %v5623_v28  ;;  %v7354_v28 = vld [vmem:[#allocation4] ss:$0 sm:$0xff] }
 0x19a   :  { %v4542_v19 = vpack.c.bf16 %v2695_v18, %v2694_v33  ;;  %5640 = verf.f32 %v2216_v43  ;;  %v2214_v21 = vmul.f32 0.70710677, %v7291_v3  ;;  %v2014_v52 = vmul.f32 0.5, %v7228_v60 }
 0x19b   :  { %v5625_v27 = vpop.eup %5624  ;;  %v4792_v54 = vpack.c.bf16 %v2795_v35, %v2794_v31  ;;  %5642 = verf.f32 %v2114_v45  ;;  %v7315_v40 = vadd.f32 %v6789_v51, %v7100_v16  ;;  %v1917_v41 = vmul.f32 0.5, %v7232_v8  ;;  %v7331_v16 = vpop.f32.mrf.mxu0 }
 0x19c   :  { %v5627_v58 = vpop.eup %5626  ;;  %4932 = vst [vmem:[%s8023_s3 + $0xc0] sm:$0xff] %v4542_v19   ;;  %5644 = verf.f32 %v2214_v21  ;;  %v7323_v49 = vadd.f32 %v6789_v51, %v7134_v7  ;;  %v7327_v60 = vadd.f32 %v6789_v51, %v7124_v10  ;;  %v2017_v8 = vmul.f32 0.5, %v7248_v56 }
 0x19d   :  { %v5629_v17 = vpop.eup %5628  ;;  %4982 = vst [vmem:[%s8023_s3 + $0x250] sm:$0xff] %v4792_v54   ;;  %v1915_v38 = vmul.f32 0.5, %v7256_v46  ;;  %v2117_v7 = vmul.f32 0.70710677, %v7315_v40  ;;  %v7341_v4 = vadd.f32 %v6789_v51, %v7164_v20  ;;  %v2700_v57 = vmul.f32 %v2504_v24, %v7271_v37  ;;  %v7350_v20 = vpop.f32.mrf.mxu1 }
 0x19e   :  { %v5631_v10 = vpop.eup %5630  ;;  %v2015_v61 = vmul.f32 0.5, %v7260_v36  ;;  %v7345_v29 = vmul.f32 0.5, %v1312_v63  ;;  %v2217_v55 = vmul.f32 0.70710677, %v7323_v49  ;;  %v2604_v26 = vadd.f32 1.0, %v5625_v27  ;;  %v7352_v37 = vpop.f32.mrf.mxu0 }
 0x19f   :  { %v2505_v25 = vadd.f32 1.0, %v5631_v10  ;;  %5646 = verf.f32 %v2117_v7  ;;  %v2115_v56 = vmul.f32 0.70710677, %v7327_v60  ;;  %v2502_v2 = vadd.f32 1.0, %v5627_v58  ;;  %v7372_v27 = vpop.f32.mrf.mxu1 }
 0x1a0   :  { %v5633_v46 = vpop.eup %5632  ;;  %v2602_v42 = vadd.f32 1.0, %v5629_v17  ;;  %5648 = verf.f32 %v2217_v55  ;;  %v2215_v51 = vmul.f32 0.70710677, %v7341_v4  ;;  %v7358_v62 = vadd.f32 %v7354_v28, %v7136_v48 }
 0x1a1   :  { %v5635_v36 = vpop.eup %5634  ;;  %v2701_v63 = vmul.f32 %v2505_v25, %v1917_v41  ;;  %v2605_v12 = vadd.f32 1.0, %v5633_v46  ;;  %5650 = verf.f32 %v2115_v56  ;;  %v7362_v34 = vadd.f32 %v7354_v28, %v7190_v1  ;;  %v7374_v1 = vpop.f32.mrf.mxu0 }
 0x1a2   :  { %v2503_v5 = vadd.f32 1.0, %v5635_v36  ;;  %5652 = verf.f32 %v2215_v51  ;;  %v7366_v33 = vadd.f32 %v7354_v28, %v7166_v15  ;;  %v5637_v18 = vpop.eup %5636  ;;  %v2800_v43 = vmul.f32 %v2604_v26, %v7294_v59 }
 0x1a3   :  { %v4557_v31 = vpack.c.bf16 %v2701_v63, %v2700_v57  ;;  %v2801_v35 = vmul.f32 %v2605_v12, %v2017_v8  ;;  %v2120_v45 = vmul.f32 0.70710677, %v7358_v62  ;;  %v2698_v48 = vmul.f32 %v2502_v2, %v7300_v23  ;;  %v7404_v26 = vpop.f32.mrf.mxu0 }
 0x1a4   :  { %v2699_v19 = vmul.f32 %v2503_v5, %v1915_v38  ;;  %v2603_v24 = vadd.f32 1.0, %v5637_v18  ;;  %v2220_v21 = vmul.f32 0.70710677, %v7362_v34  ;;  %v2798_v54 = vmul.f32 %v2602_v42, %v2014_v52 }
 0x1a5   :  { %4935 = vst [vmem:[%s8023_s3 + $0xd8] sm:$0xff] %v4557_v31   ;;  %v4807_v15 = vpack.c.bf16 %v2801_v35, %v2800_v43  ;;  %5654 = verf.f32 %v2120_v45  ;;  %v2118_v59 = vmul.f32 0.70710677, %v7366_v33  ;;  %v7382_v17 = vadd.f32 %v7354_v28, %v7209_v22  ;;  %v7430_v5 = vpop.f32.mrf.mxu0 }
 0x1a6   :  { %v5639_v58 = vpop.eup %5638  ;;  %v4552_v41 = vpack.c.bf16 %v2699_v19, %v2698_v48  ;;  %v2799_v23 = vmul.f32 %v2603_v24, %v2015_v61  ;;  %5656 = verf.f32 %v2220_v21  ;;  %v2020_v52 = vmul.f32 0.5, %v7283_v50 }
 0x1a7   :  { %v5641_v8 = vpop.eup %5640  ;;  %4985 = vst [vmem:[%s8023_s3 + $0x268] sm:$0xff] %v4807_v15   ;;  %v1918_v38 = vmul.f32 0.5, %v7287_v11  ;;  %v7391_v7 = vadd.f32 %v7354_v28, %v7192_v0  ;;  %v7395_v10 = vadd.f32 %v7354_v28, %v7234_v6  ;;  %v2508_v61 = vadd.f32 1.0, %v5639_v58  ;;  %v7402_v11 = vpop.f32.mrf.mxu1 }
 0x1a8   :  { %v5643_v57 = vpop.eup %5642  ;;  %4934 = vst [vmem:[%s8023_s3 + $0xd0] sm:$0xff] %v4552_v41   ;;  %v4802_v22 = vpack.c.bf16 %v2799_v23, %v2798_v54  ;;  %v2018_v55 = vmul.f32 0.5, %v7291_v3  ;;  %v2218_v50 = vmul.f32 0.70710677, %v7382_v17  ;;  %v1921_v25 = vmul.f32 0.5, %v7315_v40 }
 0x1a9   :  { %v5645_v0 = vpop.eup %5644  ;;  %v2021_v6 = vmul.f32 0.5, %v7323_v49  ;;  %5658 = verf.f32 %v2118_v59  ;;  %v2121_v56 = vmul.f32 0.70710677, %v7391_v7  ;;  %v2608_v46 = vadd.f32 1.0, %v5641_v8 }
 0x1aa   :  { %4984 = vst [vmem:[%s8023_s3 + $0x260] sm:$0xff] %v4802_v22   ;;  %v2506_v3 = vadd.f32 1.0, %v5643_v57  ;;  %v1919_v2 = vmul.f32 0.5, %v7327_v60  ;;  %5660 = verf.f32 %v2218_v50  ;;  %v2019_v42 = vmul.f32 0.5, %v7341_v4  ;;  %v7428_v4 = vpop.f32.mrf.mxu1 }
 0x1ab   :  { %5662 = verf.f32 %v2121_v56  ;;  %v2221_v51 = vmul.f32 0.70710677, %v7395_v10  ;;  %v7417_v40 = vadd.f32 %v7354_v28, %v7211_v9  ;;  %v2704_v36 = vmul.f32 %v2508_v61, %v7345_v29 }
 0x1ac   :  { %v5647_v49 = vpop.eup %5646  ;;  %v2606_v63 = vadd.f32 1.0, %v5645_v0  ;;  %v7422_v12 = vadd.f32 %v7354_v28, %v7262_v13  ;;  %v7426_v60 = vadd.f32 %v7354_v28, %v7236_v53  ;;  %v7435_v29 = vadd.f32 %v7354_v28, %v7277_v32  ;;  %v7439_v58 = vpop.f32.mrf.mxu1 }
 0x1ad   :  { %v5649_v18 = vpop.eup %5648  ;;  %v2509_v43 = vadd.f32 1.0, %v5647_v49  ;;  %5664 = verf.f32 %v2221_v51  ;;  %v2119_v9 = vmul.f32 0.70710677, %v7417_v40  ;;  %v2804_v13 = vmul.f32 %v2608_v46, %v2020_v52  ;;  %v7441_v32 = vpop.f32.mrf.mxu0 }
 0x1ae   :  { %v5651_v31 = vpop.eup %5650  ;;  %v2702_v35 = vmul.f32 %v2506_v3, %v1918_v38  ;;  %v2609_v45 = vadd.f32 1.0, %v5649_v18  ;;  %v2219_v53 = vmul.f32 0.70710677, %v7422_v12  ;;  %v2124_v21 = vmul.f32 0.70710677, %v7426_v60  ;;  %v7466_v46 = vpop.f32.mrf.mxu1 }
 0x1af   :  { %v5653_v48 = vpop.eup %5652  ;;  %v2705_v19 = vmul.f32 %v2509_v43, %v1921_v25  ;;  %v2507_v24 = vadd.f32 1.0, %v5651_v31  ;;  %5666 = verf.f32 %v2119_v9  ;;  %v2802_v54 = vmul.f32 %v2606_v63, %v2018_v55  ;;  %v7468_v3 = vpop.f32.mrf.mxu0 }
 0x1b0   :  { %v2805_v15 = vmul.f32 %v2609_v45, %v2021_v6  ;;  %v2607_v59 = vadd.f32 1.0, %v5653_v48  ;;  %5668 = verf.f32 %v2219_v53  ;;  %v2224_v8 = vmul.f32 0.70710677, %v7435_v29  ;;  %v7498_v9 = vpop.f32.mrf.mxu1 }
 0x1b1   :  { %v4567_v41 = vpack.c.bf16 %v2705_v19, %v2704_v36  ;;  %v2703_v23 = vmul.f32 %v2507_v24, %v1919_v2  ;;  %5670 = verf.f32 %v2124_v21  ;;  %v7446_v22 = vadd.f32 %v7354_v28, %v7264_v39 }
 0x1b2   :  { %v5655_v52 = vpop.eup %5654  ;;  %v4817_v38 = vpack.c.bf16 %v2805_v15, %v2804_v13  ;;  %v2803_v57 = vmul.f32 %v2607_v59, %v2019_v42  ;;  %v7450_v61 = vadd.f32 %v7354_v28, %v7303_v44  ;;  %v1924_v0 = vmul.f32 0.5, %v7358_v62  ;;  %v7515_v59 = vpop.f32.mrf.mxu1 }
 0x1b3   :  { %v5657_v55 = vpop.eup %5656  ;;  %4937 = vst [vmem:[%s8023_s3 + $0xe8] sm:$0xff] %v4567_v41   ;;  %v4562_v50 = vpack.c.bf16 %v2703_v23, %v2702_v35  ;;  %v7458_v25 = vadd.f32 %v7354_v28, %v7279_v47  ;;  %v2024_v44 = vmul.f32 0.5, %v7362_v34  ;;  %v1922_v6 = vmul.f32 0.5, %v7366_v33 }
 0x1b4   :  { %4987 = vst [vmem:[%s8023_s3 + $0x278] sm:$0xff] %v4817_v38   ;;  %v4812_v39 = vpack.c.bf16 %v2803_v57, %v2802_v54  ;;  %v2122_v56 = vmul.f32 0.70710677, %v7446_v22  ;;  %v2512_v47 = vadd.f32 1.0, %v5655_v52  ;;  %v2022_v62 = vmul.f32 0.5, %v7382_v17 }
 0x1b5   :  { %4936 = vst [vmem:[%s8023_s3 + $0xe0] sm:$0xff] %v4562_v50   ;;  %5672 = verf.f32 %v2224_v8  ;;  %v2222_v2 = vmul.f32 0.70710677, %v7450_v61  ;;  %v2612_v34 = vadd.f32 1.0, %v5657_v55  ;;  %v1925_v33 = vmul.f32 0.5, %v7391_v7 }
 0x1b6   :  { %v5659_v42 = vpop.eup %5658  ;;  %4986 = vst [vmem:[%s8023_s3 + $0x270] sm:$0xff] %v4812_v39   ;;  %5674 = verf.f32 %v2122_v56  ;;  %v2125_v51 = vmul.f32 0.70710677, %v7458_v25  ;;  %v2025_v36 = vmul.f32 0.5, %v7395_v10  ;;  %v7483_v17 = vadd.f32 %v7354_v28, %v7329_v14  ;;  %v7500_v14 = vpop.f32.mrf.mxu0 }
 0x1b7   :  { %v5661_v49 = vpop.eup %5660  ;;  %5676 = verf.f32 %v2222_v2  ;;  %v7487_v63 = vadd.f32 %v7354_v28, %v7305_v30  ;;  %v1923_v43 = vmul.f32 0.5, %v7417_v40  ;;  %v7492_v7 = vadd.f32 %v7354_v28, %v7350_v20 }
 0x1b8   :  { %v5663_v18 = vpop.eup %5662  ;;  %5678 = verf.f32 %v2125_v51  ;;  %v7496_v10 = vadd.f32 %v7354_v28, %v7331_v16  ;;  %v2708_v31 = vmul.f32 %v2512_v47, %v1924_v0  ;;  %v2023_v30 = vmul.f32 0.5, %v7422_v12  ;;  %v7517_v41 = vpop.f32.mrf.mxu0 }
 0x1b9   :  { %v2513_v13 = vadd.f32 1.0, %v5663_v18  ;;  %v2225_v35 = vmul.f32 0.70710677, %v7483_v17  ;;  %v2808_v45 = vmul.f32 %v2612_v34, %v2024_v44  ;;  %v2510_v53 = vadd.f32 1.0, %v5659_v42 }
 0x1ba   :  { %v5665_v40 = vpop.eup %5664  ;;  %v2123_v20 = vmul.f32 0.70710677, %v7487_v63  ;;  %v2223_v48 = vmul.f32 0.70710677, %v7492_v7  ;;  %v2610_v19 = vadd.f32 1.0, %v5661_v49  ;;  %v7509_v12 = vadd.f32 %v7354_v28, %v7372_v27  ;;  %v7532_v34 = vpop.f32.mrf.mxu0 }
 0x1bb   :  { %v2709_v16 = vmul.f32 %v2513_v13, %v1925_v33  ;;  %v2613_v24 = vadd.f32 1.0, %v5665_v40  ;;  %5680 = verf.f32 %v2225_v35  ;;  %v2128_v54 = vmul.f32 0.70710677, %v7496_v10 }
 0x1bc   :  { %v5667_v21 = vpop.eup %5666  ;;  %5682 = verf.f32 %v2123_v20  ;;  %v7513_v15 = vadd.f32 %v7354_v28, %v7352_v37  ;;  %v1928_v50 = vmul.f32 0.5, %v7426_v60  ;;  %v2228_v27 = vmul.f32 0.70710677, %v7509_v12  ;;  %v7530_v60 = vpop.f32.mrf.mxu1 }
 0x1bd   :  { %v5669_v23 = vpop.eup %5668  ;;  %v4577_v8 = vpack.c.bf16 %v2709_v16, %v2708_v31  ;;  %v2809_v52 = vmul.f32 %v2613_v24, %v2025_v36  ;;  %v2511_v38 = vadd.f32 1.0, %v5667_v21  ;;  %5684 = verf.f32 %v2223_v48 }
 0x1be   :  { %v5671_v57 = vpop.eup %5670  ;;  %v2611_v55 = vadd.f32 1.0, %v5669_v23  ;;  %5686 = verf.f32 %v2128_v54  ;;  %v2706_v0 = vmul.f32 %v2510_v53, %v1922_v6  ;;  %v2028_v44 = vmul.f32 0.5, %v7435_v29 }
 0x1bf   :  { %4939 = vst [vmem:[%s8023_s3 + $0xf8] sm:$0xff] %v4577_v8   ;;  %v4827_v37 = vpack.c.bf16 %v2809_v52, %v2808_v45  ;;  %v2707_v39 = vmul.f32 %v2511_v38, %v1923_v43  ;;  %v2806_v56 = vmul.f32 %v2610_v19, %v2022_v62  ;;  %v2126_v2 = vmul.f32 0.70710677, %v7513_v15 }
 0x1c0   :  { %v2807_v47 = vmul.f32 %v2611_v55, %v2023_v30  ;;  %v7528_v42 = vadd.f32 %v7354_v28, %v7402_v11  ;;  %v1926_v33 = vmul.f32 0.5, %v7446_v22  ;;  %v2026_v29 = vmul.f32 0.5, %v7450_v61  ;;  %v7565_v30 = vpop.f32.mrf.mxu1 }
 0x1c1   :  { %4989 = vst [vmem:[%s8023_s3 + $0x288] sm:$0xff] %v4827_v37   ;;  %v4572_v6 = vpack.c.bf16 %v2707_v39, %v2706_v0  ;;  %v7541_v62 = vadd.f32 %v7354_v28, %v7374_v1  ;;  %v2516_v49 = vadd.f32 1.0, %v5671_v57  ;;  %5688 = verf.f32 %v2228_v27 }
 0x1c2   :  { %v5673_v51 = vpop.eup %5672  ;;  %v4822_v11 = vpack.c.bf16 %v2807_v47, %v2806_v56  ;;  %v2226_v36 = vmul.f32 0.70710677, %v7528_v42  ;;  %v1929_v43 = vmul.f32 0.5, %v7458_v25  ;;  %5690 = verf.f32 %v2126_v2  ;;  %v7582_v54 = vpop.f32.mrf.mxu1 }
 0x1c3   :  { %v5675_v18 = vpop.eup %5674  ;;  %4938 = vst [vmem:[%s8023_s3 + $0xf0] sm:$0xff] %v4572_v6   ;;  %v2129_v22 = vmul.f32 0.70710677, %v7541_v62  ;;  %v7551_v1 = vadd.f32 %v7354_v28, %v7428_v4  ;;  %v2029_v31 = vmul.f32 0.5, %v7483_v17  ;;  %v7559_v13 = vadd.f32 %v7354_v28, %v7404_v26  ;;  %v7567_v4 = vpop.f32.mrf.mxu0 }
 0x1c4   :  { %v5677_v61 = vpop.eup %5676  ;;  %4988 = vst [vmem:[%s8023_s3 + $0x280] sm:$0xff] %v4822_v11   ;;  %5692 = verf.f32 %v2226_v36  ;;  %v7563_v25 = vadd.f32 %v7354_v28, %v7439_v58  ;;  %v1927_v40 = vmul.f32 0.5, %v7487_v63  ;;  %v2027_v45 = vmul.f32 0.5, %v7492_v7 }
 0x1c5   :  { %v5679_v35 = vpop.eup %5678  ;;  %5694 = verf.f32 %v2129_v22  ;;  %v2229_v17 = vmul.f32 0.70710677, %v7551_v1  ;;  %v2712_v53 = vmul.f32 %v2516_v49, %v1928_v50  ;;  %v2616_v20 = vadd.f32 1.0, %v5673_v51  ;;  %v7584_v23 = vpop.f32.mrf.mxu0 }
 0x1c6   :  { %v2517_v26 = vadd.f32 1.0, %v5679_v35  ;;  %v2127_v48 = vmul.f32 0.70710677, %v7559_v13  ;;  %v2514_v19 = vadd.f32 1.0, %v5675_v18  ;;  %v2614_v58 = vadd.f32 1.0, %v5677_v61 }
 0x1c7   :  { %5696 = verf.f32 %v2229_v17  ;;  %v2227_v16 = vmul.f32 0.70710677, %v7563_v25  ;;  %v7576_v63 = vadd.f32 %v7354_v28, %v7430_v5  ;;  %v7580_v7 = vadd.f32 %v7354_v28, %v7466_v46  ;;  %v7602_v6 = vpop.f32.mrf.mxu0 }
 0x1c8   :  { %v5681_v24 = vpop.eup %5680  ;;  %v2713_v21 = vmul.f32 %v2517_v26, %v1929_v43  ;;  %5698 = verf.f32 %v2127_v48  ;;  %v1932_v38 = vmul.f32 0.5, %v7496_v10  ;;  %v7589_v57 = vadd.f32 %v7354_v28, %v7441_v32 }
 0x1c9   :  { %v5683_v8 = vpop.eup %5682  ;;  %v2617_v52 = vadd.f32 1.0, %v5681_v24  ;;  %5700 = verf.f32 %v2227_v16  ;;  %v2812_v5 = vmul.f32 %v2616_v20, %v2028_v44  ;;  %v2132_v46 = vmul.f32 0.70710677, %v7576_v63  ;;  %v7600_v44 = vpop.f32.mrf.mxu1 }
 0x1ca   :  { %v5685_v55 = vpop.eup %5684  ;;  %v4587_v50 = vpack.c.bf16 %v2713_v21, %v2712_v53  ;;  %v2515_v27 = vadd.f32 1.0, %v5683_v8  ;;  %v2232_v56 = vmul.f32 0.70710677, %v7580_v7  ;;  %v7595_v47 = vadd.f32 %v7354_v28, %v7498_v9 }
 0x1cb   :  { %v5687_v0 = vpop.eup %5686  ;;  %v2813_v37 = vmul.f32 %v2617_v52, %v2029_v31  ;;  %v2615_v39 = vadd.f32 1.0, %v5685_v55  ;;  %v2710_v10 = vmul.f32 %v2514_v19, %v1926_v33  ;;  %v2810_v2 = vmul.f32 %v2614_v58, %v2026_v29 }
 0x1cc   :  { %4941 = vst [vmem:[%s8023_s3 + $0x108] sm:$0xff] %v4587_v50   ;;  %v2711_v32 = vmul.f32 %v2515_v27, %v1927_v40  ;;  %5702 = verf.f32 %v2132_v46  ;;  %v2130_v49 = vmul.f32 0.70710677, %v7589_v57  ;;  %v2520_v9 = vadd.f32 1.0, %v5687_v0  ;;  %v7628_v40 = vpop.f32.mrf.mxu1 }
 0x1cd   :  { %v4837_v51 = vpack.c.bf16 %v2813_v37, %v2812_v5  ;;  %v2811_v11 = vmul.f32 %v2615_v39, %v2027_v45  ;;  %5704 = verf.f32 %v2232_v56  ;;  %v2032_v33 = vmul.f32 0.5, %v7509_v12 }
 0x1ce   :  { %v4582_v36 = vpack.c.bf16 %v2711_v32, %v2710_v10  ;;  %v1930_v29 = vmul.f32 0.5, %v7513_v15  ;;  %v5689_v18 = vpop.eup %5688  ;;  %v2030_v22 = vmul.f32 0.5, %v7528_v42  ;;  %v2230_v61 = vmul.f32 0.70710677, %v7595_v47  ;;  %v7646_v8 = vpop.f32.mrf.mxu1 }
 0x1cf   :  { %4991 = vst [vmem:[%s8023_s3 + $0x298] sm:$0xff] %v4837_v51   ;;  %v4832_v43 = vpack.c.bf16 %v2811_v11, %v2810_v2  ;;  %v7614_v31 = vadd.f32 %v7354_v28, %v7468_v3  ;;  %v5691_v35 = vpop.eup %5690  ;;  %v1933_v12 = vmul.f32 0.5, %v7541_v62  ;;  %5706 = verf.f32 %v2130_v49  ;;  %v7630_v3 = vpop.f32.mrf.mxu0 }
 0x1d0   :  { %4940 = vst [vmem:[%s8023_s3 + $0x100] sm:$0xff] %v4582_v36   ;;  %v7622_v15 = vadd.f32 %v7354_v28, %v7515_v59  ;;  %v7626_v42 = vadd.f32 %v7354_v28, %v7500_v14  ;;  %v2033_v62 = vmul.f32 0.5, %v7551_v1  ;;  %5708 = verf.f32 %v2230_v61  ;;  %v7664_v51 = vpop.f32.mrf.mxu1 }
 0x1d1   :  { %v5693_v45 = vpop.eup %5692  ;;  %4990 = vst [vmem:[%s8023_s3 + $0x290] sm:$0xff] %v4832_v43   ;;  %v2133_v17 = vmul.f32 0.70710677, %v7614_v31  ;;  %v7639_v59 = vadd.f32 %v7354_v28, %v7530_v60  ;;  %v2716_v53 = vmul.f32 %v2520_v9, %v1932_v38  ;;  %v1931_v20 = vmul.f32 0.5, %v7559_v13  ;;  %v7648_v52 = vpop.f32.mrf.mxu0 }
 0x1d2   :  { %v5695_v14 = vpop.eup %5694  ;;  %v2031_v26 = vmul.f32 0.5, %v7563_v25  ;;  %v2233_v48 = vmul.f32 0.70710677, %v7622_v15  ;;  %v2620_v19 = vadd.f32 1.0, %v5689_v18  ;;  %v2131_v1 = vmul.f32 0.70710677, %v7626_v42 }
 0x1d3   :  { %v2521_v58 = vadd.f32 1.0, %v5695_v14  ;;  %5710 = verf.f32 %v2133_v17  ;;  %v2518_v24 = vadd.f32 1.0, %v5691_v35  ;;  %v2618_v21 = vadd.f32 1.0, %v5693_v45  ;;  %v7666_v11 = vpop.f32.mrf.mxu0 }
 0x1d4   :  { %v5697_v16 = vpop.eup %5696  ;;  %5712 = verf.f32 %v2233_v48  ;;  %v2231_v60 = vmul.f32 0.70710677, %v7639_v59  ;;  %v7652_v55 = vadd.f32 %v7354_v28, %v7517_v41  ;;  %v7656_v27 = vadd.f32 %v7354_v28, %v7565_v30 }
 0x1d5   :  { %v5699_v13 = vpop.eup %5698  ;;  %v2717_v38 = vmul.f32 %v2521_v58, %v1933_v12  ;;  %v2621_v25 = vadd.f32 1.0, %v5697_v16  ;;  %5714 = verf.f32 %v2131_v1  ;;  %v7660_v46 = vadd.f32 %v7354_v28, %v7532_v34  ;;  %v7693_v17 = vpop.f32.mrf.mxu0 }
 0x1d6   :  { %v5701_v5 = vpop.eup %5700  ;;  %v2519_v50 = vadd.f32 1.0, %v5699_v13  ;;  %5716 = verf.f32 %v2231_v60  ;;  %v2816_v0 = vmul.f32 %v2620_v19, %v2032_v33  ;;  %v2714_v10 = vmul.f32 %v2518_v24, %v1930_v29 }
 0x1d7   :  { %v4597_v37 = vpack.c.bf16 %v2717_v38, %v2716_v53  ;;  %v2817_v39 = vmul.f32 %v2621_v25, %v2033_v62  ;;  %v2619_v56 = vadd.f32 1.0, %v5701_v5  ;;  %v2136_v41 = vmul.f32 0.70710677, %v7652_v55  ;;  %v7691_v62 = vpop.f32.mrf.mxu1 }
 0x1d8   :  { %v2715_v2 = vmul.f32 %v2519_v50, %v1931_v20  ;;  %v2236_v32 = vmul.f32 0.70710677, %v7656_v27  ;;  %v2814_v49 = vmul.f32 %v2618_v21, %v2030_v22  ;;  %v1936_v9 = vmul.f32 0.5, %v7576_v63 }
 0x1d9   :  { %v5703_v30 = vpop.eup %5702  ;;  %4943 = vst [vmem:[%s8023_s3 + $0x118] sm:$0xff] %v4597_v37   ;;  %v4847_v34 = vpack.c.bf16 %v2817_v39, %v2816_v0  ;;  %v2815_v36 = vmul.f32 %v2619_v56, %v2031_v26  ;;  %5718 = verf.f32 %v2136_v41  ;;  %v2134_v18 = vmul.f32 0.70710677, %v7660_v46  ;;  %v7721_v16 = vpop.f32.mrf.mxu1 }
 0x1da   :  { %v5705_v33 = vpop.eup %5704  ;;  %v4592_v29 = vpack.c.bf16 %v2715_v2, %v2714_v10  ;;  %v7675_v43 = vadd.f32 %v7354_v28, %v7582_v54  ;;  %v2036_v61 = vmul.f32 0.5, %v7580_v7  ;;  %5720 = verf.f32 %v2236_v32 }
 0x1db   :  { %4993 = vst [vmem:[%s8023_s3 + $0x2a8] sm:$0xff] %v4847_v34   ;;  %v4842_v22 = vpack.c.bf16 %v2815_v36, %v2814_v49  ;;  %v7683_v63 = vadd.f32 %v7354_v28, %v7567_v4  ;;  %v2524_v35 = vadd.f32 1.0, %v5703_v30  ;;  %v1934_v54 = vmul.f32 0.5, %v7589_v57  ;;  %v5296_v2 = vpop.f32.mrf.mxu1 }
 0x1dc   :  { %4942 = vst [vmem:[%s8023_s3 + $0x110] sm:$0xff] %v4592_v29   ;;  %v2034_v12 = vmul.f32 0.5, %v7595_v47  ;;  %v2234_v45 = vmul.f32 0.70710677, %v7675_v43  ;;  %v5707_v7 = vpop.eup %5706  ;;  %v2624_v4 = vadd.f32 1.0, %v5705_v33  ;;  %v1937_v14 = vmul.f32 0.5, %v7614_v31 }
 0x1dd   :  { %4992 = vst [vmem:[%s8023_s3 + $0x2a0] sm:$0xff] %v4842_v22   ;;  %v2037_v53 = vmul.f32 0.5, %v7622_v15  ;;  %v2137_v57 = vmul.f32 0.70710677, %v7683_v63  ;;  %v5709_v20 = vpop.eup %5708  ;;  %5722 = verf.f32 %v2134_v18  ;;  %v7703_v47 = vadd.f32 %v7354_v28, %v7600_v44 }
 0x1de   :  { %v7707_v26 = vadd.f32 %v7354_v28, %v7584_v23  ;;  %v7711_v48 = vadd.f32 %v7354_v28, %v7628_v40  ;;  %v1935_v31 = vmul.f32 0.5, %v7626_v42  ;;  %v2035_v15 = vmul.f32 0.5, %v7639_v59  ;;  %v7723_v40 = vpop.f32.mrf.mxu0 }
 0x1df   :  { %5724 = verf.f32 %v2137_v57  ;;  %v7717_v19 = vadd.f32 %v7354_v28, %v7602_v6  ;;  %v2720_v44 = vmul.f32 %v2524_v35, %v1936_v9  ;;  %v2237_v1 = vmul.f32 0.70710677, %v7703_v47 }
 0x1e0   :  { %v5711_v58 = vpop.eup %5710  ;;  %5726 = verf.f32 %v2234_v45  ;;  %v2135_v23 = vmul.f32 0.70710677, %v7707_v26  ;;  %v2522_v42 = vadd.f32 1.0, %v5707_v7  ;;  %v2622_v21 = vadd.f32 1.0, %v5709_v20  ;;  %v7735_v41 = vpop.f32.mrf.mxu0 }
 0x1e1   :  { %v5713_v24 = vpop.eup %5712  ;;  %v2525_v59 = vadd.f32 1.0, %v5711_v58  ;;  %v2235_v60 = vmul.f32 0.70710677, %v7711_v48  ;;  %v2820_v6 = vmul.f32 %v2624_v4, %v2036_v61  ;;  %5728 = verf.f32 %v2237_v1  ;;  %v1815_v45 = vpop.f32.mrf.mxu1 }
 0x1e2   :  { %v5715_v13 = vpop.eup %5714  ;;  %v2625_v38 = vadd.f32 1.0, %v5713_v24  ;;  %v2140_v25 = vmul.f32 0.70710677, %v7717_v19  ;;  %5730 = verf.f32 %v2135_v23  ;;  %v7729_v37 = vadd.f32 %v7354_v28, %v7646_v8 }
 0x1e3   :  { %v5717_v5 = vpop.eup %5716  ;;  %v2721_v50 = vmul.f32 %v2525_v59, %v1937_v14  ;;  %v2523_v0 = vadd.f32 1.0, %v5715_v13  ;;  %5732 = verf.f32 %v2235_v60  ;;  %v7733_v10 = vadd.f32 %v7354_v28, %v7630_v3 }
 0x1e4   :  { %v2821_v39 = vmul.f32 %v2625_v38, %v2037_v53  ;;  %v2623_v56 = vadd.f32 1.0, %v5717_v5  ;;  %v2718_v32 = vmul.f32 %v2522_v42, %v1934_v54  ;;  %v2818_v30 = vmul.f32 %v2622_v21, %v2034_v12 }
 0x1e5   :  { %v4607_v49 = vpack.c.bf16 %v2721_v50, %v2720_v44  ;;  %v2719_v34 = vmul.f32 %v2523_v0, %v1935_v31  ;;  %5734 = verf.f32 %v2140_v25  ;;  %v2240_v8 = vmul.f32 0.70710677, %v7729_v37 }
 0x1e6   :  { %v4857_v36 = vpack.c.bf16 %v2821_v39, %v2820_v6  ;;  %v2819_v9 = vmul.f32 %v2623_v56, %v2035_v15  ;;  %v5719_v33 = vpop.eup %5718  ;;  %v2138_v3 = vmul.f32 0.70710677, %v7733_v10  ;;  %v7744_v18 = vadd.f32 %v7354_v28, %v7664_v51  ;;  %v7758_v51 = vpop.f32.mrf.mxu0 }
 0x1e7   :  { %4945 = vst [vmem:[%s8023_s3 + $0x128] sm:$0xff] %v4607_v49   ;;  %v4602_v29 = vpack.c.bf16 %v2719_v34, %v2718_v32  ;;  %v7748_v22 = vadd.f32 %v7354_v28, %v7648_v52  ;;  %v5721_v61 = vpop.eup %5720  ;;  %v1940_v54 = vmul.f32 0.5, %v7652_v55  ;;  %5736 = verf.f32 %v2240_v8 }
 0x1e8   :  { %4995 = vst [vmem:[%s8023_s3 + $0x2b8] sm:$0xff] %v4857_v36   ;;  %v4852_v35 = vpack.c.bf16 %v2819_v9, %v2818_v30  ;;  %v7756_v12 = vadd.f32 %v7354_v28, %v7691_v62  ;;  %v2040_v52 = vmul.f32 0.5, %v7656_v27  ;;  %v1938_v7 = vmul.f32 0.5, %v7660_v46  ;;  %v7780_v44 = vpop.f32.mrf.mxu0 }
 0x1e9   :  { %4944 = vst [vmem:[%s8023_s3 + $0x120] sm:$0xff] %v4602_v29   ;;  %v2038_v4 = vmul.f32 0.5, %v7675_v43  ;;  %v2238_v55 = vmul.f32 0.70710677, %v7744_v18  ;;  %v2528_v62 = vadd.f32 1.0, %v5719_v33  ;;  %v1941_v14 = vmul.f32 0.5, %v7683_v63  ;;  %v5297_v63 = vpop.f32.mrf.mxu1 }
 0x1ea   :  { %4994 = vst [vmem:[%s8023_s3 + $0x2b0] sm:$0xff] %v4852_v35   ;;  %5738 = verf.f32 %v2138_v3  ;;  %v2141_v53 = vmul.f32 0.70710677, %v7748_v22  ;;  %v5723_v57 = vpop.eup %5722  ;;  %v2628_v20 = vadd.f32 1.0, %v5721_v61  ;;  %v2041_v27 = vmul.f32 0.5, %v7703_v47 }
 0x1eb   :  { %5740 = verf.f32 %v2238_v55  ;;  %v2241_v46 = vmul.f32 0.70710677, %v7756_v12  ;;  %v1939_v31 = vmul.f32 0.5, %v7707_v26  ;;  %v2039_v15 = vmul.f32 0.5, %v7711_v48  ;;  %v1818_v5 = vpop.f32.mrf.mxu1 }
 0x1ec   :  { %v5725_v43 = vpop.eup %5724  ;;  %5742 = verf.f32 %v2141_v53  ;;  %v7778_v58 = vadd.f32 %v7354_v28, %v7666_v11  ;;  %v7784_v47 = vadd.f32 %v7354_v28, %v7721_v16  ;;  %v7788_v26 = vadd.f32 %v7354_v28, %v7693_v17 }
 0x1ed   :  { %v5727_v1 = vpop.eup %5726  ;;  %v2529_v23 = vadd.f32 1.0, %v5725_v43  ;;  %5744 = verf.f32 %v2241_v46  ;;  %v2724_v48 = vmul.f32 %v2528_v62, %v1940_v54  ;;  %v7791_v24 = vmul.f32 0.5, %v7717_v19  ;;  %v7799_v19 = vpop.f32.mrf.mxu0 }
 0x1ee   :  { %v2139_v11 = vmul.f32 0.70710677, %v7778_v58  ;;  %v7795_v42 = vadd.f32 %v7354_v28, %v5296_v2  ;;  %v5729_v21 = vpop.eup %5728  ;;  %v2824_v59 = vmul.f32 %v2628_v20, %v2040_v52  ;;  %v2526_v60 = vadd.f32 1.0, %v5723_v57  ;;  %v5300_v61 = vpop.f32.mrf.mxu1 }
 0x1ef   :  { %v2725_v13 = vmul.f32 %v2529_v23, %v1941_v14  ;;  %v2239_v16 = vmul.f32 0.70710677, %v7784_v47  ;;  %v5731_v6 = vpop.eup %5730  ;;  %v2626_v38 = vadd.f32 1.0, %v5727_v1  ;;  %v2629_v25 = vadd.f32 1.0, %v5729_v21  ;;  %v7813_v35 = vpop.f32.mrf.mxu0 }
 0x1f0   :  { %5746 = verf.f32 %v2139_v11  ;;  %v2144_v17 = vmul.f32 0.70710677, %v7788_v26  ;;  %v5733_v50 = vpop.eup %5732  ;;  %v2527_v39 = vadd.f32 1.0, %v5731_v6  ;;  %v2244_v56 = vmul.f32 0.70710677, %v7795_v42  ;;  %v1831_v43 = vpop.f32.mrf.mxu1 }
 0x1f1   :  { %v4617_v0 = vpack.c.bf16 %v2725_v13, %v2724_v48  ;;  %5748 = verf.f32 %v2239_v16  ;;  %v2825_v2 = vmul.f32 %v2629_v25, %v2041_v27  ;;  %v2627_v32 = vadd.f32 1.0, %v5733_v50 }
 0x1f2   :  { %5750 = verf.f32 %v2144_v17  ;;  %v7804_v30 = vadd.f32 %v7354_v28, %v7723_v40  ;;  %v5735_v49 = vpop.eup %5734  ;;  %v2722_v34 = vmul.f32 %v2526_v60, %v1938_v7  ;;  %v2723_v36 = vmul.f32 %v2527_v39, %v1939_v31  ;;  %v7845_v31 = vpop.f32.mrf.mxu0 }
 0x1f3   :  { %4947 = vst [vmem:[%s8023_s3 + $0x138] sm:$0xff] %v4617_v0   ;;  %5752 = verf.f32 %v2244_v56  ;;  %v7810_v9 = vadd.f32 %v7354_v28, %v1815_v45  ;;  %v2822_v8 = vmul.f32 %v2626_v38, %v2038_v4  ;;  %v4867_v33 = vpack.c.bf16 %v2825_v2, %v2824_v59  ;;  %v5301_v13 = vpop.f32.mrf.mxu1 }
 0x1f4   :  { %v2823_v29 = vmul.f32 %v2627_v32, %v2039_v15  ;;  %v2142_v3 = vmul.f32 0.70710677, %v7804_v30  ;;  %v5737_v40 = vpop.eup %5736  ;;  %v4612_v54 = vpack.c.bf16 %v2723_v36, %v2722_v34  ;;  %v2044_v52 = vmul.f32 0.5, %v7729_v37  ;;  %v7857_v16 = vpop.f32.mrf.mxu0 }
 0x1f5   :  { %v1942_v7 = vmul.f32 0.5, %v7733_v10  ;;  %v2242_v55 = vmul.f32 0.70710677, %v7810_v9  ;;  %4997 = vst [vmem:[%s8023_s3 + $0x2c8] sm:$0xff] %v4867_v33   ;;  %v2532_v4 = vadd.f32 1.0, %v5735_v49  ;;  %v7823_v62 = vadd.f32 %v7354_v28, %v7735_v41  ;;  %v1834_v33 = vpop.f32.mrf.mxu1 }
 0x1f6   :  { %v4862_v45 = vpack.c.bf16 %v2823_v29, %v2822_v8  ;;  %5754 = verf.f32 %v2142_v3  ;;  %4946 = vst [vmem:[%s8023_s3 + $0x130] sm:$0xff] %v4612_v54   ;;  %v2632_v37 = vadd.f32 1.0, %v5737_v40  ;;  %v2042_v10 = vmul.f32 0.5, %v7744_v18  ;;  %v1447_v29 = vpop.f32.mrf.mxu0 }
 0x1f7   :  { %v5739_v14 = vpop.eup %5738  ;;  %v7830_v53 = vadd.f32 %v7354_v28, %v5297_v63  ;;  %v7834_v57 = vadd.f32 %v7354_v28, %v7758_v51  ;;  %v1945_v41 = vmul.f32 0.5, %v7748_v22  ;;  %v2045_v27 = vmul.f32 0.5, %v7756_v12 }
 0x1f8   :  { %v5741_v20 = vpop.eup %5740  ;;  %4996 = vst [vmem:[%s8023_s3 + $0x2c0] sm:$0xff] %v4862_v45   ;;  %v2145_v46 = vmul.f32 0.70710677, %v7823_v62  ;;  %v7843_v18 = vadd.f32 %v7354_v28, %v1818_v5  ;;  %v1943_v51 = vmul.f32 0.5, %v7778_v58  ;;  %v2043_v63 = vmul.f32 0.5, %v7784_v47 }
 0x1f9   :  { %v5743_v15 = vpop.eup %5742  ;;  %5756 = verf.f32 %v2242_v55  ;;  %v2245_v1 = vmul.f32 0.70710677, %v7830_v53  ;;  %v2728_v22 = vmul.f32 %v2532_v4, %v7791_v24  ;;  %v2143_v48 = vmul.f32 0.70710677, %v7834_v57 }
 0x1fa   :  { %v5745_v23 = vpop.eup %5744  ;;  %v2533_v12 = vadd.f32 1.0, %v5743_v15  ;;  %5758 = verf.f32 %v2145_v46  ;;  %v2828_v11 = vmul.f32 %v2632_v37, %v2044_v52  ;;  %v2530_v21 = vadd.f32 1.0, %v5739_v14  ;;  %v7887_v37 = vld [vmem:[#allocation4] ss:$0 sm:$0xff] }
 0x1fb   :  { %v2633_v59 = vadd.f32 1.0, %v5745_v23  ;;  %5760 = verf.f32 %v2245_v1  ;;  %v2243_v58 = vmul.f32 0.70710677, %v7843_v18  ;;  %v7855_v47 = vadd.f32 %v7354_v28, %v7780_v44 }
 0x1fc   :  { %v2729_v60 = vmul.f32 %v2533_v12, %v1945_v41  ;;  %5762 = verf.f32 %v2143_v48  ;;  %v2630_v6 = vadd.f32 1.0, %v5741_v20  ;;  %v7860_v25 = vadd.f32 %v7354_v28, %v5300_v61  ;;  %v5205_v20 = vpop.f32.mrf.mxu0 }
 0x1fd   :  { %v5747_v24 = vpop.eup %5746  ;;  %v2829_v38 = vmul.f32 %v2633_v59, %v2045_v27  ;;  %v7864_v17 = vadd.f32 %v7354_v28, %v7799_v19  ;;  %v1948_v39 = vmul.f32 0.5, %v7788_v26  ;;  %5764 = verf.f32 %v2243_v58 }
 0x1fe   :  { %v5749_v5 = vpop.eup %5748  ;;  %v4627_v50 = vpack.c.bf16 %v2729_v60, %v2728_v22  ;;  %v2531_v0 = vadd.f32 1.0, %v5747_v24  ;;  %v2148_v32 = vmul.f32 0.70710677, %v7855_v47  ;;  %v7869_v49 = vadd.f32 %v7354_v28, %v1831_v43 }
 0x1ff   :  { %v5751_v44 = vpop.eup %5750  ;;  %v4877_v56 = vpack.c.bf16 %v2829_v38, %v2828_v11  ;;  %v2631_v2 = vadd.f32 1.0, %v5749_v5  ;;  %v2726_v36 = vmul.f32 %v2530_v21, %v1942_v7  ;;  %v2048_v8 = vmul.f32 0.5, %v7795_v42  ;;  %v1450_v11 = vpop.f32.mrf.mxu0 }
 0x200   :  { %v5753_v34 = vpop.eup %5752  ;;  %4949 = vst [vmem:[%s8023_s3 + $0x148] sm:$0xff] %v4627_v50   ;;  %v2727_v19 = vmul.f32 %v2531_v0, %v1943_v51  ;;  %v2248_v26 = vmul.f32 0.70710677, %v7860_v25  ;;  %v2826_v3 = vmul.f32 %v2630_v6, %v2042_v10  ;;  %5766 = verf.f32 %v2148_v32  ;;  %v5304_v10 = vpop.f32.mrf.mxu1 }
 0x201   :  { %4999 = vst [vmem:[%s8023_s3 + $0x2d8] sm:$0xff] %v4877_v56   ;;  %v2827_v28 = vmul.f32 %v2631_v2, %v2043_v63  ;;  %v2146_v61 = vmul.f32 0.70710677, %v7864_v17  ;;  %v1946_v54 = vmul.f32 0.5, %v7804_v30  ;;  %v2046_v52 = vmul.f32 0.5, %v7810_v9  ;;  %v5208_v32 = vpop.f32.mrf.mxu0 }
 0x202   :  { %v4622_v40 = vpack.c.bf16 %v2727_v19, %v2726_v36  ;;  %v1949_v42 = vmul.f32 0.5, %v7823_v62  ;;  %v2536_v45 = vadd.f32 1.0, %v5751_v44  ;;  %v2636_v4 = vadd.f32 1.0, %v5753_v34 }
 0x203   :  { %v5755_v7 = vpop.eup %5754  ;;  %v4872_v55 = vpack.c.bf16 %v2827_v28, %v2826_v3  ;;  %v2246_v14 = vmul.f32 0.70710677, %v7869_v49  ;;  %5768 = verf.f32 %v2248_v26  ;;  %v7891_v30 = vadd.f32 %v7887_v37, %v7813_v35 }
 0x204   :  { %4948 = vst [vmem:[%s8023_s3 + $0x140] sm:$0xff] %v4622_v40   ;;  %v7894_v9 = vadd.f32 %v7887_v37, %v5301_v13  ;;  %v7898_v62 = vadd.f32 %v7887_v37, %v7845_v31  ;;  %v2534_v41 = vadd.f32 1.0, %v5755_v7  ;;  %v2049_v27 = vmul.f32 0.5, %v7830_v53 }
 0x205   :  { %4998 = vst [vmem:[%s8023_s3 + $0x2d0] sm:$0xff] %v4872_v55   ;;  %5770 = verf.f32 %v2146_v61  ;;  %v7905_v35 = vadd.f32 %v7887_v37, %v1834_v33  ;;  %v1947_v43 = vmul.f32 0.5, %v7834_v57  ;;  %v2047_v15 = vmul.f32 0.5, %v7843_v18  ;;  %v1847_v18 = vpop.f32.mrf.mxu1 }
 0x206   :  { %v5757_v46 = vpop.eup %5756  ;;  %5772 = verf.f32 %v2246_v14  ;;  %v2149_v31 = vmul.f32 0.70710677, %v7891_v30  ;;  %v2732_v63 = vmul.f32 %v2536_v45, %v1948_v39  ;;  %v2832_v1 = vmul.f32 %v2636_v4, %v2048_v8 }
 0x207   :  { %v5759_v51 = vpop.eup %5758  ;;  %v2249_v23 = vmul.f32 0.70710677, %v7894_v9  ;;  %v2147_v22 = vmul.f32 0.70710677, %v7898_v62  ;;  %v2247_v48 = vmul.f32 0.70710677, %v7905_v35  ;;  %v7915_v57 = vadd.f32 %v7887_v37, %v7857_v16  ;;  %v5305_v2 = vpop.f32.mrf.mxu1 }
 0x208   :  { %v5761_v53 = vpop.eup %5760  ;;  %v2537_v12 = vadd.f32 1.0, %v5759_v51  ;;  %5774 = verf.f32 %v2149_v31  ;;  %v2730_v59 = vmul.f32 %v2534_v41, %v1946_v54  ;;  %v2634_v60 = vadd.f32 1.0, %v5757_v46 }
 0x209   :  { %v5763_v21 = vpop.eup %5762  ;;  %v2637_v58 = vadd.f32 1.0, %v5761_v53  ;;  %5776 = verf.f32 %v2249_v23  ;;  %v7918_v6 = vadd.f32 %v7887_v37, %v5304_v10  ;;  %v7921_v50 = vadd.f32 %v7887_v37, %v1447_v29  ;;  %v1850_v7 = vpop.f32.mrf.mxu1 }
 0x20a   :  { %v2733_v13 = vmul.f32 %v2537_v12, %v1949_v42  ;;  %v2535_v24 = vadd.f32 1.0, %v5763_v21  ;;  %5778 = verf.f32 %v2147_v22  ;;  %v5765_v38 = vpop.eup %5764  ;;  %v7924_v16 = vadd.f32 %v7887_v37, %v1847_v18 }
 0x20b   :  { %v2833_v5 = vmul.f32 %v2637_v58, %v2049_v27  ;;  %5780 = verf.f32 %v2247_v48  ;;  %v2635_v44 = vadd.f32 1.0, %v5765_v38  ;;  %v2152_v56 = vmul.f32 0.70710677, %v7915_v57 }
 0x20c   :  { %v4637_v0 = vpack.c.bf16 %v2733_v13, %v2732_v63  ;;  %v2731_v39 = vmul.f32 %v2535_v24, %v1947_v43  ;;  %v2252_v36 = vmul.f32 0.70710677, %v7918_v6  ;;  %v2830_v8 = vmul.f32 %v2634_v60, %v2046_v52 }
 0x20d   :  { %v4887_v34 = vpack.c.bf16 %v2833_v5, %v2832_v1  ;;  %v5767_v19 = vpop.eup %5766  ;;  %v2831_v33 = vmul.f32 %v2635_v44, %v2047_v15  ;;  %v2150_v29 = vmul.f32 0.70710677, %v7921_v50  ;;  %v1952_v3 = vmul.f32 0.5, %v7855_v47  ;;  %v1463_v47 = vpop.f32.mrf.mxu0 }
 0x20e   :  { %4951 = vst [vmem:[%s8023_s3 + $0x158] sm:$0xff] %v4637_v0   ;;  %v4632_v26 = vpack.c.bf16 %v2731_v39, %v2730_v59  ;;  %v2052_v28 = vmul.f32 0.5, %v7860_v25  ;;  %v2250_v61 = vmul.f32 0.70710677, %v7924_v16  ;;  %v7939_v40 = vadd.f32 %v7887_v37, %v5205_v20 }
 0x20f   :  { %5001 = vst [vmem:[%s8023_s3 + $0x2e8] sm:$0xff] %v4887_v34   ;;  %v4882_v54 = vpack.c.bf16 %v2831_v33, %v2830_v8  ;;  %v1950_v52 = vmul.f32 0.5, %v7864_v17  ;;  %5782 = verf.f32 %v2152_v56  ;;  %v7946_v42 = vadd.f32 %v7887_v37, %v5305_v2  ;;  %v5209_v15 = vpop.f32.mrf.mxu0 }
 0x210   :  { %4950 = vst [vmem:[%s8023_s3 + $0x150] sm:$0xff] %v4632_v26   ;;  %v5769_v55 = vpop.eup %5768  ;;  %v2540_v25 = vadd.f32 1.0, %v5767_v19  ;;  %v2050_v45 = vmul.f32 0.5, %v7869_v49  ;;  %v1953_v4 = vmul.f32 0.5, %v7891_v30  ;;  %5784 = verf.f32 %v2252_v36 }
 0x211   :  { %5000 = vst [vmem:[%s8023_s3 + $0x2e0] sm:$0xff] %v4882_v54   ;;  %v2053_v17 = vmul.f32 0.5, %v7894_v9  ;;  %5786 = verf.f32 %v2150_v29  ;;  %v2153_v10 = vmul.f32 0.70710677, %v7939_v40  ;;  %v2253_v20 = vmul.f32 0.70710677, %v7946_v42  ;;  %v1466_v13 = vpop.f32.mrf.mxu0 }
 0x212   :  { %v5771_v14 = vpop.eup %5770  ;;  %v1951_v27 = vmul.f32 0.5, %v7898_v62  ;;  %5788 = verf.f32 %v2250_v61  ;;  %v7958_v49 = vadd.f32 %v7887_v37, %v1450_v11  ;;  %v7961_v30 = vadd.f32 %v7887_v37, %v1850_v7 }
 0x213   :  { %v5773_v41 = vpop.eup %5772  ;;  %v2051_v46 = vmul.f32 0.5, %v7905_v35  ;;  %5790 = verf.f32 %v2153_v10  ;;  %v7965_v9 = vadd.f32 %v7887_v37, %v5208_v32  ;;  %v7968_v43 = vadd.f32 %v7887_v37, %v1463_v47 }
 0x214   :  { %v2736_v51 = vmul.f32 %v2540_v25, %v1952_v3  ;;  %v2640_v62 = vadd.f32 1.0, %v5769_v55  ;;  %5792 = verf.f32 %v2253_v20  ;;  %v2151_v63 = vmul.f32 0.70710677, %v7958_v49 }
 0x215   :  { %v5775_v31 = vpop.eup %5774  ;;  %v2538_v23 = vadd.f32 1.0, %v5771_v14  ;;  %v2638_v22 = vadd.f32 1.0, %v5773_v41  ;;  %v2251_v35 = vmul.f32 0.70710677, %v7961_v30  ;;  %v2156_v18 = vmul.f32 0.70710677, %v7965_v9 }
 0x216   :  { %v5777_v1 = vpop.eup %5776  ;;  %v2541_v53 = vadd.f32 1.0, %v5775_v31  ;;  %5794 = verf.f32 %v2151_v63  ;;  %v7974_v11 = vadd.f32 %v7887_v37, %v5209_v15  ;;  %v2154_v58 = vmul.f32 0.70710677, %v7968_v43 }
 0x217   :  { %v5779_v12 = vpop.eup %5778  ;;  %v2641_v48 = vadd.f32 1.0, %v5777_v1  ;;  %5796 = verf.f32 %v2251_v35  ;;  %v2836_v24 = vmul.f32 %v2640_v62, %v2052_v28  ;;  %v2734_v0 = vmul.f32 %v2538_v23, %v1950_v52 }
 0x218   :  { %v5781_v21 = vpop.eup %5780  ;;  %v2737_v59 = vmul.f32 %v2541_v53, %v1953_v4  ;;  %v2539_v60 = vadd.f32 1.0, %v5779_v12  ;;  %5798 = verf.f32 %v2156_v18  ;;  %v2834_v39 = vmul.f32 %v2638_v22, %v2050_v45 }
 0x219   :  { %v2837_v38 = vmul.f32 %v2641_v48, %v2053_v17  ;;  %v2639_v5 = vadd.f32 1.0, %v5781_v21  ;;  %v2157_v34 = vmul.f32 0.70710677, %v7974_v11  ;;  %v1467_v36 = vadd.f32 %v7887_v37, %v1466_v13 }
 0x21a   :  { %v4647_v44 = vpack.c.bf16 %v2737_v59, %v2736_v51  ;;  %v2735_v56 = vmul.f32 %v2539_v60, %v1951_v27  ;;  %5800 = verf.f32 %v2154_v58  ;;  %v1956_v7 = vmul.f32 0.5, %v7915_v57 }
 0x21b   :  { %v4897_v2 = vpack.c.bf16 %v2837_v38, %v2836_v24  ;;  %v2835_v32 = vmul.f32 %v2639_v5, %v2051_v46  ;;  %5802 = verf.f32 %v2157_v34  ;;  %v2155_v29 = vmul.f32 0.70710677, %v1467_v36 }
 0x21c   :  { %4953 = vst [vmem:[%s8023_s3 + $0x168] sm:$0xff] %v4647_v44   ;;  %v4642_v19 = vpack.c.bf16 %v2735_v56, %v2734_v0  ;;  %v5783_v8 = vpop.eup %5782  ;;  %v1957_v47 = vmul.f32 0.5, %v7939_v40  ;;  %v2056_v25 = vmul.f32 0.5, %v7918_v6  ;;  %v2057_v4 = vmul.f32 0.5, %v7946_v42 }
 0x21d   :  { %5003 = vst [vmem:[%s8023_s3 + $0x2f8] sm:$0xff] %v4897_v2   ;;  %v4892_v26 = vpack.c.bf16 %v2835_v32, %v2834_v39  ;;  %v5785_v33 = vpop.eup %5784  ;;  %v2544_v28 = vadd.f32 1.0, %v5783_v8  ;;  %5804 = verf.f32 %v2155_v29  ;;  %v1954_v20 = vmul.f32 0.5, %v7921_v50 }
 0x21e   :  { %4952 = vst [vmem:[%s8023_s3 + $0x160] sm:$0xff] %v4642_v19   ;;  %v5787_v37 = vpop.eup %5786  ;;  %v2644_v54 = vadd.f32 1.0, %v5785_v33  ;;  %v1955_v57 = vmul.f32 0.5, %v7958_v49  ;;  %v2054_v62 = vmul.f32 0.5, %v7924_v16  ;;  %v2055_v63 = vmul.f32 0.5, %v7961_v30 }
 0x21f   :  { %5002 = vst [vmem:[%s8023_s3 + $0x2f0] sm:$0xff] %v4892_v26   ;;  %v5789_v3 = vpop.eup %5788  ;;  %v2542_v45 = vadd.f32 1.0, %v5787_v37  ;;  %v2740_v10 = vmul.f32 %v2544_v28, %v1956_v7  ;;  %v1960_v30 = vmul.f32 0.5, %v7965_v9  ;;  %v1961_v18 = vmul.f32 0.5, %v7974_v11 }
 0x220   :  { %v5791_v61 = vpop.eup %5790  ;;  %v2642_v41 = vadd.f32 1.0, %v5789_v3  ;;  %v2840_v15 = vmul.f32 %v2644_v54, %v2056_v25  ;;  %v1958_v24 = vmul.f32 0.5, %v7968_v43  ;;  %v1959_v38 = vmul.f32 0.5, %v1467_v36 }
 0x221   :  { %v5793_v52 = vpop.eup %5792  ;;  %v2545_v55 = vadd.f32 1.0, %v5791_v61  ;;  %v2738_v1 = vmul.f32 %v2542_v45, %v1954_v20 }
 0x222   :  { %v2645_v14 = vadd.f32 1.0, %v5793_v52  ;;  %v2838_v53 = vmul.f32 %v2642_v41, %v2054_v62 }
 0x223   :  { %v5795_v17 = vpop.eup %5794  ;;  %v2741_v27 = vmul.f32 %v2545_v55, %v1957_v47 }
 0x224   :  { %v5797_v46 = vpop.eup %5796  ;;  %v2841_v31 = vmul.f32 %v2645_v14, %v2057_v4  ;;  %v2543_v51 = vadd.f32 1.0, %v5795_v17 }
 0x225   :  { %v5799_v40 = vpop.eup %5798  ;;  %v4657_v6 = vpack.c.bf16 %v2741_v27, %v2740_v10  ;;  %v2643_v42 = vadd.f32 1.0, %v5797_v46 }
 0x226   :  { %v4907_v23 = vpack.c.bf16 %v2841_v31, %v2840_v15  ;;  %v2739_v22 = vmul.f32 %v2543_v51, %v1955_v57  ;;  %v2548_v16 = vadd.f32 1.0, %v5799_v40 }
 0x227   :  { %4955 = vst [vmem:[%s8023_s3 + $0x178] sm:$0xff] %v4657_v6   ;;  %v2839_v50 = vmul.f32 %v2643_v42, %v2055_v63  ;;  %v5801_v35 = vpop.eup %5800 }
 0x228   :  { %5005 = vst [vmem:[%s8023_s3 + $0x308] sm:$0xff] %v4907_v23   ;;  %v4652_v49 = vpack.c.bf16 %v2739_v22, %v2738_v1  ;;  %v5803_v12 = vpop.eup %5802  ;;  %v2546_v59 = vadd.f32 1.0, %v5801_v35  ;;  %v2744_v58 = vmul.f32 %v2548_v16, %v1960_v30 }
 0x229   :  { %v4902_v48 = vpack.c.bf16 %v2839_v50, %v2838_v53  ;;  %v2549_v21 = vadd.f32 1.0, %v5803_v12 }
 0x22a   :  { %4954 = vst [vmem:[%s8023_s3 + $0x170] sm:$0xff] %v4652_v49   ;;  %v5805_v60 = vpop.eup %5804  ;;  %v2742_v39 = vmul.f32 %v2546_v59, %v1958_v24 }
 0x22b   :  { %5004 = vst [vmem:[%s8023_s3 + $0x300] sm:$0xff] %v4902_v48   ;;  %v2745_v13 = vmul.f32 %v2549_v21, %v1961_v18  ;;  %v2547_v5 = vadd.f32 1.0, %v5805_v60 }
 0x22d   :  { %v4667_v0 = vpack.c.bf16 %v2745_v13, %v2744_v58  ;;  %v2743_v44 = vmul.f32 %v2547_v5, %v1959_v38 }
 0x22f   :  { %4957 = vst [vmem:[%s8023_s3 + $0x188] sm:$0xff] %v4667_v0   ;;  %v4662_v9 = vpack.c.bf16 %v2743_v44, %v2742_v39 }
 0x231   :  { %4956 = vst [vmem:[%s8023_s3 + $0x180] sm:$0xff] %v4662_v9  }
 0x232   :  { %3826 = vsyncpa [#allocation3], 1 }
 0x233   :  { %3827 = vsyncpa [#allocation5], 1 }

// kernel: _lambda_.10
= control target key start
LH: loop header
LB: loop body
LE: loop exit
PB: predicated region body
PF: predicated region fallthrough
CT: control target
= control target key end

     0   :  { %8 = vsyncpa [#allocation3], 0  ;;  %s7667_s0 = inlined_call_operand.vmem [shape: bf16[6272,32], index: 0, kind: input, shape index: {}]   ;;  %s7668_s1 = inlined_call_operand.hbm [shape: bf16[32,64], index: 1, kind: input, shape index: {}]   ;;  %s7669_s2 = inlined_call_operand.hbm [shape: f32[1,64], index: 2, kind: input, shape index: {}]   ;;  %s7670_s3 = inlined_call_operand.vmem [shape: bf16[6272,64], index: 3, kind: output, shape index: {}]  }
   0x1   :  { %9 = vsyncpa [#allocation5], 0  ;;  %s5589_s12 = smov 0  }
   0x2 LB: > { %s4063_s13 = sadd.s32 4294967295, %s5563_s12   ;;  %p4065_p0 = scmp.ge.s32.totalorder %s5563_s12, 1  ;;  %s5563_s12 = sphi %s5589_s12, %s15_s12  }
   0x3   : > { %p114_p1 = scmp.lt.s32.totalorder %s5563_s12, 5  ;;  %s5565_s14 = smov [#allocation2]  }
   0x4   : > { %s126_s15 = sshll.u32 %s5565_s14, 4  ;;  %p5603_p3 = scmp.eq.s32.totalorder %s4063_s13, 0  ;;  %s127_s15 = int_to_ptr.vmem [resolvable:$true] %s126_s15 }
   0x5   : > { %p5597_p2 = pnand %p4065_p0, %p114_p1  ;;  %s5566_s18 = smov [#allocation4]  }
   0x6   : > { %s140_s19 = sshll.u32 %s5566_s18, 4  ;;  %s5508_s21 = scalar_lea.vmem %s127_s15, 256  ;;  %s141_s19 = int_to_ptr.vmem [resolvable:$true] %s140_s19 }
   0x7   : > { %p4979_p4 = pneg %p5597_p2  ;;  %p5509_p7 = scmp.ne.s32.totalorder %s127_s15, %s5508_s21 }
   0x8   : > { %p5516_p10 = scmp.lt.s32.totalorder %s127_s15, %s127_s15  ;;  %p5517_p11 = scmp.lt.s32.totalorder %s5508_s21, %s5508_s21 }
   0x9   : > { %p5611_p5 = pnand %p5603_p3, %p4979_p4 }
   0xa   : > { %p5518_p12 = por %p5517_p11, %p5516_p10 }
   0xb   : > { %p5499_p6 = pneg %p5611_p5 }
   0xd   : > { %p5511_p8 = pnand %p5509_p7, %p5499_p6 }
   0xf   : > { %p5512_p9 = pneg %p5511_p8 }
  0x11   : > { %p5519_p13 = pnand %p5518_p12, %p5512_p9 }
  0x13   : > { %5522 = shalt.err (!%p5519_p13)
}
  0x14   : > { %s5567_s22 = smov 64   ;;  %s5568_s23 = smov 4  }
  0x15   : > { %4982 = dma.hbm_to_vmem [thread:$0]  (!%p5611_p5), %s7668_s1, 256, %s127_s15, [#allocation3], %s5567_s22, %s5567_s22, %s5568_s23  }
  0x16   : > { %s5534_s26 = scalar_lea.vmem %s141_s19, 16  ;;  %s5541_s27 = scalar_lea.vmem %s141_s19, 32 }
  0x17   : > { %p5535_p0 = scmp.ne.s32.totalorder %s141_s19, %s5534_s26  ;;  %p5542_p7 = scmp.lt.s32.totalorder %s141_s19, %s141_s19 }
  0x18   : > { %p5543_p8 = scmp.lt.s32.totalorder %s5541_s27, %s5534_s26 }
  0x19   : > { %p5537_p1 = pnand %p5535_p0, %p5499_p6 }
  0x1a   : > { %p5544_p9 = por %p5543_p8, %p5542_p7 }
  0x1b   : > { %p5538_p4 = pneg %p5537_p1 }
  0x1d   : > { %p5545_p10 = pnand %p5544_p9, %p5538_p4 }
  0x1f   : > { %5548 = shalt.err (!%p5545_p10)
}
  0x20   : > { %4985 = dma.hbm_to_vmem [thread:$0]  (!%p5611_p5), %s7669_s2, 16, %s141_s19, [#allocation5]  }
  0x21   : > { %162 = sbr.rel (%p5597_p2) target bundleno = 601 (0x259), region = 32 }
  0x26   : > { %5554 = dma.done.wait (%p5603_p3), [#allocation3], 256  }
  0x27   : > { %5556 = vsyncadd (%p5603_p3), [#allocation3], 4294967040 }
  0x28   : > { %5558 = dma.done.wait (%p5603_p3), [#allocation5], 16  }
  0x29   : > { %5560 = vsyncadd (%p5603_p3), [#allocation5], 4294967280  ;;  %s190_s30 = smul.u32 196, %s4063_s13  ;;  %v5002_v0 = vld [vmem:[#allocation2 + $0x8] sm:$0xff]   ;;  %v5003_v1 = vld [vmem:[#allocation2] sm:$0xff]   ;;  %vm912_vm0 = vcmask 261120  }
  0x2a   : > { %4767 = vmatprep.subr.bf16.mxu0 %v5002_v0  ;;  %4967 = vmatprep.subr.bf16.mxu1 %v5002_v0  ;;  %vm3788_vm1 = vcmask 519168  }
  0x2b   : > { %p191_p6 = scmp.lt.s32.totalorder %s190_s30, 783  ;;  %4768 = vmatpush3.bf16.msra.mxu0 %v5002_v0  ;;  %4969 = vmatpush3.bf16.msra.mxu1 %v5002_v0 }
  0x2c   : > { %4769 = vmatprep.subr.bf16.mxu0 %v5003_v1  ;;  %4968 = vmatprep.subr.bf16.mxu1 %v5003_v1 }
  0x2d   : > { %s7675_s30 = smov (!%p191_p6, %s190_s30), 783 }
  0x2e   : > { %s4072_s4 = sshll.u32 %s7675_s30, 2 }
  0x2f   : > { %s5653_s7 = scalar_lea.vmem %s7667_s0, %s4072_s4  ;;  %4770 = vmatpush3.bf16.msra.mxu0 %v5003_v1  ;;  %4970 = vmatpush3.bf16.msra.mxu1 %v5003_v1  ;;  %s5914_s10 = scalar_lea.vmem %s7670_s3, %s4072_s4 }
  0x30   : > { %v5004_v2 = vld [vmem:[%s5653_s7] sm:$0xff]   ;;  %v5005_v3 = vld [vmem:[%s5653_s7 + $0x190] sm:$0xff]   ;;  %v5006_v4 = vld [vmem:[%s5653_s7 + $0x8] sm:$0xff]  }
  0x31   : > { %4771 = vmatprep.mubr.msk.bf16.mxu0 %vm912_vm0, %v5004_v2  ;;  %4871 = vmatprep.mubr.msk.bf16.mxu1 %vm912_vm0, %v5005_v3  ;;  %v5007_v5 = vld [vmem:[%s5653_s7 + $0x198] sm:$0xff]   ;;  %v5008_v6 = vld [vmem:[%s5653_s7 + $0x10] sm:$0xff]   ;;  %v5009_v7 = vld [vmem:[%s5653_s7 + $0x1a0] sm:$0xff]  }
  0x32   : > { %4772 = vmatmul.mubr.msk.bf16.vlgmr.msra.gmra.mxu0 %vm912_vm0, %v5006_v4  ;;  %4872 = vmatmul.mubr.msk.bf16.vlgmr.msra.gmra.mxu1 %vm912_vm0, %v5007_v5  ;;  %v5010_v8 = vld [vmem:[%s5653_s7 + $0x18] sm:$0xff]   ;;  %v5011_v9 = vld [vmem:[%s5653_s7 + $0x1a8] sm:$0xff]   ;;  %v5012_v10 = vld [vmem:[%s5653_s7 + $0x20] sm:$0xff]  }
  0x33   : > { %4775 = vmatprep.mubr.msk.bf16.mxu0 %vm912_vm0, %v5008_v6  ;;  %4875 = vmatprep.mubr.msk.bf16.mxu1 %vm912_vm0, %v5009_v7  ;;  %v5013_v11 = vld [vmem:[%s5653_s7 + $0x1b0] sm:$0xff]   ;;  %v5014_v12 = vld [vmem:[%s5653_s7 + $0x28] sm:$0xff]   ;;  %v5015_v13 = vld [vmem:[%s5653_s7 + $0x1b8] sm:$0xff]  }
  0x34   : > { %v5016_v14 = vld [vmem:[%s5653_s7 + $0x30] sm:$0xff]   ;;  %v5017_v15 = vld [vmem:[%s5653_s7 + $0x1c0] sm:$0xff]   ;;  %v5018_v16 = vld [vmem:[%s5653_s7 + $0x38] sm:$0xff]  }
  0x35   : > { %v5019_v17 = vld [vmem:[%s5653_s7 + $0x1c8] sm:$0xff]   ;;  %v5020_v18 = vld [vmem:[%s5653_s7 + $0x40] sm:$0xff]   ;;  %v5021_v19 = vld [vmem:[%s5653_s7 + $0x1d0] sm:$0xff]  }
  0x36   : > { %v5022_v20 = vld [vmem:[%s5653_s7 + $0x48] sm:$0xff]   ;;  %v5023_v21 = vld [vmem:[%s5653_s7 + $0x1d8] sm:$0xff]   ;;  %v5024_v22 = vld [vmem:[%s5653_s7 + $0x50] sm:$0xff]  }
  0x37   : > { %v5025_v23 = vld [vmem:[%s5653_s7 + $0x1e0] sm:$0xff]   ;;  %v5026_v24 = vld [vmem:[%s5653_s7 + $0x58] sm:$0xff]   ;;  %v5027_v25 = vld [vmem:[%s5653_s7 + $0x1e8] sm:$0xff]  }
  0x38   : > { %v5028_v26 = vld [vmem:[%s5653_s7 + $0x60] sm:$0xff]   ;;  %v5029_v27 = vld [vmem:[%s5653_s7 + $0x1f0] sm:$0xff]   ;;  %v5030_v28 = vld [vmem:[%s5653_s7 + $0x68] sm:$0xff]  }
  0x39   : > { %v5031_v29 = vld [vmem:[%s5653_s7 + $0x1f8] sm:$0xff]   ;;  %v5032_v30 = vld [vmem:[%s5653_s7 + $0x70] sm:$0xff]   ;;  %v5033_v31 = vld [vmem:[%s5653_s7 + $0x200] sm:$0xff]  }
  0x3a   : > { %4776 = vmatmul.mubr.msk.bf16.gmra.mxu0 %vm912_vm0, %v5010_v8  ;;  %4876 = vmatmul.mubr.msk.bf16.gmra.mxu1 %vm912_vm0, %v5011_v9  ;;  %v5034_v32 = vld [vmem:[%s5653_s7 + $0x78] sm:$0xff]   ;;  %v5035_v33 = vld [vmem:[%s5653_s7 + $0x208] sm:$0xff]   ;;  %v5036_v34 = vld [vmem:[%s5653_s7 + $0x80] sm:$0xff]  }
  0x3b   : > { %4779 = vmatprep.mubr.msk.bf16.mxu0 %vm912_vm0, %v5012_v10  ;;  %4879 = vmatprep.mubr.msk.bf16.mxu1 %vm912_vm0, %v5013_v11  ;;  %v5037_v35 = vld [vmem:[%s5653_s7 + $0x210] sm:$0xff]   ;;  %v5038_v36 = vld [vmem:[%s5653_s7 + $0x88] sm:$0xff]   ;;  %v5039_v37 = vld [vmem:[%s5653_s7 + $0x218] sm:$0xff]  }
  0x3c   : > { %v5040_v38 = vld [vmem:[%s5653_s7 + $0x90] sm:$0xff]   ;;  %v5041_v39 = vld [vmem:[%s5653_s7 + $0x220] sm:$0xff]   ;;  %v5042_v40 = vld [vmem:[%s5653_s7 + $0x98] sm:$0xff]  }
  0x3d   : > { %v5043_v41 = vld [vmem:[%s5653_s7 + $0x228] sm:$0xff]   ;;  %v5044_v42 = vld [vmem:[%s5653_s7 + $0xa0] sm:$0xff]   ;;  %v5045_v43 = vld [vmem:[%s5653_s7 + $0x230] sm:$0xff]  }
  0x3e   : > { %v5046_v44 = vld [vmem:[%s5653_s7 + $0xa8] sm:$0xff]   ;;  %v5047_v45 = vld [vmem:[%s5653_s7 + $0x238] sm:$0xff]   ;;  %v5048_v46 = vld [vmem:[%s5653_s7 + $0xb0] sm:$0xff]  }
  0x3f   : > { %v5049_v47 = vld [vmem:[%s5653_s7 + $0x240] sm:$0xff]   ;;  %v5050_v48 = vld [vmem:[%s5653_s7 + $0xb8] sm:$0xff]   ;;  %v5051_v49 = vld [vmem:[%s5653_s7 + $0x248] sm:$0xff]  }
  0x40   : > { %v5052_v50 = vld [vmem:[%s5653_s7 + $0xc0] sm:$0xff]   ;;  %v5053_v51 = vld [vmem:[%s5653_s7 + $0x250] sm:$0xff]   ;;  %v5054_v52 = vld [vmem:[%s5653_s7 + $0xc8] sm:$0xff]  }
  0x41   : > { %v5055_v53 = vld [vmem:[%s5653_s7 + $0x258] sm:$0xff]   ;;  %v5056_v54 = vld [vmem:[%s5653_s7 + $0xd0] sm:$0xff]   ;;  %v5057_v55 = vld [vmem:[%s5653_s7 + $0x260] sm:$0xff]  }
  0x42   : > { %4780 = vmatmul.mubr.msk.bf16.gmra.mxu0 %vm912_vm0, %v5014_v12  ;;  %4880 = vmatmul.mubr.msk.bf16.gmra.mxu1 %vm912_vm0, %v5015_v13  ;;  %v5058_v56 = vld [vmem:[%s5653_s7 + $0xd8] sm:$0xff]   ;;  %v5059_v57 = vld [vmem:[%s5653_s7 + $0x268] sm:$0xff]   ;;  %v5060_v58 = vld [vmem:[%s5653_s7 + $0xe0] sm:$0xff]  }
  0x43   : > { %4783 = vmatprep.mubr.msk.bf16.mxu0 %vm912_vm0, %v5016_v14  ;;  %4883 = vmatprep.mubr.msk.bf16.mxu1 %vm912_vm0, %v5017_v15  ;;  %v5061_v59 = vld [vmem:[%s5653_s7 + $0x270] sm:$0xff]   ;;  %v5062_v60 = vld [vmem:[%s5653_s7 + $0xe8] sm:$0xff]   ;;  %v5063_v61 = vld [vmem:[%s5653_s7 + $0x278] sm:$0xff]  }
  0x44   : > { %v5064_v62 = vld [vmem:[%s5653_s7 + $0xf0] sm:$0xff]   ;;  %v5065_v63 = vld [vmem:[%s5653_s7 + $0x280] sm:$0xff]   ;;  %v5066_v0 = vld [vmem:[%s5653_s7 + $0xf8] sm:$0xff]  }
  0x45   : > { %v5067_v1 = vld [vmem:[%s5653_s7 + $0x288] sm:$0xff]   ;;  %v5068_v2 = vld [vmem:[%s5653_s7 + $0x100] sm:$0xff]   ;;  %v5069_v3 = vld [vmem:[%s5653_s7 + $0x290] sm:$0xff]  }
  0x46   : > { %v5070_v4 = vld [vmem:[%s5653_s7 + $0x108] sm:$0xff]   ;;  %v5071_v5 = vld [vmem:[%s5653_s7 + $0x298] sm:$0xff]   ;;  %v5072_v6 = vld [vmem:[%s5653_s7 + $0x110] sm:$0xff]  }
  0x47   : > { %v5073_v7 = vld [vmem:[%s5653_s7 + $0x2a0] sm:$0xff]   ;;  %v5074_v8 = vld [vmem:[%s5653_s7 + $0x118] sm:$0xff]   ;;  %v5075_v9 = vld [vmem:[%s5653_s7 + $0x2a8] sm:$0xff]  }
  0x48   : > { %v5076_v10 = vld [vmem:[%s5653_s7 + $0x120] sm:$0xff]   ;;  %v5077_v11 = vld [vmem:[%s5653_s7 + $0x2b0] sm:$0xff]   ;;  %v5078_v12 = vld [vmem:[%s5653_s7 + $0x128] sm:$0xff]  }
  0x49   : > { %v5079_v13 = vld [vmem:[%s5653_s7 + $0x2b8] sm:$0xff]   ;;  %v5080_v14 = vld [vmem:[%s5653_s7 + $0x130] sm:$0xff]   ;;  %v5081_v15 = vld [vmem:[%s5653_s7 + $0x2c0] sm:$0xff]  }
  0x4a   : > { %4784 = vmatmul.mubr.msk.bf16.gmra.mxu0 %vm912_vm0, %v5018_v16  ;;  %4884 = vmatmul.mubr.msk.bf16.gmra.mxu1 %vm912_vm0, %v5019_v17  ;;  %v5082_v16 = vld [vmem:[%s5653_s7 + $0x138] sm:$0xff]   ;;  %v5083_v17 = vld [vmem:[%s5653_s7 + $0x2c8] sm:$0xff]  }
  0x4b   : > { %4787 = vmatprep.mubr.msk.bf16.mxu0 %vm912_vm0, %v5020_v18  ;;  %4887 = vmatprep.mubr.msk.bf16.mxu1 %vm912_vm0, %v5021_v19  ;;  %v5084_v18 = vld [vmem:[%s5653_s7 + $0x140] sm:$0xff]   ;;  %v5085_v19 = vld [vmem:[%s5653_s7 + $0x2d0] sm:$0xff]  }
  0x52   : > { %4788 = vmatmul.mubr.msk.bf16.gmra.mxu0 %vm912_vm0, %v5022_v20  ;;  %4888 = vmatmul.mubr.msk.bf16.gmra.mxu1 %vm912_vm0, %v5023_v21  ;;  %v5086_v20 = vld [vmem:[%s5653_s7 + $0x148] sm:$0xff]   ;;  %v5087_v21 = vld [vmem:[%s5653_s7 + $0x2d8] sm:$0xff]  }
  0x53   : > { %4791 = vmatprep.mubr.msk.bf16.mxu0 %vm912_vm0, %v5024_v22  ;;  %4891 = vmatprep.mubr.msk.bf16.mxu1 %vm912_vm0, %v5025_v23  ;;  %v5088_v22 = vld [vmem:[%s5653_s7 + $0x150] sm:$0xff]   ;;  %v5089_v23 = vld [vmem:[%s5653_s7 + $0x2e0] sm:$0xff]  }
  0x5a   : > { %4792 = vmatmul.mubr.msk.bf16.gmra.mxu0 %vm912_vm0, %v5026_v24  ;;  %4892 = vmatmul.mubr.msk.bf16.gmra.mxu1 %vm912_vm0, %v5027_v25  ;;  %v5090_v24 = vld [vmem:[%s5653_s7 + $0x158] sm:$0xff]   ;;  %v5091_v25 = vld [vmem:[%s5653_s7 + $0x2e8] sm:$0xff]  }
  0x5b   : > { %4795 = vmatprep.mubr.msk.bf16.mxu0 %vm912_vm0, %v5028_v26  ;;  %4895 = vmatprep.mubr.msk.bf16.mxu1 %vm912_vm0, %v5029_v27  ;;  %v5092_v26 = vld [vmem:[%s5653_s7 + $0x160] sm:$0xff]   ;;  %v5093_v27 = vld [vmem:[%s5653_s7 + $0x2f0] sm:$0xff]  }
  0x62   : > { %4796 = vmatmul.mubr.msk.bf16.gmra.mxu0 %vm912_vm0, %v5030_v28  ;;  %4896 = vmatmul.mubr.msk.bf16.gmra.mxu1 %vm912_vm0, %v5031_v29  ;;  %v5094_v28 = vld [vmem:[%s5653_s7 + $0x168] sm:$0xff]   ;;  %v5095_v29 = vld [vmem:[%s5653_s7 + $0x2f8] sm:$0xff]  }
  0x63   : > { %4799 = vmatprep.mubr.msk.bf16.mxu0 %vm912_vm0, %v5032_v30  ;;  %4899 = vmatprep.mubr.msk.bf16.mxu1 %vm912_vm0, %v5033_v31  ;;  %v5096_v30 = vld [vmem:[%s5653_s7 + $0x170] sm:$0xff]   ;;  %v5097_v31 = vld [vmem:[%s5653_s7 + $0x300] sm:$0xff]  }
  0x6a   : > { %4800 = vmatmul.mubr.msk.bf16.gmra.mxu0 %vm912_vm0, %v5034_v32  ;;  %4900 = vmatmul.mubr.msk.bf16.gmra.mxu1 %vm912_vm0, %v5035_v33  ;;  %v5098_v32 = vld [vmem:[%s5653_s7 + $0x178] sm:$0xff]   ;;  %v5099_v33 = vld [vmem:[%s5653_s7 + $0x308] sm:$0xff]  }
  0x6b   : > { %4803 = vmatprep.mubr.msk.bf16.mxu0 %vm912_vm0, %v5036_v34  ;;  %4903 = vmatprep.mubr.msk.bf16.mxu1 %vm912_vm0, %v5037_v35  ;;  %v5100_v34 = vld [vmem:[%s5653_s7 + $0x180] sm:$0xff]   ;;  %v5101_v35 = vld [vmem:[%s5653_s7 + $0x188] sm:$0xff]  }
  0x72   : > { %4804 = vmatmul.mubr.msk.bf16.gmra.mxu0 %vm912_vm0, %v5038_v36  ;;  %4904 = vmatmul.mubr.msk.bf16.gmra.mxu1 %vm912_vm0, %v5039_v37  ;;  %v5850_v36 = vld [vmem:[#allocation4] ss:$0 sm:$0xff] }
  0x73   : > { %4807 = vmatprep.mubr.msk.bf16.mxu0 %vm912_vm0, %v5040_v38  ;;  %4907 = vmatprep.mubr.msk.bf16.mxu1 %vm912_vm0, %v5041_v39 }
  0x7a   : > { %4808 = vmatmul.mubr.msk.bf16.gmra.mxu0 %vm912_vm0, %v5042_v40  ;;  %4908 = vmatmul.mubr.msk.bf16.gmra.mxu1 %vm912_vm0, %v5043_v41 }
  0x7b   : > { %4811 = vmatprep.mubr.msk.bf16.mxu0 %vm912_vm0, %v5044_v42  ;;  %4911 = vmatprep.mubr.msk.bf16.mxu1 %vm912_vm0, %v5045_v43 }
  0x82   : > { %4812 = vmatmul.mubr.msk.bf16.gmra.mxu0 %vm912_vm0, %v5046_v44  ;;  %4912 = vmatmul.mubr.msk.bf16.gmra.mxu1 %vm912_vm0, %v5047_v45 }
  0x83   : > { %4815 = vmatprep.mubr.msk.bf16.mxu0 %vm912_vm0, %v5048_v46  ;;  %4915 = vmatprep.mubr.msk.bf16.mxu1 %vm912_vm0, %v5049_v47 }
  0x8a   : > { %4816 = vmatmul.mubr.msk.bf16.gmra.mxu0 %vm912_vm0, %v5050_v48  ;;  %4916 = vmatmul.mubr.msk.bf16.gmra.mxu1 %vm912_vm0, %v5051_v49 }
  0x8b   : > { %4819 = vmatprep.mubr.msk.bf16.mxu0 %vm912_vm0, %v5052_v50  ;;  %4919 = vmatprep.mubr.msk.bf16.mxu1 %vm912_vm0, %v5053_v51 }
  0x92   : > { %4820 = vmatmul.mubr.msk.bf16.gmra.mxu0 %vm912_vm0, %v5054_v52  ;;  %4920 = vmatmul.mubr.msk.bf16.gmra.mxu1 %vm912_vm0, %v5055_v53 }
  0x93   : > { %4823 = vmatprep.mubr.msk.bf16.mxu0 %vm912_vm0, %v5056_v54  ;;  %4923 = vmatprep.mubr.msk.bf16.mxu1 %vm912_vm0, %v5057_v55 }
  0x9a   : > { %4824 = vmatmul.mubr.msk.bf16.gmra.mxu0 %vm912_vm0, %v5058_v56  ;;  %4924 = vmatmul.mubr.msk.bf16.gmra.mxu1 %vm912_vm0, %v5059_v57 }
  0x9b   : > { %4827 = vmatprep.mubr.msk.bf16.mxu0 %vm912_vm0, %v5060_v58  ;;  %4927 = vmatprep.mubr.msk.bf16.mxu1 %vm912_vm0, %v5061_v59 }
  0xa2   : > { %4828 = vmatmul.mubr.msk.bf16.gmra.mxu0 %vm912_vm0, %v5062_v60  ;;  %4928 = vmatmul.mubr.msk.bf16.gmra.mxu1 %vm912_vm0, %v5063_v61 }
  0xa3   : > { %4831 = vmatprep.mubr.msk.bf16.mxu0 %vm912_vm0, %v5064_v62  ;;  %4931 = vmatprep.mubr.msk.bf16.mxu1 %vm912_vm0, %v5065_v63 }
  0xaa   : > { %4832 = vmatmul.mubr.msk.bf16.gmra.mxu0 %vm912_vm0, %v5066_v0  ;;  %4932 = vmatmul.mubr.msk.bf16.gmra.mxu1 %vm912_vm0, %v5067_v1 }
  0xab   : > { %4835 = vmatprep.mubr.msk.bf16.mxu0 %vm912_vm0, %v5068_v2  ;;  %4935 = vmatprep.mubr.msk.bf16.mxu1 %vm912_vm0, %v5069_v3 }
  0xb2   : > { %4836 = vmatmul.mubr.msk.bf16.gmra.mxu0 %vm912_vm0, %v5070_v4  ;;  %4936 = vmatmul.mubr.msk.bf16.gmra.mxu1 %vm912_vm0, %v5071_v5 }
  0xb3   : > { %4839 = vmatprep.mubr.msk.bf16.mxu0 %vm912_vm0, %v5072_v6  ;;  %4939 = vmatprep.mubr.msk.bf16.mxu1 %vm912_vm0, %v5073_v7 }
  0xba   : > { %4840 = vmatmul.mubr.msk.bf16.gmra.mxu0 %vm912_vm0, %v5074_v8  ;;  %4940 = vmatmul.mubr.msk.bf16.gmra.mxu1 %vm912_vm0, %v5075_v9 }
  0xbb   : > { %4843 = vmatprep.mubr.msk.bf16.mxu0 %vm912_vm0, %v5076_v10  ;;  %4943 = vmatprep.mubr.msk.bf16.mxu1 %vm912_vm0, %v5077_v11 }
  0xc2   : > { %4844 = vmatmul.mubr.msk.bf16.gmra.mxu0 %vm912_vm0, %v5078_v12  ;;  %4944 = vmatmul.mubr.msk.bf16.gmra.mxu1 %vm912_vm0, %v5079_v13 }
  0xc3   : > { %4847 = vmatprep.mubr.msk.bf16.mxu0 %vm912_vm0, %v5080_v14  ;;  %4947 = vmatprep.mubr.msk.bf16.mxu1 %vm912_vm0, %v5081_v15 }
  0xca   : > { %4848 = vmatmul.mubr.msk.bf16.gmra.mxu0 %vm912_vm0, %v5082_v16  ;;  %4948 = vmatmul.mubr.msk.bf16.gmra.mxu1 %vm912_vm0, %v5083_v17 }
  0xcb   : > { %4851 = vmatprep.mubr.msk.bf16.mxu0 %vm912_vm0, %v5084_v18  ;;  %4951 = vmatprep.mubr.msk.bf16.mxu1 %vm912_vm0, %v5085_v19 }
  0xd2   : > { %4852 = vmatmul.mubr.msk.bf16.gmra.mxu0 %vm912_vm0, %v5086_v20  ;;  %4952 = vmatmul.mubr.msk.bf16.gmra.mxu1 %vm912_vm0, %v5087_v21 }
  0xd3   : > { %4855 = vmatprep.mubr.msk.bf16.mxu0 %vm912_vm0, %v5088_v22  ;;  %4955 = vmatprep.mubr.msk.bf16.mxu1 %vm912_vm0, %v5089_v23 }
  0xda   : > { %4856 = vmatmul.mubr.msk.bf16.gmra.mxu0 %vm912_vm0, %v5090_v24  ;;  %4956 = vmatmul.mubr.msk.bf16.gmra.mxu1 %vm912_vm0, %v5091_v25 }
  0xdb   : > { %4859 = vmatprep.mubr.msk.bf16.mxu0 %vm912_vm0, %v5092_v26  ;;  %4959 = vmatprep.mubr.msk.bf16.mxu1 %vm912_vm0, %v5093_v27 }
  0xe2   : > { %4860 = vmatmul.mubr.msk.bf16.gmra.mxu0 %vm912_vm0, %v5094_v28  ;;  %4960 = vmatmul.mubr.msk.bf16.gmra.mxu1 %vm912_vm0, %v5095_v29 }
  0xe3   : > { %4863 = vmatprep.mubr.msk.bf16.mxu0 %vm912_vm0, %v5096_v30  ;;  %4963 = vmatprep.mubr.msk.bf16.mxu1 %vm912_vm0, %v5097_v31 }
  0xea   : > { %4864 = vmatmul.mubr.msk.bf16.gmra.mxu0 %vm912_vm0, %v5098_v32  ;;  %4964 = vmatmul.mubr.msk.bf16.gmra.mxu1 %vm912_vm0, %v5099_v33 }
  0xeb   : > { %4867 = vmatprep.mubr.msk.bf16.mxu0 %vm912_vm0, %v5100_v34 }
  0xf2   : > { %v4773_v37 = vpop.f32.mrf.mxu0  ;;  %4868 = vmatmul.mubr.msk.bf16.gmra.mxu0 %vm912_vm0, %v5101_v35  ;;  %v4873_v38 = vpop.f32.mrf.mxu1 }
  0xf3   : > { %v1250_v39 = vadd.f32 %v4773_v37, %v5850_v36  ;;  %v1650_v40 = vadd.f32 %v4873_v38, %v5850_v36 }
  0xf4   : > { %v1241_v41 = vpop.f32.mrf.mxu0  ;;  %v1641_v42 = vpop.f32.mrf.mxu1 }
  0xf5   : > { %v2222_v43 = vmul.f32 0.70710677, %v1250_v39  ;;  %v2322_v44 = vmul.f32 0.70710677, %v1650_v40  ;;  %v1242_v45 = vadd.f32 %v5850_v36, %v1241_v41  ;;  %v1642_v46 = vadd.f32 %v5850_v36, %v1641_v42 }
  0xf6   : > { %v4774_v47 = vpop.f32.mrf.mxu0  ;;  %v4874_v48 = vpop.f32.mrf.mxu1  ;;  %v2026_v2 = vmul.f32 0.5, %v1250_v39  ;;  %v2126_v5 = vmul.f32 0.5, %v1650_v40 }
  0xf7   : > { %5102 = verf.f32 %v2222_v43  ;;  %v1253_v49 = vadd.f32 %v4774_v47, %v5850_v36  ;;  %v1653_v50 = vadd.f32 %v4874_v48, %v5850_v36  ;;  %v2220_v51 = vmul.f32 0.70710677, %v1242_v45 }
  0xf8   : > { %5104 = verf.f32 %v2322_v44  ;;  %v1244_v52 = vpop.f32.mrf.mxu0  ;;  %v1644_v53 = vpop.f32.mrf.mxu1  ;;  %v2320_v54 = vmul.f32 0.70710677, %v1642_v46  ;;  %v2024_v13 = vmul.f32 0.5, %v1242_v45  ;;  %v5869_v14 = vmul.f32 0.5, %v1642_v46 }
  0xf9   : > { %v2223_v55 = vmul.f32 0.70710677, %v1253_v49  ;;  %5106 = verf.f32 %v2220_v51  ;;  %v2323_v56 = vmul.f32 0.70710677, %v1653_v50  ;;  %v1245_v57 = vadd.f32 %v5850_v36, %v1244_v52 }
  0xfa   : > { %v1645_v58 = vadd.f32 %v5850_v36, %v1644_v53  ;;  %v4777_v59 = vpop.f32.mrf.mxu0  ;;  %v4877_v60 = vpop.f32.mrf.mxu1  ;;  %5108 = verf.f32 %v2320_v54  ;;  %v5871_v18 = vmul.f32 0.5, %v1253_v49  ;;  %v5873_v19 = vmul.f32 0.5, %v1653_v50 }
  0xfb   : > { %v1266_v61 = vadd.f32 %v4777_v59, %v5850_v36  ;;  %v1666_v62 = vadd.f32 %v4877_v60, %v5850_v36  ;;  %5110 = verf.f32 %v2223_v55  ;;  %v2221_v63 = vmul.f32 0.70710677, %v1245_v57 }
  0xfc   : > { %v1257_v0 = vpop.f32.mrf.mxu0  ;;  %v1657_v1 = vpop.f32.mrf.mxu1  ;;  %5112 = verf.f32 %v2323_v56  ;;  %v2321_v3 = vmul.f32 0.70710677, %v1645_v58  ;;  %v5875_v21 = vmul.f32 0.5, %v1245_v57  ;;  %v5887_v30 = vmul.f32 0.5, %v1645_v58 }
  0xfd   : > { %v2226_v4 = vmul.f32 0.70710677, %v1266_v61  ;;  %5114 = verf.f32 %v2221_v63  ;;  %v2326_v6 = vmul.f32 0.70710677, %v1666_v62  ;;  %v1258_v7 = vadd.f32 %v5850_v36, %v1257_v0 }
  0xfe   : > { %v4778_v8 = vpop.f32.mrf.mxu0  ;;  %v4878_v9 = vpop.f32.mrf.mxu1  ;;  %5116 = verf.f32 %v2321_v3  ;;  %v1658_v10 = vadd.f32 %v5850_v36, %v1657_v1  ;;  %v5889_v31 = vmul.f32 0.5, %v1266_v61  ;;  %v5894_v38 = vmul.f32 0.5, %v1666_v62 }
  0xff   : > { %v1269_v11 = vadd.f32 %v4778_v8, %v5850_v36  ;;  %v5867_v12 = vadd.f32 %v4878_v9, %v5850_v36  ;;  %5118 = verf.f32 %v2226_v4  ;;  %v2224_v15 = vmul.f32 0.70710677, %v1258_v7 }
 0x100   : > { %v1260_v16 = vpop.f32.mrf.mxu0  ;;  %v1660_v17 = vpop.f32.mrf.mxu1  ;;  %5120 = verf.f32 %v2326_v6  ;;  %v2324_v20 = vmul.f32 0.70710677, %v1658_v10  ;;  %v5897_v41 = vmul.f32 0.5, %v1258_v7  ;;  %v5899_v42 = vmul.f32 0.5, %v1658_v10 }
 0x101   : > { %5122 = verf.f32 %v2224_v15  ;;  %v2227_v22 = vmul.f32 0.70710677, %v1269_v11  ;;  %v2327_v23 = vmul.f32 0.70710677, %v5867_v12  ;;  %v5879_v26 = vadd.f32 %v5850_v36, %v1260_v16 }
 0x102   : > { %v4781_v24 = vpop.f32.mrf.mxu0  ;;  %v4881_v25 = vpop.f32.mrf.mxu1  ;;  %5124 = verf.f32 %v2324_v20  ;;  %v5882_v27 = vadd.f32 %v5850_v36, %v1660_v17  ;;  %v5906_v48 = vmul.f32 0.5, %v1269_v11 }
 0x103   : > { %v5885_v28 = vadd.f32 %v4781_v24, %v5850_v36  ;;  %5126 = verf.f32 %v2227_v22  ;;  %v5892_v32 = vadd.f32 %v4881_v25, %v5850_v36  ;;  %v2225_v39 = vmul.f32 0.70710677, %v5879_v26 }
 0x104   : > { %v5103_v29 = vpop.eup %5102  ;;  %v1273_v33 = vpop.f32.mrf.mxu0  ;;  %5128 = verf.f32 %v2327_v23  ;;  %v2325_v43 = vmul.f32 0.70710677, %v5882_v27  ;;  %v2029_v24 = vmul.f32 0.5, %v5879_v26 }
 0x105   : > { %v1673_v34 = vpop.f32.mrf.mxu1  ;;  %v5105_v35 = vpop.eup %5104  ;;  %v2614_v37 = vadd.f32 1.0, %v5103_v29  ;;  %5130 = verf.f32 %v2225_v39  ;;  %v2230_v49 = vmul.f32 0.70710677, %v5885_v28  ;;  %v2330_v53 = vmul.f32 0.70710677, %v5892_v32 }
 0x106   : > { %v2714_v40 = vadd.f32 1.0, %v5105_v35  ;;  %v5902_v44 = vpop.f32.mrf.mxu0  ;;  %v5107_v46 = vpop.eup %5106  ;;  %5132 = verf.f32 %v2325_v43  ;;  %v5922_v59 = vadd.f32 %v5850_v36, %v1273_v33  ;;  %v5939_v11 = vadd.f32 %v5850_v36, %v1673_v34 }
 0x107   : > { %v5904_v45 = vpop.f32.mrf.mxu1  ;;  %v2810_v47 = vmul.f32 %v2614_v37, %v2026_v2  ;;  %v5109_v50 = vpop.eup %5108  ;;  %v2612_v52 = vadd.f32 1.0, %v5107_v46  ;;  %5134 = verf.f32 %v2230_v49  ;;  %v5963_v43 = vadd.f32 %v5902_v44, %v5850_v36 }
 0x108   : > { %v2910_v51 = vmul.f32 %v2714_v40, %v2126_v5  ;;  %v5917_v54 = vpop.f32.mrf.mxu0  ;;  %v5111_v56 = vpop.eup %5110  ;;  %v2712_v58 = vadd.f32 1.0, %v5109_v50  ;;  %5136 = verf.f32 %v2330_v53  ;;  %v5932_v5 = vmul.f32 0.5, %v5867_v12 }
 0x109   : > { %v5919_v55 = vpop.f32.mrf.mxu1  ;;  %v4473_v57 = vpack.c.bf16 %v2810_v47, %v2810_v47  ;;  %v5113_v60 = vpop.eup %5112  ;;  %v2808_v62 = vmul.f32 %v2612_v52, %v2024_v13  ;;  %v2615_v63 = vadd.f32 1.0, %v5111_v56  ;;  %v2228_v6 = vmul.f32 0.70710677, %v5922_v59 }
 0x10a   : > { %v4573_v61 = vpack.c.bf16 %v2910_v51, %v2910_v51  ;;  %v5924_v0 = vpop.f32.mrf.mxu0  ;;  %v5115_v2 = vpop.eup %5114  ;;  %v2908_v3 = vmul.f32 %v2712_v58, %v5869_v14  ;;  %v2715_v4 = vadd.f32 1.0, %v5113_v60  ;;  %v2328_v37 = vmul.f32 0.70710677, %v5939_v11 }
 0x10b   : > { %v5926_v1 = vpop.f32.mrf.mxu1  ;;  %3791 = vst.msk [vmem:[%s5914_s10 + $0x8] sm:$0xf] %vm3788_vm1, %v4473_v57  ;;  %v5117_v7 = vpop.eup %5116  ;;  %v4471_v8 = vpack.c.bf16 %v2808_v62, %v2808_v62  ;;  %v2811_v9 = vmul.f32 %v2615_v63, %v5871_v18  ;;  %v2613_v10 = vadd.f32 1.0, %v5115_v2  ;;  %5138 = verf.f32 %v2228_v6 }
 0x10c   : > { %3891 = vst.msk [vmem:[%s5914_s10 + $0x198] sm:$0xf] %vm3788_vm1, %v4573_v61  ;;  %v5941_v13 = vpop.f32.mrf.mxu0  ;;  %v5119_v12 = vpop.eup %5118  ;;  %v4571_v15 = vpack.c.bf16 %v2908_v3, %v2908_v3  ;;  %v2911_v16 = vmul.f32 %v2715_v4, %v5873_v19  ;;  %v2713_v17 = vadd.f32 1.0, %v5117_v7  ;;  %5140 = verf.f32 %v2328_v37 }
 0x10d   : > { %v5943_v14 = vpop.f32.mrf.mxu1  ;;  %v5121_v20 = vpop.eup %5120  ;;  %3789 = vst.msk [vmem:[%s5914_s10] sm:$0xf] %vm3788_vm1, %v4471_v8  ;;  %v4474_v18 = vpack.c.bf16 %v2811_v9, %v2811_v9  ;;  %v2809_v22 = vmul.f32 %v2613_v10, %v5875_v21  ;;  %v2618_v23 = vadd.f32 1.0, %v5119_v12  ;;  %v2129_v56 = vmul.f32 0.5, %v5882_v27 }
 0x10e   : > { %v5950_v25 = vpop.f32.mrf.mxu0  ;;  %v5123_v33 = vpop.eup %5122  ;;  %3889 = vst.msk [vmem:[%s5914_s10 + $0x190] sm:$0xf] %vm3788_vm1, %v4571_v15  ;;  %v4574_v19 = vpack.c.bf16 %v2911_v16, %v2911_v16  ;;  %v2909_v34 = vmul.f32 %v2713_v17, %v5887_v30  ;;  %v2718_v35 = vadd.f32 1.0, %v5121_v20  ;;  %v2231_v62 = vmul.f32 0.70710677, %v5963_v43 }
 0x10f   : > { %v5952_v29 = vpop.f32.mrf.mxu1  ;;  %v5125_v39 = vpop.eup %5124  ;;  %3792 = vst.msk [vmem:[%s5914_s10 + $0xc] sm:$0xf] %vm3788_vm1, %v4474_v18  ;;  %v4472_v21 = vpack.c.bf16 %v2809_v22, %v2809_v22  ;;  %v2814_v26 = vmul.f32 %v2618_v23, %v5889_v31  ;;  %v2616_v40 = vadd.f32 1.0, %v5123_v33  ;;  %v5989_v2 = vadd.f32 %v5904_v45, %v5850_v36 }
 0x110   : > { %v5965_v46 = vpop.f32.mrf.mxu0  ;;  %v5127_v30 = vpop.eup %5126  ;;  %3892 = vst.msk [vmem:[%s5914_s10 + $0x19c] sm:$0xf] %vm3788_vm1, %v4574_v19  ;;  %v4572_v49 = vpack.c.bf16 %v2909_v34, %v2909_v34  ;;  %v2914_v50 = vmul.f32 %v2718_v35, %v5894_v38  ;;  %v2716_v51 = vadd.f32 1.0, %v5125_v39  ;;  %v5993_v3 = vadd.f32 %v5850_v36, %v5917_v54 }
 0x111   : > { %v5967_v47 = vpop.f32.mrf.mxu1  ;;  %v5129_v31 = vpop.eup %5128  ;;  %3790 = vst.msk [vmem:[%s5914_s10 + $0x4] sm:$0xf] %vm3788_vm1, %v4472_v21  ;;  %v4477_v52 = vpack.c.bf16 %v2814_v26, %v2814_v26  ;;  %v2812_v44 = vmul.f32 %v2616_v40, %v5897_v41  ;;  %v2619_v53 = vadd.f32 1.0, %v5127_v30  ;;  %5142 = verf.f32 %v2231_v62 }
 0x112   : > { %v5976_v57 = vpop.f32.mrf.mxu0  ;;  %3890 = vst.msk [vmem:[%s5914_s10 + $0x194] sm:$0xf] %vm3788_vm1, %v4572_v49  ;;  %v4577_v38 = vpack.c.bf16 %v2914_v50, %v2914_v50  ;;  %v2912_v60 = vmul.f32 %v2716_v51, %v5899_v42  ;;  %v2719_v61 = vadd.f32 1.0, %v5129_v31  ;;  %v5131_v63 = vpop.eup %5130  ;;  %v2034_v10 = vmul.f32 0.5, %v5885_v28 }
 0x113   : > { %v5978_v58 = vpop.f32.mrf.mxu1  ;;  %3795 = vst.msk [vmem:[%s5914_s10 + $0x18] sm:$0xf] %vm3788_vm1, %v4477_v52  ;;  %v4475_v41 = vpack.c.bf16 %v2812_v44, %v2812_v44  ;;  %v2815_v27 = vmul.f32 %v2619_v53, %v5906_v48  ;;  %v5133_v6 = vpop.eup %5132  ;;  %v2617_v48 = vadd.f32 1.0, %v5131_v63  ;;  %v2331_v12 = vmul.f32 0.70710677, %v5989_v2 }
 0x114   : > { %v5995_v4 = vpop.f32.mrf.mxu0  ;;  %3895 = vst.msk [vmem:[%s5914_s10 + $0x1a8] sm:$0xf] %vm3788_vm1, %v4577_v38  ;;  %v4575_v7 = vpack.c.bf16 %v2912_v60, %v2912_v60  ;;  %v2915_v8 = vmul.f32 %v2719_v61, %v5932_v5  ;;  %v5135_v45 = vpop.eup %5134  ;;  %v2717_v54 = vadd.f32 1.0, %v5133_v6  ;;  %v2134_v22 = vmul.f32 0.5, %v5892_v32 }
 0x115   : > { %v5997_v42 = vpop.f32.mrf.mxu1  ;;  %3793 = vst.msk [vmem:[%s5914_s10 + $0x10] sm:$0xf] %vm3788_vm1, %v4475_v41  ;;  %v4478_v9 = vpack.c.bf16 %v2815_v27, %v2815_v27  ;;  %v5137_v17 = vpop.eup %5136  ;;  %v2813_v20 = vmul.f32 %v2617_v48, %v2029_v24  ;;  %v2622_v18 = vadd.f32 1.0, %v5135_v45  ;;  %5144 = verf.f32 %v2331_v12 }
 0x116   : > { %v6006_v15 = vpop.f32.mrf.mxu0  ;;  %3893 = vst.msk [vmem:[%s5914_s10 + $0x1a0] sm:$0xf] %vm3788_vm1, %v4575_v7  ;;  %v4578_v5 = vpack.c.bf16 %v2915_v8, %v2915_v8  ;;  %v2913_v23 = vmul.f32 %v2717_v54, %v2129_v56  ;;  %v2722_v33 = vadd.f32 1.0, %v5137_v17  ;;  %v2229_v28 = vmul.f32 0.70710677, %v5993_v3 }
 0x117   : > { %v6008_v16 = vpop.f32.mrf.mxu1  ;;  %3796 = vst.msk [vmem:[%s5914_s10 + $0x1c] sm:$0xf] %vm3788_vm1, %v4478_v9  ;;  %v4476_v35 = vpack.c.bf16 %v2813_v20, %v2813_v20  ;;  %v2818_v24 = vmul.f32 %v2622_v18, %v2034_v10  ;;  %v1677_v32 = vadd.f32 %v5850_v36, %v5919_v55  ;;  %v1298_v37 = vadd.f32 %v5924_v0, %v5850_v36 }
 0x118   : > { %v6016_v19 = vpop.f32.mrf.mxu0  ;;  %3896 = vst.msk [vmem:[%s5914_s10 + $0x1ac] sm:$0xf] %vm3788_vm1, %v4578_v5  ;;  %v5139_v39 = vpop.eup %5138  ;;  %v4576_v21 = vpack.c.bf16 %v2913_v23, %v2913_v23  ;;  %v2918_v26 = vmul.f32 %v2722_v33, %v2134_v22  ;;  %5146 = verf.f32 %v2229_v28  ;;  %v1698_v40 = vadd.f32 %v5926_v1, %v5850_v36 }
 0x119   : > { %v6018_v34 = vpop.f32.mrf.mxu1  ;;  %3794 = vst.msk [vmem:[%s5914_s10 + $0x14] sm:$0xf] %vm3788_vm1, %v4476_v35  ;;  %v4481_v50 = vpack.c.bf16 %v2818_v24, %v2818_v24  ;;  %v2032_v55 = vmul.f32 0.5, %v5922_v59  ;;  %v2620_v51 = vadd.f32 1.0, %v5139_v39  ;;  %v2329_v0 = vmul.f32 0.70710677, %v1677_v32  ;;  %v5141_v60 = vpop.eup %5140 }
 0x11a   : > { %v6028_v30 = vpop.f32.mrf.mxu0  ;;  %3894 = vst.msk [vmem:[%s5914_s10 + $0x1a4] sm:$0xf] %vm3788_vm1, %v4576_v21  ;;  %v4581_v31 = vpack.c.bf16 %v2918_v26, %v2918_v26  ;;  %v2132_v52 = vmul.f32 0.5, %v5939_v11  ;;  %v2234_v44 = vmul.f32 0.70710677, %v1298_v37  ;;  %v1290_v59 = vadd.f32 %v5850_v36, %v5941_v13 }
 0x11b   : > { %v6030_v49 = vpop.f32.mrf.mxu1  ;;  %3799 = vst.msk [vmem:[%s5914_s10 + $0x28] sm:$0xf] %vm3788_vm1, %v4481_v50  ;;  %v2816_v56 = vmul.f32 %v2620_v51, %v2032_v55  ;;  %5148 = verf.f32 %v2329_v0  ;;  %v2334_v38 = vmul.f32 0.70710677, %v1698_v40  ;;  %v1690_v11 = vadd.f32 %v5850_v36, %v5943_v14 }
 0x11c   : > { %v6038_v53 = vpop.f32.mrf.mxu0  ;;  %3899 = vst.msk [vmem:[%s5914_s10 + $0x1b8] sm:$0xf] %vm3788_vm1, %v4581_v31  ;;  %5150 = verf.f32 %v2234_v44  ;;  %v1301_v61 = vadd.f32 %v5950_v25, %v5850_v36  ;;  %v6054_v62 = vadd.f32 %v5952_v29, %v5850_v36  ;;  %v2720_v27 = vadd.f32 1.0, %v5141_v60 }
 0x11d   : > { %v6040_v1 = vpop.f32.mrf.mxu1  ;;  %v4479_v13 = vpack.c.bf16 %v2816_v56, %v2816_v56  ;;  %v2035_v6 = vmul.f32 0.5, %v5963_v43  ;;  %5152 = verf.f32 %v2334_v38  ;;  %v2135_v7 = vmul.f32 0.5, %v5989_v2 }
 0x11e   : > { %v6056_v63 = vpop.f32.mrf.mxu0  ;;  %v2033_v14 = vmul.f32 0.5, %v5993_v3  ;;  %v2232_v8 = vmul.f32 0.70710677, %v1290_v59  ;;  %v2332_v48 = vmul.f32 0.70710677, %v1690_v11  ;;  %v2916_v29 = vmul.f32 %v2720_v27, %v2132_v52  ;;  %v5143_v43 = vpop.eup %5142 }
 0x11f   : > { %v6058_v41 = vpop.f32.mrf.mxu1  ;;  %3797 = vst.msk [vmem:[%s5914_s10 + $0x20] sm:$0xf] %vm3788_vm1, %v4479_v13  ;;  %v6069_v9 = vmul.f32 0.5, %v1677_v32  ;;  %v2235_v54 = vmul.f32 0.70710677, %v1301_v61  ;;  %v1293_v2 = vadd.f32 %v5850_v36, %v5965_v46  ;;  %v6076_v3 = vadd.f32 %v5850_v36, %v5967_v47 }
 0x120   : > { %v6063_v25 = vpop.f32.mrf.mxu0  ;;  %v2335_v10 = vmul.f32 0.70710677, %v6054_v62  ;;  %5154 = verf.f32 %v2232_v8  ;;  %v6080_v12 = vadd.f32 %v5976_v57, %v5850_v36  ;;  %v4579_v20 = vpack.c.bf16 %v2916_v29, %v2916_v29 }
 0x121   : > { %v6065_v45 = vpop.f32.mrf.mxu1  ;;  %v2623_v18 = vadd.f32 1.0, %v5143_v43  ;;  %5156 = verf.f32 %v2332_v48  ;;  %v6088_v22 = vadd.f32 %v5978_v58, %v5850_v36  ;;  %v2038_v46 = vmul.f32 0.5, %v1298_v37 }
 0x122   : > { %v6082_v17 = vpop.f32.mrf.mxu0  ;;  %v6090_v23 = vmul.f32 0.5, %v1698_v40  ;;  %5158 = verf.f32 %v2235_v54  ;;  %v2233_v47 = vmul.f32 0.70710677, %v1293_v2  ;;  %v5145_v28 = vpop.eup %5144  ;;  %3897 = vst.msk [vmem:[%s5914_s10 + $0x1b0] sm:$0xf] %vm3788_vm1, %v4579_v20  ;;  %v6098_v24 = vmul.f32 0.5, %v1290_v59 }
 0x123   : > { %v6084_v5 = vpop.f32.mrf.mxu1  ;;  %v2819_v35 = vmul.f32 %v2623_v18, %v2035_v6  ;;  %5160 = verf.f32 %v2335_v10  ;;  %v2333_v32 = vmul.f32 0.70710677, %v6076_v3  ;;  %v2723_v58 = vadd.f32 1.0, %v5145_v28 }
 0x124   : > { %v6092_v33 = vpop.f32.mrf.mxu0  ;;  %v6101_v39 = vmul.f32 0.5, %v1690_v11  ;;  %5162 = verf.f32 %v2233_v47  ;;  %v2238_v37 = vmul.f32 0.70710677, %v6080_v12  ;;  %v2338_v55 = vmul.f32 0.70710677, %v6088_v22 }
 0x125   : > { %v6094_v57 = vpop.f32.mrf.mxu1  ;;  %v5147_v40 = vpop.eup %5146  ;;  %v4482_v50 = vpack.c.bf16 %v2819_v35, %v2819_v35  ;;  %5164 = verf.f32 %v2333_v32  ;;  %v1306_v51 = vadd.f32 %v5850_v36, %v5995_v4  ;;  %v2919_v0 = vmul.f32 %v2723_v58, %v2135_v7 }
 0x126   : > { %v6104_v21 = vpop.f32.mrf.mxu0  ;;  %v2621_v31 = vadd.f32 1.0, %v5147_v40  ;;  %5166 = verf.f32 %v2238_v37  ;;  %v6113_v52 = vadd.f32 %v5850_v36, %v5997_v42  ;;  %v6121_v38 = vmul.f32 0.5, %v1301_v61 }
 0x127   : > { %v6106_v26 = vpop.f32.mrf.mxu1  ;;  %3800 = vst.msk [vmem:[%s5914_s10 + $0x2c] sm:$0xf] %vm3788_vm1, %v4482_v50  ;;  %5168 = verf.f32 %v2338_v55  ;;  %v2236_v59 = vmul.f32 0.70710677, %v1306_v51  ;;  %v6125_v4 = vadd.f32 %v6006_v15, %v5850_v36  ;;  %v4582_v11 = vpack.c.bf16 %v2919_v0, %v2919_v0 }
 0x128   : > { %v6115_v44 = vpop.f32.mrf.mxu0  ;;  %v5149_v60 = vpop.eup %5148  ;;  %v2817_v13 = vmul.f32 %v2621_v31, %v2033_v14  ;;  %v6128_v42 = vmul.f32 0.5, %v6054_v62  ;;  %v2336_v27 = vmul.f32 0.70710677, %v6113_v52  ;;  %v6135_v48 = vmul.f32 0.5, %v1293_v2 }
 0x129   : > { %v6117_v56 = vpop.f32.mrf.mxu1  ;;  %v5151_v61 = vpop.eup %5150  ;;  %v2721_v8 = vadd.f32 1.0, %v5149_v60  ;;  %5170 = verf.f32 %v2236_v59  ;;  %v2239_v15 = vmul.f32 0.70710677, %v6125_v4  ;;  %3900 = vst.msk [vmem:[%s5914_s10 + $0x1bc] sm:$0xf] %vm3788_vm1, %v4582_v11  ;;  %v6142_v54 = vadd.f32 %v6008_v16, %v5850_v36 }
 0x12a   : > { %v6131_v6 = vpop.f32.mrf.mxu0  ;;  %v5153_v29 = vpop.eup %5152  ;;  %v4480_v14 = vpack.c.bf16 %v2817_v13, %v2817_v13  ;;  %v2626_v62 = vadd.f32 1.0, %v5151_v61  ;;  %5172 = verf.f32 %v2336_v27  ;;  %v6149_v2 = vadd.f32 %v5850_v36, %v6016_v19 }
 0x12b   : > { %v6133_v7 = vpop.f32.mrf.mxu1  ;;  %v2917_v43 = vmul.f32 %v2721_v8, %v6069_v9  ;;  %v2726_v20 = vadd.f32 1.0, %v5153_v29  ;;  %5174 = verf.f32 %v2239_v15  ;;  %v2137_v47 = vmul.f32 0.5, %v6076_v3 }
 0x12c   : > { %v6144_v10 = vpop.f32.mrf.mxu0  ;;  %3798 = vst.msk [vmem:[%s5914_s10 + $0x24] sm:$0xf] %vm3788_vm1, %v4480_v14  ;;  %v2822_v18 = vmul.f32 %v2626_v62, %v2038_v46  ;;  %v2339_v28 = vmul.f32 0.70710677, %v6142_v54  ;;  %v6157_v16 = vadd.f32 %v5850_v36, %v6018_v34  ;;  %v2042_v46 = vmul.f32 0.5, %v6080_v12 }
 0x12d   : > { %v6159_v35 = vpop.f32.mrf.mxu1  ;;  %v5155_v32 = vpop.eup %5154  ;;  %v4580_v58 = vpack.c.bf16 %v2917_v43, %v2917_v43  ;;  %v2922_v19 = vmul.f32 %v2726_v20, %v6090_v23  ;;  %v2237_v3 = vmul.f32 0.70710677, %v6149_v2  ;;  %v2142_v55 = vmul.f32 0.5, %v6088_v22 }
 0x12e   : > { %v6161_v9 = vpop.f32.mrf.mxu0  ;;  %v5157_v37 = vpop.eup %5156  ;;  %v4485_v40 = vpack.c.bf16 %v2822_v18, %v2822_v18  ;;  %v2624_v50 = vadd.f32 1.0, %v5155_v32  ;;  %5176 = verf.f32 %v2339_v28  ;;  %v2337_v23 = vmul.f32 0.70710677, %v6157_v16 }
 0x12f   : > { %v5159_v0 = vpop.eup %5158  ;;  %3898 = vst.msk [vmem:[%s5914_s10 + $0x1b4] sm:$0xf] %vm3788_vm1, %v4580_v58  ;;  %v4585_v31 = vpack.c.bf16 %v2922_v19, %v2922_v19  ;;  %v2724_v59 = vadd.f32 1.0, %v5157_v37  ;;  %5178 = verf.f32 %v2237_v3  ;;  %v2040_v13 = vmul.f32 0.5, %v1306_v51  ;;  %v6179_v27 = vpop.f32.mrf.mxu1 }
 0x130   : > { %v6167_v34 = vpop.f32.mrf.mxu0  ;;  %v5161_v12 = vpop.eup %5160  ;;  %3803 = vst.msk [vmem:[%s5914_s10 + $0x38] sm:$0xf] %vm3788_vm1, %v4485_v40  ;;  %v2820_v60 = vmul.f32 %v2624_v50, %v6098_v24  ;;  %v2627_v11 = vadd.f32 1.0, %v5159_v0  ;;  %v6177_v22 = vadd.f32 %v6028_v30, %v5850_v36  ;;  %5180 = verf.f32 %v2337_v23 }
 0x131   : > { %v5163_v8 = vpop.eup %5162  ;;  %3903 = vst.msk [vmem:[%s5914_s10 + $0x1c8] sm:$0xf] %vm3788_vm1, %v4585_v31  ;;  %v2920_v15 = vmul.f32 %v2724_v59, %v6101_v39  ;;  %v2727_v29 = vadd.f32 1.0, %v5161_v12  ;;  %v6188_v24 = vadd.f32 %v6030_v49, %v5850_v36  ;;  %v6193_v43 = vadd.f32 %v5850_v36, %v6038_v53  ;;  %v6201_v53 = vpop.f32.mrf.mxu1 }
 0x132   : > { %v6181_v61 = vpop.f32.mrf.mxu0  ;;  %v5165_v51 = vpop.eup %5164  ;;  %v4483_v14 = vpack.c.bf16 %v2820_v60, %v2820_v60  ;;  %v2823_v30 = vmul.f32 %v2627_v11, %v6121_v38  ;;  %v2625_v62 = vadd.f32 1.0, %v5163_v8  ;;  %v2242_v32 = vmul.f32 0.70710677, %v6177_v22 }
 0x133   : > { %v5167_v20 = vpop.eup %5166  ;;  %v4583_v18 = vpack.c.bf16 %v2920_v15, %v2920_v15  ;;  %v2923_v39 = vmul.f32 %v2727_v29, %v6128_v42  ;;  %v2725_v28 = vadd.f32 1.0, %v5165_v51  ;;  %v2140_v3 = vmul.f32 0.5, %v6113_v52  ;;  %v6218_v29 = vpop.f32.mrf.mxu1 }
 0x134   : > { %v5169_v49 = vpop.eup %5168  ;;  %3801 = vst.msk [vmem:[%s5914_s10 + $0x30] sm:$0xf] %vm3788_vm1, %v4483_v14  ;;  %v4486_v58 = vpack.c.bf16 %v2823_v30, %v2823_v30  ;;  %v2821_v38 = vmul.f32 %v2625_v62, %v6135_v48  ;;  %v2630_v19 = vadd.f32 1.0, %v5167_v20  ;;  %v6203_v37 = vpop.f32.mrf.mxu0  ;;  %5182 = verf.f32 %v2242_v32 }
 0x135   : > { %3901 = vst.msk [vmem:[%s5914_s10 + $0x1c0] sm:$0xf] %vm3788_vm1, %v4583_v18  ;;  %v4586_v42 = vpack.c.bf16 %v2923_v39, %v2923_v39  ;;  %v2921_v40 = vmul.f32 %v2725_v28, %v2137_v47  ;;  %v2730_v50 = vadd.f32 1.0, %v5169_v49  ;;  %v2043_v59 = vmul.f32 0.5, %v6125_v4 }
 0x136   : > { %v5171_v0 = vpop.eup %5170  ;;  %3804 = vst.msk [vmem:[%s5914_s10 + $0x3c] sm:$0xf] %vm3788_vm1, %v4486_v58  ;;  %v4484_v31 = vpack.c.bf16 %v2821_v38, %v2821_v38  ;;  %v2826_v48 = vmul.f32 %v2630_v19, %v2042_v46  ;;  %v2342_v52 = vmul.f32 0.70710677, %v6188_v24  ;;  %v2240_v11 = vmul.f32 0.70710677, %v6193_v43  ;;  %v6220_v51 = vpop.f32.mrf.mxu0 }
 0x137   : > { %v5173_v23 = vpop.eup %5172  ;;  %3904 = vst.msk [vmem:[%s5914_s10 + $0x1cc] sm:$0xf] %vm3788_vm1, %v4586_v42  ;;  %v4584_v12 = vpack.c.bf16 %v2921_v40, %v2921_v40  ;;  %v2926_v60 = vmul.f32 %v2730_v50, %v2142_v55  ;;  %v2628_v47 = vadd.f32 1.0, %v5171_v0  ;;  %v1722_v4 = vadd.f32 %v5850_v36, %v6040_v1  ;;  %v6241_v19 = vpop.f32.mrf.mxu1 }
 0x138   : > { %v5175_v8 = vpop.eup %5174  ;;  %3802 = vst.msk [vmem:[%s5914_s10 + $0x34] sm:$0xf] %vm3788_vm1, %v4484_v31  ;;  %v4489_v15 = vpack.c.bf16 %v2826_v48, %v2826_v48  ;;  %v2728_v46 = vadd.f32 1.0, %v5173_v23  ;;  %5184 = verf.f32 %v2342_v52  ;;  %v6228_v18 = vadd.f32 %v6056_v63, %v5850_v36 }
 0x139   : > { %3902 = vst.msk [vmem:[%s5914_s10 + $0x1c4] sm:$0xf] %vm3788_vm1, %v4584_v12  ;;  %v4589_v55 = vpack.c.bf16 %v2926_v60, %v2926_v60  ;;  %v2824_v14 = vmul.f32 %v2628_v47, %v2040_v13  ;;  %v2631_v30 = vadd.f32 1.0, %v5175_v8  ;;  %5186 = verf.f32 %v2240_v11  ;;  %v6264_v60 = vpop.f32.mrf.mxu1 }
 0x13a   : > { %3807 = vst.msk [vmem:[%s5914_s10 + $0x48] sm:$0xf] %vm3788_vm1, %v4489_v15  ;;  %v2924_v62 = vmul.f32 %v2728_v46, %v2140_v3  ;;  %v2340_v20 = vmul.f32 0.70710677, %v1722_v4  ;;  %v6234_v13 = vadd.f32 %v6058_v41, %v5850_v36  ;;  %v6238_v32 = vadd.f32 %v5850_v36, %v6063_v25  ;;  %v6243_v3 = vpop.f32.mrf.mxu0 }
 0x13b   : > { %v5177_v1 = vpop.eup %5176  ;;  %3907 = vst.msk [vmem:[%s5914_s10 + $0x1d8] sm:$0xf] %vm3788_vm1, %v4589_v55  ;;  %v4487_v39 = vpack.c.bf16 %v2824_v14, %v2824_v14  ;;  %v2827_v28 = vmul.f32 %v2631_v30, %v2043_v59  ;;  %v2143_v38 = vmul.f32 0.5, %v6142_v54  ;;  %v2041_v41 = vmul.f32 0.5, %v6149_v2 }
 0x13c   : > { %v5179_v49 = vpop.eup %5178  ;;  %v4587_v58 = vpack.c.bf16 %v2924_v62, %v2924_v62  ;;  %v2731_v63 = vadd.f32 1.0, %v5177_v1  ;;  %5188 = verf.f32 %v2340_v20  ;;  %v2243_v25 = vmul.f32 0.70710677, %v6228_v18  ;;  %v6266_v47 = vpop.f32.mrf.mxu0 }
 0x13d   : > { %3805 = vst.msk [vmem:[%s5914_s10 + $0x40] sm:$0xf] %vm3788_vm1, %v4487_v39  ;;  %v4490_v42 = vpack.c.bf16 %v2827_v28, %v2827_v28  ;;  %v2629_v40 = vadd.f32 1.0, %v5179_v49  ;;  %v5181_v50 = vpop.eup %5180  ;;  %v2141_v54 = vmul.f32 0.5, %v6157_v16  ;;  %v2343_v31 = vmul.f32 0.70710677, %v6234_v13  ;;  %v6288_v1 = vpop.f32.mrf.mxu1 }
 0x13e   : > { %3905 = vst.msk [vmem:[%s5914_s10 + $0x1d0] sm:$0xf] %vm3788_vm1, %v4587_v58  ;;  %v2927_v0 = vmul.f32 %v2731_v63, %v2143_v38  ;;  %v2241_v48 = vmul.f32 0.70710677, %v6238_v32  ;;  %v2729_v52 = vadd.f32 1.0, %v5181_v50  ;;  %5190 = verf.f32 %v2243_v25  ;;  %v6290_v39 = vpop.f32.mrf.mxu0 }
 0x13f   : > { %3808 = vst.msk [vmem:[%s5914_s10 + $0x4c] sm:$0xf] %vm3788_vm1, %v4490_v42  ;;  %v2825_v59 = vmul.f32 %v2629_v40, %v2041_v41  ;;  %v1725_v2 = vadd.f32 %v5850_v36, %v6065_v45  ;;  %5192 = verf.f32 %v2343_v31  ;;  %v6260_v12 = vadd.f32 %v6082_v17, %v5850_v36  ;;  %v6304_v50 = vpop.f32.mrf.mxu1 }
 0x140   : > { %v4590_v23 = vpack.c.bf16 %v2927_v0, %v2927_v0  ;;  %v1746_v16 = vadd.f32 %v6084_v5, %v5850_v36  ;;  %v2925_v8 = vmul.f32 %v2729_v52, %v2141_v54  ;;  %v2046_v15 = vmul.f32 0.5, %v6177_v22  ;;  %v6306_v0 = vpop.f32.mrf.mxu0 }
 0x141   : > { %v4488_v11 = vpack.c.bf16 %v2825_v59, %v2825_v59  ;;  %5194 = verf.f32 %v2241_v48  ;;  %v5183_v45 = vpop.eup %5182  ;;  %v2146_v46 = vmul.f32 0.5, %v6188_v24  ;;  %v2044_v17 = vmul.f32 0.5, %v6193_v43 }
 0x142   : > { %3908 = vst.msk [vmem:[%s5914_s10 + $0x1dc] sm:$0xf] %vm3788_vm1, %v4590_v23  ;;  %v2341_v55 = vmul.f32 0.70710677, %v1725_v2  ;;  %v2246_v5 = vmul.f32 0.70710677, %v6260_v12  ;;  %v4588_v14 = vpack.c.bf16 %v2925_v8, %v2925_v8  ;;  %v6278_v22 = vadd.f32 %v5850_v36, %v6092_v33 }
 0x143   : > { %3806 = vst.msk [vmem:[%s5914_s10 + $0x44] sm:$0xf] %vm3788_vm1, %v4488_v11  ;;  %v2634_v30 = vadd.f32 1.0, %v5183_v45  ;;  %v2346_v62 = vmul.f32 0.70710677, %v1746_v16  ;;  %v2144_v20 = vmul.f32 0.5, %v1722_v4  ;;  %v6282_v24 = vadd.f32 %v5850_v36, %v6094_v57 }
 0x144   : > { %5196 = verf.f32 %v2341_v55  ;;  %v6286_v43 = vadd.f32 %v6104_v21, %v5850_v36  ;;  %3906 = vst.msk [vmem:[%s5914_s10 + $0x1d4] sm:$0xf] %vm3788_vm1, %v4588_v14  ;;  %v2244_v33 = vmul.f32 0.70710677, %v6278_v22  ;;  %v6297_v4 = vadd.f32 %v6106_v26, %v5850_v36  ;;  %v6330_v55 = vpop.f32.mrf.mxu0 }
 0x145   : > { %v5185_v28 = vpop.eup %5184  ;;  %v2830_v49 = vmul.f32 %v2634_v30, %v2046_v15  ;;  %5198 = verf.f32 %v2246_v5  ;;  %v2047_v21 = vmul.f32 0.5, %v6228_v18  ;;  %v2344_v38 = vmul.f32 0.70710677, %v6282_v24  ;;  %v6335_v5 = vld [vmem:[#allocation4] ss:$0 sm:$0xff] }
 0x146   : > { %v5187_v57 = vpop.eup %5186  ;;  %v2734_v58 = vadd.f32 1.0, %v5185_v28  ;;  %5200 = verf.f32 %v2346_v62  ;;  %v2147_v41 = vmul.f32 0.5, %v6234_v13  ;;  %v2045_v25 = vmul.f32 0.5, %v6238_v32 }
 0x147   : > { %v4493_v63 = vpack.c.bf16 %v2830_v49, %v2830_v49  ;;  %v2632_v42 = vadd.f32 1.0, %v5187_v57  ;;  %5202 = verf.f32 %v2244_v33  ;;  %v2247_v26 = vmul.f32 0.70710677, %v6286_v43 }
 0x148   : > { %v2930_v40 = vmul.f32 %v2734_v58, %v2146_v46  ;;  %5204 = verf.f32 %v2344_v38  ;;  %v2347_v31 = vmul.f32 0.70710677, %v6297_v4  ;;  %v6313_v13 = vadd.f32 %v5850_v36, %v6115_v44 }
 0x149   : > { %v5189_v18 = vpop.eup %5188  ;;  %3811 = vst.msk [vmem:[%s5914_s10 + $0x58] sm:$0xf] %vm3788_vm1, %v4493_v63  ;;  %v2828_v54 = vmul.f32 %v2632_v42, %v2044_v17  ;;  %v6317_v32 = vadd.f32 %v5850_v36, %v6117_v56  ;;  %5206 = verf.f32 %v2247_v26  ;;  %v6321_v52 = vadd.f32 %v6131_v6, %v5850_v36  ;;  %v6328_v17 = vpop.f32.mrf.mxu1 }
 0x14a   : > { %v4593_v48 = vpack.c.bf16 %v2930_v40, %v2930_v40  ;;  %v2732_v59 = vadd.f32 1.0, %v5189_v18  ;;  %v2145_v11 = vmul.f32 0.5, %v1725_v2  ;;  %5208 = verf.f32 %v2347_v31  ;;  %v6353_v63 = vpop.f32.mrf.mxu0 }
 0x14b   : > { %v4491_v23 = vpack.c.bf16 %v2828_v54, %v2828_v54  ;;  %v2245_v8 = vmul.f32 0.70710677, %v6313_v13  ;;  %v5191_v15 = vpop.eup %5190  ;;  %v2050_v56 = vmul.f32 0.5, %v6260_v12  ;;  %v2150_v45 = vmul.f32 0.5, %v1746_v16  ;;  %v6351_v38 = vpop.f32.mrf.mxu1 }
 0x14c   : > { %3911 = vst.msk [vmem:[%s5914_s10 + $0x1e8] sm:$0xf] %vm3788_vm1, %v4593_v48  ;;  %v2928_v44 = vmul.f32 %v2732_v59, %v2144_v20  ;;  %v2345_v46 = vmul.f32 0.70710677, %v6317_v32  ;;  %v5193_v36 = vpop.eup %5192  ;;  %v2635_v6 = vadd.f32 1.0, %v5191_v15  ;;  %v6339_v12 = vadd.f32 %v6335_v5, %v6133_v7  ;;  %v6376_v15 = vpop.f32.mrf.mxu0 }
 0x14d   : > { %3809 = vst.msk [vmem:[%s5914_s10 + $0x50] sm:$0xf] %vm3788_vm1, %v4491_v23  ;;  %5210 = verf.f32 %v2245_v8  ;;  %v2250_v2 = vmul.f32 0.70710677, %v6321_v52  ;;  %v2735_v30 = vadd.f32 1.0, %v5193_v36  ;;  %v6343_v62 = vadd.f32 %v6335_v5, %v6144_v10  ;;  %v6374_v8 = vpop.f32.mrf.mxu1 }
 0x14e   : > { %v5195_v16 = vpop.eup %5194  ;;  %v4591_v14 = vpack.c.bf16 %v2928_v44, %v2928_v44  ;;  %5212 = verf.f32 %v2345_v46  ;;  %v2831_v20 = vmul.f32 %v2635_v6, %v2047_v21  ;;  %v2048_v49 = vmul.f32 0.5, %v6278_v22 }
 0x14f   : > { %v2633_v28 = vadd.f32 1.0, %v5195_v16  ;;  %5214 = verf.f32 %v2250_v2  ;;  %v2931_v33 = vmul.f32 %v2735_v30, %v2147_v41  ;;  %v2148_v57 = vmul.f32 0.5, %v6282_v24 }
 0x150   : > { %3909 = vst.msk [vmem:[%s5914_s10 + $0x1e0] sm:$0xf] %vm3788_vm1, %v4591_v14  ;;  %v2350_v7 = vmul.f32 0.70710677, %v6339_v12  ;;  %v2248_v58 = vmul.f32 0.70710677, %v6343_v62  ;;  %v4494_v21 = vpack.c.bf16 %v2831_v20, %v2831_v20  ;;  %v6357_v22 = vadd.f32 %v6335_v5, %v6159_v35 }
 0x151   : > { %v5197_v10 = vpop.eup %5196  ;;  %v2829_v42 = vmul.f32 %v2633_v28, %v2045_v25  ;;  %v6361_v24 = vadd.f32 %v6335_v5, %v6161_v9  ;;  %v4594_v40 = vpack.c.bf16 %v2931_v33, %v2931_v33  ;;  %v2051_v18 = vmul.f32 0.5, %v6286_v43 }
 0x152   : > { %v5199_v41 = vpop.eup %5198  ;;  %v2733_v26 = vadd.f32 1.0, %v5197_v10  ;;  %5216 = verf.f32 %v2350_v7  ;;  %3812 = vst.msk [vmem:[%s5914_s10 + $0x5c] sm:$0xf] %vm3788_vm1, %v4494_v21  ;;  %v6368_v35 = vadd.f32 %v6335_v5, %v6179_v27  ;;  %v2151_v23 = vmul.f32 0.5, %v6297_v4  ;;  %v6389_v7 = vpop.f32.mrf.mxu1 }
 0x153   : > { %v5201_v54 = vpop.eup %5200  ;;  %v4492_v31 = vpack.c.bf16 %v2829_v42, %v2829_v42  ;;  %v2638_v25 = vadd.f32 1.0, %v5199_v41  ;;  %5218 = verf.f32 %v2248_v58  ;;  %3912 = vst.msk [vmem:[%s5914_s10 + $0x1ec] sm:$0xf] %vm3788_vm1, %v4594_v40  ;;  %v2348_v43 = vmul.f32 0.70710677, %v6357_v22  ;;  %v6391_v58 = vpop.f32.mrf.mxu0 }
 0x154   : > { %v5203_v48 = vpop.eup %5202  ;;  %v2929_v9 = vmul.f32 %v2733_v26, %v2145_v11  ;;  %v2738_v59 = vadd.f32 1.0, %v5201_v54  ;;  %v2049_v36 = vmul.f32 0.5, %v6313_v13  ;;  %v2251_v6 = vmul.f32 0.70710677, %v6361_v24 }
 0x155   : > { %v5205_v44 = vpop.eup %5204  ;;  %3810 = vst.msk [vmem:[%s5914_s10 + $0x54] sm:$0xf] %vm3788_vm1, %v4492_v31  ;;  %v2834_v46 = vmul.f32 %v2638_v25, %v2050_v56  ;;  %v2636_v27 = vadd.f32 1.0, %v5203_v48  ;;  %5220 = verf.f32 %v2348_v43  ;;  %v2351_v20 = vmul.f32 0.70710677, %v6368_v35 }
 0x156   : > { %v4592_v11 = vpack.c.bf16 %v2929_v9, %v2929_v9  ;;  %v2934_v2 = vmul.f32 %v2738_v59, %v2150_v45  ;;  %v2736_v4 = vadd.f32 1.0, %v5205_v44  ;;  %v5207_v16 = vpop.eup %5206  ;;  %5222 = verf.f32 %v2251_v6  ;;  %v6413_v59 = vpop.f32.mrf.mxu1 }
 0x157   : > { %v4497_v14 = vpack.c.bf16 %v2834_v46, %v2834_v46  ;;  %v2832_v30 = vmul.f32 %v2636_v27, %v2048_v49  ;;  %v5209_v28 = vpop.eup %5208  ;;  %v2639_v13 = vadd.f32 1.0, %v5207_v16  ;;  %v6387_v45 = vadd.f32 %v6335_v5, %v6167_v34 }
 0x158   : > { %3910 = vst.msk [vmem:[%s5914_s10 + $0x1e4] sm:$0xf] %vm3788_vm1, %v4592_v11  ;;  %v4597_v56 = vpack.c.bf16 %v2934_v2, %v2934_v2  ;;  %v2932_v33 = vmul.f32 %v2736_v4, %v2148_v57  ;;  %v2739_v10 = vadd.f32 1.0, %v5209_v28  ;;  %5224 = verf.f32 %v2351_v20  ;;  %v6435_v20 = vpop.f32.mrf.mxu1 }
 0x159   : > { %3815 = vst.msk [vmem:[%s5914_s10 + $0x68] sm:$0xf] %vm3788_vm1, %v4497_v14  ;;  %v4495_v49 = vpack.c.bf16 %v2832_v30, %v2832_v30  ;;  %v6397_v21 = vadd.f32 %v6335_v5, %v6201_v53  ;;  %v2835_v34 = vmul.f32 %v2639_v13, %v2051_v18  ;;  %v2149_v41 = vmul.f32 0.5, %v6317_v32 }
 0x15a   : > { %v5211_v57 = vpop.eup %5210  ;;  %3915 = vst.msk [vmem:[%s5914_s10 + $0x1f8] sm:$0xf] %vm3788_vm1, %v4597_v56  ;;  %v4595_v42 = vpack.c.bf16 %v2932_v33, %v2932_v33  ;;  %v2249_v40 = vmul.f32 0.70710677, %v6387_v45  ;;  %v2935_v54 = vmul.f32 %v2739_v10, %v2151_v23  ;;  %v2054_v25 = vmul.f32 0.5, %v6321_v52  ;;  %v6415_v23 = vpop.f32.mrf.mxu0 }
 0x15b   : > { %v5213_v26 = vpop.eup %5212  ;;  %3813 = vst.msk [vmem:[%s5914_s10 + $0x60] sm:$0xf] %vm3788_vm1, %v4495_v49  ;;  %v2637_v31 = vadd.f32 1.0, %v5211_v57  ;;  %v2349_v53 = vmul.f32 0.70710677, %v6397_v21  ;;  %v4498_v9 = vpack.c.bf16 %v2835_v34, %v2835_v34  ;;  %v6411_v32 = vadd.f32 %v6335_v5, %v6181_v61 }
 0x15c   : > { %v5215_v48 = vpop.eup %5214  ;;  %3913 = vst.msk [vmem:[%s5914_s10 + $0x1f0] sm:$0xf] %vm3788_vm1, %v4595_v42  ;;  %v2737_v18 = vadd.f32 1.0, %v5213_v26  ;;  %5226 = verf.f32 %v2249_v40  ;;  %v4598_v43 = vpack.c.bf16 %v2935_v54, %v2935_v54  ;;  %v6422_v6 = vadd.f32 %v6335_v5, %v6218_v29  ;;  %v6437_v28 = vpop.f32.mrf.mxu0 }
 0x15d   : > { %v2833_v44 = vmul.f32 %v2637_v31, %v2049_v36  ;;  %v2642_v52 = vadd.f32 1.0, %v5215_v48  ;;  %5228 = verf.f32 %v2349_v53  ;;  %3816 = vst.msk [vmem:[%s5914_s10 + $0x6c] sm:$0xf] %vm3788_vm1, %v4498_v9  ;;  %v2254_v27 = vmul.f32 0.70710677, %v6411_v32  ;;  %v6462_v54 = vpop.f32.mrf.mxu1 }
 0x15e   : > { %v2933_v46 = vmul.f32 %v2737_v18, %v2149_v41  ;;  %3916 = vst.msk [vmem:[%s5914_s10 + $0x1fc] sm:$0xf] %vm3788_vm1, %v4598_v43  ;;  %v6428_v36 = vadd.f32 %v6335_v5, %v6203_v37  ;;  %v6432_v4 = vadd.f32 %v6335_v5, %v6241_v19  ;;  %v2154_v30 = vmul.f32 0.5, %v6339_v12  ;;  %v6464_v31 = vpop.f32.mrf.mxu0 }
 0x15f   : > { %v5217_v61 = vpop.eup %5216  ;;  %v4496_v11 = vpack.c.bf16 %v2833_v44, %v2833_v44  ;;  %v2838_v2 = vmul.f32 %v2642_v52, %v2054_v25  ;;  %5230 = verf.f32 %v2254_v27  ;;  %v2052_v37 = vmul.f32 0.5, %v6343_v62 }
 0x160   : > { %v5219_v16 = vpop.eup %5218  ;;  %v4596_v14 = vpack.c.bf16 %v2933_v46, %v2933_v46  ;;  %v2742_v29 = vadd.f32 1.0, %v5217_v61  ;;  %v2354_v19 = vmul.f32 0.70710677, %v6422_v6  ;;  %v2152_v12 = vmul.f32 0.5, %v6357_v22  ;;  %v6484_v61 = vpop.f32.mrf.mxu1 }
 0x161   : > { %3814 = vst.msk [vmem:[%s5914_s10 + $0x64] sm:$0xf] %vm3788_vm1, %v4496_v11  ;;  %v4501_v56 = vpack.c.bf16 %v2838_v2, %v2838_v2  ;;  %v2640_v33 = vadd.f32 1.0, %v5219_v16  ;;  %v2252_v49 = vmul.f32 0.70710677, %v6428_v36  ;;  %v6452_v62 = vadd.f32 %v6335_v5, %v6220_v51  ;;  %v6486_v11 = vpop.f32.mrf.mxu0 }
 0x162   : > { %3914 = vst.msk [vmem:[%s5914_s10 + $0x1f4] sm:$0xf] %vm3788_vm1, %v4596_v14  ;;  %v2938_v13 = vmul.f32 %v2742_v29, %v2154_v30  ;;  %v2352_v10 = vmul.f32 0.70710677, %v6432_v4  ;;  %v5221_v57 = vpop.eup %5220  ;;  %5232 = verf.f32 %v2354_v19  ;;  %v6456_v34 = vadd.f32 %v6335_v5, %v6264_v60 }
 0x163   : > { %3819 = vst.msk [vmem:[%s5914_s10 + $0x78] sm:$0xf] %vm3788_vm1, %v4501_v56  ;;  %v2836_v42 = vmul.f32 %v2640_v33, %v2052_v37  ;;  %v5223_v41 = vpop.eup %5222  ;;  %v2740_v40 = vadd.f32 1.0, %v5221_v57  ;;  %5234 = verf.f32 %v2252_v49  ;;  %v6460_v26 = vadd.f32 %v6335_v5, %v6243_v3  ;;  %v6502_v49 = vpop.f32.mrf.mxu1 }
 0x164   : > { %v4601_v22 = vpack.c.bf16 %v2938_v13, %v2938_v13  ;;  %v2055_v51 = vmul.f32 0.5, %v6361_v24  ;;  %v2643_v53 = vadd.f32 1.0, %v5223_v41  ;;  %5236 = verf.f32 %v2352_v10 }
 0x165   : > { %v4499_v25 = vpack.c.bf16 %v2836_v42, %v2836_v42  ;;  %v5225_v60 = vpop.eup %5224  ;;  %v2936_v48 = vmul.f32 %v2740_v40, %v2152_v12  ;;  %v2155_v9 = vmul.f32 0.5, %v6368_v35  ;;  %v2255_v18 = vmul.f32 0.70710677, %v6452_v62 }
 0x166   : > { %3919 = vst.msk [vmem:[%s5914_s10 + $0x208] sm:$0xf] %vm3788_vm1, %v4601_v22  ;;  %v2355_v3 = vmul.f32 0.70710677, %v6456_v34  ;;  %v2839_v43 = vmul.f32 %v2643_v53, %v2055_v51  ;;  %v2743_v44 = vadd.f32 1.0, %v5225_v60  ;;  %v2053_v52 = vmul.f32 0.5, %v6387_v45 }
 0x167   : > { %3817 = vst.msk [vmem:[%s5914_s10 + $0x70] sm:$0xf] %vm3788_vm1, %v4499_v25  ;;  %v2253_v24 = vmul.f32 0.70710677, %v6460_v26  ;;  %v4599_v46 = vpack.c.bf16 %v2936_v48, %v2936_v48  ;;  %5238 = verf.f32 %v2255_v18  ;;  %v6478_v27 = vadd.f32 %v6335_v5, %v6288_v1  ;;  %v6528_v18 = vpop.f32.mrf.mxu1 }
 0x168   : > { %v6482_v35 = vadd.f32 %v6335_v5, %v6266_v47  ;;  %v4502_v16 = vpack.c.bf16 %v2839_v43, %v2839_v43  ;;  %v2939_v45 = vmul.f32 %v2743_v44, %v2155_v9  ;;  %5240 = verf.f32 %v2355_v3 }
 0x169   : > { %v5227_v2 = vpop.eup %5226  ;;  %v6490_v14 = vadd.f32 %v6335_v5, %v6304_v50  ;;  %3917 = vst.msk [vmem:[%s5914_s10 + $0x200] sm:$0xf] %vm3788_vm1, %v4599_v46  ;;  %v2153_v47 = vmul.f32 0.5, %v6397_v21  ;;  %5242 = verf.f32 %v2253_v24  ;;  %v2353_v29 = vmul.f32 0.70710677, %v6478_v27  ;;  %v6504_v21 = vpop.f32.mrf.mxu0 }
 0x16a   : > { %v5229_v30 = vpop.eup %5228  ;;  %v2641_v1 = vadd.f32 1.0, %v5227_v2  ;;  %3820 = vst.msk [vmem:[%s5914_s10 + $0x7c] sm:$0xf] %vm3788_vm1, %v4502_v16  ;;  %v4602_v56 = vpack.c.bf16 %v2939_v45, %v2939_v45  ;;  %v2058_v33 = vmul.f32 0.5, %v6411_v32  ;;  %v2258_v19 = vmul.f32 0.70710677, %v6482_v35 }
 0x16b   : > { %v2741_v37 = vadd.f32 1.0, %v5229_v30  ;;  %v2158_v13 = vmul.f32 0.5, %v6422_v6  ;;  %5244 = verf.f32 %v2353_v29  ;;  %v2358_v12 = vmul.f32 0.70710677, %v6490_v14 }
 0x16c   : > { %v2837_v50 = vmul.f32 %v2641_v1, %v2053_v52  ;;  %v5231_v10 = vpop.eup %5230  ;;  %3920 = vst.msk [vmem:[%s5914_s10 + $0x20c] sm:$0xf] %vm3788_vm1, %v4602_v56  ;;  %5246 = verf.f32 %v2258_v19  ;;  %v6510_v32 = vadd.f32 %v6335_v5, %v6290_v39  ;;  %v6514_v6 = vadd.f32 %v6335_v5, %v6328_v17  ;;  %v6552_v1 = vpop.f32.mrf.mxu1 }
 0x16d   : > { %v2937_v57 = vmul.f32 %v2741_v37, %v2153_v47  ;;  %v2646_v41 = vadd.f32 1.0, %v5231_v10  ;;  %5248 = verf.f32 %v2358_v12  ;;  %v6518_v22 = vadd.f32 %v6335_v5, %v6306_v0  ;;  %v6530_v0 = vpop.f32.mrf.mxu0 }
 0x16e   : > { %v4500_v42 = vpack.c.bf16 %v2837_v50, %v2837_v50  ;;  %v2056_v25 = vmul.f32 0.5, %v6428_v36  ;;  %v2156_v51 = vmul.f32 0.5, %v6432_v4  ;;  %v2256_v39 = vmul.f32 0.70710677, %v6510_v32 }
 0x16f   : > { %v4600_v40 = vpack.c.bf16 %v2937_v57, %v2937_v57  ;;  %v5233_v53 = vpop.eup %5232  ;;  %v2842_v17 = vmul.f32 %v2646_v41, %v2058_v33  ;;  %v2059_v60 = vmul.f32 0.5, %v6452_v62  ;;  %v2356_v48 = vmul.f32 0.70710677, %v6514_v6  ;;  %v6554_v47 = vpop.f32.mrf.mxu0 }
 0x170   : > { %3818 = vst.msk [vmem:[%s5914_s10 + $0x74] sm:$0xf] %vm3788_vm1, %v4500_v42  ;;  %v2259_v9 = vmul.f32 0.70710677, %v6518_v22  ;;  %v5235_v36 = vpop.eup %5234  ;;  %v2746_v4 = vadd.f32 1.0, %v5233_v53  ;;  %5250 = verf.f32 %v2256_v39  ;;  %v6536_v3 = vadd.f32 %v6335_v5, %v6351_v38 }
 0x171   : > { %3918 = vst.msk [vmem:[%s5914_s10 + $0x204] sm:$0xf] %vm3788_vm1, %v4600_v40  ;;  %v6540_v62 = vadd.f32 %v6335_v5, %v6330_v55  ;;  %v5237_v43 = vpop.eup %5236  ;;  %v4505_v44 = vpack.c.bf16 %v2842_v17, %v2842_v17  ;;  %v2644_v52 = vadd.f32 1.0, %v5235_v36  ;;  %5252 = verf.f32 %v2356_v48  ;;  %v6571_v40 = vpop.f32.mrf.mxu1 }
 0x172   : > { %v6544_v24 = vadd.f32 %v6335_v5, %v6374_v8  ;;  %v2942_v46 = vmul.f32 %v2746_v4, %v2158_v13  ;;  %v2744_v2 = vadd.f32 1.0, %v5237_v43  ;;  %v2159_v16 = vmul.f32 0.5, %v6456_v34 }
 0x173   : > { %5254 = verf.f32 %v2259_v9  ;;  %3823 = vst.msk [vmem:[%s5914_s10 + $0x88] sm:$0xf] %vm3788_vm1, %v4505_v44  ;;  %v2840_v38 = vmul.f32 %v2644_v52, %v2056_v25  ;;  %v2057_v45 = vmul.f32 0.5, %v6460_v26  ;;  %v2359_v55 = vmul.f32 0.70710677, %v6536_v3 }
 0x174   : > { %v2257_v30 = vmul.f32 0.70710677, %v6540_v62  ;;  %v5239_v8 = vpop.eup %5238  ;;  %v4605_v29 = vpack.c.bf16 %v2942_v46, %v2942_v46  ;;  %v2940_v56 = vmul.f32 %v2744_v2, %v2156_v51  ;;  %v2157_v34 = vmul.f32 0.5, %v6478_v27  ;;  %v6590_v2 = vpop.f32.mrf.mxu1 }
 0x175   : > { %v2357_v37 = vmul.f32 0.70710677, %v6544_v24  ;;  %v5241_v33 = vpop.eup %5240  ;;  %v4503_v19 = vpack.c.bf16 %v2840_v38, %v2840_v38  ;;  %v2647_v26 = vadd.f32 1.0, %v5239_v8  ;;  %5256 = verf.f32 %v2359_v55 }
 0x176   : > { %v6560_v50 = vadd.f32 %v6335_v5, %v6353_v63  ;;  %v5243_v13 = vpop.eup %5242  ;;  %3923 = vst.msk [vmem:[%s5914_s10 + $0x218] sm:$0xf] %vm3788_vm1, %v4605_v29  ;;  %v4603_v12 = vpack.c.bf16 %v2940_v56, %v2940_v56  ;;  %v2747_v10 = vadd.f32 1.0, %v5241_v33  ;;  %5258 = verf.f32 %v2257_v30  ;;  %v6573_v63 = vpop.f32.mrf.mxu0 }
 0x177   : > { %v6566_v27 = vadd.f32 %v6335_v5, %v6389_v7  ;;  %3821 = vst.msk [vmem:[%s5914_s10 + $0x80] sm:$0xf] %vm3788_vm1, %v4503_v19  ;;  %v2843_v57 = vmul.f32 %v2647_v26, %v2059_v60  ;;  %v2645_v42 = vadd.f32 1.0, %v5243_v13  ;;  %v2062_v41 = vmul.f32 0.5, %v6482_v35 }
 0x178   : > { %5260 = verf.f32 %v2357_v37  ;;  %v5245_v25 = vpop.eup %5244  ;;  %3921 = vst.msk [vmem:[%s5914_s10 + $0x210] sm:$0xf] %vm3788_vm1, %v4603_v12  ;;  %v2943_v51 = vmul.f32 %v2747_v10, %v2159_v16  ;;  %v2162_v39 = vmul.f32 0.5, %v6490_v14  ;;  %v2262_v7 = vmul.f32 0.70710677, %v6560_v50  ;;  %v6592_v16 = vpop.f32.mrf.mxu0 }
 0x179   : > { %v2362_v53 = vmul.f32 0.70710677, %v6566_v27  ;;  %v5247_v17 = vpop.eup %5246  ;;  %v4506_v60 = vpack.c.bf16 %v2843_v57, %v2843_v57  ;;  %v2841_v35 = vmul.f32 %v2645_v42, %v2057_v45  ;;  %v2745_v48 = vadd.f32 1.0, %v5245_v25  ;;  %v6613_v12 = vpop.f32.mrf.mxu1 }
 0x17a   : > { %v6582_v9 = vadd.f32 %v6335_v5, %v6376_v15  ;;  %v5249_v36 = vpop.eup %5248  ;;  %v4606_v4 = vpack.c.bf16 %v2943_v51, %v2943_v51  ;;  %v2650_v43 = vadd.f32 1.0, %v5247_v17  ;;  %5262 = verf.f32 %v2262_v7 }
 0x17b   : > { %v6586_v14 = vadd.f32 %v6335_v5, %v6413_v59  ;;  %3824 = vst.msk [vmem:[%s5914_s10 + $0x8c] sm:$0xf] %vm3788_vm1, %v4506_v60  ;;  %v4504_v44 = vpack.c.bf16 %v2841_v35, %v2841_v35  ;;  %v2941_v52 = vmul.f32 %v2745_v48, %v2157_v34  ;;  %v2750_v46 = vadd.f32 1.0, %v5249_v36  ;;  %v6637_v48 = vpop.f32.mrf.mxu1 }
 0x17c   : > { %5264 = verf.f32 %v2362_v53  ;;  %3924 = vst.msk [vmem:[%s5914_s10 + $0x21c] sm:$0xf] %vm3788_vm1, %v4606_v4  ;;  %v2846_v15 = vmul.f32 %v2650_v43, %v2062_v41  ;;  %v2060_v38 = vmul.f32 0.5, %v6510_v32  ;;  %v2160_v45 = vmul.f32 0.5, %v6514_v6 }
 0x17d   : > { %v2260_v59 = vmul.f32 0.70710677, %v6582_v9  ;;  %v5251_v55 = vpop.eup %5250  ;;  %3822 = vst.msk [vmem:[%s5914_s10 + $0x84] sm:$0xf] %vm3788_vm1, %v4504_v44  ;;  %v4604_v30 = vpack.c.bf16 %v2941_v52, %v2941_v52  ;;  %v2946_v8 = vmul.f32 %v2750_v46, %v2162_v39  ;;  %v2360_v29 = vmul.f32 0.70710677, %v6586_v14 }
 0x17e   : > { %v6604_v56 = vadd.f32 %v6335_v5, %v6391_v58  ;;  %v5253_v34 = vpop.eup %5252  ;;  %v4509_v37 = vpack.c.bf16 %v2846_v15, %v2846_v15  ;;  %v2648_v33 = vadd.f32 1.0, %v5251_v55  ;;  %v6608_v32 = vadd.f32 %v6335_v5, %v6435_v20  ;;  %v6615_v58 = vpop.f32.mrf.mxu0 }
 0x17f   : > { %5266 = verf.f32 %v2260_v59  ;;  %3922 = vst.msk [vmem:[%s5914_s10 + $0x214] sm:$0xf] %vm3788_vm1, %v4604_v30  ;;  %v4609_v19 = vpack.c.bf16 %v2946_v8, %v2946_v8  ;;  %v2748_v26 = vadd.f32 1.0, %v5253_v34  ;;  %v2063_v13 = vmul.f32 0.5, %v6518_v22  ;;  %v6660_v8 = vpop.f32.mrf.mxu1 }
 0x180   : > { %v5255_v6 = vpop.eup %5254  ;;  %5268 = verf.f32 %v2360_v29  ;;  %3827 = vst.msk [vmem:[%s5914_s10 + $0x98] sm:$0xf] %vm3788_vm1, %v4509_v37  ;;  %v2844_v10 = vmul.f32 %v2648_v33, %v2060_v38  ;;  %v2163_v42 = vmul.f32 0.5, %v6536_v3  ;;  %v2263_v20 = vmul.f32 0.70710677, %v6604_v56 }
 0x181   : > { %v2651_v57 = vadd.f32 1.0, %v5255_v6  ;;  %3927 = vst.msk [vmem:[%s5914_s10 + $0x228] sm:$0xf] %vm3788_vm1, %v4609_v19  ;;  %v2944_v41 = vmul.f32 %v2748_v26, %v2160_v45  ;;  %v2363_v25 = vmul.f32 0.70710677, %v6608_v32  ;;  %v6626_v22 = vadd.f32 %v6335_v5, %v6415_v23 }
 0x182   : > { %v6630_v51 = vadd.f32 %v6335_v5, %v6462_v54  ;;  %v5257_v39 = vpop.eup %5256  ;;  %v4507_v7 = vpack.c.bf16 %v2844_v10, %v2844_v10  ;;  %5270 = verf.f32 %v2263_v20  ;;  %v6634_v3 = vadd.f32 %v6335_v5, %v6437_v28  ;;  %v6639_v54 = vpop.f32.mrf.mxu0 }
 0x183   : > { %v2847_v53 = vmul.f32 %v2651_v57, %v2063_v13  ;;  %v5259_v17 = vpop.eup %5258  ;;  %v4607_v60 = vpack.c.bf16 %v2944_v41, %v2944_v41  ;;  %v2751_v35 = vadd.f32 1.0, %v5257_v39  ;;  %v2061_v23 = vmul.f32 0.5, %v6540_v62 }
 0x184   : > { %5272 = verf.f32 %v2363_v25  ;;  %3825 = vst.msk [vmem:[%s5914_s10 + $0x90] sm:$0xf] %vm3788_vm1, %v4507_v7  ;;  %v2649_v43 = vadd.f32 1.0, %v5259_v17  ;;  %v2161_v44 = vmul.f32 0.5, %v6544_v24  ;;  %v2261_v28 = vmul.f32 0.70710677, %v6626_v22  ;;  %v6662_v29 = vpop.f32.mrf.mxu0 }
 0x185   : > { %v5261_v36 = vpop.eup %5260  ;;  %v4510_v4 = vpack.c.bf16 %v2847_v53, %v2847_v53  ;;  %3925 = vst.msk [vmem:[%s5914_s10 + $0x220] sm:$0xf] %vm3788_vm1, %v4607_v60  ;;  %v2947_v52 = vmul.f32 %v2751_v35, %v2163_v42  ;;  %v2066_v62 = vmul.f32 0.5, %v6560_v50  ;;  %v2361_v15 = vmul.f32 0.70710677, %v6630_v51 }
 0x186   : > { %v2749_v46 = vadd.f32 1.0, %v5261_v36  ;;  %v2845_v38 = vmul.f32 %v2649_v43, %v2061_v23  ;;  %5274 = verf.f32 %v2261_v28  ;;  %v2266_v45 = vmul.f32 0.70710677, %v6634_v3  ;;  %v6692_v25 = vpop.f32.mrf.mxu0 }
 0x187   : > { %3828 = vst.msk [vmem:[%s5914_s10 + $0x9c] sm:$0xf] %vm3788_vm1, %v4510_v4  ;;  %v6654_v24 = vadd.f32 %v6335_v5, %v6484_v61  ;;  %v5263_v59 = vpop.eup %5262  ;;  %v4610_v55 = vpack.c.bf16 %v2947_v52, %v2947_v52  ;;  %5276 = verf.f32 %v2361_v15  ;;  %v6658_v50 = vadd.f32 %v6335_v5, %v6464_v31 }
 0x188   : > { %v2945_v30 = vmul.f32 %v2749_v46, %v2161_v44  ;;  %v4508_v37 = vpack.c.bf16 %v2845_v38, %v2845_v38  ;;  %v2654_v33 = vadd.f32 1.0, %v5263_v59  ;;  %v2166_v61 = vmul.f32 0.5, %v6566_v27  ;;  %v6708_v52 = vpop.f32.mrf.mxu0 }
 0x189   : > { %v5265_v34 = vpop.eup %5264  ;;  %5278 = verf.f32 %v2266_v45  ;;  %3928 = vst.msk [vmem:[%s5914_s10 + $0x22c] sm:$0xf] %vm3788_vm1, %v4610_v55  ;;  %v2064_v26 = vmul.f32 0.5, %v6582_v9  ;;  %v2366_v31 = vmul.f32 0.70710677, %v6654_v24  ;;  %v6674_v57 = vadd.f32 %v6335_v5, %v6502_v49  ;;  %v6690_v49 = vpop.f32.mrf.mxu1 }
 0x18a   : > { %v4608_v6 = vpack.c.bf16 %v2945_v30, %v2945_v30  ;;  %v2754_v19 = vadd.f32 1.0, %v5265_v34  ;;  %3826 = vst.msk [vmem:[%s5914_s10 + $0x94] sm:$0xf] %vm3788_vm1, %v4508_v37  ;;  %v2850_v13 = vmul.f32 %v2654_v33, %v2066_v62  ;;  %v2264_v10 = vmul.f32 0.70710677, %v6658_v50 }
 0x18b   : > { %v6678_v27 = vadd.f32 %v6335_v5, %v6486_v11  ;;  %5280 = verf.f32 %v2366_v31  ;;  %v6684_v20 = vadd.f32 %v6335_v5, %v6528_v18  ;;  %v6688_v41 = vadd.f32 %v6335_v5, %v6504_v21  ;;  %v6706_v28 = vpop.f32.mrf.mxu1 }
 0x18c   : > { %v5267_v42 = vpop.eup %5266  ;;  %3926 = vst.msk [vmem:[%s5914_s10 + $0x224] sm:$0xf] %vm3788_vm1, %v4608_v6  ;;  %v2950_v9 = vmul.f32 %v2754_v19, %v2166_v61  ;;  %v4513_v39 = vpack.c.bf16 %v2850_v13, %v2850_v13  ;;  %v2164_v53 = vmul.f32 0.5, %v6586_v14  ;;  %5282 = verf.f32 %v2264_v10  ;;  %v6732_v6 = vpop.f32.mrf.mxu0 }
 0x18d   : > { %v5269_v11 = vpop.eup %5268  ;;  %v2652_v7 = vadd.f32 1.0, %v5267_v42  ;;  %v2067_v18 = vmul.f32 0.5, %v6604_v56  ;;  %v2364_v35 = vmul.f32 0.70710677, %v6674_v57  ;;  %v2167_v23 = vmul.f32 0.5, %v6608_v32  ;;  %v6730_v61 = vpop.f32.mrf.mxu1 }
 0x18e   : > { %v4613_v17 = vpack.c.bf16 %v2950_v9, %v2950_v9  ;;  %v2752_v60 = vadd.f32 1.0, %v5269_v11  ;;  %3831 = vst.msk [vmem:[%s5914_s10 + $0xa8] sm:$0xf] %vm3788_vm1, %v4513_v39  ;;  %v2267_v36 = vmul.f32 0.70710677, %v6678_v27  ;;  %v2065_v44 = vmul.f32 0.5, %v6626_v22 }
 0x18f   : > { %v2848_v21 = vmul.f32 %v2652_v7, %v2064_v26  ;;  %v2367_v4 = vmul.f32 0.70710677, %v6684_v20  ;;  %v5271_v43 = vpop.eup %5270  ;;  %5284 = verf.f32 %v2364_v35  ;;  %v2265_v56 = vmul.f32 0.70710677, %v6688_v41 }
 0x190   : > { %3931 = vst.msk [vmem:[%s5914_s10 + $0x238] sm:$0xf] %vm3788_vm1, %v4613_v17  ;;  %v2948_v14 = vmul.f32 %v2752_v60, %v2164_v53  ;;  %v2655_v62 = vadd.f32 1.0, %v5271_v43  ;;  %5286 = verf.f32 %v2267_v36  ;;  %v6712_v15 = vadd.f32 %v6335_v5, %v6552_v1  ;;  %v6754_v17 = vpop.f32.mrf.mxu1  ;;  %v6756_v60 = vpop.f32.mrf.mxu0 }
 0x191   : > { %v5273_v32 = vpop.eup %5272  ;;  %v4511_v46 = vpack.c.bf16 %v2848_v21, %v2848_v21  ;;  %5288 = verf.f32 %v2367_v4  ;;  %v6716_v22 = vadd.f32 %v6335_v5, %v6530_v0  ;;  %v2165_v55 = vmul.f32 0.5, %v6630_v51 }
 0x192   : > { %v4611_v38 = vpack.c.bf16 %v2948_v14, %v2948_v14  ;;  %v2755_v45 = vadd.f32 1.0, %v5273_v32  ;;  %v2851_v59 = vmul.f32 %v2655_v62, %v2067_v18  ;;  %5290 = verf.f32 %v2265_v56  ;;  %v6772_v62 = vpop.f32.mrf.mxu1 }
 0x193   : > { %3829 = vst.msk [vmem:[%s5914_s10 + $0xa0] sm:$0xf] %vm3788_vm1, %v4511_v46  ;;  %v2365_v30 = vmul.f32 0.70710677, %v6712_v15  ;;  %v5275_v34 = vpop.eup %5274  ;;  %v2070_v37 = vmul.f32 0.5, %v6634_v3  ;;  %v6728_v0 = vadd.f32 %v6335_v5, %v6571_v40  ;;  %v6736_v31 = vadd.f32 %v6335_v5, %v6554_v47 }
 0x194   : > { %3929 = vst.msk [vmem:[%s5914_s10 + $0x230] sm:$0xf] %vm3788_vm1, %v4611_v38  ;;  %v2951_v1 = vmul.f32 %v2755_v45, %v2167_v23  ;;  %v2270_v33 = vmul.f32 0.70710677, %v6716_v22  ;;  %v5277_v51 = vpop.eup %5276  ;;  %v4514_v19 = vpack.c.bf16 %v2851_v59, %v2851_v59  ;;  %v2653_v26 = vadd.f32 1.0, %v5275_v34 }
 0x195   : > { %5292 = verf.f32 %v2365_v30  ;;  %v2753_v10 = vadd.f32 1.0, %v5277_v51  ;;  %v2170_v42 = vmul.f32 0.5, %v6654_v24  ;;  %v2068_v11 = vmul.f32 0.5, %v6658_v50 }
 0x196   : > { %v5279_v3 = vpop.eup %5278  ;;  %v4614_v13 = vpack.c.bf16 %v2951_v1, %v2951_v1  ;;  %5294 = verf.f32 %v2270_v33  ;;  %3832 = vst.msk [vmem:[%s5914_s10 + $0xac] sm:$0xf] %vm3788_vm1, %v4514_v19  ;;  %v2849_v40 = vmul.f32 %v2653_v26, %v2065_v44  ;;  %v2370_v39 = vmul.f32 0.70710677, %v6728_v0 }
 0x197   : > { %v2658_v9 = vadd.f32 1.0, %v5279_v3  ;;  %v2949_v7 = vmul.f32 %v2753_v10, %v2165_v55  ;;  %v2268_v47 = vmul.f32 0.70710677, %v6736_v31  ;;  %v6748_v53 = vadd.f32 %v6335_v5, %v6590_v2 }
 0x198   : > { %3932 = vst.msk [vmem:[%s5914_s10 + $0x23c] sm:$0xf] %vm3788_vm1, %v4614_v13  ;;  %v6752_v24 = vadd.f32 %v6335_v5, %v6573_v63  ;;  %v5281_v50 = vpop.eup %5280  ;;  %v4512_v18 = vpack.c.bf16 %v2849_v40, %v2849_v40  ;;  %5296 = verf.f32 %v2370_v39  ;;  %v6760_v21 = vadd.f32 %v6335_v5, %v6613_v12  ;;  %v6795_v13 = vpop.f32.mrf.mxu1 }
 0x199   : > { %v2854_v35 = vmul.f32 %v2658_v9, %v2070_v37  ;;  %v5283_v23 = vpop.eup %5282  ;;  %v4612_v2 = vpack.c.bf16 %v2949_v7, %v2949_v7  ;;  %v2758_v36 = vadd.f32 1.0, %v5281_v50  ;;  %v2168_v63 = vmul.f32 0.5, %v6674_v57  ;;  %v6774_v57 = vpop.f32.mrf.mxu0 }
 0x19a   : > { %5298 = verf.f32 %v2268_v47  ;;  %3830 = vst.msk [vmem:[%s5914_s10 + $0xa4] sm:$0xf] %vm3788_vm1, %v4512_v18  ;;  %v2656_v43 = vadd.f32 1.0, %v5283_v23  ;;  %v2071_v14 = vmul.f32 0.5, %v6678_v27  ;;  %v2368_v44 = vmul.f32 0.70710677, %v6748_v53 }
 0x19b   : > { %v4517_v4 = vpack.c.bf16 %v2854_v35, %v2854_v35  ;;  %3930 = vst.msk [vmem:[%s5914_s10 + $0x234] sm:$0xf] %vm3788_vm1, %v4612_v2  ;;  %v2954_v56 = vmul.f32 %v2758_v36, %v2170_v42  ;;  %v2171_v12 = vmul.f32 0.5, %v6684_v20  ;;  %v2271_v32 = vmul.f32 0.70710677, %v6752_v24  ;;  %v6797_v10 = vpop.f32.mrf.mxu0  ;;  %v6810_v2 = vpop.f32.mrf.mxu1 }
 0x19c   : > { %v2371_v46 = vmul.f32 0.70710677, %v6760_v21  ;;  %v5285_v38 = vpop.eup %5284  ;;  %v2852_v27 = vmul.f32 %v2656_v43, %v2068_v11  ;;  %5300 = verf.f32 %v2368_v44  ;;  %v6780_v45 = vadd.f32 %v6335_v5, %v6592_v16 }
 0x19d   : > { %3835 = vst.msk [vmem:[%s5914_s10 + $0xb8] sm:$0xf] %vm3788_vm1, %v4517_v4  ;;  %v6784_v20 = vadd.f32 %v6335_v5, %v6637_v48  ;;  %v5287_v59 = vpop.eup %5286  ;;  %v4617_v55 = vpack.c.bf16 %v2954_v56, %v2954_v56  ;;  %v2756_v30 = vadd.f32 1.0, %v5285_v38  ;;  %5302 = verf.f32 %v2271_v32  ;;  %v6812_v36 = vpop.f32.mrf.mxu0 }
 0x19e   : > { %v6788_v34 = vadd.f32 %v6335_v5, %v6615_v58  ;;  %v5289_v1 = vpop.eup %5288  ;;  %v4515_v37 = vpack.c.bf16 %v2852_v27, %v2852_v27  ;;  %v2659_v33 = vadd.f32 1.0, %v5287_v59  ;;  %v2069_v51 = vmul.f32 0.5, %v6688_v41 }
 0x19f   : > { %5304 = verf.f32 %v2371_v46  ;;  %v5291_v16 = vpop.eup %5290  ;;  %3935 = vst.msk [vmem:[%s5914_s10 + $0x248] sm:$0xf] %vm3788_vm1, %v4617_v55  ;;  %v2952_v48 = vmul.f32 %v2756_v30, %v2168_v63  ;;  %v2759_v19 = vadd.f32 1.0, %v5289_v1  ;;  %v2169_v26 = vmul.f32 0.5, %v6712_v15  ;;  %v6837_v30 = vpop.f32.mrf.mxu1 }
 0x1a0   : > { %v2269_v3 = vmul.f32 0.70710677, %v6780_v45  ;;  %3833 = vst.msk [vmem:[%s5914_s10 + $0xb0] sm:$0xf] %vm3788_vm1, %v4515_v37  ;;  %v2855_v58 = vmul.f32 %v2659_v33, %v2071_v14  ;;  %v2657_v42 = vadd.f32 1.0, %v5291_v16  ;;  %v2074_v41 = vmul.f32 0.5, %v6716_v22  ;;  %v6839_v1 = vpop.f32.mrf.mxu0 }
 0x1a1   : > { %v2369_v40 = vmul.f32 0.70710677, %v6784_v20  ;;  %v4615_v11 = vpack.c.bf16 %v2952_v48, %v2952_v48  ;;  %v2955_v39 = vmul.f32 %v2759_v19, %v2171_v12  ;;  %v2274_v15 = vmul.f32 0.70710677, %v6788_v34 }
 0x1a2   : > { %v5293_v9 = vpop.eup %5292  ;;  %5306 = verf.f32 %v2269_v3  ;;  %v4518_v47 = vpack.c.bf16 %v2855_v58, %v2855_v58  ;;  %v2853_v50 = vmul.f32 %v2657_v42, %v2069_v51  ;;  %v6808_v22 = vadd.f32 %v6335_v5, %v6660_v8 }
 0x1a3   : > { %v5295_v7 = vpop.eup %5294  ;;  %v2757_v18 = vadd.f32 1.0, %v5293_v9  ;;  %5308 = verf.f32 %v2369_v40  ;;  %3933 = vst.msk [vmem:[%s5914_s10 + $0x240] sm:$0xf] %vm3788_vm1, %v4615_v11  ;;  %v4618_v35 = vpack.c.bf16 %v2955_v39, %v2955_v39  ;;  %v6818_v43 = vadd.f32 %v6335_v5, %v6639_v54  ;;  %v6865_v9 = vpop.f32.mrf.mxu0 }
 0x1a4   : > { %v2662_v23 = vadd.f32 1.0, %v5295_v7  ;;  %5310 = verf.f32 %v2274_v15  ;;  %3836 = vst.msk [vmem:[%s5914_s10 + $0xbc] sm:$0xf] %vm3788_vm1, %v4518_v47  ;;  %v4516_v63 = vpack.c.bf16 %v2853_v50, %v2853_v50  ;;  %v6822_v14 = vadd.f32 %v6335_v5, %v6690_v49 }
 0x1a5   : > { %v2953_v4 = vmul.f32 %v2757_v18, %v2169_v26  ;;  %v5297_v44 = vpop.eup %5296  ;;  %3936 = vst.msk [vmem:[%s5914_s10 + $0x24c] sm:$0xf] %vm3788_vm1, %v4618_v35  ;;  %v2174_v56 = vmul.f32 0.5, %v6728_v0  ;;  %v2374_v12 = vmul.f32 0.70710677, %v6808_v22  ;;  %v6830_v32 = vadd.f32 %v6335_v5, %v6662_v29 }
 0x1a6   : > { %v2858_v8 = vmul.f32 %v2662_v23, %v2074_v41  ;;  %3834 = vst.msk [vmem:[%s5914_s10 + $0xb4] sm:$0xf] %vm3788_vm1, %v4516_v63  ;;  %v2762_v49 = vadd.f32 1.0, %v5297_v44  ;;  %v2072_v38 = vmul.f32 0.5, %v6736_v31  ;;  %v2272_v27 = vmul.f32 0.70710677, %v6818_v43 }
 0x1a7   : > { %v5299_v46 = vpop.eup %5298  ;;  %v4616_v54 = vpack.c.bf16 %v2953_v4, %v2953_v4  ;;  %v2172_v0 = vmul.f32 0.5, %v6748_v53  ;;  %5312 = verf.f32 %v2374_v12  ;;  %v2075_v29 = vmul.f32 0.5, %v6752_v24  ;;  %v6848_v53 = vld [vmem:[#allocation4] ss:$0 sm:$0xff] }
 0x1a8   : > { %v4521_v59 = vpack.c.bf16 %v2858_v8, %v2858_v8  ;;  %v2660_v55 = vadd.f32 1.0, %v5299_v46  ;;  %v2958_v5 = vmul.f32 %v2762_v49, %v2174_v56  ;;  %5314 = verf.f32 %v2272_v27  ;;  %v6886_v8 = vpop.f32.mrf.mxu0 }
 0x1a9   : > { %3934 = vst.msk [vmem:[%s5914_s10 + $0x244] sm:$0xf] %vm3788_vm1, %v4616_v54  ;;  %v2372_v37 = vmul.f32 0.70710677, %v6822_v14  ;;  %v5301_v31 = vpop.eup %5300  ;;  %v2275_v51 = vmul.f32 0.70710677, %v6830_v32  ;;  %v6852_v16 = vadd.f32 %v6848_v53, %v6706_v28  ;;  %v6856_v48 = vadd.f32 %v6848_v53, %v6692_v25  ;;  %v6863_v28 = vpop.f32.mrf.mxu1 }
 0x1aa   : > { %3839 = vst.msk [vmem:[%s5914_s10 + $0xc8] sm:$0xf] %vm3788_vm1, %v4521_v59  ;;  %v2856_v33 = vmul.f32 %v2660_v55, %v2072_v38  ;;  %v5303_v24 = vpop.eup %5302  ;;  %v4621_v19 = vpack.c.bf16 %v2958_v5, %v2958_v5  ;;  %v2760_v26 = vadd.f32 1.0, %v5301_v31  ;;  %v6860_v3 = vadd.f32 %v6848_v53, %v6730_v61 }
 0x1ab   : > { %5316 = verf.f32 %v2372_v37  ;;  %v2663_v41 = vadd.f32 1.0, %v5303_v24  ;;  %v2175_v40 = vmul.f32 0.5, %v6760_v21  ;;  %v2073_v39 = vmul.f32 0.5, %v6780_v45  ;;  %v6884_v44 = vpop.f32.mrf.mxu1  ;;  %v6912_v37 = vpop.f32.mrf.mxu0 }
 0x1ac   : > { %v5305_v58 = vpop.eup %5304  ;;  %v4519_v42 = vpack.c.bf16 %v2856_v33, %v2856_v33  ;;  %5318 = verf.f32 %v2275_v51  ;;  %3939 = vst.msk [vmem:[%s5914_s10 + $0x258] sm:$0xf] %vm3788_vm1, %v4621_v19  ;;  %v2956_v25 = vmul.f32 %v2760_v26, %v2172_v0  ;;  %v2375_v15 = vmul.f32 0.70710677, %v6852_v16 }
 0x1ad   : > { %v2763_v11 = vadd.f32 1.0, %v5305_v58  ;;  %v2859_v61 = vmul.f32 %v2663_v41, %v2075_v29  ;;  %v2173_v7 = vmul.f32 0.5, %v6784_v20  ;;  %v2273_v21 = vmul.f32 0.70710677, %v6856_v48  ;;  %v6910_v29 = vpop.f32.mrf.mxu1 }
 0x1ae   : > { %3837 = vst.msk [vmem:[%s5914_s10 + $0xc0] sm:$0xf] %vm3788_vm1, %v4519_v42  ;;  %v2373_v47 = vmul.f32 0.70710677, %v6860_v3  ;;  %v4619_v18 = vpack.c.bf16 %v2956_v25, %v2956_v25  ;;  %5320 = verf.f32 %v2375_v15  ;;  %v6878_v45 = vadd.f32 %v6848_v53, %v6708_v52 }
 0x1af   : > { %v5307_v50 = vpop.eup %5306  ;;  %v2959_v35 = vmul.f32 %v2763_v11, %v2175_v40  ;;  %v4522_v63 = vpack.c.bf16 %v2859_v61, %v2859_v61  ;;  %5322 = verf.f32 %v2273_v21  ;;  %v6882_v20 = vadd.f32 %v6848_v53, %v6754_v17  ;;  %v6934_v11 = vpop.f32.mrf.mxu1 }
 0x1b0   : > { %v5309_v23 = vpop.eup %5308  ;;  %v2661_v4 = vadd.f32 1.0, %v5307_v50  ;;  %3937 = vst.msk [vmem:[%s5914_s10 + $0x250] sm:$0xf] %vm3788_vm1, %v4619_v18  ;;  %v2078_v52 = vmul.f32 0.5, %v6788_v34  ;;  %5324 = verf.f32 %v2373_v47  ;;  %v2178_v38 = vmul.f32 0.5, %v6808_v22 }
 0x1b1   : > { %v5311_v56 = vpop.eup %5310  ;;  %v4622_v12 = vpack.c.bf16 %v2959_v35, %v2959_v35  ;;  %v2761_v46 = vadd.f32 1.0, %v5309_v23  ;;  %3840 = vst.msk [vmem:[%s5914_s10 + $0xcc] sm:$0xf] %vm3788_vm1, %v4522_v63  ;;  %v2278_v17 = vmul.f32 0.70710677, %v6878_v45  ;;  %v6900_v55 = vadd.f32 %v6848_v53, %v6732_v6 }
 0x1b2   : > { %v2857_v54 = vmul.f32 %v2661_v4, %v2073_v39  ;;  %v2666_v49 = vadd.f32 1.0, %v5311_v56  ;;  %v2378_v59 = vmul.f32 0.70710677, %v6882_v20  ;;  %v6904_v34 = vadd.f32 %v6848_v53, %v6772_v62 }
 0x1b3   : > { %3940 = vst.msk [vmem:[%s5914_s10 + $0x25c] sm:$0xf] %vm3788_vm1, %v4622_v12  ;;  %v2957_v27 = vmul.f32 %v2761_v46, %v2173_v7  ;;  %5326 = verf.f32 %v2278_v17  ;;  %v6908_v22 = vadd.f32 %v6848_v53, %v6756_v60  ;;  %v2076_v6 = vmul.f32 0.5, %v6818_v43  ;;  %v6950_v12 = vpop.f32.mrf.mxu1 }
 0x1b4   : > { %v4520_v0 = vpack.c.bf16 %v2857_v54, %v2857_v54  ;;  %v2862_v5 = vmul.f32 %v2666_v49, %v2078_v52  ;;  %v5313_v31 = vpop.eup %5312  ;;  %5328 = verf.f32 %v2378_v59  ;;  %v2276_v62 = vmul.f32 0.70710677, %v6900_v55 }
 0x1b5   : > { %v4620_v33 = vpack.c.bf16 %v2957_v27, %v2957_v27  ;;  %v5315_v51 = vpop.eup %5314  ;;  %v2766_v19 = vadd.f32 1.0, %v5313_v31  ;;  %v2176_v60 = vmul.f32 0.5, %v6822_v14  ;;  %v2376_v26 = vmul.f32 0.70710677, %v6904_v34 }
 0x1b6   : > { %3838 = vst.msk [vmem:[%s5914_s10 + $0xc4] sm:$0xf] %vm3788_vm1, %v4520_v0  ;;  %v4525_v24 = vpack.c.bf16 %v2862_v5, %v2862_v5  ;;  %v2664_v58 = vadd.f32 1.0, %v5315_v51  ;;  %v2079_v42 = vmul.f32 0.5, %v6830_v32  ;;  %5330 = verf.f32 %v2276_v62  ;;  %v6936_v32 = vpop.f32.mrf.mxu0 }
 0x1b7   : > { %3938 = vst.msk [vmem:[%s5914_s10 + $0x254] sm:$0xf] %vm3788_vm1, %v4620_v33  ;;  %v2279_v43 = vmul.f32 0.70710677, %v6908_v22  ;;  %v2962_v40 = vmul.f32 %v2766_v19, %v2178_v38  ;;  %5332 = verf.f32 %v2376_v26  ;;  %v6928_v25 = vadd.f32 %v6848_v53, %v6795_v13 }
 0x1b8   : > { %v5317_v41 = vpop.eup %5316  ;;  %3843 = vst.msk [vmem:[%s5914_s10 + $0xd8] sm:$0xf] %vm3788_vm1, %v4525_v24  ;;  %v6932_v14 = vadd.f32 %v6848_v53, %v6774_v57  ;;  %v2860_v15 = vmul.f32 %v2664_v58, %v2076_v6  ;;  %v6940_v7 = vadd.f32 %v6848_v53, %v6810_v2  ;;  %v2179_v47 = vmul.f32 0.5, %v6852_v16  ;;  %v6952_v16 = vpop.f32.mrf.mxu0 }
 0x1b9   : > { %v5319_v39 = vpop.eup %5318  ;;  %v2764_v61 = vadd.f32 1.0, %v5317_v41  ;;  %5334 = verf.f32 %v2279_v43  ;;  %v4625_v21 = vpack.c.bf16 %v2962_v40, %v2962_v40  ;;  %v2379_v57 = vmul.f32 0.70710677, %v6928_v25  ;;  %v6976_v6 = vpop.f32.mrf.mxu1 }
 0x1ba   : > { %v2667_v13 = vadd.f32 1.0, %v5319_v39  ;;  %v4523_v50 = vpack.c.bf16 %v2860_v15, %v2860_v15  ;;  %v2077_v35 = vmul.f32 0.5, %v6856_v48  ;;  %v2277_v23 = vmul.f32 0.70710677, %v6932_v14  ;;  %v6978_v62 = vpop.f32.mrf.mxu0 }
 0x1bb   : > { %v2960_v18 = vmul.f32 %v2764_v61, %v2176_v60  ;;  %v5321_v63 = vpop.eup %5320  ;;  %3943 = vst.msk [vmem:[%s5914_s10 + $0x268] sm:$0xf] %vm3788_vm1, %v4625_v21  ;;  %v2177_v2 = vmul.f32 0.5, %v6860_v3  ;;  %5336 = verf.f32 %v2379_v57  ;;  %v2377_v56 = vmul.f32 0.70710677, %v6940_v7  ;;  %v7000_v61 = vpop.f32.mrf.mxu1 }
 0x1bc   : > { %v2863_v4 = vmul.f32 %v2667_v13, %v2079_v42  ;;  %v5323_v46 = vpop.eup %5322  ;;  %3841 = vst.msk [vmem:[%s5914_s10 + $0xd0] sm:$0xf] %vm3788_vm1, %v4523_v50  ;;  %v2767_v52 = vadd.f32 1.0, %v5321_v63  ;;  %5338 = verf.f32 %v2277_v23  ;;  %v6958_v54 = vadd.f32 %v6848_v53, %v6797_v10  ;;  %v7002_v21 = vpop.f32.mrf.mxu0 }
 0x1bd   : > { %v4623_v48 = vpack.c.bf16 %v2960_v18, %v2960_v18  ;;  %v5325_v3 = vpop.eup %5324  ;;  %v2665_v38 = vadd.f32 1.0, %v5323_v46  ;;  %5340 = verf.f32 %v2377_v56  ;;  %v6962_v17 = vadd.f32 %v6848_v53, %v6837_v30 }
 0x1be   : > { %v4526_v49 = vpack.c.bf16 %v2863_v4, %v2863_v4  ;;  %v2963_v27 = vmul.f32 %v2767_v52, %v2179_v47  ;;  %v2765_v59 = vadd.f32 1.0, %v5325_v3  ;;  %v2082_v0 = vmul.f32 0.5, %v6878_v45  ;;  %v7019_v52 = vpop.f32.mrf.mxu0 }
 0x1bf   : > { %3941 = vst.msk [vmem:[%s5914_s10 + $0x260] sm:$0xf] %vm3788_vm1, %v4623_v48  ;;  %v2282_v5 = vmul.f32 0.70710677, %v6958_v54  ;;  %v2861_v10 = vmul.f32 %v2665_v38, %v2077_v35  ;;  %v2182_v31 = vmul.f32 0.5, %v6882_v20  ;;  %v6974_v30 = vadd.f32 %v6848_v53, %v6812_v36  ;;  %v7017_v48 = vpop.f32.mrf.mxu1 }
 0x1c0   : > { %3844 = vst.msk [vmem:[%s5914_s10 + $0xdc] sm:$0xf] %vm3788_vm1, %v4526_v49  ;;  %v2382_v33 = vmul.f32 0.70710677, %v6962_v17  ;;  %v5327_v51 = vpop.eup %5326  ;;  %v4626_v45 = vpack.c.bf16 %v2963_v27, %v2963_v27  ;;  %v2961_v24 = vmul.f32 %v2765_v59, %v2177_v2  ;;  %v6982_v19 = vadd.f32 %v6848_v53, %v6863_v28 }
 0x1c1   : > { %5342 = verf.f32 %v2282_v5  ;;  %v5329_v20 = vpop.eup %5328  ;;  %v4524_v60 = vpack.c.bf16 %v2861_v10, %v2861_v10  ;;  %v2670_v26 = vadd.f32 1.0, %v5327_v51  ;;  %v2080_v58 = vmul.f32 0.5, %v6900_v55 }
 0x1c2   : > { %5344 = verf.f32 %v2382_v33  ;;  %3944 = vst.msk [vmem:[%s5914_s10 + $0x26c] sm:$0xf] %vm3788_vm1, %v4626_v45  ;;  %v4624_v36 = vpack.c.bf16 %v2961_v24, %v2961_v24  ;;  %v2770_v42 = vadd.f32 1.0, %v5329_v20  ;;  %v2180_v43 = vmul.f32 0.5, %v6904_v34  ;;  %v7040_v20 = vpop.f32.mrf.mxu0 }
 0x1c3   : > { %v2280_v41 = vmul.f32 0.70710677, %v6974_v30  ;;  %v5331_v40 = vpop.eup %5330  ;;  %3842 = vst.msk [vmem:[%s5914_s10 + $0xd4] sm:$0xf] %vm3788_vm1, %v4524_v60  ;;  %v2866_v28 = vmul.f32 %v2670_v26, %v2082_v0  ;;  %v2380_v39 = vmul.f32 0.70710677, %v6982_v19  ;;  %v6994_v15 = vadd.f32 %v6848_v53, %v6839_v1 }
 0x1c4   : > { %v6998_v55 = vadd.f32 %v6848_v53, %v6884_v44  ;;  %v5333_v34 = vpop.eup %5332  ;;  %3942 = vst.msk [vmem:[%s5914_s10 + $0x264] sm:$0xf] %vm3788_vm1, %v4624_v36  ;;  %v2966_v13 = vmul.f32 %v2770_v42, %v2182_v31  ;;  %v2668_v47 = vadd.f32 1.0, %v5331_v40  ;;  %v7008_v57 = vadd.f32 %v6848_v53, %v6865_v9 }
 0x1c5   : > { %5346 = verf.f32 %v2280_v41  ;;  %v4529_v50 = vpack.c.bf16 %v2866_v28, %v2866_v28  ;;  %v2768_v44 = vadd.f32 1.0, %v5333_v34  ;;  %v2083_v18 = vmul.f32 0.5, %v6908_v22 }
 0x1c6   : > { %v5335_v1 = vpop.eup %5334  ;;  %5348 = verf.f32 %v2380_v39  ;;  %v4629_v35 = vpack.c.bf16 %v2966_v13, %v2966_v13  ;;  %v2864_v23 = vmul.f32 %v2668_v47, %v2080_v58  ;;  %v2283_v4 = vmul.f32 0.70710677, %v6994_v15 }
 0x1c7   : > { %v2671_v63 = vadd.f32 1.0, %v5335_v1  ;;  %3847 = vst.msk [vmem:[%s5914_s10 + $0xe8] sm:$0xf] %vm3788_vm1, %v4529_v50  ;;  %v2964_v2 = vmul.f32 %v2768_v44, %v2180_v43  ;;  %v2183_v56 = vmul.f32 0.5, %v6928_v25  ;;  %v2081_v9 = vmul.f32 0.5, %v6932_v14  ;;  %v7061_v1 = vpop.f32.mrf.mxu0 }
 0x1c8   : > { %v2383_v46 = vmul.f32 0.70710677, %v6998_v55  ;;  %v5337_v22 = vpop.eup %5336  ;;  %3947 = vst.msk [vmem:[%s5914_s10 + $0x278] sm:$0xf] %vm3788_vm1, %v4629_v35  ;;  %v4527_v3 = vpack.c.bf16 %v2864_v23, %v2864_v23  ;;  %5350 = verf.f32 %v2283_v4  ;;  %v2281_v38 = vmul.f32 0.70710677, %v7008_v57 }
 0x1c9   : > { %v2867_v49 = vmul.f32 %v2671_v63, %v2083_v18  ;;  %v5339_v27 = vpop.eup %5338  ;;  %v4627_v25 = vpack.c.bf16 %v2964_v2, %v2964_v2  ;;  %v2771_v59 = vadd.f32 1.0, %v5337_v22  ;;  %v7026_v14 = vadd.f32 %v6848_v53, %v6910_v29  ;;  %v7038_v29 = vpop.f32.mrf.mxu1 }
 0x1ca   : > { %5352 = verf.f32 %v2383_v46  ;;  %v5341_v0 = vpop.eup %5340  ;;  %3845 = vst.msk [vmem:[%s5914_s10 + $0xe0] sm:$0xf] %vm3788_vm1, %v4527_v3  ;;  %v2669_v10 = vadd.f32 1.0, %v5339_v27  ;;  %v7032_v31 = vadd.f32 %v6848_v53, %v6886_v8  ;;  %v2181_v51 = vmul.f32 0.5, %v6940_v7 }
 0x1cb   : > { %v4530_v5 = vpack.c.bf16 %v2867_v49, %v2867_v49  ;;  %5354 = verf.f32 %v2281_v38  ;;  %3945 = vst.msk [vmem:[%s5914_s10 + $0x270] sm:$0xf] %vm3788_vm1, %v4627_v25  ;;  %v2967_v33 = vmul.f32 %v2771_v59, %v2183_v56  ;;  %v2769_v45 = vadd.f32 1.0, %v5341_v0  ;;  %v7059_v47 = vpop.f32.mrf.mxu1 }
 0x1cc   : > { %v2381_v24 = vmul.f32 0.70710677, %v7026_v14  ;;  %v2865_v60 = vmul.f32 %v2669_v10, %v2081_v9  ;;  %v2086_v26 = vmul.f32 0.5, %v6958_v54  ;;  %v2286_v8 = vmul.f32 0.70710677, %v7032_v31 }
 0x1cd   : > { %3848 = vst.msk [vmem:[%s5914_s10 + $0xec] sm:$0xf] %vm3788_vm1, %v4530_v5  ;;  %v7048_v58 = vadd.f32 %v6848_v53, %v6934_v11  ;;  %v4630_v36 = vpack.c.bf16 %v2967_v33, %v2967_v33  ;;  %v2965_v42 = vmul.f32 %v2769_v45, %v2181_v51  ;;  %v7052_v43 = vadd.f32 %v6848_v53, %v6912_v37  ;;  %v7087_v22 = vpop.f32.mrf.mxu1 }
 0x1ce   : > { %v5343_v7 = vpop.eup %5342  ;;  %5356 = verf.f32 %v2381_v24  ;;  %v4528_v40 = vpack.c.bf16 %v2865_v60, %v2865_v60  ;;  %v2186_v54 = vmul.f32 0.5, %v6962_v17  ;;  %v2084_v34 = vmul.f32 0.5, %v6974_v30 }
 0x1cf   : > { %v5345_v41 = vpop.eup %5344  ;;  %v2674_v28 = vadd.f32 1.0, %v5343_v7  ;;  %5358 = verf.f32 %v2286_v8  ;;  %3948 = vst.msk [vmem:[%s5914_s10 + $0x27c] sm:$0xf] %vm3788_vm1, %v4630_v36  ;;  %v4628_v11 = vpack.c.bf16 %v2965_v42, %v2965_v42  ;;  %v2386_v13 = vmul.f32 0.70710677, %v7048_v58 }
 0x1d0   : > { %v2774_v39 = vadd.f32 1.0, %v5345_v41  ;;  %3846 = vst.msk [vmem:[%s5914_s10 + $0xe4] sm:$0xf] %vm3788_vm1, %v4528_v40  ;;  %v2284_v50 = vmul.f32 0.70710677, %v7052_v43  ;;  %v7068_v17 = vadd.f32 %v6848_v53, %v6950_v12  ;;  %v7072_v44 = vadd.f32 %v6848_v53, %v6936_v32 }
 0x1d1   : > { %v2870_v37 = vmul.f32 %v2674_v28, %v2086_v26  ;;  %3946 = vst.msk [vmem:[%s5914_s10 + $0x274] sm:$0xf] %vm3788_vm1, %v4628_v11  ;;  %5360 = verf.f32 %v2386_v13  ;;  %v7078_v35 = vadd.f32 %v6848_v53, %v6976_v6  ;;  %v7082_v23 = vadd.f32 %v6848_v53, %v6952_v16  ;;  %v7089_v6 = vpop.f32.mrf.mxu0 }
 0x1d2   : > { %v5347_v30 = vpop.eup %5346  ;;  %v2970_v18 = vmul.f32 %v2774_v39, %v2186_v54  ;;  %v2184_v32 = vmul.f32 0.5, %v6982_v19  ;;  %5362 = verf.f32 %v2284_v50  ;;  %v2087_v9 = vmul.f32 0.5, %v6994_v15 }
 0x1d3   : > { %v5349_v12 = vpop.eup %5348  ;;  %v4533_v63 = vpack.c.bf16 %v2870_v37, %v2870_v37  ;;  %v2672_v4 = vadd.f32 1.0, %v5347_v30  ;;  %v2384_v46 = vmul.f32 0.70710677, %v7068_v17  ;;  %v2187_v3 = vmul.f32 0.5, %v6998_v55  ;;  %v7110_v24 = vpop.f32.mrf.mxu0 }
 0x1d4   : > { %v4633_v2 = vpack.c.bf16 %v2970_v18, %v2970_v18  ;;  %v2772_v56 = vadd.f32 1.0, %v5349_v12  ;;  %v2287_v49 = vmul.f32 0.70710677, %v7072_v44  ;;  %v2387_v19 = vmul.f32 0.70710677, %v7078_v35 }
 0x1d5   : > { %3851 = vst.msk [vmem:[%s5914_s10 + $0xf8] sm:$0xf] %vm3788_vm1, %v4533_v63  ;;  %v2868_v16 = vmul.f32 %v2672_v4, %v2084_v34  ;;  %v5351_v38 = vpop.eup %5350  ;;  %v2085_v15 = vmul.f32 0.5, %v7008_v57  ;;  %5364 = verf.f32 %v2384_v46  ;;  %v2285_v25 = vmul.f32 0.70710677, %v7082_v23  ;;  %v7108_v57 = vpop.f32.mrf.mxu1 }
 0x1d6   : > { %3951 = vst.msk [vmem:[%s5914_s10 + $0x288] sm:$0xf] %vm3788_vm1, %v4633_v2  ;;  %v2968_v27 = vmul.f32 %v2772_v56, %v2184_v32  ;;  %v2675_v5 = vadd.f32 1.0, %v5351_v38  ;;  %5366 = verf.f32 %v2287_v49  ;;  %v7102_v55 = vadd.f32 %v6848_v53, %v7000_v61  ;;  %v7134_v13 = vpop.f32.mrf.mxu0 }
 0x1d7   : > { %v5353_v59 = vpop.eup %5352  ;;  %v4531_v0 = vpack.c.bf16 %v2868_v16, %v2868_v16  ;;  %5368 = verf.f32 %v2387_v19  ;;  %v7106_v45 = vadd.f32 %v6848_v53, %v6978_v62  ;;  %v2185_v8 = vmul.f32 0.5, %v7026_v14  ;;  %v7132_v34 = vpop.f32.mrf.mxu1 }
 0x1d8   : > { %v5355_v10 = vpop.eup %5354  ;;  %v4631_v33 = vpack.c.bf16 %v2968_v27, %v2968_v27  ;;  %v2775_v51 = vadd.f32 1.0, %v5353_v59  ;;  %v2871_v60 = vmul.f32 %v2675_v5, %v2087_v9  ;;  %5370 = verf.f32 %v2285_v25  ;;  %v7158_v16 = vpop.f32.mrf.mxu0 }
 0x1d9   : > { %3849 = vst.msk [vmem:[%s5914_s10 + $0xf0] sm:$0xf] %vm3788_vm1, %v4531_v0  ;;  %v2673_v26 = vadd.f32 1.0, %v5355_v10  ;;  %v2090_v7 = vmul.f32 0.5, %v7032_v31  ;;  %v2385_v62 = vmul.f32 0.70710677, %v7102_v55  ;;  %v7122_v28 = vadd.f32 %v6848_v53, %v7017_v48  ;;  %v7156_v46 = vpop.f32.mrf.mxu1 }
 0x1da   : > { %3949 = vst.msk [vmem:[%s5914_s10 + $0x280] sm:$0xf] %vm3788_vm1, %v4631_v33  ;;  %v2971_v61 = vmul.f32 %v2775_v51, %v2187_v3  ;;  %v2290_v36 = vmul.f32 0.70710677, %v7106_v45  ;;  %v4534_v41 = vpack.c.bf16 %v2871_v60, %v2871_v60  ;;  %v7126_v14 = vadd.f32 %v6848_v53, %v7002_v21  ;;  %v7182_v33 = vpop.f32.mrf.mxu0 }
 0x1db   : > { %v5357_v42 = vpop.eup %5356  ;;  %v2869_v40 = vmul.f32 %v2673_v26, %v2085_v15  ;;  %5372 = verf.f32 %v2385_v62  ;;  %v7130_v31 = vadd.f32 %v6848_v53, %v7038_v29  ;;  %v2190_v21 = vmul.f32 0.5, %v7048_v58  ;;  %v7180_v10 = vpop.f32.mrf.mxu1 }
 0x1dc   : > { %v5359_v54 = vpop.eup %5358  ;;  %v4634_v11 = vpack.c.bf16 %v2971_v61, %v2971_v61  ;;  %v2773_v39 = vadd.f32 1.0, %v5357_v42  ;;  %3852 = vst.msk [vmem:[%s5914_s10 + $0xfc] sm:$0xf] %vm3788_vm1, %v4534_v41  ;;  %5374 = verf.f32 %v2290_v36  ;;  %v2088_v30 = vmul.f32 0.5, %v7052_v43 }
 0x1dd   : > { %v4532_v48 = vpack.c.bf16 %v2869_v40, %v2869_v40  ;;  %v2678_v37 = vadd.f32 1.0, %v5359_v54  ;;  %v2390_v18 = vmul.f32 0.70710677, %v7122_v28  ;;  %v2288_v29 = vmul.f32 0.70710677, %v7126_v14 }
 0x1de   : > { %3952 = vst.msk [vmem:[%s5914_s10 + $0x28c] sm:$0xf] %vm3788_vm1, %v4634_v11  ;;  %v2969_v50 = vmul.f32 %v2773_v39, %v2185_v8  ;;  %v5361_v12 = vpop.eup %5360  ;;  %v2188_v4 = vmul.f32 0.5, %v7068_v17  ;;  %v2388_v32 = vmul.f32 0.70710677, %v7130_v31  ;;  %v7150_v58 = vadd.f32 %v6848_v53, %v7019_v52  ;;  %v7194_v11 = vpop.f32.mrf.mxu1 }
 0x1df   : > { %3850 = vst.msk [vmem:[%s5914_s10 + $0xf4] sm:$0xf] %vm3788_vm1, %v4532_v48  ;;  %v2874_v63 = vmul.f32 %v2678_v37, %v2090_v7  ;;  %v5363_v2 = vpop.eup %5362  ;;  %v2778_v43 = vadd.f32 1.0, %v5361_v12  ;;  %5376 = verf.f32 %v2390_v18  ;;  %v7154_v9 = vadd.f32 %v6848_v53, %v7059_v47 }
 0x1e0   : > { %v4632_v56 = vpack.c.bf16 %v2969_v50, %v2969_v50  ;;  %v2676_v3 = vadd.f32 1.0, %v5363_v2  ;;  %v2091_v49 = vmul.f32 0.5, %v7072_v44  ;;  %5378 = verf.f32 %v2288_v29 }
 0x1e1   : > { %v4537_v17 = vpack.c.bf16 %v2874_v63, %v2874_v63  ;;  %v2974_v52 = vmul.f32 %v2778_v43, %v2190_v21  ;;  %v2191_v19 = vmul.f32 0.5, %v7078_v35  ;;  %5380 = verf.f32 %v2388_v32 }
 0x1e2   : > { %3950 = vst.msk [vmem:[%s5914_s10 + $0x284] sm:$0xf] %vm3788_vm1, %v4632_v56  ;;  %v2291_v38 = vmul.f32 0.70710677, %v7150_v58  ;;  %v5365_v27 = vpop.eup %5364  ;;  %v2872_v47 = vmul.f32 %v2676_v3, %v2088_v30  ;;  %v2391_v15 = vmul.f32 0.70710677, %v7154_v9  ;;  %v7170_v25 = vadd.f32 %v6848_v53, %v7040_v20 }
 0x1e3   : > { %3855 = vst.msk [vmem:[%s5914_s10 + $0x108] sm:$0xf] %vm3788_vm1, %v4537_v17  ;;  %v7174_v44 = vadd.f32 %v6848_v53, %v7087_v22  ;;  %v5367_v59 = vpop.eup %5366  ;;  %v4637_v35 = vpack.c.bf16 %v2974_v52, %v2974_v52  ;;  %v2776_v0 = vadd.f32 1.0, %v5365_v27  ;;  %v7178_v5 = vadd.f32 %v6848_v53, %v7061_v1 }
 0x1e4   : > { %5382 = verf.f32 %v2291_v38  ;;  %v5369_v51 = vpop.eup %5368  ;;  %v4535_v20 = vpack.c.bf16 %v2872_v47, %v2872_v47  ;;  %v2679_v60 = vadd.f32 1.0, %v5367_v59  ;;  %v2089_v26 = vmul.f32 0.5, %v7082_v23 }
 0x1e5   : > { %5384 = verf.f32 %v2391_v15  ;;  %v5371_v22 = vpop.eup %5370  ;;  %3955 = vst.msk [vmem:[%s5914_s10 + $0x298] sm:$0xf] %vm3788_vm1, %v4637_v35  ;;  %v2972_v8 = vmul.f32 %v2776_v0, %v2188_v4  ;;  %v2779_v61 = vadd.f32 1.0, %v5369_v51  ;;  %v2189_v7 = vmul.f32 0.5, %v7102_v55  ;;  %v7196_v55 = vpop.f32.mrf.mxu0 }
 0x1e6   : > { %v2289_v1 = vmul.f32 0.70710677, %v7170_v25  ;;  %3853 = vst.msk [vmem:[%s5914_s10 + $0x100] sm:$0xf] %vm3788_vm1, %v4535_v20  ;;  %v2875_v62 = vmul.f32 %v2679_v60, %v2091_v49  ;;  %v2677_v36 = vadd.f32 1.0, %v5371_v22  ;;  %v2094_v42 = vmul.f32 0.5, %v7106_v45 }
 0x1e7   : > { %v2389_v41 = vmul.f32 0.70710677, %v7174_v44  ;;  %v4635_v23 = vpack.c.bf16 %v2972_v8, %v2972_v8  ;;  %v2975_v40 = vmul.f32 %v2779_v61, %v2191_v19  ;;  %v2294_v54 = vmul.f32 0.70710677, %v7178_v5  ;;  %v7222_v43 = vpop.f32.mrf.mxu0 }
 0x1e8   : > { %5386 = verf.f32 %v2289_v1  ;;  %v5373_v39 = vpop.eup %5372  ;;  %v4538_v48 = vpack.c.bf16 %v2875_v62, %v2875_v62  ;;  %v2873_v37 = vmul.f32 %v2677_v36, %v2089_v26  ;;  %v7200_v45 = vadd.f32 %v6848_v53, %v7108_v57 }
 0x1e9   : > { %5388 = verf.f32 %v2389_v41  ;;  %v5375_v21 = vpop.eup %5374  ;;  %3953 = vst.msk [vmem:[%s5914_s10 + $0x290] sm:$0xf] %vm3788_vm1, %v4635_v23  ;;  %v4638_v50 = vpack.c.bf16 %v2975_v40, %v2975_v40  ;;  %v2777_v30 = vadd.f32 1.0, %v5373_v39  ;;  %v7206_v18 = vadd.f32 %v6848_v53, %v7089_v6  ;;  %v7220_v6 = vpop.f32.mrf.mxu1 }
 0x1ea   : > { %5390 = verf.f32 %v2294_v54  ;;  %3856 = vst.msk [vmem:[%s5914_s10 + $0x10c] sm:$0xf] %vm3788_vm1, %v4538_v48  ;;  %v4536_v29 = vpack.c.bf16 %v2873_v37, %v2873_v37  ;;  %v2682_v12 = vadd.f32 1.0, %v5375_v21  ;;  %v2194_v63 = vmul.f32 0.5, %v7122_v28  ;;  %v7243_v20 = vpop.f32.mrf.mxu0 }
 0x1eb   : > { %v2394_v57 = vmul.f32 0.70710677, %v7200_v45  ;;  %3956 = vst.msk [vmem:[%s5914_s10 + $0x29c] sm:$0xf] %vm3788_vm1, %v4638_v50  ;;  %v2973_v4 = vmul.f32 %v2777_v30, %v2189_v7  ;;  %v2092_v32 = vmul.f32 0.5, %v7126_v14  ;;  %v7218_v56 = vadd.f32 %v6848_v53, %v7132_v34  ;;  %v7241_v51 = vpop.f32.mrf.mxu1 }
 0x1ec   : > { %v2292_v2 = vmul.f32 0.70710677, %v7206_v18  ;;  %v5377_v17 = vpop.eup %5376  ;;  %3854 = vst.msk [vmem:[%s5914_s10 + $0x104] sm:$0xf] %vm3788_vm1, %v4536_v29  ;;  %v2878_v28 = vmul.f32 %v2682_v12, %v2094_v42  ;;  %v7228_v3 = vadd.f32 %v6848_v53, %v7110_v24  ;;  %v7232_v14 = vadd.f32 %v6848_v53, %v7156_v46  ;;  %v7262_v40 = vpop.f32.mrf.mxu0 }
 0x1ed   : > { %5392 = verf.f32 %v2394_v57  ;;  %v5379_v34 = vpop.eup %5378  ;;  %v4636_v49 = vpack.c.bf16 %v2973_v4, %v2973_v4  ;;  %v2782_v52 = vadd.f32 1.0, %v5377_v17  ;;  %v2192_v19 = vmul.f32 0.5, %v7130_v31  ;;  %v7260_v23 = vpop.f32.mrf.mxu1 }
 0x1ee   : > { %5394 = verf.f32 %v2292_v2  ;;  %v5381_v38 = vpop.eup %5380  ;;  %v4541_v27 = vpack.c.bf16 %v2878_v28, %v2878_v28  ;;  %v2680_v47 = vadd.f32 1.0, %v5379_v34  ;;  %v2095_v15 = vmul.f32 0.5, %v7150_v58  ;;  %v7287_v17 = vpop.f32.mrf.mxu0 }
 0x1ef   : > { %v2392_v59 = vmul.f32 0.70710677, %v7218_v56  ;;  %3954 = vst.msk [vmem:[%s5914_s10 + $0x294] sm:$0xf] %vm3788_vm1, %v4636_v49  ;;  %v2978_v24 = vmul.f32 %v2782_v52, %v2194_v63  ;;  %v2780_v35 = vadd.f32 1.0, %v5381_v38  ;;  %v2195_v46 = vmul.f32 0.5, %v7154_v9  ;;  %v4953_v2 = vpop.f32.mrf.mxu1 }
 0x1f0   : > { %v2295_v0 = vmul.f32 0.70710677, %v7228_v3  ;;  %3859 = vst.msk [vmem:[%s5914_s10 + $0x118] sm:$0xf] %vm3788_vm1, %v4541_v27  ;;  %v2876_v60 = vmul.f32 %v2680_v47, %v2092_v32  ;;  %v2395_v58 = vmul.f32 0.70710677, %v7232_v14  ;;  %v7250_v26 = vadd.f32 %v6848_v53, %v7134_v13 }
 0x1f1   : > { %v5383_v31 = vpop.eup %5382  ;;  %5396 = verf.f32 %v2392_v59  ;;  %v4641_v9 = vpack.c.bf16 %v2978_v24, %v2978_v24  ;;  %v2976_v8 = vmul.f32 %v2780_v35, %v2192_v19  ;;  %v2093_v62 = vmul.f32 0.5, %v7170_v25  ;;  %v1961_v24 = vpop.f32.mrf.mxu1 }
 0x1f2   : > { %v5385_v22 = vpop.eup %5384  ;;  %v2683_v61 = vadd.f32 1.0, %v5383_v31  ;;  %5398 = verf.f32 %v2295_v0  ;;  %v4539_v7 = vpack.c.bf16 %v2876_v60, %v2876_v60  ;;  %v2293_v41 = vmul.f32 0.70710677, %v7250_v26  ;;  %v7304_v35 = vpop.f32.mrf.mxu0 }
 0x1f3   : > { %v2783_v1 = vadd.f32 1.0, %v5385_v22  ;;  %5400 = verf.f32 %v2395_v58  ;;  %3959 = vst.msk [vmem:[%s5914_s10 + $0x2a8] sm:$0xf] %vm3788_vm1, %v4641_v9  ;;  %v4639_v36 = vpack.c.bf16 %v2976_v8, %v2976_v8  ;;  %v7258_v13 = vadd.f32 %v6848_v53, %v7180_v10 }
 0x1f4   : > { %v2879_v42 = vmul.f32 %v2683_v61, %v2095_v15  ;;  %3857 = vst.msk [vmem:[%s5914_s10 + $0x110] sm:$0xf] %vm3788_vm1, %v4539_v7  ;;  %v2193_v39 = vmul.f32 0.5, %v7174_v44  ;;  %v7269_v48 = vadd.f32 %v6848_v53, %v7158_v16  ;;  %v7273_v37 = vadd.f32 %v6848_v53, %v7194_v11 }
 0x1f5   : > { %v5387_v54 = vpop.eup %5386  ;;  %v2979_v25 = vmul.f32 %v2783_v1, %v2195_v46  ;;  %3957 = vst.msk [vmem:[%s5914_s10 + $0x2a0] sm:$0xf] %vm3788_vm1, %v4639_v36  ;;  %5402 = verf.f32 %v2293_v41  ;;  %v7279_v30 = vadd.f32 %v6848_v53, %v7182_v33  ;;  %v2098_v16 = vmul.f32 0.5, %v7178_v5 }
 0x1f6   : > { %v5389_v10 = vpop.eup %5388  ;;  %v4542_v21 = vpack.c.bf16 %v2879_v42, %v2879_v42  ;;  %v2681_v50 = vadd.f32 1.0, %v5387_v54  ;;  %v2393_v63 = vmul.f32 0.70710677, %v7258_v13  ;;  %v2198_v4 = vmul.f32 0.5, %v7200_v45  ;;  %v7325_v42 = vpop.f32.mrf.mxu0 }
 0x1f7   : > { %v5391_v44 = vpop.eup %5390  ;;  %v4642_v29 = vpack.c.bf16 %v2979_v25, %v2979_v25  ;;  %v2781_v12 = vadd.f32 1.0, %v5389_v10  ;;  %v2298_v32 = vmul.f32 0.70710677, %v7269_v48  ;;  %v2096_v28 = vmul.f32 0.5, %v7206_v18 }
 0x1f8   : > { %3860 = vst.msk [vmem:[%s5914_s10 + $0x11c] sm:$0xf] %vm3788_vm1, %v4542_v21  ;;  %v2877_v11 = vmul.f32 %v2681_v50, %v2093_v62  ;;  %v2686_v57 = vadd.f32 1.0, %v5391_v44  ;;  %5404 = verf.f32 %v2393_v63  ;;  %v2398_v5 = vmul.f32 0.70710677, %v7273_v37 }
 0x1f9   : > { %3960 = vst.msk [vmem:[%s5914_s10 + $0x2ac] sm:$0xf] %vm3788_vm1, %v4642_v29  ;;  %v2977_v33 = vmul.f32 %v2781_v12, %v2193_v39  ;;  %5406 = verf.f32 %v2298_v32  ;;  %v2296_v45 = vmul.f32 0.70710677, %v7279_v30  ;;  %v7296_v47 = vadd.f32 %v6848_v53, %v7220_v6 }
 0x1fa   : > { %v5393_v34 = vpop.eup %5392  ;;  %v4540_v49 = vpack.c.bf16 %v2877_v11, %v2877_v11  ;;  %v2882_v52 = vmul.f32 %v2686_v57, %v2098_v16  ;;  %5408 = verf.f32 %v2398_v5  ;;  %v7302_v59 = vadd.f32 %v6848_v53, %v7196_v55  ;;  %v7348_v11 = vpop.f32.mrf.mxu0 }
 0x1fb   : > { %v5395_v19 = vpop.eup %5394  ;;  %v4640_v38 = vpack.c.bf16 %v2977_v33, %v2977_v33  ;;  %v2786_v27 = vadd.f32 1.0, %v5393_v34  ;;  %5410 = verf.f32 %v2296_v45  ;;  %v2396_v0 = vmul.f32 0.70710677, %v7296_v47  ;;  %v7358_v33 = vld [vmem:[#allocation4] ss:$0 sm:$0xff] }
 0x1fc   : > { %3858 = vst.msk [vmem:[%s5914_s10 + $0x114] sm:$0xf] %vm3788_vm1, %v4540_v49  ;;  %v4545_v18 = vpack.c.bf16 %v2882_v52, %v2882_v52  ;;  %v2684_v15 = vadd.f32 1.0, %v5395_v19  ;;  %v7311_v6 = vadd.f32 %v6848_v53, %v7241_v51  ;;  %v2196_v55 = vmul.f32 0.5, %v7218_v56  ;;  %v7323_v56 = vpop.f32.mrf.mxu1 }
 0x1fd   : > { %3958 = vst.msk [vmem:[%s5914_s10 + $0x2a4] sm:$0xf] %vm3788_vm1, %v4640_v38  ;;  %v2982_v46 = vmul.f32 %v2786_v27, %v2198_v4  ;;  %v2299_v58 = vmul.f32 0.70710677, %v7302_v59  ;;  %v7319_v22 = vadd.f32 %v6848_v53, %v7222_v43  ;;  %v2099_v51 = vmul.f32 0.5, %v7228_v3  ;;  %v7374_v38 = vpop.f32.mrf.mxu0 }
 0x1fe   : > { %v5397_v31 = vpop.eup %5396  ;;  %3863 = vst.msk [vmem:[%s5914_s10 + $0x128] sm:$0xf] %vm3788_vm1, %v4545_v18  ;;  %v2880_v60 = vmul.f32 %v2684_v15, %v2096_v28  ;;  %5412 = verf.f32 %v2396_v0  ;;  %v2399_v36 = vmul.f32 0.70710677, %v7311_v6  ;;  %v2199_v41 = vmul.f32 0.5, %v7232_v14 }
 0x1ff   : > { %v5399_v9 = vpop.eup %5398  ;;  %v4645_v8 = vpack.c.bf16 %v2982_v46, %v2982_v46  ;;  %v2784_v61 = vadd.f32 1.0, %v5397_v31  ;;  %5414 = verf.f32 %v2299_v58  ;;  %v2297_v25 = vmul.f32 0.70710677, %v7319_v22 }
 0x200   : > { %v5401_v7 = vpop.eup %5400  ;;  %v4543_v1 = vpack.c.bf16 %v2880_v60, %v2880_v60  ;;  %v2687_v62 = vadd.f32 1.0, %v5399_v9  ;;  %5416 = verf.f32 %v2399_v36  ;;  %v7335_v39 = vadd.f32 %v6848_v53, %v7260_v23  ;;  %v7346_v23 = vpop.f32.mrf.mxu1 }
 0x201   : > { %3963 = vst.msk [vmem:[%s5914_s10 + $0x2b8] sm:$0xf] %vm3788_vm1, %v4645_v8  ;;  %v2980_v43 = vmul.f32 %v2784_v61, %v2196_v55  ;;  %v2787_v54 = vadd.f32 1.0, %v5401_v7  ;;  %v7339_v10 = vadd.f32 %v6848_v53, %v7243_v20  ;;  %5418 = verf.f32 %v2297_v25  ;;  %v7387_v7 = vpop.f32.mrf.mxu0 }
 0x202   : > { %3861 = vst.msk [vmem:[%s5914_s10 + $0x120] sm:$0xf] %vm3788_vm1, %v4543_v1  ;;  %v2883_v3 = vmul.f32 %v2687_v62, %v2099_v51  ;;  %v5403_v21 = vpop.eup %5402  ;;  %v7342_v44 = vadd.f32 %v6848_v53, %v4953_v2  ;;  %v2097_v12 = vmul.f32 0.5, %v7250_v26  ;;  %v2397_v63 = vmul.f32 0.70710677, %v7335_v39 }
 0x203   : > { %v4643_v50 = vpack.c.bf16 %v2980_v43, %v2980_v43  ;;  %v2983_v14 = vmul.f32 %v2787_v54, %v2199_v41  ;;  %v2685_v16 = vadd.f32 1.0, %v5403_v21  ;;  %v2197_v57 = vmul.f32 0.5, %v7258_v13 }
 0x204   : > { %v4546_v29 = vpack.c.bf16 %v2883_v3, %v2883_v3  ;;  %v2102_v4 = vmul.f32 0.5, %v7269_v48  ;;  %v2302_v53 = vmul.f32 0.70710677, %v7339_v10  ;;  %5420 = verf.f32 %v2397_v63  ;;  %v7413_v63 = vpop.f32.mrf.mxu0 }
 0x205   : > { %3961 = vst.msk [vmem:[%s5914_s10 + $0x2b0] sm:$0xf] %vm3788_vm1, %v4643_v50  ;;  %v4646_v20 = vpack.c.bf16 %v2983_v14, %v2983_v14  ;;  %v5405_v32 = vpop.eup %5404  ;;  %v2881_v26 = vmul.f32 %v2685_v16, %v2097_v12  ;;  %v2402_v2 = vmul.f32 0.70710677, %v7342_v44  ;;  %v7362_v28 = vadd.f32 %v7358_v33, %v7262_v40  ;;  %v4957_v40 = vpop.f32.mrf.mxu1 }
 0x206   : > { %3864 = vst.msk [vmem:[%s5914_s10 + $0x12c] sm:$0xf] %vm3788_vm1, %v4546_v29  ;;  %v5407_v5 = vpop.eup %5406  ;;  %v2785_v13 = vadd.f32 1.0, %v5405_v32  ;;  %5422 = verf.f32 %v2302_v53  ;;  %v7367_v48 = vadd.f32 %v7358_v33, %v1961_v24  ;;  %v7371_v34 = vadd.f32 %v7358_v33, %v7287_v17 }
 0x207   : > { %3964 = vst.msk [vmem:[%s5914_s10 + $0x2bc] sm:$0xf] %vm3788_vm1, %v4646_v20  ;;  %v5409_v49 = vpop.eup %5408  ;;  %v4544_v52 = vpack.c.bf16 %v2881_v26, %v2881_v26  ;;  %v2690_v45 = vadd.f32 1.0, %v5407_v5  ;;  %v2202_v19 = vmul.f32 0.5, %v7273_v37  ;;  %5424 = verf.f32 %v2402_v2  ;;  %v1977_v51 = vpop.f32.mrf.mxu1 }
 0x208   : > { %v5411_v27 = vpop.eup %5410  ;;  %v2981_v18 = vmul.f32 %v2785_v13, %v2197_v57  ;;  %v2790_v15 = vadd.f32 1.0, %v5409_v49  ;;  %v2100_v46 = vmul.f32 0.5, %v7279_v30  ;;  %v2300_v24 = vmul.f32 0.70710677, %v7362_v28 }
 0x209   : > { %3862 = vst.msk [vmem:[%s5914_s10 + $0x124] sm:$0xf] %vm3788_vm1, %v4544_v52  ;;  %v2886_v17 = vmul.f32 %v2690_v45, %v2102_v4  ;;  %v2688_v0 = vadd.f32 1.0, %v5411_v27  ;;  %v2200_v31 = vmul.f32 0.5, %v7296_v47  ;;  %v2400_v37 = vmul.f32 0.70710677, %v7367_v48  ;;  %v4958_v16 = vpop.f32.mrf.mxu1 }
 0x20a   : > { %v4644_v60 = vpack.c.bf16 %v2981_v18, %v2981_v18  ;;  %v2986_v55 = vmul.f32 %v2790_v15, %v2202_v19  ;;  %5426 = verf.f32 %v2300_v24  ;;  %v2303_v58 = vmul.f32 0.70710677, %v7371_v34  ;;  %v7433_v19 = vpop.f32.mrf.mxu0 }
 0x20b   : > { %v5413_v9 = vpop.eup %5412  ;;  %v4549_v8 = vpack.c.bf16 %v2886_v17, %v2886_v17  ;;  %v2884_v30 = vmul.f32 %v2688_v0, %v2100_v46  ;;  %5428 = verf.f32 %v2400_v37  ;;  %v7385_v61 = vadd.f32 %v7358_v33, %v7323_v56  ;;  %v1980_v45 = vpop.f32.mrf.mxu1 }
 0x20c   : > { %v5415_v47 = vpop.eup %5414  ;;  %3962 = vst.msk [vmem:[%s5914_s10 + $0x2b4] sm:$0xf] %vm3788_vm1, %v4644_v60  ;;  %v4649_v1 = vpack.c.bf16 %v2986_v55, %v2986_v55  ;;  %v2788_v62 = vadd.f32 1.0, %v5413_v9  ;;  %5430 = verf.f32 %v2303_v58  ;;  %v7393_v36 = vadd.f32 %v7358_v33, %v7304_v35 }
 0x20d   : > { %3867 = vst.msk [vmem:[%s5914_s10 + $0x138] sm:$0xf] %vm3788_vm1, %v4549_v8  ;;  %v4547_v43 = vpack.c.bf16 %v2884_v30, %v2884_v30  ;;  %v2103_v56 = vmul.f32 0.5, %v7302_v59  ;;  %v2691_v41 = vadd.f32 1.0, %v5415_v47  ;;  %v2403_v54 = vmul.f32 0.70710677, %v7385_v61  ;;  %v5417_v25 = vpop.eup %5416  ;;  %v4961_v9 = vpop.f32.mrf.mxu1 }
 0x20e   : > { %3967 = vst.msk [vmem:[%s5914_s10 + $0x2c8] sm:$0xf] %vm3788_vm1, %v4649_v1  ;;  %v2984_v3 = vmul.f32 %v2788_v62, %v2200_v31  ;;  %v2203_v21 = vmul.f32 0.5, %v7311_v6  ;;  %v2301_v50 = vmul.f32 0.70710677, %v7393_v36  ;;  %v7405_v35 = vadd.f32 %v7358_v33, %v7346_v23  ;;  %v5419_v14 = vpop.eup %5418  ;;  %v7449_v8 = vpop.f32.mrf.mxu0 }
 0x20f   : > { %3865 = vst.msk [vmem:[%s5914_s10 + $0x130] sm:$0xf] %vm3788_vm1, %v4547_v43  ;;  %v2887_v59 = vmul.f32 %v2691_v41, %v2103_v56  ;;  %v2791_v29 = vadd.f32 1.0, %v5417_v25  ;;  %5432 = verf.f32 %v2403_v54  ;;  %v7411_v12 = vadd.f32 %v7358_v33, %v7325_v42 }
 0x210   : > { %v4647_v6 = vpack.c.bf16 %v2984_v3, %v2984_v3  ;;  %v2101_v20 = vmul.f32 0.5, %v7319_v22  ;;  %v2689_v23 = vadd.f32 1.0, %v5419_v14  ;;  %5434 = verf.f32 %v2301_v50  ;;  %v1993_v14 = vpop.f32.mrf.mxu1 }
 0x211   : > { %v4550_v57 = vpack.c.bf16 %v2887_v59, %v2887_v59  ;;  %v2987_v4 = vmul.f32 %v2791_v29, %v2203_v21  ;;  %v2201_v53 = vmul.f32 0.5, %v7335_v39  ;;  %v2401_v32 = vmul.f32 0.70710677, %v7405_v35  ;;  %v5421_v26 = vpop.eup %5420  ;;  %v7471_v59 = vpop.f32.mrf.mxu0 }
 0x212   : > { %3965 = vst.msk [vmem:[%s5914_s10 + $0x2c0] sm:$0xf] %vm3788_vm1, %v4647_v6  ;;  %v2885_v42 = vmul.f32 %v2689_v23, %v2101_v20  ;;  %v2306_v2 = vmul.f32 0.70710677, %v7411_v12  ;;  %v7422_v5 = vadd.f32 %v7358_v33, %v4957_v40  ;;  %v7426_v22 = vadd.f32 %v7358_v33, %v7348_v11 }
 0x213   : > { %v5423_v13 = vpop.eup %5422  ;;  %3868 = vst.msk [vmem:[%s5914_s10 + $0x13c] sm:$0xf] %vm3788_vm1, %v4550_v57  ;;  %v4650_v39 = vpack.c.bf16 %v2987_v4, %v2987_v4  ;;  %v2789_v49 = vadd.f32 1.0, %v5421_v26  ;;  %5436 = verf.f32 %v2401_v32  ;;  %v7431_v52 = vadd.f32 %v7358_v33, %v1977_v51 }
 0x214   : > { %v5425_v27 = vpop.eup %5424  ;;  %v4548_v40 = vpack.c.bf16 %v2885_v42, %v2885_v42  ;;  %v2106_v18 = vmul.f32 0.5, %v7339_v10  ;;  %v2694_v15 = vadd.f32 1.0, %v5423_v13  ;;  %5438 = verf.f32 %v2306_v2  ;;  %v4962_v13 = vpop.f32.mrf.mxu1 }
 0x215   : > { %3968 = vst.msk [vmem:[%s5914_s10 + $0x2cc] sm:$0xf] %vm3788_vm1, %v4650_v39  ;;  %v2985_v11 = vmul.f32 %v2789_v49, %v2201_v53  ;;  %v2206_v46 = vmul.f32 0.5, %v7342_v44  ;;  %v2794_v24 = vadd.f32 1.0, %v5425_v27  ;;  %v2406_v17 = vmul.f32 0.70710677, %v7422_v5  ;;  %v7487_v39 = vpop.f32.mrf.mxu0 }
 0x216   : > { %3866 = vst.msk [vmem:[%s5914_s10 + $0x134] sm:$0xf] %vm3788_vm1, %v4548_v40  ;;  %v2890_v0 = vmul.f32 %v2694_v15, %v2106_v18  ;;  %v2104_v31 = vmul.f32 0.5, %v7362_v28  ;;  %v2304_v37 = vmul.f32 0.70710677, %v7426_v22  ;;  %v7447_v44 = vadd.f32 %v7358_v33, %v7374_v38 }
 0x217   : > { %v2404_v10 = vmul.f32 0.70710677, %v7431_v52  ;;  %v5427_v60 = vpop.eup %5426  ;;  %v4648_v55 = vpack.c.bf16 %v2985_v11, %v2985_v11  ;;  %v2990_v58 = vmul.f32 %v2794_v24, %v2206_v46  ;;  %5440 = verf.f32 %v2406_v17 }
 0x218   : > { %v5429_v30 = vpop.eup %5428  ;;  %v4553_v28 = vpack.c.bf16 %v2890_v0, %v2890_v0  ;;  %v2692_v51 = vadd.f32 1.0, %v5427_v60  ;;  %5442 = verf.f32 %v2304_v37  ;;  %v7452_v47 = vadd.f32 %v7358_v33, %v4958_v16  ;;  %v1996_v37 = vpop.f32.mrf.mxu1 }
 0x219   : > { %v5431_v1 = vpop.eup %5430  ;;  %3966 = vst.msk [vmem:[%s5914_s10 + $0x2c4] sm:$0xf] %vm3788_vm1, %v4648_v55  ;;  %v4653_v62 = vpack.c.bf16 %v2990_v58, %v2990_v58  ;;  %v2204_v43 = vmul.f32 0.5, %v7367_v48  ;;  %v2792_v56 = vadd.f32 1.0, %v5429_v30  ;;  %5444 = verf.f32 %v2404_v10  ;;  %v1609_v10 = vpop.f32.mrf.mxu0 }
 0x21a   : > { %3871 = vst.msk [vmem:[%s5914_s10 + $0x148] sm:$0xf] %vm3788_vm1, %v4553_v28  ;;  %v2888_v38 = vmul.f32 %v2692_v51, %v2104_v31  ;;  %v2107_v41 = vmul.f32 0.5, %v7371_v34  ;;  %v2695_v54 = vadd.f32 1.0, %v5431_v1  ;;  %v2307_v25 = vmul.f32 0.70710677, %v7447_v44 }
 0x21b   : > { %3971 = vst.msk [vmem:[%s5914_s10 + $0x2d8] sm:$0xf] %vm3788_vm1, %v4653_v62  ;;  %v2988_v3 = vmul.f32 %v2792_v56, %v2204_v43  ;;  %v2407_v21 = vmul.f32 0.70710677, %v7452_v47  ;;  %v7466_v50 = vadd.f32 %v7358_v33, %v7387_v7  ;;  %v7469_v48 = vadd.f32 %v7358_v33, %v1980_v45 }
 0x21c   : > { %v5433_v34 = vpop.eup %5432  ;;  %v4551_v29 = vpack.c.bf16 %v2888_v38, %v2888_v38  ;;  %v2891_v16 = vmul.f32 %v2695_v54, %v2107_v41  ;;  %5446 = verf.f32 %v2307_v25  ;;  %v7475_v6 = vadd.f32 %v7358_v33, %v7413_v63  ;;  %v4965_v41 = vpop.f32.mrf.mxu1 }
 0x21d   : > { %v5435_v20 = vpop.eup %5434  ;;  %v4651_v23 = vpack.c.bf16 %v2988_v3, %v2988_v3  ;;  %v2207_v7 = vmul.f32 0.5, %v7385_v61  ;;  %v2795_v57 = vadd.f32 1.0, %v5433_v34  ;;  %5448 = verf.f32 %v2407_v21  ;;  %v7522_v54 = vpop.f32.mrf.mxu0 }
 0x21e   : > { %3869 = vst.msk [vmem:[%s5914_s10 + $0x140] sm:$0xf] %vm3788_vm1, %v4551_v29  ;;  %v4554_v4 = vpack.c.bf16 %v2891_v16, %v2891_v16  ;;  %v2105_v53 = vmul.f32 0.5, %v7393_v36  ;;  %v2693_v32 = vadd.f32 1.0, %v5435_v20  ;;  %v2305_v26 = vmul.f32 0.70710677, %v7466_v50 }
 0x21f   : > { %3969 = vst.msk [vmem:[%s5914_s10 + $0x2d0] sm:$0xf] %vm3788_vm1, %v4651_v23  ;;  %v2991_v42 = vmul.f32 %v2795_v57, %v2207_v7  ;;  %v2205_v63 = vmul.f32 0.5, %v7405_v35  ;;  %v2405_v2 = vmul.f32 0.70710677, %v7469_v48  ;;  %v7492_v45 = vadd.f32 %v7358_v33, %v4961_v9 }
 0x220   : > { %v2310_v61 = vmul.f32 0.70710677, %v7475_v6  ;;  %v5437_v49 = vpop.eup %5436  ;;  %3872 = vst.msk [vmem:[%s5914_s10 + $0x14c] sm:$0xf] %vm3788_vm1, %v4554_v4  ;;  %v2889_v36 = vmul.f32 %v2693_v32, %v2105_v53  ;;  %5450 = verf.f32 %v2305_v26  ;;  %v7496_v27 = vadd.f32 %v7358_v33, %v7433_v19  ;;  %v2009_v32 = vpop.f32.mrf.mxu1 }
 0x221   : > { %v5439_v35 = vpop.eup %5438  ;;  %v4654_v40 = vpack.c.bf16 %v2991_v42, %v2991_v42  ;;  %v2793_v18 = vadd.f32 1.0, %v5437_v49  ;;  %5452 = verf.f32 %v2405_v2  ;;  %v7499_v15 = vadd.f32 %v7358_v33, %v1993_v14  ;;  %v1612_v26 = vpop.f32.mrf.mxu0 }
 0x222   : > { %v4552_v11 = vpack.c.bf16 %v2889_v36, %v2889_v36  ;;  %v2110_v46 = vmul.f32 0.5, %v7411_v12  ;;  %v2698_v24 = vadd.f32 1.0, %v5439_v35  ;;  %5454 = verf.f32 %v2310_v61 }
 0x223   : > { %3972 = vst.msk [vmem:[%s5914_s10 + $0x2dc] sm:$0xf] %vm3788_vm1, %v4654_v40  ;;  %v2989_v17 = vmul.f32 %v2793_v18, %v2205_v63  ;;  %v2210_v0 = vmul.f32 0.5, %v7422_v5  ;;  %v2410_v19 = vmul.f32 0.70710677, %v7492_v45  ;;  %v2108_v12 = vmul.f32 0.5, %v7426_v22 }
 0x224   : > { %v2308_v31 = vmul.f32 0.70710677, %v7496_v27  ;;  %v5441_v60 = vpop.eup %5440  ;;  %3870 = vst.msk [vmem:[%s5914_s10 + $0x144] sm:$0xf] %vm3788_vm1, %v4552_v11  ;;  %v2894_v55 = vmul.f32 %v2698_v24, %v2110_v46  ;;  %v2408_v58 = vmul.f32 0.70710677, %v7499_v15  ;;  %v7513_v9 = vadd.f32 %v7358_v33, %v7449_v8 }
 0x225   : > { %v5443_v5 = vpop.eup %5442  ;;  %v4652_v30 = vpack.c.bf16 %v2989_v17, %v2989_v17  ;;  %v2798_v28 = vadd.f32 1.0, %v5441_v60  ;;  %5456 = verf.f32 %v2410_v19  ;;  %v7516_v51 = vadd.f32 %v7358_v33, %v4962_v13 }
 0x226   : > { %v5445_v1 = vpop.eup %5444  ;;  %v4557_v62 = vpack.c.bf16 %v2894_v55, %v2894_v55  ;;  %v2696_v43 = vadd.f32 1.0, %v5443_v5  ;;  %v2208_v56 = vmul.f32 0.5, %v7431_v52  ;;  %5458 = verf.f32 %v2308_v31  ;;  %v4966_v55 = vpop.f32.mrf.mxu1 }
 0x227   : > { %3970 = vst.msk [vmem:[%s5914_s10 + $0x2d4] sm:$0xf] %vm3788_vm1, %v4652_v30  ;;  %v2994_v22 = vmul.f32 %v2798_v28, %v2210_v0  ;;  %v2796_v38 = vadd.f32 1.0, %v5445_v1  ;;  %5460 = verf.f32 %v2408_v58  ;;  %v2311_v8 = vmul.f32 0.70710677, %v7513_v9 }
 0x228   : > { %3875 = vst.msk [vmem:[%s5914_s10 + $0x158] sm:$0xf] %vm3788_vm1, %v4557_v62  ;;  %v2892_v25 = vmul.f32 %v2696_v43, %v2108_v12  ;;  %v2111_v3 = vmul.f32 0.5, %v7447_v44  ;;  %v2411_v21 = vmul.f32 0.70710677, %v7516_v51  ;;  %v7530_v52 = vadd.f32 %v7358_v33, %v7471_v59 }
 0x229   : > { %v5447_v14 = vpop.eup %5446  ;;  %v4657_v34 = vpack.c.bf16 %v2994_v22, %v2994_v22  ;;  %v2992_v29 = vmul.f32 %v2796_v38, %v2208_v56  ;;  %5462 = verf.f32 %v2311_v8  ;;  %v7533_v16 = vadd.f32 %v7358_v33, %v1996_v37 }
 0x22a   : > { %v5449_v20 = vpop.eup %5448  ;;  %v4555_v23 = vpack.c.bf16 %v2892_v25, %v2892_v25  ;;  %v2699_v7 = vadd.f32 1.0, %v5447_v14  ;;  %v2211_v44 = vmul.f32 0.5, %v7452_v47  ;;  %5464 = verf.f32 %v2411_v21 }
 0x22b   : > { %3975 = vst.msk [vmem:[%s5914_s10 + $0x2e8] sm:$0xf] %vm3788_vm1, %v4657_v34  ;;  %v4655_v57 = vpack.c.bf16 %v2992_v29, %v2992_v29  ;;  %v2799_v59 = vadd.f32 1.0, %v5449_v20  ;;  %v2109_v4 = vmul.f32 0.5, %v7466_v50  ;;  %v2309_v53 = vmul.f32 0.70710677, %v7530_v52  ;;  %v2012_v20 = vpop.f32.mrf.mxu1 }
 0x22c   : > { %3873 = vst.msk [vmem:[%s5914_s10 + $0x150] sm:$0xf] %vm3788_vm1, %v4555_v23  ;;  %v2895_v42 = vmul.f32 %v2699_v7, %v2111_v3  ;;  %v2409_v63 = vmul.f32 0.70710677, %v7533_v16  ;;  %v7545_v2 = vadd.f32 %v7358_v33, %v7487_v39  ;;  %v7548_v47 = vadd.f32 %v7358_v33, %v4965_v41 }
 0x22d   : > { %v5451_v61 = vpop.eup %5450  ;;  %3973 = vst.msk [vmem:[%s5914_s10 + $0x2e0] sm:$0xf] %vm3788_vm1, %v4655_v57  ;;  %v2995_v50 = vmul.f32 %v2799_v59, %v2211_v44  ;;  %v2209_v13 = vmul.f32 0.5, %v7469_v48  ;;  %5466 = verf.f32 %v2309_v53  ;;  %v7554_v49 = vadd.f32 %v7358_v33, %v1609_v10  ;;  %v4869_v48 = vpop.f32.mrf.mxu0 }
 0x22e   : > { %v5453_v36 = vpop.eup %5452  ;;  %v4558_v35 = vpack.c.bf16 %v2895_v42, %v2895_v42  ;;  %v2697_v40 = vadd.f32 1.0, %v5451_v61  ;;  %5468 = verf.f32 %v2409_v63  ;;  %v7557_v39 = vadd.f32 %v7358_v33, %v2009_v32 }
 0x22f   : > { %v5455_v18 = vpop.eup %5454  ;;  %v4658_v11 = vpack.c.bf16 %v2995_v50, %v2995_v50  ;;  %v2797_v46 = vadd.f32 1.0, %v5453_v36  ;;  %v2114_v24 = vmul.f32 0.5, %v7475_v6  ;;  %v2314_v17 = vmul.f32 0.70710677, %v7545_v2  ;;  %v1625_v62 = vpop.f32.mrf.mxu0 }
 0x230   : > { %3876 = vst.msk [vmem:[%s5914_s10 + $0x15c] sm:$0xf] %vm3788_vm1, %v4558_v35  ;;  %v2893_v0 = vmul.f32 %v2697_v40, %v2109_v4  ;;  %v2702_v19 = vadd.f32 1.0, %v5455_v18  ;;  %v2214_v31 = vmul.f32 0.5, %v7492_v45  ;;  %v2414_v37 = vmul.f32 0.70710677, %v7548_v47 }
 0x231   : > { %3976 = vst.msk [vmem:[%s5914_s10 + $0x2ec] sm:$0xf] %vm3788_vm1, %v4658_v11  ;;  %v2993_v10 = vmul.f32 %v2797_v46, %v2209_v13  ;;  %v2112_v60 = vmul.f32 0.5, %v7496_v27  ;;  %5470 = verf.f32 %v2314_v17  ;;  %v2312_v6 = vmul.f32 0.70710677, %v7554_v49  ;;  %v4870_v57 = vpop.f32.mrf.mxu0 }
 0x232   : > { %v5457_v12 = vpop.eup %5456  ;;  %v4556_v58 = vpack.c.bf16 %v2893_v0, %v2893_v0  ;;  %v2898_v5 = vmul.f32 %v2702_v19, %v2114_v24  ;;  %5472 = verf.f32 %v2414_v37  ;;  %v2412_v30 = vmul.f32 0.70710677, %v7557_v39 }
 0x233   : > { %v5459_v45 = vpop.eup %5458  ;;  %v4656_v28 = vpack.c.bf16 %v2993_v10, %v2993_v10  ;;  %v2802_v1 = vadd.f32 1.0, %v5457_v12  ;;  %5474 = verf.f32 %v2312_v6  ;;  %v7572_v27 = vadd.f32 %v7358_v33, %v7522_v54 }
 0x234   : > { %v5461_v43 = vpop.eup %5460  ;;  %3874 = vst.msk [vmem:[%s5914_s10 + $0x154] sm:$0xf] %vm3788_vm1, %v4556_v58  ;;  %v4561_v56 = vpack.c.bf16 %v2898_v5, %v2898_v5  ;;  %v2700_v22 = vadd.f32 1.0, %v5459_v45  ;;  %5476 = verf.f32 %v2412_v30  ;;  %v7577_v38 = vadd.f32 %v7358_v33, %v4966_v55 }
 0x235   : > { %3974 = vst.msk [vmem:[%s5914_s10 + $0x2e4] sm:$0xf] %vm3788_vm1, %v4656_v28  ;;  %v2998_v8 = vmul.f32 %v2802_v1, %v2214_v31  ;;  %v2212_v41 = vmul.f32 0.5, %v7499_v15  ;;  %v2800_v25 = vadd.f32 1.0, %v5461_v43  ;;  %v2315_v3 = vmul.f32 0.70710677, %v7572_v27 }
 0x236   : > { %v5463_v54 = vpop.eup %5462  ;;  %3879 = vst.msk [vmem:[%s5914_s10 + $0x168] sm:$0xf] %vm3788_vm1, %v4561_v56  ;;  %v2896_v21 = vmul.f32 %v2700_v22, %v2112_v60  ;;  %v2115_v14 = vmul.f32 0.5, %v7513_v9  ;;  %v2415_v34 = vmul.f32 0.70710677, %v7577_v38  ;;  %v7588_v29 = vadd.f32 %v7358_v33, %v1612_v26 }
 0x237   : > { %v5465_v23 = vpop.eup %5464  ;;  %v4661_v7 = vpack.c.bf16 %v2998_v8, %v2998_v8  ;;  %v2996_v15 = vmul.f32 %v2800_v25, %v2212_v41  ;;  %v2703_v44 = vadd.f32 1.0, %v5463_v54  ;;  %5478 = verf.f32 %v2315_v3 }
 0x238   : > { %v4559_v59 = vpack.c.bf16 %v2896_v21, %v2896_v21  ;;  %v2215_v4 = vmul.f32 0.5, %v7516_v51  ;;  %v2803_v53 = vadd.f32 1.0, %v5465_v23  ;;  %5480 = verf.f32 %v2415_v34 }
 0x239   : > { %3979 = vst.msk [vmem:[%s5914_s10 + $0x2f8] sm:$0xf] %vm3788_vm1, %v4661_v7  ;;  %v4659_v9 = vpack.c.bf16 %v2996_v15, %v2996_v15  ;;  %v2899_v32 = vmul.f32 %v2703_v44, %v2115_v14  ;;  %v2313_v26 = vmul.f32 0.70710677, %v7588_v29  ;;  %v7595_v42 = vadd.f32 %v7358_v33, %v2012_v20 }
 0x23a   : > { %v5467_v63 = vpop.eup %5466  ;;  %3877 = vst.msk [vmem:[%s5914_s10 + $0x160] sm:$0xf] %vm3788_vm1, %v4559_v59  ;;  %v2999_v61 = vmul.f32 %v2803_v53, %v2215_v4  ;;  %v7600_v50 = vadd.f32 %v7358_v33, %v4869_v48  ;;  %v7603_v51 = vadd.f32 %v7358_v33, %v1625_v62  ;;  %v7606_v13 = vadd.f32 %v7358_v33, %v4870_v57  ;;  %v1628_v48 = vpop.f32.mrf.mxu0 }
 0x23b   : > { %v5469_v36 = vpop.eup %5468  ;;  %3977 = vst.msk [vmem:[%s5914_s10 + $0x2f0] sm:$0xf] %vm3788_vm1, %v4659_v9  ;;  %v4562_v35 = vpack.c.bf16 %v2899_v32, %v2899_v32  ;;  %v2113_v40 = vmul.f32 0.5, %v7530_v52  ;;  %v2701_v18 = vadd.f32 1.0, %v5467_v63  ;;  %5482 = verf.f32 %v2313_v26 }
 0x23c   : > { %v4662_v11 = vpack.c.bf16 %v2999_v61, %v2999_v61  ;;  %v2213_v46 = vmul.f32 0.5, %v7533_v16  ;;  %v2801_v24 = vadd.f32 1.0, %v5469_v36  ;;  %v2413_v17 = vmul.f32 0.70710677, %v7595_v42 }
 0x23d   : > { %3880 = vst.msk [vmem:[%s5914_s10 + $0x16c] sm:$0xf] %vm3788_vm1, %v4562_v35  ;;  %v2897_v0 = vmul.f32 %v2701_v18, %v2113_v40  ;;  %v2318_v19 = vmul.f32 0.70710677, %v7600_v50  ;;  %v2316_v31 = vmul.f32 0.70710677, %v7603_v51  ;;  %v7622_v12 = vadd.f32 %v7358_v33, %v1628_v48 }
 0x23e   : > { %v5471_v37 = vpop.eup %5470  ;;  %3980 = vst.msk [vmem:[%s5914_s10 + $0x2fc] sm:$0xf] %vm3788_vm1, %v4662_v11  ;;  %v2997_v52 = vmul.f32 %v2801_v24, %v2213_v46  ;;  %v2118_v10 = vmul.f32 0.5, %v7545_v2  ;;  %5484 = verf.f32 %v2413_v17  ;;  %v2319_v16 = vmul.f32 0.70710677, %v7606_v13 }
 0x23f   : > { %v5473_v60 = vpop.eup %5472  ;;  %v4560_v6 = vpack.c.bf16 %v2897_v0, %v2897_v0  ;;  %v2706_v55 = vadd.f32 1.0, %v5471_v37  ;;  %5486 = verf.f32 %v2318_v19  ;;  %v2218_v30 = vmul.f32 0.5, %v7548_v47 }
 0x240   : > { %v5475_v58 = vpop.eup %5474  ;;  %v4660_v5 = vpack.c.bf16 %v2997_v52, %v2997_v52  ;;  %v2806_v45 = vadd.f32 1.0, %v5473_v60  ;;  %5488 = verf.f32 %v2316_v31  ;;  %v2116_v1 = vmul.f32 0.5, %v7554_v49 }
 0x241   : > { %v5477_v28 = vpop.eup %5476  ;;  %3878 = vst.msk [vmem:[%s5914_s10 + $0x164] sm:$0xf] %vm3788_vm1, %v4560_v6  ;;  %v2902_v2 = vmul.f32 %v2706_v55, %v2118_v10  ;;  %v2704_v62 = vadd.f32 1.0, %v5475_v58  ;;  %5490 = verf.f32 %v2319_v16  ;;  %v2216_v43 = vmul.f32 0.5, %v7557_v39 }
 0x242   : > { %3978 = vst.msk [vmem:[%s5914_s10 + $0x2f4] sm:$0xf] %vm3788_vm1, %v4660_v5  ;;  %v3002_v33 = vmul.f32 %v2806_v45, %v2218_v30  ;;  %v2804_v56 = vadd.f32 1.0, %v5477_v28  ;;  %v2317_v47 = vmul.f32 0.70710677, %v7622_v12  ;;  %v2119_v21 = vmul.f32 0.5, %v7572_v27 }
 0x243   : > { %v4565_v22 = vpack.c.bf16 %v2902_v2, %v2902_v2  ;;  %v2900_v8 = vmul.f32 %v2704_v62, %v2116_v1  ;;  %v2219_v34 = vmul.f32 0.5, %v7577_v38  ;;  %v2117_v57 = vmul.f32 0.5, %v7588_v29 }
 0x244   : > { %v5479_v41 = vpop.eup %5478  ;;  %v4665_v25 = vpack.c.bf16 %v3002_v33, %v3002_v33  ;;  %v3000_v3 = vmul.f32 %v2804_v56, %v2216_v43  ;;  %5492 = verf.f32 %v2317_v47  ;;  %v2217_v38 = vmul.f32 0.5, %v7595_v42 }
 0x245   : > { %v5481_v49 = vpop.eup %5480  ;;  %3883 = vst.msk [vmem:[%s5914_s10 + $0x178] sm:$0xf] %vm3788_vm1, %v4565_v22  ;;  %v4563_v54 = vpack.c.bf16 %v2900_v8, %v2900_v8  ;;  %v2707_v14 = vadd.f32 1.0, %v5479_v41  ;;  %v2122_v61 = vmul.f32 0.5, %v7600_v50  ;;  %v2120_v40 = vmul.f32 0.5, %v7603_v51 }
 0x246   : > { %3983 = vst.msk [vmem:[%s5914_s10 + $0x308] sm:$0xf] %vm3788_vm1, %v4665_v25  ;;  %v4663_v39 = vpack.c.bf16 %v3000_v3, %v3000_v3  ;;  %v2807_v20 = vadd.f32 1.0, %v5481_v49  ;;  %v2123_v42 = vmul.f32 0.5, %v7606_v13  ;;  %v2121_v51 = vmul.f32 0.5, %v7622_v12 }
 0x247   : > { %3881 = vst.msk [vmem:[%s5914_s10 + $0x170] sm:$0xf] %vm3788_vm1, %v4563_v54  ;;  %v2903_v23 = vmul.f32 %v2707_v14, %v2119_v21 }
 0x248   : > { %v5483_v7 = vpop.eup %5482  ;;  %3981 = vst.msk [vmem:[%s5914_s10 + $0x300] sm:$0xf] %vm3788_vm1, %v4663_v39  ;;  %v3003_v15 = vmul.f32 %v2807_v20, %v2219_v34 }
 0x249   : > { %v4566_v44 = vpack.c.bf16 %v2903_v23, %v2903_v23  ;;  %v2705_v27 = vadd.f32 1.0, %v5483_v7 }
 0x24a   : > { %v4666_v59 = vpack.c.bf16 %v3003_v15, %v3003_v15 }
 0x24b   : > { %v5485_v4 = vpop.eup %5484  ;;  %3884 = vst.msk [vmem:[%s5914_s10 + $0x17c] sm:$0xf] %vm3788_vm1, %v4566_v44  ;;  %v2901_v53 = vmul.f32 %v2705_v27, %v2117_v57 }
 0x24c   : > { %v5487_v9 = vpop.eup %5486  ;;  %3984 = vst.msk [vmem:[%s5914_s10 + $0x30c] sm:$0xf] %vm3788_vm1, %v4666_v59  ;;  %v2805_v32 = vadd.f32 1.0, %v5485_v4 }
 0x24d   : > { %v5489_v26 = vpop.eup %5488  ;;  %v4564_v63 = vpack.c.bf16 %v2901_v53, %v2901_v53  ;;  %v2710_v36 = vadd.f32 1.0, %v5487_v9 }
 0x24e   : > { %v5491_v29 = vpop.eup %5490  ;;  %v3001_v35 = vmul.f32 %v2805_v32, %v2217_v38  ;;  %v2708_v18 = vadd.f32 1.0, %v5489_v26 }
 0x24f   : > { %3882 = vst.msk [vmem:[%s5914_s10 + $0x174] sm:$0xf] %vm3788_vm1, %v4564_v63  ;;  %v2906_v11 = vmul.f32 %v2710_v36, %v2122_v61  ;;  %v2711_v46 = vadd.f32 1.0, %v5491_v29 }
 0x250   : > { %v4664_v24 = vpack.c.bf16 %v3001_v35, %v3001_v35  ;;  %v2904_v17 = vmul.f32 %v2708_v18, %v2120_v40 }
 0x251   : > { %v5493_v48 = vpop.eup %5492  ;;  %v4569_v50 = vpack.c.bf16 %v2906_v11, %v2906_v11  ;;  %v2907_v0 = vmul.f32 %v2711_v46, %v2123_v42 }
 0x252   : > { %3982 = vst.msk [vmem:[%s5914_s10 + $0x304] sm:$0xf] %vm3788_vm1, %v4664_v24  ;;  %v4567_v19 = vpack.c.bf16 %v2904_v17, %v2904_v17  ;;  %v2709_v31 = vadd.f32 1.0, %v5493_v48 }
 0x253   : > { %3887 = vst.msk [vmem:[%s5914_s10 + $0x188] sm:$0xf] %vm3788_vm1, %v4569_v50  ;;  %v4570_v37 = vpack.c.bf16 %v2907_v0, %v2907_v0 }
 0x254   : > { %3885 = vst.msk [vmem:[%s5914_s10 + $0x180] sm:$0xf] %vm3788_vm1, %v4567_v19  ;;  %v2905_v52 = vmul.f32 %v2709_v31, %v2121_v51 }
 0x255   : > { %3888 = vst.msk [vmem:[%s5914_s10 + $0x18c] sm:$0xf] %vm3788_vm1, %v4570_v37 }
 0x256   : > { %v4568_v13 = vpack.c.bf16 %v2905_v52, %v2905_v52 }
 0x258   : > { %3886 = vst.msk [vmem:[%s5914_s10 + $0x184] sm:$0xf] %vm3788_vm1, %v4568_v13 }
 0x259 PF: > { %s15_s12 = sadd.s32 1, %s5563_s12  }
 0x25a   : > { %p12_p2 = scmp.ge.s32.totalorder %s15_s12, 6  }
 0x25c   :  { %14 = sbr.rel (!%p12_p2) target bundleno = 2 (0x2), region = 71 }
 0x261   :  { %4007 = vsyncpa [#allocation3], 1 }
 0x262   :  { %4009 = vsyncpa [#allocation3 + $0x1], 1 }
 0x263   :  { %4010 = vsyncpa [#allocation5], 1 }

// kernel: _lambda_.11
= control target key start
LH: loop header
LB: loop body
LE: loop exit
PB: predicated region body
PF: predicated region fallthrough
CT: control target
= control target key end

     0   :  { %8 = vsyncpa [#allocation3], 0  ;;  %s4666_s12 = smov 0   ;;  %s5621_s0 = inlined_call_operand.vmem [shape: bf16[25088,16], index: 0, kind: input, shape index: {}]   ;;  %s5622_s1 = inlined_call_operand.hbm [shape: bf16[16,32], index: 1, kind: input, shape index: {}]   ;;  %s5623_s2 = inlined_call_operand.vmem [shape: f32[1,32], index: 2, kind: input, shape index: {}]   ;;  %s5624_s3 = inlined_call_operand.vmem [shape: bf16[25088,32], index: 3, kind: output, shape index: {}]  }
   0x1 LB: > { %s3444_s13 = sadd.s32 4294967295, %s4641_s12   ;;  %p3446_p0 = scmp.ge.s32.totalorder %s4641_s12, 1  ;;  %s4641_s12 = sphi %s4666_s12, %s14_s12  }
   0x2   : > { %p113_p1 = scmp.lt.s32.totalorder %s4641_s12, 15  ;;  %s4643_s14 = smov [#allocation2]  }
   0x3   : > { %s125_s15 = sshll.u32 %s4643_s14, 4  ;;  %p4678_p3 = scmp.eq.s32.totalorder %s3444_s13, 0  ;;  %s126_s15 = int_to_ptr.vmem [resolvable:$true] %s125_s15 }
   0x4   : > { %p4674_p2 = pnand %p3446_p0, %p113_p1  ;;  %s4616_s18 = scalar_lea.vmem %s126_s15, 128 }
   0x5   : > { %p4617_p7 = scmp.ne.s32.totalorder %s126_s15, %s4616_s18  ;;  %p4624_p10 = scmp.lt.s32.totalorder %s126_s15, %s126_s15 }
   0x6   : > { %p4474_p4 = pneg %p4674_p2  ;;  %p4625_p11 = scmp.lt.s32.totalorder %s4616_s18, %s4616_s18 }
   0x8   : > { %p4475_p5 = pnand %p4678_p3, %p4474_p4  ;;  %p4626_p12 = por %p4625_p11, %p4624_p10 }
   0xa   : > { %p4607_p6 = pneg %p4475_p5 }
   0xc   : > { %p4619_p8 = pnand %p4617_p7, %p4607_p6 }
   0xe   : > { %p4620_p9 = pneg %p4619_p8 }
  0x10   : > { %p4627_p13 = pnand %p4626_p12, %p4620_p9 }
  0x12   : > { %4630 = shalt.err (!%p4627_p13)
}
  0x13   : > { %s4644_s19 = smov 64   ;;  %s4645_s20 = smov 4  }
  0x14   : > { %4477 = dma.hbm_to_vmem [thread:$0]  (!%p4475_p5), %s5622_s1, 128, %s126_s15, [#allocation3], %s4644_s19, %s4644_s19, %s4645_s20  }
  0x15   : > { %153 = sbr.rel (%p4674_p2) target bundleno = 457 (0x1c9), region = 32 }
  0x1a   : > { %4636 = dma.done.wait (%p4678_p3), [#allocation3], 128  }
  0x1b   : > { %4638 = vsyncadd (%p4678_p3), [#allocation3], 4294967168  ;;  %s177_s23 = smul.u32 224, %s3444_s13  ;;  %v4491_v0 = vld [vmem:[#allocation2] sm:$0xff]   ;;  %vm989_vm0 = vcmask 130048   ;;  %vm3151_vm1 = vcmask 257024  }
  0x1c   : > { %4242 = vmatprep.subr.bf16.mxu0 %v4491_v0  ;;  %4468 = vmatprep.subr.bf16.mxu1 %v4491_v0 }
  0x1d   : > { %p178_p0 = scmp.lt.s32.totalorder %s177_s23, 3135  ;;  %4243 = vmatpush3.bf16.msra.mxu0 %v4491_v0  ;;  %4469 = vmatpush3.bf16.msra.mxu1 %v4491_v0 }
  0x1f   : > { %s5628_s23 = smov (!%p178_p0, %s177_s23), 3135 }
  0x20   : > { %s3451_s24 = sshll.u32 %s5628_s23, 2 }
  0x21   : > { %s4703_s27 = scalar_lea.vmem %s5621_s0, %s3451_s24  ;;  %s4921_s5 = scalar_lea.vmem %s5624_s3, %s3451_s24 }
  0x22   : > { %v4492_v1 = vld [vmem:[%s4703_s27] sm:$0xff]   ;;  %v4494_v3 = vld [vmem:[%s4703_s27 + $0x8] sm:$0xff]   ;;  %v4496_v5 = vld [vmem:[%s4703_s27 + $0x10] sm:$0xff]  }
  0x23   : > { %v4493_v2 = vld [vmem:[%s4703_s27 + $0x1c0] sm:$0xff]   ;;  %4244 = vmatprep.mubr.msk.bf16.mxu0 %vm989_vm0, %v4492_v1  ;;  %v4495_v4 = vld [vmem:[%s4703_s27 + $0x1c8] sm:$0xff]   ;;  %v4497_v6 = vld [vmem:[%s4703_s27 + $0x1d0] sm:$0xff]  }
  0x24   : > { %4356 = vmatprep.mubr.msk.bf16.mxu1 %vm989_vm0, %v4493_v2  ;;  %4245 = vmatmul.mubr.msk.bf16.vlgmr.msra.gmra.mxu0 %vm989_vm0, %v4494_v3  ;;  %v4498_v7 = vld [vmem:[%s4703_s27 + $0x18] sm:$0xff]   ;;  %v4500_v9 = vld [vmem:[%s4703_s27 + $0x20] sm:$0xff]   ;;  %v4502_v11 = vld [vmem:[%s4703_s27 + $0x28] sm:$0xff]  }
  0x25   : > { %4357 = vmatmul.mubr.msk.bf16.vlgmr.msra.gmra.mxu1 %vm989_vm0, %v4495_v4  ;;  %4248 = vmatprep.mubr.msk.bf16.mxu0 %vm989_vm0, %v4496_v5  ;;  %v4499_v8 = vld [vmem:[%s4703_s27 + $0x1d8] sm:$0xff]   ;;  %v4501_v10 = vld [vmem:[%s4703_s27 + $0x1e0] sm:$0xff]   ;;  %v4503_v12 = vld [vmem:[%s4703_s27 + $0x1e8] sm:$0xff]  }
  0x26   : > { %4360 = vmatprep.mubr.msk.bf16.mxu1 %vm989_vm0, %v4497_v6  ;;  %v4504_v13 = vld [vmem:[%s4703_s27 + $0x30] sm:$0xff]   ;;  %v4506_v15 = vld [vmem:[%s4703_s27 + $0x38] sm:$0xff]   ;;  %v4508_v17 = vld [vmem:[%s4703_s27 + $0x40] sm:$0xff]  }
  0x27   : > { %v4505_v14 = vld [vmem:[%s4703_s27 + $0x1f0] sm:$0xff]   ;;  %v4507_v16 = vld [vmem:[%s4703_s27 + $0x1f8] sm:$0xff]   ;;  %v4509_v18 = vld [vmem:[%s4703_s27 + $0x200] sm:$0xff]  }
  0x28   : > { %v4510_v19 = vld [vmem:[%s4703_s27 + $0x48] sm:$0xff]   ;;  %v4512_v21 = vld [vmem:[%s4703_s27 + $0x50] sm:$0xff]   ;;  %v4514_v23 = vld [vmem:[%s4703_s27 + $0x58] sm:$0xff]  }
  0x29   : > { %v4511_v20 = vld [vmem:[%s4703_s27 + $0x208] sm:$0xff]   ;;  %v4513_v22 = vld [vmem:[%s4703_s27 + $0x210] sm:$0xff]   ;;  %v4515_v24 = vld [vmem:[%s4703_s27 + $0x218] sm:$0xff]  }
  0x2a   : > { %v4516_v25 = vld [vmem:[%s4703_s27 + $0x60] sm:$0xff]   ;;  %v4518_v27 = vld [vmem:[%s4703_s27 + $0x68] sm:$0xff]   ;;  %v4520_v29 = vld [vmem:[%s4703_s27 + $0x70] sm:$0xff]  }
  0x2b   : > { %v4517_v26 = vld [vmem:[%s4703_s27 + $0x220] sm:$0xff]   ;;  %v4519_v28 = vld [vmem:[%s4703_s27 + $0x228] sm:$0xff]   ;;  %v4521_v30 = vld [vmem:[%s4703_s27 + $0x230] sm:$0xff]  }
  0x2c   : > { %4249 = vmatmul.mubr.msk.bf16.gmra.mxu0 %vm989_vm0, %v4498_v7  ;;  %v4522_v31 = vld [vmem:[%s4703_s27 + $0x78] sm:$0xff]   ;;  %v4524_v33 = vld [vmem:[%s4703_s27 + $0x80] sm:$0xff]   ;;  %v4526_v35 = vld [vmem:[%s4703_s27 + $0x88] sm:$0xff]  }
  0x2d   : > { %4361 = vmatmul.mubr.msk.bf16.gmra.mxu1 %vm989_vm0, %v4499_v8  ;;  %4252 = vmatprep.mubr.msk.bf16.mxu0 %vm989_vm0, %v4500_v9  ;;  %v4523_v32 = vld [vmem:[%s4703_s27 + $0x238] sm:$0xff]   ;;  %v4525_v34 = vld [vmem:[%s4703_s27 + $0x240] sm:$0xff]   ;;  %v4527_v36 = vld [vmem:[%s4703_s27 + $0x248] sm:$0xff]  }
  0x2e   : > { %4364 = vmatprep.mubr.msk.bf16.mxu1 %vm989_vm0, %v4501_v10  ;;  %v4528_v37 = vld [vmem:[%s4703_s27 + $0x90] sm:$0xff]   ;;  %v4530_v39 = vld [vmem:[%s4703_s27 + $0x98] sm:$0xff]   ;;  %v4532_v41 = vld [vmem:[%s4703_s27 + $0xa0] sm:$0xff]  }
  0x2f   : > { %v4529_v38 = vld [vmem:[%s4703_s27 + $0x250] sm:$0xff]   ;;  %v4531_v40 = vld [vmem:[%s4703_s27 + $0x258] sm:$0xff]   ;;  %v4533_v42 = vld [vmem:[%s4703_s27 + $0x260] sm:$0xff]  }
  0x30   : > { %v4534_v43 = vld [vmem:[%s4703_s27 + $0xa8] sm:$0xff]   ;;  %v4536_v45 = vld [vmem:[%s4703_s27 + $0xb0] sm:$0xff]   ;;  %v4538_v47 = vld [vmem:[%s4703_s27 + $0xb8] sm:$0xff]  }
  0x31   : > { %v4535_v44 = vld [vmem:[%s4703_s27 + $0x268] sm:$0xff]   ;;  %v4537_v46 = vld [vmem:[%s4703_s27 + $0x270] sm:$0xff]   ;;  %v4539_v48 = vld [vmem:[%s4703_s27 + $0x278] sm:$0xff]  }
  0x32   : > { %v4540_v49 = vld [vmem:[%s4703_s27 + $0xc0] sm:$0xff]   ;;  %v4542_v51 = vld [vmem:[%s4703_s27 + $0xc8] sm:$0xff]   ;;  %v4544_v53 = vld [vmem:[%s4703_s27 + $0xd0] sm:$0xff]  }
  0x33   : > { %v4541_v50 = vld [vmem:[%s4703_s27 + $0x280] sm:$0xff]   ;;  %v4543_v52 = vld [vmem:[%s4703_s27 + $0x288] sm:$0xff]   ;;  %v4545_v54 = vld [vmem:[%s4703_s27 + $0x290] sm:$0xff]  }
  0x34   : > { %4253 = vmatmul.mubr.msk.bf16.gmra.mxu0 %vm989_vm0, %v4502_v11  ;;  %v4546_v55 = vld [vmem:[%s4703_s27 + $0xd8] sm:$0xff]   ;;  %v4548_v57 = vld [vmem:[%s4703_s27 + $0xe0] sm:$0xff]   ;;  %v4550_v59 = vld [vmem:[%s4703_s27 + $0xe8] sm:$0xff]  }
  0x35   : > { %4365 = vmatmul.mubr.msk.bf16.gmra.mxu1 %vm989_vm0, %v4503_v12  ;;  %4256 = vmatprep.mubr.msk.bf16.mxu0 %vm989_vm0, %v4504_v13  ;;  %v4547_v56 = vld [vmem:[%s4703_s27 + $0x298] sm:$0xff]   ;;  %v4549_v58 = vld [vmem:[%s4703_s27 + $0x2a0] sm:$0xff]   ;;  %v4551_v60 = vld [vmem:[%s4703_s27 + $0x2a8] sm:$0xff]  }
  0x36   : > { %4368 = vmatprep.mubr.msk.bf16.mxu1 %vm989_vm0, %v4505_v14  ;;  %v4552_v61 = vld [vmem:[%s4703_s27 + $0xf0] sm:$0xff]   ;;  %v4554_v63 = vld [vmem:[%s4703_s27 + $0xf8] sm:$0xff]   ;;  %v4556_v1 = vld [vmem:[%s4703_s27 + $0x100] sm:$0xff]  }
  0x37   : > { %v4553_v62 = vld [vmem:[%s4703_s27 + $0x2b0] sm:$0xff]   ;;  %v4555_v0 = vld [vmem:[%s4703_s27 + $0x2b8] sm:$0xff]   ;;  %v4557_v2 = vld [vmem:[%s4703_s27 + $0x2c0] sm:$0xff]  }
  0x38   : > { %v4558_v3 = vld [vmem:[%s4703_s27 + $0x108] sm:$0xff]   ;;  %v4560_v5 = vld [vmem:[%s4703_s27 + $0x110] sm:$0xff]   ;;  %v4562_v7 = vld [vmem:[%s4703_s27 + $0x118] sm:$0xff]  }
  0x39   : > { %v4559_v4 = vld [vmem:[%s4703_s27 + $0x2c8] sm:$0xff]   ;;  %v4561_v6 = vld [vmem:[%s4703_s27 + $0x2d0] sm:$0xff]   ;;  %v4563_v8 = vld [vmem:[%s4703_s27 + $0x2d8] sm:$0xff]  }
  0x3a   : > { %v4564_v9 = vld [vmem:[%s4703_s27 + $0x120] sm:$0xff]   ;;  %v4566_v11 = vld [vmem:[%s4703_s27 + $0x128] sm:$0xff]   ;;  %v4568_v13 = vld [vmem:[%s4703_s27 + $0x130] sm:$0xff]  }
  0x3b   : > { %v4565_v10 = vld [vmem:[%s4703_s27 + $0x2e0] sm:$0xff]   ;;  %v4567_v12 = vld [vmem:[%s4703_s27 + $0x2e8] sm:$0xff]   ;;  %v4569_v14 = vld [vmem:[%s4703_s27 + $0x2f0] sm:$0xff]  }
  0x3c   : > { %4257 = vmatmul.mubr.msk.bf16.gmra.mxu0 %vm989_vm0, %v4506_v15  ;;  %v4570_v15 = vld [vmem:[%s4703_s27 + $0x138] sm:$0xff]  }
  0x3d   : > { %4369 = vmatmul.mubr.msk.bf16.gmra.mxu1 %vm989_vm0, %v4507_v16  ;;  %4260 = vmatprep.mubr.msk.bf16.mxu0 %vm989_vm0, %v4508_v17  ;;  %v4571_v16 = vld [vmem:[%s4703_s27 + $0x2f8] sm:$0xff]   ;;  %v4572_v17 = vld [vmem:[%s4703_s27 + $0x140] sm:$0xff]  }
  0x3e   : > { %4372 = vmatprep.mubr.msk.bf16.mxu1 %vm989_vm0, %v4509_v18  ;;  %v4573_v18 = vld [vmem:[%s4703_s27 + $0x300] sm:$0xff]  }
  0x44   : > { %4261 = vmatmul.mubr.msk.bf16.gmra.mxu0 %vm989_vm0, %v4510_v19  ;;  %v4574_v19 = vld [vmem:[%s4703_s27 + $0x148] sm:$0xff]  }
  0x45   : > { %4373 = vmatmul.mubr.msk.bf16.gmra.mxu1 %vm989_vm0, %v4511_v20  ;;  %4264 = vmatprep.mubr.msk.bf16.mxu0 %vm989_vm0, %v4512_v21  ;;  %v4575_v20 = vld [vmem:[%s4703_s27 + $0x308] sm:$0xff]   ;;  %v4576_v21 = vld [vmem:[%s4703_s27 + $0x150] sm:$0xff]  }
  0x46   : > { %4376 = vmatprep.mubr.msk.bf16.mxu1 %vm989_vm0, %v4513_v22  ;;  %v4577_v22 = vld [vmem:[%s4703_s27 + $0x310] sm:$0xff]  }
  0x4c   : > { %4265 = vmatmul.mubr.msk.bf16.gmra.mxu0 %vm989_vm0, %v4514_v23  ;;  %v4578_v23 = vld [vmem:[%s4703_s27 + $0x158] sm:$0xff]  }
  0x4d   : > { %4377 = vmatmul.mubr.msk.bf16.gmra.mxu1 %vm989_vm0, %v4515_v24  ;;  %4268 = vmatprep.mubr.msk.bf16.mxu0 %vm989_vm0, %v4516_v25  ;;  %v4579_v24 = vld [vmem:[%s4703_s27 + $0x318] sm:$0xff]   ;;  %v4580_v25 = vld [vmem:[%s4703_s27 + $0x160] sm:$0xff]  }
  0x4e   : > { %4380 = vmatprep.mubr.msk.bf16.mxu1 %vm989_vm0, %v4517_v26  ;;  %v4581_v26 = vld [vmem:[%s4703_s27 + $0x320] sm:$0xff]  }
  0x54   : > { %4269 = vmatmul.mubr.msk.bf16.gmra.mxu0 %vm989_vm0, %v4518_v27  ;;  %v4582_v27 = vld [vmem:[%s4703_s27 + $0x168] sm:$0xff]  }
  0x55   : > { %4381 = vmatmul.mubr.msk.bf16.gmra.mxu1 %vm989_vm0, %v4519_v28  ;;  %4272 = vmatprep.mubr.msk.bf16.mxu0 %vm989_vm0, %v4520_v29  ;;  %v4583_v28 = vld [vmem:[%s4703_s27 + $0x328] sm:$0xff]   ;;  %v4584_v29 = vld [vmem:[%s4703_s27 + $0x170] sm:$0xff]  }
  0x56   : > { %4384 = vmatprep.mubr.msk.bf16.mxu1 %vm989_vm0, %v4521_v30  ;;  %v4585_v30 = vld [vmem:[%s4703_s27 + $0x330] sm:$0xff]  }
  0x5c   : > { %4273 = vmatmul.mubr.msk.bf16.gmra.mxu0 %vm989_vm0, %v4522_v31  ;;  %v4586_v31 = vld [vmem:[%s4703_s27 + $0x178] sm:$0xff]  }
  0x5d   : > { %4385 = vmatmul.mubr.msk.bf16.gmra.mxu1 %vm989_vm0, %v4523_v32  ;;  %4276 = vmatprep.mubr.msk.bf16.mxu0 %vm989_vm0, %v4524_v33  ;;  %v4587_v32 = vld [vmem:[%s4703_s27 + $0x338] sm:$0xff]   ;;  %v4588_v33 = vld [vmem:[%s4703_s27 + $0x180] sm:$0xff]  }
  0x5e   : > { %4388 = vmatprep.mubr.msk.bf16.mxu1 %vm989_vm0, %v4525_v34  ;;  %v4589_v34 = vld [vmem:[%s4703_s27 + $0x340] sm:$0xff]  }
  0x64   : > { %4277 = vmatmul.mubr.msk.bf16.gmra.mxu0 %vm989_vm0, %v4526_v35  ;;  %v4590_v35 = vld [vmem:[%s4703_s27 + $0x188] sm:$0xff]  }
  0x65   : > { %4389 = vmatmul.mubr.msk.bf16.gmra.mxu1 %vm989_vm0, %v4527_v36  ;;  %4280 = vmatprep.mubr.msk.bf16.mxu0 %vm989_vm0, %v4528_v37  ;;  %v4591_v36 = vld [vmem:[%s4703_s27 + $0x348] sm:$0xff]   ;;  %v4592_v37 = vld [vmem:[%s4703_s27 + $0x190] sm:$0xff]  }
  0x66   : > { %4392 = vmatprep.mubr.msk.bf16.mxu1 %vm989_vm0, %v4529_v38  ;;  %v4593_v38 = vld [vmem:[%s4703_s27 + $0x350] sm:$0xff]  }
  0x6c   : > { %4281 = vmatmul.mubr.msk.bf16.gmra.mxu0 %vm989_vm0, %v4530_v39  ;;  %v4908_v39 = vld [vmem:[%s5623_s2] ss:$0 sm:$0xff] }
  0x6d   : > { %4393 = vmatmul.mubr.msk.bf16.gmra.mxu1 %vm989_vm0, %v4531_v40  ;;  %4284 = vmatprep.mubr.msk.bf16.mxu0 %vm989_vm0, %v4532_v41 }
  0x6e   : > { %4396 = vmatprep.mubr.msk.bf16.mxu1 %vm989_vm0, %v4533_v42 }
  0x74   : > { %4285 = vmatmul.mubr.msk.bf16.gmra.mxu0 %vm989_vm0, %v4534_v43 }
  0x75   : > { %4397 = vmatmul.mubr.msk.bf16.gmra.mxu1 %vm989_vm0, %v4535_v44  ;;  %4288 = vmatprep.mubr.msk.bf16.mxu0 %vm989_vm0, %v4536_v45 }
  0x76   : > { %4400 = vmatprep.mubr.msk.bf16.mxu1 %vm989_vm0, %v4537_v46 }
  0x7c   : > { %4289 = vmatmul.mubr.msk.bf16.gmra.mxu0 %vm989_vm0, %v4538_v47 }
  0x7d   : > { %4401 = vmatmul.mubr.msk.bf16.gmra.mxu1 %vm989_vm0, %v4539_v48  ;;  %4292 = vmatprep.mubr.msk.bf16.mxu0 %vm989_vm0, %v4540_v49 }
  0x7e   : > { %4404 = vmatprep.mubr.msk.bf16.mxu1 %vm989_vm0, %v4541_v50 }
  0x84   : > { %4293 = vmatmul.mubr.msk.bf16.gmra.mxu0 %vm989_vm0, %v4542_v51 }
  0x85   : > { %4405 = vmatmul.mubr.msk.bf16.gmra.mxu1 %vm989_vm0, %v4543_v52  ;;  %4296 = vmatprep.mubr.msk.bf16.mxu0 %vm989_vm0, %v4544_v53  ;;  %v4594_v52 = vld [vmem:[%s4703_s27 + $0x198] sm:$0xff]  }
  0x86   : > { %4408 = vmatprep.mubr.msk.bf16.mxu1 %vm989_vm0, %v4545_v54  ;;  %v4595_v53 = vld [vmem:[%s4703_s27 + $0x358] sm:$0xff]  }
  0x8c   : > { %4297 = vmatmul.mubr.msk.bf16.gmra.mxu0 %vm989_vm0, %v4546_v55 }
  0x8d   : > { %4409 = vmatmul.mubr.msk.bf16.gmra.mxu1 %vm989_vm0, %v4547_v56  ;;  %4300 = vmatprep.mubr.msk.bf16.mxu0 %vm989_vm0, %v4548_v57 }
  0x8e   : > { %4412 = vmatprep.mubr.msk.bf16.mxu1 %vm989_vm0, %v4549_v58  ;;  %v4596_v58 = vld [vmem:[%s4703_s27 + $0x1a0] sm:$0xff]  }
  0x94   : > { %4301 = vmatmul.mubr.msk.bf16.gmra.mxu0 %vm989_vm0, %v4550_v59 }
  0x95   : > { %4413 = vmatmul.mubr.msk.bf16.gmra.mxu1 %vm989_vm0, %v4551_v60  ;;  %4304 = vmatprep.mubr.msk.bf16.mxu0 %vm989_vm0, %v4552_v61  ;;  %v4597_v61 = vld [vmem:[%s4703_s27 + $0x360] sm:$0xff]  }
  0x96   : > { %4416 = vmatprep.mubr.msk.bf16.mxu1 %vm989_vm0, %v4553_v62 }
  0x9c   : > { %4305 = vmatmul.mubr.msk.bf16.gmra.mxu0 %vm989_vm0, %v4554_v63 }
  0x9d   : > { %4417 = vmatmul.mubr.msk.bf16.gmra.mxu1 %vm989_vm0, %v4555_v0  ;;  %4308 = vmatprep.mubr.msk.bf16.mxu0 %vm989_vm0, %v4556_v1 }
  0x9e   : > { %4420 = vmatprep.mubr.msk.bf16.mxu1 %vm989_vm0, %v4557_v2 }
  0xa4   : > { %4309 = vmatmul.mubr.msk.bf16.gmra.mxu0 %vm989_vm0, %v4558_v3 }
  0xa5   : > { %4421 = vmatmul.mubr.msk.bf16.gmra.mxu1 %vm989_vm0, %v4559_v4  ;;  %4312 = vmatprep.mubr.msk.bf16.mxu0 %vm989_vm0, %v4560_v5 }
  0xa6   : > { %4424 = vmatprep.mubr.msk.bf16.mxu1 %vm989_vm0, %v4561_v6 }
  0xac   : > { %4313 = vmatmul.mubr.msk.bf16.gmra.mxu0 %vm989_vm0, %v4562_v7 }
  0xad   : > { %4425 = vmatmul.mubr.msk.bf16.gmra.mxu1 %vm989_vm0, %v4563_v8  ;;  %4316 = vmatprep.mubr.msk.bf16.mxu0 %vm989_vm0, %v4564_v9 }
  0xae   : > { %4428 = vmatprep.mubr.msk.bf16.mxu1 %vm989_vm0, %v4565_v10 }
  0xb4   : > { %4317 = vmatmul.mubr.msk.bf16.gmra.mxu0 %vm989_vm0, %v4566_v11 }
  0xb5   : > { %4429 = vmatmul.mubr.msk.bf16.gmra.mxu1 %vm989_vm0, %v4567_v12  ;;  %4320 = vmatprep.mubr.msk.bf16.mxu0 %vm989_vm0, %v4568_v13 }
  0xb6   : > { %4432 = vmatprep.mubr.msk.bf16.mxu1 %vm989_vm0, %v4569_v14 }
  0xbc   : > { %4321 = vmatmul.mubr.msk.bf16.gmra.mxu0 %vm989_vm0, %v4570_v15 }
  0xbd   : > { %4433 = vmatmul.mubr.msk.bf16.gmra.mxu1 %vm989_vm0, %v4571_v16  ;;  %4324 = vmatprep.mubr.msk.bf16.mxu0 %vm989_vm0, %v4572_v17  ;;  %v4598_v16 = vld [vmem:[%s4703_s27 + $0x1a8] sm:$0xff]  }
  0xbe   : > { %4436 = vmatprep.mubr.msk.bf16.mxu1 %vm989_vm0, %v4573_v18  ;;  %v4599_v17 = vld [vmem:[%s4703_s27 + $0x368] sm:$0xff]  }
  0xc4   : > { %4325 = vmatmul.mubr.msk.bf16.gmra.mxu0 %vm989_vm0, %v4574_v19 }
  0xc5   : > { %4437 = vmatmul.mubr.msk.bf16.gmra.mxu1 %vm989_vm0, %v4575_v20  ;;  %4328 = vmatprep.mubr.msk.bf16.mxu0 %vm989_vm0, %v4576_v21 }
  0xc6   : > { %4440 = vmatprep.mubr.msk.bf16.mxu1 %vm989_vm0, %v4577_v22  ;;  %v4600_v22 = vld [vmem:[%s4703_s27 + $0x1b0] sm:$0xff]  }
  0xcc   : > { %4329 = vmatmul.mubr.msk.bf16.gmra.mxu0 %vm989_vm0, %v4578_v23 }
  0xcd   : > { %4441 = vmatmul.mubr.msk.bf16.gmra.mxu1 %vm989_vm0, %v4579_v24  ;;  %4332 = vmatprep.mubr.msk.bf16.mxu0 %vm989_vm0, %v4580_v25  ;;  %v4601_v25 = vld [vmem:[%s4703_s27 + $0x370] sm:$0xff]  }
  0xce   : > { %4444 = vmatprep.mubr.msk.bf16.mxu1 %vm989_vm0, %v4581_v26 }
  0xd4   : > { %4333 = vmatmul.mubr.msk.bf16.gmra.mxu0 %vm989_vm0, %v4582_v27 }
  0xd5   : > { %4445 = vmatmul.mubr.msk.bf16.gmra.mxu1 %vm989_vm0, %v4583_v28  ;;  %4336 = vmatprep.mubr.msk.bf16.mxu0 %vm989_vm0, %v4584_v29 }
  0xd6   : > { %4448 = vmatprep.mubr.msk.bf16.mxu1 %vm989_vm0, %v4585_v30 }
  0xdc   : > { %4337 = vmatmul.mubr.msk.bf16.gmra.mxu0 %vm989_vm0, %v4586_v31 }
  0xdd   : > { %4449 = vmatmul.mubr.msk.bf16.gmra.mxu1 %vm989_vm0, %v4587_v32  ;;  %4340 = vmatprep.mubr.msk.bf16.mxu0 %vm989_vm0, %v4588_v33 }
  0xde   : > { %4452 = vmatprep.mubr.msk.bf16.mxu1 %vm989_vm0, %v4589_v34 }
  0xe4   : > { %v4246_v40 = vpop.f32.mrf.mxu0  ;;  %4341 = vmatmul.mubr.msk.bf16.gmra.mxu0 %vm989_vm0, %v4590_v35 }
  0xe5   : > { %v4358_v41 = vpop.f32.mrf.mxu1  ;;  %4453 = vmatmul.mubr.msk.bf16.gmra.mxu1 %vm989_vm0, %v4591_v36  ;;  %v1369_v42 = vadd.f32 %v4246_v40, %v4908_v39  ;;  %4344 = vmatprep.mubr.msk.bf16.mxu0 %vm989_vm0, %v4592_v37 }
  0xe6   : > { %v1817_v43 = vadd.f32 %v4358_v41, %v4908_v39  ;;  %4456 = vmatprep.mubr.msk.bf16.mxu1 %vm989_vm0, %v4593_v38  ;;  %v1360_v44 = vpop.f32.mrf.mxu0 }
  0xe7   : > { %v1808_v45 = vpop.f32.mrf.mxu1  ;;  %v3907_v46 = vpack.c.bf16 %v1369_v42, %v1369_v42  ;;  %v1361_v48 = vadd.f32 %v4908_v39, %v1360_v44 }
  0xe8   : > { %v4019_v47 = vpack.c.bf16 %v1817_v43, %v1817_v43  ;;  %v1809_v49 = vadd.f32 %v4908_v39, %v1808_v45  ;;  %v4247_v50 = vpop.f32.mrf.mxu0  ;;  %v4602_v45 = vld [vmem:[%s4703_s27 + $0x1b8] sm:$0xff]  }
  0xe9   : > { %v4359_v51 = vpop.f32.mrf.mxu1  ;;  %3154 = vst.msk [vmem:[%s4921_s5 + $0x8] sm:$0xf] %vm3151_vm1, %v3907_v46  ;;  %v3905_v54 = vpack.c.bf16 %v1361_v48, %v1361_v48  ;;  %v1372_v56 = vadd.f32 %v4247_v50, %v4908_v39  ;;  %v4603_v46 = vld [vmem:[%s4703_s27 + $0x378] sm:$0xff]  }
  0xea   : > { %3266 = vst.msk [vmem:[%s4921_s5 + $0x1c8] sm:$0xf] %vm3151_vm1, %v4019_v47  ;;  %v4017_v55 = vpack.c.bf16 %v1809_v49, %v1809_v49  ;;  %v1820_v57 = vadd.f32 %v4359_v51, %v4908_v39  ;;  %v1363_v59 = vpop.f32.mrf.mxu0 }
  0xeb   : > { %v1811_v60 = vpop.f32.mrf.mxu1  ;;  %3152 = vst.msk [vmem:[%s4921_s5] sm:$0xf] %vm3151_vm1, %v3905_v54  ;;  %v3908_v62 = vpack.c.bf16 %v1372_v56, %v1372_v56  ;;  %v1364_v0 = vadd.f32 %v4908_v39, %v1363_v59 }
  0xec   : > { %3264 = vst.msk [vmem:[%s4921_s5 + $0x1c0] sm:$0xf] %vm3151_vm1, %v4017_v55  ;;  %v4020_v63 = vpack.c.bf16 %v1820_v57, %v1820_v57  ;;  %v1812_v1 = vadd.f32 %v4908_v39, %v1811_v60  ;;  %v4250_v2 = vpop.f32.mrf.mxu0  ;;  %4345 = vmatmul.mubr.msk.bf16.gmra.mxu0 %vm989_vm0, %v4594_v52 }
  0xed   : > { %v4362_v3 = vpop.f32.mrf.mxu1  ;;  %4457 = vmatmul.mubr.msk.bf16.gmra.mxu1 %vm989_vm0, %v4595_v53  ;;  %3155 = vst.msk [vmem:[%s4921_s5 + $0xc] sm:$0xf] %vm3151_vm1, %v3908_v62  ;;  %v3906_v4 = vpack.c.bf16 %v1364_v0, %v1364_v0  ;;  %v1385_v6 = vadd.f32 %v4250_v2, %v4908_v39  ;;  %4348 = vmatprep.mubr.msk.bf16.mxu0 %vm989_vm0, %v4596_v58 }
  0xee   : > { %3267 = vst.msk [vmem:[%s4921_s5 + $0x1cc] sm:$0xf] %vm3151_vm1, %v4020_v63  ;;  %v4018_v5 = vpack.c.bf16 %v1812_v1, %v1812_v1  ;;  %v1833_v7 = vadd.f32 %v4362_v3, %v4908_v39  ;;  %v1376_v8 = vpop.f32.mrf.mxu0  ;;  %4460 = vmatprep.mubr.msk.bf16.mxu1 %vm989_vm0, %v4597_v61 }
  0xef   : > { %v1824_v9 = vpop.f32.mrf.mxu1  ;;  %3153 = vst.msk [vmem:[%s4921_s5 + $0x4] sm:$0xf] %vm3151_vm1, %v3906_v4  ;;  %v3911_v10 = vpack.c.bf16 %v1385_v6, %v1385_v6  ;;  %v1377_v12 = vadd.f32 %v4908_v39, %v1376_v8 }
  0xf0   : > { %3265 = vst.msk [vmem:[%s4921_s5 + $0x1c4] sm:$0xf] %vm3151_vm1, %v4018_v5  ;;  %v4023_v11 = vpack.c.bf16 %v1833_v7, %v1833_v7  ;;  %v1825_v13 = vadd.f32 %v4908_v39, %v1824_v9  ;;  %v4251_v14 = vpop.f32.mrf.mxu0 }
  0xf1   : > { %v4363_v15 = vpop.f32.mrf.mxu1  ;;  %3158 = vst.msk [vmem:[%s4921_s5 + $0x18] sm:$0xf] %vm3151_vm1, %v3911_v10  ;;  %v3909_v18 = vpack.c.bf16 %v1377_v12, %v1377_v12  ;;  %v1388_v20 = vadd.f32 %v4251_v14, %v4908_v39 }
  0xf2   : > { %3270 = vst.msk [vmem:[%s4921_s5 + $0x1d8] sm:$0xf] %vm3151_vm1, %v4023_v11  ;;  %v4021_v19 = vpack.c.bf16 %v1825_v13, %v1825_v13  ;;  %v1836_v21 = vadd.f32 %v4363_v15, %v4908_v39  ;;  %v1379_v23 = vpop.f32.mrf.mxu0 }
  0xf3   : > { %v1827_v24 = vpop.f32.mrf.mxu1  ;;  %3156 = vst.msk [vmem:[%s4921_s5 + $0x10] sm:$0xf] %vm3151_vm1, %v3909_v18  ;;  %v3912_v26 = vpack.c.bf16 %v1388_v20, %v1388_v20  ;;  %v1380_v28 = vadd.f32 %v4908_v39, %v1379_v23 }
  0xf4   : > { %3268 = vst.msk [vmem:[%s4921_s5 + $0x1d0] sm:$0xf] %vm3151_vm1, %v4021_v19  ;;  %v4024_v27 = vpack.c.bf16 %v1836_v21, %v1836_v21  ;;  %v1828_v29 = vadd.f32 %v4908_v39, %v1827_v24  ;;  %v4254_v30 = vpop.f32.mrf.mxu0  ;;  %4349 = vmatmul.mubr.msk.bf16.gmra.mxu0 %vm989_vm0, %v4598_v16 }
  0xf5   : > { %v4366_v31 = vpop.f32.mrf.mxu1  ;;  %4461 = vmatmul.mubr.msk.bf16.gmra.mxu1 %vm989_vm0, %v4599_v17  ;;  %3159 = vst.msk [vmem:[%s4921_s5 + $0x1c] sm:$0xf] %vm3151_vm1, %v3912_v26  ;;  %v3910_v32 = vpack.c.bf16 %v1380_v28, %v1380_v28  ;;  %v1401_v34 = vadd.f32 %v4254_v30, %v4908_v39  ;;  %4352 = vmatprep.mubr.msk.bf16.mxu0 %vm989_vm0, %v4600_v22 }
  0xf6   : > { %3271 = vst.msk [vmem:[%s4921_s5 + $0x1dc] sm:$0xf] %vm3151_vm1, %v4024_v27  ;;  %v4022_v33 = vpack.c.bf16 %v1828_v29, %v1828_v29  ;;  %v1849_v35 = vadd.f32 %v4366_v31, %v4908_v39  ;;  %v1392_v36 = vpop.f32.mrf.mxu0  ;;  %4464 = vmatprep.mubr.msk.bf16.mxu1 %vm989_vm0, %v4601_v25 }
  0xf7   : > { %v1840_v37 = vpop.f32.mrf.mxu1  ;;  %3157 = vst.msk [vmem:[%s4921_s5 + $0x14] sm:$0xf] %vm3151_vm1, %v3910_v32  ;;  %v3915_v38 = vpack.c.bf16 %v1401_v34, %v1401_v34  ;;  %v1393_v41 = vadd.f32 %v4908_v39, %v1392_v36 }
  0xf8   : > { %3269 = vst.msk [vmem:[%s4921_s5 + $0x1d4] sm:$0xf] %vm3151_vm1, %v4022_v33  ;;  %v4027_v40 = vpack.c.bf16 %v1849_v35, %v1849_v35  ;;  %v1841_v42 = vadd.f32 %v4908_v39, %v1840_v37  ;;  %v4255_v43 = vpop.f32.mrf.mxu0 }
  0xf9   : > { %v4367_v44 = vpop.f32.mrf.mxu1  ;;  %3162 = vst.msk [vmem:[%s4921_s5 + $0x28] sm:$0xf] %vm3151_vm1, %v3915_v38  ;;  %v3913_v47 = vpack.c.bf16 %v1393_v41, %v1393_v41  ;;  %v1404_v49 = vadd.f32 %v4255_v43, %v4908_v39 }
  0xfa   : > { %3274 = vst.msk [vmem:[%s4921_s5 + $0x1e8] sm:$0xf] %vm3151_vm1, %v4027_v40  ;;  %v4025_v48 = vpack.c.bf16 %v1841_v42, %v1841_v42  ;;  %v1852_v50 = vadd.f32 %v4367_v44, %v4908_v39  ;;  %v1395_v51 = vpop.f32.mrf.mxu0 }
  0xfb   : > { %v1843_v52 = vpop.f32.mrf.mxu1  ;;  %3160 = vst.msk [vmem:[%s4921_s5 + $0x20] sm:$0xf] %vm3151_vm1, %v3913_v47  ;;  %v3916_v53 = vpack.c.bf16 %v1404_v49, %v1404_v49  ;;  %v1396_v55 = vadd.f32 %v4908_v39, %v1395_v51 }
  0xfc   : > { %3272 = vst.msk [vmem:[%s4921_s5 + $0x1e0] sm:$0xf] %vm3151_vm1, %v4025_v48  ;;  %v4028_v54 = vpack.c.bf16 %v1852_v50, %v1852_v50  ;;  %v1844_v56 = vadd.f32 %v4908_v39, %v1843_v52  ;;  %v4258_v57 = vpop.f32.mrf.mxu0  ;;  %4353 = vmatmul.mubr.msk.bf16.gmra.mxu0 %vm989_vm0, %v4602_v45 }
  0xfd   : > { %v4370_v58 = vpop.f32.mrf.mxu1  ;;  %4465 = vmatmul.mubr.msk.bf16.gmra.mxu1 %vm989_vm0, %v4603_v46  ;;  %3163 = vst.msk [vmem:[%s4921_s5 + $0x2c] sm:$0xf] %vm3151_vm1, %v3916_v53  ;;  %v3914_v59 = vpack.c.bf16 %v1396_v55, %v1396_v55  ;;  %v1417_v61 = vadd.f32 %v4258_v57, %v4908_v39 }
  0xfe   : > { %3275 = vst.msk [vmem:[%s4921_s5 + $0x1ec] sm:$0xf] %vm3151_vm1, %v4028_v54  ;;  %v4026_v60 = vpack.c.bf16 %v1844_v56, %v1844_v56  ;;  %v1865_v62 = vadd.f32 %v4370_v58, %v4908_v39  ;;  %v1408_v63 = vpop.f32.mrf.mxu0 }
  0xff   : > { %v1856_v0 = vpop.f32.mrf.mxu1  ;;  %3161 = vst.msk [vmem:[%s4921_s5 + $0x24] sm:$0xf] %vm3151_vm1, %v3914_v59  ;;  %v3919_v1 = vpack.c.bf16 %v1417_v61, %v1417_v61  ;;  %v1409_v3 = vadd.f32 %v4908_v39, %v1408_v63 }
 0x100   : > { %3273 = vst.msk [vmem:[%s4921_s5 + $0x1e4] sm:$0xf] %vm3151_vm1, %v4026_v60  ;;  %v4031_v2 = vpack.c.bf16 %v1865_v62, %v1865_v62  ;;  %v1857_v4 = vadd.f32 %v4908_v39, %v1856_v0  ;;  %v4259_v5 = vpop.f32.mrf.mxu0 }
 0x101   : > { %v4371_v6 = vpop.f32.mrf.mxu1  ;;  %3166 = vst.msk [vmem:[%s4921_s5 + $0x38] sm:$0xf] %vm3151_vm1, %v3919_v1  ;;  %v3917_v7 = vpack.c.bf16 %v1409_v3, %v1409_v3  ;;  %v1420_v9 = vadd.f32 %v4259_v5, %v4908_v39 }
 0x102   : > { %3278 = vst.msk [vmem:[%s4921_s5 + $0x1f8] sm:$0xf] %vm3151_vm1, %v4031_v2  ;;  %v4029_v8 = vpack.c.bf16 %v1857_v4, %v1857_v4  ;;  %v1868_v10 = vadd.f32 %v4371_v6, %v4908_v39  ;;  %v1411_v11 = vpop.f32.mrf.mxu0 }
 0x103   : > { %v1859_v12 = vpop.f32.mrf.mxu1  ;;  %3164 = vst.msk [vmem:[%s4921_s5 + $0x30] sm:$0xf] %vm3151_vm1, %v3917_v7  ;;  %v3920_v13 = vpack.c.bf16 %v1420_v9, %v1420_v9  ;;  %v1412_v15 = vadd.f32 %v4908_v39, %v1411_v11 }
 0x104   : > { %3276 = vst.msk [vmem:[%s4921_s5 + $0x1f0] sm:$0xf] %vm3151_vm1, %v4029_v8  ;;  %v4032_v14 = vpack.c.bf16 %v1868_v10, %v1868_v10  ;;  %v1860_v16 = vadd.f32 %v4908_v39, %v1859_v12  ;;  %v4262_v17 = vpop.f32.mrf.mxu0 }
 0x105   : > { %v4374_v18 = vpop.f32.mrf.mxu1  ;;  %3167 = vst.msk [vmem:[%s4921_s5 + $0x3c] sm:$0xf] %vm3151_vm1, %v3920_v13  ;;  %v3918_v19 = vpack.c.bf16 %v1412_v15, %v1412_v15  ;;  %v1433_v21 = vadd.f32 %v4262_v17, %v4908_v39 }
 0x106   : > { %3279 = vst.msk [vmem:[%s4921_s5 + $0x1fc] sm:$0xf] %vm3151_vm1, %v4032_v14  ;;  %v4030_v20 = vpack.c.bf16 %v1860_v16, %v1860_v16  ;;  %v1881_v22 = vadd.f32 %v4374_v18, %v4908_v39  ;;  %v1424_v23 = vpop.f32.mrf.mxu0 }
 0x107   : > { %v1872_v24 = vpop.f32.mrf.mxu1  ;;  %3165 = vst.msk [vmem:[%s4921_s5 + $0x34] sm:$0xf] %vm3151_vm1, %v3918_v19  ;;  %v3923_v25 = vpack.c.bf16 %v1433_v21, %v1433_v21  ;;  %v1425_v27 = vadd.f32 %v4908_v39, %v1424_v23 }
 0x108   : > { %3277 = vst.msk [vmem:[%s4921_s5 + $0x1f4] sm:$0xf] %vm3151_vm1, %v4030_v20  ;;  %v4035_v26 = vpack.c.bf16 %v1881_v22, %v1881_v22  ;;  %v1873_v28 = vadd.f32 %v4908_v39, %v1872_v24  ;;  %v4263_v29 = vpop.f32.mrf.mxu0 }
 0x109   : > { %v4375_v30 = vpop.f32.mrf.mxu1  ;;  %3170 = vst.msk [vmem:[%s4921_s5 + $0x48] sm:$0xf] %vm3151_vm1, %v3923_v25  ;;  %v3921_v31 = vpack.c.bf16 %v1425_v27, %v1425_v27  ;;  %v1436_v33 = vadd.f32 %v4263_v29, %v4908_v39 }
 0x10a   : > { %3282 = vst.msk [vmem:[%s4921_s5 + $0x208] sm:$0xf] %vm3151_vm1, %v4035_v26  ;;  %v4033_v32 = vpack.c.bf16 %v1873_v28, %v1873_v28  ;;  %v1884_v34 = vadd.f32 %v4375_v30, %v4908_v39  ;;  %v1427_v35 = vpop.f32.mrf.mxu0 }
 0x10b   : > { %v1875_v36 = vpop.f32.mrf.mxu1  ;;  %3168 = vst.msk [vmem:[%s4921_s5 + $0x40] sm:$0xf] %vm3151_vm1, %v3921_v31  ;;  %v3924_v37 = vpack.c.bf16 %v1436_v33, %v1436_v33  ;;  %v1428_v40 = vadd.f32 %v4908_v39, %v1427_v35 }
 0x10c   : > { %3280 = vst.msk [vmem:[%s4921_s5 + $0x200] sm:$0xf] %vm3151_vm1, %v4033_v32  ;;  %v4036_v38 = vpack.c.bf16 %v1884_v34, %v1884_v34  ;;  %v1876_v41 = vadd.f32 %v4908_v39, %v1875_v36  ;;  %v4266_v42 = vpop.f32.mrf.mxu0 }
 0x10d   : > { %v4378_v43 = vpop.f32.mrf.mxu1  ;;  %3171 = vst.msk [vmem:[%s4921_s5 + $0x4c] sm:$0xf] %vm3151_vm1, %v3924_v37  ;;  %v3922_v44 = vpack.c.bf16 %v1428_v40, %v1428_v40  ;;  %v1449_v46 = vadd.f32 %v4266_v42, %v4908_v39 }
 0x10e   : > { %3283 = vst.msk [vmem:[%s4921_s5 + $0x20c] sm:$0xf] %vm3151_vm1, %v4036_v38  ;;  %v4034_v45 = vpack.c.bf16 %v1876_v41, %v1876_v41  ;;  %v1897_v47 = vadd.f32 %v4378_v43, %v4908_v39  ;;  %v1440_v48 = vpop.f32.mrf.mxu0 }
 0x10f   : > { %v1888_v49 = vpop.f32.mrf.mxu1  ;;  %3169 = vst.msk [vmem:[%s4921_s5 + $0x44] sm:$0xf] %vm3151_vm1, %v3922_v44  ;;  %v3927_v50 = vpack.c.bf16 %v1449_v46, %v1449_v46  ;;  %v1441_v52 = vadd.f32 %v4908_v39, %v1440_v48 }
 0x110   : > { %3281 = vst.msk [vmem:[%s4921_s5 + $0x204] sm:$0xf] %vm3151_vm1, %v4034_v45  ;;  %v4039_v51 = vpack.c.bf16 %v1897_v47, %v1897_v47  ;;  %v1889_v53 = vadd.f32 %v4908_v39, %v1888_v49  ;;  %v4267_v54 = vpop.f32.mrf.mxu0 }
 0x111   : > { %v4379_v55 = vpop.f32.mrf.mxu1  ;;  %3174 = vst.msk [vmem:[%s4921_s5 + $0x58] sm:$0xf] %vm3151_vm1, %v3927_v50  ;;  %v3925_v56 = vpack.c.bf16 %v1441_v52, %v1441_v52  ;;  %v1452_v58 = vadd.f32 %v4267_v54, %v4908_v39 }
 0x112   : > { %3286 = vst.msk [vmem:[%s4921_s5 + $0x218] sm:$0xf] %vm3151_vm1, %v4039_v51  ;;  %v4037_v57 = vpack.c.bf16 %v1889_v53, %v1889_v53  ;;  %v1900_v59 = vadd.f32 %v4379_v55, %v4908_v39  ;;  %v1443_v60 = vpop.f32.mrf.mxu0 }
 0x113   : > { %v1891_v61 = vpop.f32.mrf.mxu1  ;;  %3172 = vst.msk [vmem:[%s4921_s5 + $0x50] sm:$0xf] %vm3151_vm1, %v3925_v56  ;;  %v3928_v62 = vpack.c.bf16 %v1452_v58, %v1452_v58  ;;  %v1444_v0 = vadd.f32 %v4908_v39, %v1443_v60 }
 0x114   : > { %3284 = vst.msk [vmem:[%s4921_s5 + $0x210] sm:$0xf] %vm3151_vm1, %v4037_v57  ;;  %v4040_v63 = vpack.c.bf16 %v1900_v59, %v1900_v59  ;;  %v1892_v1 = vadd.f32 %v4908_v39, %v1891_v61  ;;  %v4270_v2 = vpop.f32.mrf.mxu0 }
 0x115   : > { %v4382_v3 = vpop.f32.mrf.mxu1  ;;  %3175 = vst.msk [vmem:[%s4921_s5 + $0x5c] sm:$0xf] %vm3151_vm1, %v3928_v62  ;;  %v3926_v4 = vpack.c.bf16 %v1444_v0, %v1444_v0  ;;  %v1465_v6 = vadd.f32 %v4270_v2, %v4908_v39 }
 0x116   : > { %3287 = vst.msk [vmem:[%s4921_s5 + $0x21c] sm:$0xf] %vm3151_vm1, %v4040_v63  ;;  %v4038_v5 = vpack.c.bf16 %v1892_v1, %v1892_v1  ;;  %v1913_v7 = vadd.f32 %v4382_v3, %v4908_v39  ;;  %v1456_v8 = vpop.f32.mrf.mxu0 }
 0x117   : > { %v1904_v9 = vpop.f32.mrf.mxu1  ;;  %3173 = vst.msk [vmem:[%s4921_s5 + $0x54] sm:$0xf] %vm3151_vm1, %v3926_v4  ;;  %v3931_v10 = vpack.c.bf16 %v1465_v6, %v1465_v6  ;;  %v1457_v12 = vadd.f32 %v4908_v39, %v1456_v8 }
 0x118   : > { %3285 = vst.msk [vmem:[%s4921_s5 + $0x214] sm:$0xf] %vm3151_vm1, %v4038_v5  ;;  %v4043_v11 = vpack.c.bf16 %v1913_v7, %v1913_v7  ;;  %v1905_v13 = vadd.f32 %v4908_v39, %v1904_v9  ;;  %v4271_v14 = vpop.f32.mrf.mxu0 }
 0x119   : > { %v4383_v15 = vpop.f32.mrf.mxu1  ;;  %3178 = vst.msk [vmem:[%s4921_s5 + $0x68] sm:$0xf] %vm3151_vm1, %v3931_v10  ;;  %v3929_v16 = vpack.c.bf16 %v1457_v12, %v1457_v12  ;;  %v1468_v18 = vadd.f32 %v4271_v14, %v4908_v39 }
 0x11a   : > { %3290 = vst.msk [vmem:[%s4921_s5 + $0x228] sm:$0xf] %vm3151_vm1, %v4043_v11  ;;  %v4041_v17 = vpack.c.bf16 %v1905_v13, %v1905_v13  ;;  %v1916_v19 = vadd.f32 %v4383_v15, %v4908_v39  ;;  %v1459_v20 = vpop.f32.mrf.mxu0 }
 0x11b   : > { %v1907_v21 = vpop.f32.mrf.mxu1  ;;  %3176 = vst.msk [vmem:[%s4921_s5 + $0x60] sm:$0xf] %vm3151_vm1, %v3929_v16  ;;  %v3932_v22 = vpack.c.bf16 %v1468_v18, %v1468_v18  ;;  %v1460_v24 = vadd.f32 %v4908_v39, %v1459_v20 }
 0x11c   : > { %3288 = vst.msk [vmem:[%s4921_s5 + $0x220] sm:$0xf] %vm3151_vm1, %v4041_v17  ;;  %v4044_v23 = vpack.c.bf16 %v1916_v19, %v1916_v19  ;;  %v1908_v25 = vadd.f32 %v4908_v39, %v1907_v21  ;;  %v4274_v26 = vpop.f32.mrf.mxu0 }
 0x11d   : > { %v4386_v27 = vpop.f32.mrf.mxu1  ;;  %3179 = vst.msk [vmem:[%s4921_s5 + $0x6c] sm:$0xf] %vm3151_vm1, %v3932_v22  ;;  %v3930_v28 = vpack.c.bf16 %v1460_v24, %v1460_v24  ;;  %v1481_v30 = vadd.f32 %v4274_v26, %v4908_v39 }
 0x11e   : > { %3291 = vst.msk [vmem:[%s4921_s5 + $0x22c] sm:$0xf] %vm3151_vm1, %v4044_v23  ;;  %v4042_v29 = vpack.c.bf16 %v1908_v25, %v1908_v25  ;;  %v1929_v31 = vadd.f32 %v4386_v27, %v4908_v39  ;;  %v1472_v32 = vpop.f32.mrf.mxu0 }
 0x11f   : > { %v1920_v33 = vpop.f32.mrf.mxu1  ;;  %3177 = vst.msk [vmem:[%s4921_s5 + $0x64] sm:$0xf] %vm3151_vm1, %v3930_v28  ;;  %v3935_v34 = vpack.c.bf16 %v1481_v30, %v1481_v30  ;;  %v1473_v36 = vadd.f32 %v4908_v39, %v1472_v32 }
 0x120   : > { %3289 = vst.msk [vmem:[%s4921_s5 + $0x224] sm:$0xf] %vm3151_vm1, %v4042_v29  ;;  %v4047_v35 = vpack.c.bf16 %v1929_v31, %v1929_v31  ;;  %v1921_v37 = vadd.f32 %v4908_v39, %v1920_v33  ;;  %v4275_v38 = vpop.f32.mrf.mxu0 }
 0x121   : > { %v4387_v40 = vpop.f32.mrf.mxu1  ;;  %3182 = vst.msk [vmem:[%s4921_s5 + $0x78] sm:$0xf] %vm3151_vm1, %v3935_v34  ;;  %v3933_v41 = vpack.c.bf16 %v1473_v36, %v1473_v36  ;;  %v1484_v43 = vadd.f32 %v4275_v38, %v4908_v39 }
 0x122   : > { %3294 = vst.msk [vmem:[%s4921_s5 + $0x238] sm:$0xf] %vm3151_vm1, %v4047_v35  ;;  %v4045_v42 = vpack.c.bf16 %v1921_v37, %v1921_v37  ;;  %v1932_v44 = vadd.f32 %v4387_v40, %v4908_v39  ;;  %v1475_v45 = vpop.f32.mrf.mxu0 }
 0x123   : > { %v1923_v46 = vpop.f32.mrf.mxu1  ;;  %3180 = vst.msk [vmem:[%s4921_s5 + $0x70] sm:$0xf] %vm3151_vm1, %v3933_v41  ;;  %v3936_v47 = vpack.c.bf16 %v1484_v43, %v1484_v43  ;;  %v1476_v49 = vadd.f32 %v4908_v39, %v1475_v45 }
 0x124   : > { %3292 = vst.msk [vmem:[%s4921_s5 + $0x230] sm:$0xf] %vm3151_vm1, %v4045_v42  ;;  %v4048_v48 = vpack.c.bf16 %v1932_v44, %v1932_v44  ;;  %v1924_v50 = vadd.f32 %v4908_v39, %v1923_v46  ;;  %v4278_v51 = vpop.f32.mrf.mxu0 }
 0x125   : > { %v4390_v52 = vpop.f32.mrf.mxu1  ;;  %3183 = vst.msk [vmem:[%s4921_s5 + $0x7c] sm:$0xf] %vm3151_vm1, %v3936_v47  ;;  %v3934_v53 = vpack.c.bf16 %v1476_v49, %v1476_v49  ;;  %v1497_v55 = vadd.f32 %v4278_v51, %v4908_v39 }
 0x126   : > { %3295 = vst.msk [vmem:[%s4921_s5 + $0x23c] sm:$0xf] %vm3151_vm1, %v4048_v48  ;;  %v4046_v54 = vpack.c.bf16 %v1924_v50, %v1924_v50  ;;  %v1945_v56 = vadd.f32 %v4390_v52, %v4908_v39  ;;  %v1488_v57 = vpop.f32.mrf.mxu0 }
 0x127   : > { %v1936_v58 = vpop.f32.mrf.mxu1  ;;  %3181 = vst.msk [vmem:[%s4921_s5 + $0x74] sm:$0xf] %vm3151_vm1, %v3934_v53  ;;  %v3939_v59 = vpack.c.bf16 %v1497_v55, %v1497_v55  ;;  %v1489_v61 = vadd.f32 %v4908_v39, %v1488_v57 }
 0x128   : > { %3293 = vst.msk [vmem:[%s4921_s5 + $0x234] sm:$0xf] %vm3151_vm1, %v4046_v54  ;;  %v4051_v60 = vpack.c.bf16 %v1945_v56, %v1945_v56  ;;  %v1937_v62 = vadd.f32 %v4908_v39, %v1936_v58  ;;  %v4279_v63 = vpop.f32.mrf.mxu0 }
 0x129   : > { %v4391_v0 = vpop.f32.mrf.mxu1  ;;  %3186 = vst.msk [vmem:[%s4921_s5 + $0x88] sm:$0xf] %vm3151_vm1, %v3939_v59  ;;  %v3937_v1 = vpack.c.bf16 %v1489_v61, %v1489_v61  ;;  %v1500_v3 = vadd.f32 %v4279_v63, %v4908_v39 }
 0x12a   : > { %3298 = vst.msk [vmem:[%s4921_s5 + $0x248] sm:$0xf] %vm3151_vm1, %v4051_v60  ;;  %v4049_v2 = vpack.c.bf16 %v1937_v62, %v1937_v62  ;;  %v1948_v4 = vadd.f32 %v4391_v0, %v4908_v39  ;;  %v1491_v5 = vpop.f32.mrf.mxu0 }
 0x12b   : > { %v1939_v6 = vpop.f32.mrf.mxu1  ;;  %3184 = vst.msk [vmem:[%s4921_s5 + $0x80] sm:$0xf] %vm3151_vm1, %v3937_v1  ;;  %v3940_v7 = vpack.c.bf16 %v1500_v3, %v1500_v3  ;;  %v1492_v9 = vadd.f32 %v4908_v39, %v1491_v5 }
 0x12c   : > { %3296 = vst.msk [vmem:[%s4921_s5 + $0x240] sm:$0xf] %vm3151_vm1, %v4049_v2  ;;  %v4052_v8 = vpack.c.bf16 %v1948_v4, %v1948_v4  ;;  %v1940_v10 = vadd.f32 %v4908_v39, %v1939_v6  ;;  %v4282_v11 = vpop.f32.mrf.mxu0 }
 0x12d   : > { %v4394_v12 = vpop.f32.mrf.mxu1  ;;  %3187 = vst.msk [vmem:[%s4921_s5 + $0x8c] sm:$0xf] %vm3151_vm1, %v3940_v7  ;;  %v3938_v13 = vpack.c.bf16 %v1492_v9, %v1492_v9  ;;  %v1513_v15 = vadd.f32 %v4282_v11, %v4908_v39 }
 0x12e   : > { %3299 = vst.msk [vmem:[%s4921_s5 + $0x24c] sm:$0xf] %vm3151_vm1, %v4052_v8  ;;  %v4050_v14 = vpack.c.bf16 %v1940_v10, %v1940_v10  ;;  %v1961_v16 = vadd.f32 %v4394_v12, %v4908_v39  ;;  %v1504_v17 = vpop.f32.mrf.mxu0 }
 0x12f   : > { %v1952_v18 = vpop.f32.mrf.mxu1  ;;  %3185 = vst.msk [vmem:[%s4921_s5 + $0x84] sm:$0xf] %vm3151_vm1, %v3938_v13  ;;  %v3943_v19 = vpack.c.bf16 %v1513_v15, %v1513_v15  ;;  %v1505_v21 = vadd.f32 %v4908_v39, %v1504_v17 }
 0x130   : > { %3297 = vst.msk [vmem:[%s4921_s5 + $0x244] sm:$0xf] %vm3151_vm1, %v4050_v14  ;;  %v4055_v20 = vpack.c.bf16 %v1961_v16, %v1961_v16  ;;  %v1953_v22 = vadd.f32 %v4908_v39, %v1952_v18  ;;  %v4283_v23 = vpop.f32.mrf.mxu0 }
 0x131   : > { %v4395_v24 = vpop.f32.mrf.mxu1  ;;  %3190 = vst.msk [vmem:[%s4921_s5 + $0x98] sm:$0xf] %vm3151_vm1, %v3943_v19  ;;  %v3941_v25 = vpack.c.bf16 %v1505_v21, %v1505_v21  ;;  %v1516_v27 = vadd.f32 %v4283_v23, %v4908_v39 }
 0x132   : > { %3302 = vst.msk [vmem:[%s4921_s5 + $0x258] sm:$0xf] %vm3151_vm1, %v4055_v20  ;;  %v4053_v26 = vpack.c.bf16 %v1953_v22, %v1953_v22  ;;  %v1964_v28 = vadd.f32 %v4395_v24, %v4908_v39  ;;  %v1507_v29 = vpop.f32.mrf.mxu0 }
 0x133   : > { %v1955_v30 = vpop.f32.mrf.mxu1  ;;  %3188 = vst.msk [vmem:[%s4921_s5 + $0x90] sm:$0xf] %vm3151_vm1, %v3941_v25  ;;  %v3944_v31 = vpack.c.bf16 %v1516_v27, %v1516_v27  ;;  %v1508_v33 = vadd.f32 %v4908_v39, %v1507_v29 }
 0x134   : > { %3300 = vst.msk [vmem:[%s4921_s5 + $0x250] sm:$0xf] %vm3151_vm1, %v4053_v26  ;;  %v4056_v32 = vpack.c.bf16 %v1964_v28, %v1964_v28  ;;  %v1956_v34 = vadd.f32 %v4908_v39, %v1955_v30  ;;  %v4286_v35 = vpop.f32.mrf.mxu0 }
 0x135   : > { %v4398_v36 = vpop.f32.mrf.mxu1  ;;  %3191 = vst.msk [vmem:[%s4921_s5 + $0x9c] sm:$0xf] %vm3151_vm1, %v3944_v31  ;;  %v3942_v37 = vpack.c.bf16 %v1508_v33, %v1508_v33  ;;  %v1529_v40 = vadd.f32 %v4286_v35, %v4908_v39 }
 0x136   : > { %3303 = vst.msk [vmem:[%s4921_s5 + $0x25c] sm:$0xf] %vm3151_vm1, %v4056_v32  ;;  %v4054_v38 = vpack.c.bf16 %v1956_v34, %v1956_v34  ;;  %v1977_v41 = vadd.f32 %v4398_v36, %v4908_v39  ;;  %v1520_v42 = vpop.f32.mrf.mxu0 }
 0x137   : > { %v1968_v43 = vpop.f32.mrf.mxu1  ;;  %3189 = vst.msk [vmem:[%s4921_s5 + $0x94] sm:$0xf] %vm3151_vm1, %v3942_v37  ;;  %v3947_v44 = vpack.c.bf16 %v1529_v40, %v1529_v40  ;;  %v1521_v46 = vadd.f32 %v4908_v39, %v1520_v42 }
 0x138   : > { %3301 = vst.msk [vmem:[%s4921_s5 + $0x254] sm:$0xf] %vm3151_vm1, %v4054_v38  ;;  %v4059_v45 = vpack.c.bf16 %v1977_v41, %v1977_v41  ;;  %v1969_v47 = vadd.f32 %v4908_v39, %v1968_v43  ;;  %v4287_v48 = vpop.f32.mrf.mxu0 }
 0x139   : > { %v4399_v49 = vpop.f32.mrf.mxu1  ;;  %3194 = vst.msk [vmem:[%s4921_s5 + $0xa8] sm:$0xf] %vm3151_vm1, %v3947_v44  ;;  %v3945_v50 = vpack.c.bf16 %v1521_v46, %v1521_v46  ;;  %v1532_v52 = vadd.f32 %v4287_v48, %v4908_v39 }
 0x13a   : > { %3306 = vst.msk [vmem:[%s4921_s5 + $0x268] sm:$0xf] %vm3151_vm1, %v4059_v45  ;;  %v4057_v51 = vpack.c.bf16 %v1969_v47, %v1969_v47  ;;  %v1980_v53 = vadd.f32 %v4399_v49, %v4908_v39  ;;  %v1523_v54 = vpop.f32.mrf.mxu0 }
 0x13b   : > { %v1971_v55 = vpop.f32.mrf.mxu1  ;;  %3192 = vst.msk [vmem:[%s4921_s5 + $0xa0] sm:$0xf] %vm3151_vm1, %v3945_v50  ;;  %v3948_v56 = vpack.c.bf16 %v1532_v52, %v1532_v52  ;;  %v1524_v58 = vadd.f32 %v4908_v39, %v1523_v54 }
 0x13c   : > { %3304 = vst.msk [vmem:[%s4921_s5 + $0x260] sm:$0xf] %vm3151_vm1, %v4057_v51  ;;  %v4060_v57 = vpack.c.bf16 %v1980_v53, %v1980_v53  ;;  %v1972_v59 = vadd.f32 %v4908_v39, %v1971_v55  ;;  %v4290_v60 = vpop.f32.mrf.mxu0 }
 0x13d   : > { %v4402_v61 = vpop.f32.mrf.mxu1  ;;  %3195 = vst.msk [vmem:[%s4921_s5 + $0xac] sm:$0xf] %vm3151_vm1, %v3948_v56  ;;  %v3946_v62 = vpack.c.bf16 %v1524_v58, %v1524_v58  ;;  %v1545_v0 = vadd.f32 %v4290_v60, %v4908_v39 }
 0x13e   : > { %3307 = vst.msk [vmem:[%s4921_s5 + $0x26c] sm:$0xf] %vm3151_vm1, %v4060_v57  ;;  %v4058_v63 = vpack.c.bf16 %v1972_v59, %v1972_v59  ;;  %v1993_v1 = vadd.f32 %v4402_v61, %v4908_v39  ;;  %v1536_v2 = vpop.f32.mrf.mxu0 }
 0x13f   : > { %v1984_v3 = vpop.f32.mrf.mxu1  ;;  %3193 = vst.msk [vmem:[%s4921_s5 + $0xa4] sm:$0xf] %vm3151_vm1, %v3946_v62  ;;  %v3951_v4 = vpack.c.bf16 %v1545_v0, %v1545_v0  ;;  %v1537_v6 = vadd.f32 %v4908_v39, %v1536_v2 }
 0x140   : > { %3305 = vst.msk [vmem:[%s4921_s5 + $0x264] sm:$0xf] %vm3151_vm1, %v4058_v63  ;;  %v4063_v5 = vpack.c.bf16 %v1993_v1, %v1993_v1  ;;  %v1985_v7 = vadd.f32 %v4908_v39, %v1984_v3  ;;  %v4291_v8 = vpop.f32.mrf.mxu0 }
 0x141   : > { %v4403_v9 = vpop.f32.mrf.mxu1  ;;  %3198 = vst.msk [vmem:[%s4921_s5 + $0xb8] sm:$0xf] %vm3151_vm1, %v3951_v4  ;;  %v3949_v10 = vpack.c.bf16 %v1537_v6, %v1537_v6  ;;  %v1548_v12 = vadd.f32 %v4291_v8, %v4908_v39 }
 0x142   : > { %3310 = vst.msk [vmem:[%s4921_s5 + $0x278] sm:$0xf] %vm3151_vm1, %v4063_v5  ;;  %v4061_v11 = vpack.c.bf16 %v1985_v7, %v1985_v7  ;;  %v1996_v13 = vadd.f32 %v4403_v9, %v4908_v39  ;;  %v1539_v14 = vpop.f32.mrf.mxu0 }
 0x143   : > { %v1987_v15 = vpop.f32.mrf.mxu1  ;;  %3196 = vst.msk [vmem:[%s4921_s5 + $0xb0] sm:$0xf] %vm3151_vm1, %v3949_v10  ;;  %v3952_v16 = vpack.c.bf16 %v1548_v12, %v1548_v12  ;;  %v1540_v18 = vadd.f32 %v4908_v39, %v1539_v14 }
 0x144   : > { %3308 = vst.msk [vmem:[%s4921_s5 + $0x270] sm:$0xf] %vm3151_vm1, %v4061_v11  ;;  %v4064_v17 = vpack.c.bf16 %v1996_v13, %v1996_v13  ;;  %v1988_v19 = vadd.f32 %v4908_v39, %v1987_v15  ;;  %v4294_v20 = vpop.f32.mrf.mxu0 }
 0x145   : > { %v4406_v21 = vpop.f32.mrf.mxu1  ;;  %3199 = vst.msk [vmem:[%s4921_s5 + $0xbc] sm:$0xf] %vm3151_vm1, %v3952_v16  ;;  %v3950_v22 = vpack.c.bf16 %v1540_v18, %v1540_v18  ;;  %v1561_v24 = vadd.f32 %v4294_v20, %v4908_v39 }
 0x146   : > { %3311 = vst.msk [vmem:[%s4921_s5 + $0x27c] sm:$0xf] %vm3151_vm1, %v4064_v17  ;;  %v4062_v23 = vpack.c.bf16 %v1988_v19, %v1988_v19  ;;  %v2009_v25 = vadd.f32 %v4406_v21, %v4908_v39  ;;  %v1552_v26 = vpop.f32.mrf.mxu0 }
 0x147   : > { %v2000_v27 = vpop.f32.mrf.mxu1  ;;  %3197 = vst.msk [vmem:[%s4921_s5 + $0xb4] sm:$0xf] %vm3151_vm1, %v3950_v22  ;;  %v3955_v28 = vpack.c.bf16 %v1561_v24, %v1561_v24  ;;  %v1553_v30 = vadd.f32 %v4908_v39, %v1552_v26 }
 0x148   : > { %3309 = vst.msk [vmem:[%s4921_s5 + $0x274] sm:$0xf] %vm3151_vm1, %v4062_v23  ;;  %v4067_v29 = vpack.c.bf16 %v2009_v25, %v2009_v25  ;;  %v2001_v31 = vadd.f32 %v4908_v39, %v2000_v27  ;;  %v4295_v32 = vpop.f32.mrf.mxu0 }
 0x149   : > { %v4407_v33 = vpop.f32.mrf.mxu1  ;;  %3202 = vst.msk [vmem:[%s4921_s5 + $0xc8] sm:$0xf] %vm3151_vm1, %v3955_v28  ;;  %v3953_v34 = vpack.c.bf16 %v1553_v30, %v1553_v30  ;;  %v1564_v36 = vadd.f32 %v4295_v32, %v4908_v39 }
 0x14a   : > { %3314 = vst.msk [vmem:[%s4921_s5 + $0x288] sm:$0xf] %vm3151_vm1, %v4067_v29  ;;  %v4065_v35 = vpack.c.bf16 %v2001_v31, %v2001_v31  ;;  %v2012_v37 = vadd.f32 %v4407_v33, %v4908_v39  ;;  %v1555_v38 = vpop.f32.mrf.mxu0 }
 0x14b   : > { %v2003_v40 = vpop.f32.mrf.mxu1  ;;  %3200 = vst.msk [vmem:[%s4921_s5 + $0xc0] sm:$0xf] %vm3151_vm1, %v3953_v34  ;;  %v3956_v41 = vpack.c.bf16 %v1564_v36, %v1564_v36  ;;  %v1556_v43 = vadd.f32 %v4908_v39, %v1555_v38 }
 0x14c   : > { %3312 = vst.msk [vmem:[%s4921_s5 + $0x280] sm:$0xf] %vm3151_vm1, %v4065_v35  ;;  %v4068_v42 = vpack.c.bf16 %v2012_v37, %v2012_v37  ;;  %v2004_v44 = vadd.f32 %v4908_v39, %v2003_v40  ;;  %v4298_v45 = vpop.f32.mrf.mxu0  ;;  %v5306_v40 = vld [vmem:[%s5623_s2] ss:$0 sm:$0xff] }
 0x14d   : > { %v4410_v46 = vpop.f32.mrf.mxu1  ;;  %3203 = vst.msk [vmem:[%s4921_s5 + $0xcc] sm:$0xf] %vm3151_vm1, %v3956_v41  ;;  %v3954_v47 = vpack.c.bf16 %v1556_v43, %v1556_v43  ;;  %v1577_v49 = vadd.f32 %v4298_v45, %v4908_v39 }
 0x14e   : > { %3315 = vst.msk [vmem:[%s4921_s5 + $0x28c] sm:$0xf] %vm3151_vm1, %v4068_v42  ;;  %v4066_v48 = vpack.c.bf16 %v2004_v44, %v2004_v44  ;;  %v2025_v50 = vadd.f32 %v4410_v46, %v4908_v39  ;;  %v1568_v51 = vpop.f32.mrf.mxu0 }
 0x14f   : > { %v2016_v52 = vpop.f32.mrf.mxu1  ;;  %3201 = vst.msk [vmem:[%s4921_s5 + $0xc4] sm:$0xf] %vm3151_vm1, %v3954_v47  ;;  %v3959_v53 = vpack.c.bf16 %v1577_v49, %v1577_v49  ;;  %v1569_v55 = vadd.f32 %v4908_v39, %v1568_v51 }
 0x150   : > { %3313 = vst.msk [vmem:[%s4921_s5 + $0x284] sm:$0xf] %vm3151_vm1, %v4066_v48  ;;  %v4071_v54 = vpack.c.bf16 %v2025_v50, %v2025_v50  ;;  %v2017_v56 = vadd.f32 %v4908_v39, %v2016_v52  ;;  %v4299_v57 = vpop.f32.mrf.mxu0 }
 0x151   : > { %v4411_v58 = vpop.f32.mrf.mxu1  ;;  %3206 = vst.msk [vmem:[%s4921_s5 + $0xd8] sm:$0xf] %vm3151_vm1, %v3959_v53  ;;  %v3957_v59 = vpack.c.bf16 %v1569_v55, %v1569_v55  ;;  %v1580_v61 = vadd.f32 %v4299_v57, %v4908_v39 }
 0x152   : > { %3318 = vst.msk [vmem:[%s4921_s5 + $0x298] sm:$0xf] %vm3151_vm1, %v4071_v54  ;;  %v4069_v60 = vpack.c.bf16 %v2017_v56, %v2017_v56  ;;  %v2028_v62 = vadd.f32 %v4411_v58, %v4908_v39  ;;  %v1571_v63 = vpop.f32.mrf.mxu0 }
 0x153   : > { %v2019_v0 = vpop.f32.mrf.mxu1  ;;  %3204 = vst.msk [vmem:[%s4921_s5 + $0xd0] sm:$0xf] %vm3151_vm1, %v3957_v59  ;;  %v3960_v1 = vpack.c.bf16 %v1580_v61, %v1580_v61  ;;  %v1572_v3 = vadd.f32 %v4908_v39, %v1571_v63 }
 0x154   : > { %3316 = vst.msk [vmem:[%s4921_s5 + $0x290] sm:$0xf] %vm3151_vm1, %v4069_v60  ;;  %v4072_v2 = vpack.c.bf16 %v2028_v62, %v2028_v62  ;;  %v2020_v4 = vadd.f32 %v4908_v39, %v2019_v0  ;;  %v4302_v5 = vpop.f32.mrf.mxu0 }
 0x155   : > { %v4414_v6 = vpop.f32.mrf.mxu1  ;;  %3207 = vst.msk [vmem:[%s4921_s5 + $0xdc] sm:$0xf] %vm3151_vm1, %v3960_v1  ;;  %v3958_v7 = vpack.c.bf16 %v1572_v3, %v1572_v3  ;;  %v1593_v9 = vadd.f32 %v4302_v5, %v4908_v39 }
 0x156   : > { %3319 = vst.msk [vmem:[%s4921_s5 + $0x29c] sm:$0xf] %vm3151_vm1, %v4072_v2  ;;  %v4070_v8 = vpack.c.bf16 %v2020_v4, %v2020_v4  ;;  %v2041_v10 = vadd.f32 %v4414_v6, %v4908_v39  ;;  %v1584_v11 = vpop.f32.mrf.mxu0 }
 0x157   : > { %v2032_v12 = vpop.f32.mrf.mxu1  ;;  %3205 = vst.msk [vmem:[%s4921_s5 + $0xd4] sm:$0xf] %vm3151_vm1, %v3958_v7  ;;  %v3963_v13 = vpack.c.bf16 %v1593_v9, %v1593_v9  ;;  %v1585_v15 = vadd.f32 %v4908_v39, %v1584_v11 }
 0x158   : > { %3317 = vst.msk [vmem:[%s4921_s5 + $0x294] sm:$0xf] %vm3151_vm1, %v4070_v8  ;;  %v4075_v14 = vpack.c.bf16 %v2041_v10, %v2041_v10  ;;  %v2033_v16 = vadd.f32 %v4908_v39, %v2032_v12  ;;  %v4303_v17 = vpop.f32.mrf.mxu0 }
 0x159   : > { %v4415_v18 = vpop.f32.mrf.mxu1  ;;  %3210 = vst.msk [vmem:[%s4921_s5 + $0xe8] sm:$0xf] %vm3151_vm1, %v3963_v13  ;;  %v3961_v19 = vpack.c.bf16 %v1585_v15, %v1585_v15  ;;  %v1596_v21 = vadd.f32 %v4303_v17, %v4908_v39 }
 0x15a   : > { %3322 = vst.msk [vmem:[%s4921_s5 + $0x2a8] sm:$0xf] %vm3151_vm1, %v4075_v14  ;;  %v4073_v20 = vpack.c.bf16 %v2033_v16, %v2033_v16  ;;  %v2044_v22 = vadd.f32 %v4415_v18, %v4908_v39  ;;  %v1587_v23 = vpop.f32.mrf.mxu0 }
 0x15b   : > { %v2035_v24 = vpop.f32.mrf.mxu1  ;;  %3208 = vst.msk [vmem:[%s4921_s5 + $0xe0] sm:$0xf] %vm3151_vm1, %v3961_v19  ;;  %v3964_v25 = vpack.c.bf16 %v1596_v21, %v1596_v21  ;;  %v1588_v27 = vadd.f32 %v4908_v39, %v1587_v23 }
 0x15c   : > { %3320 = vst.msk [vmem:[%s4921_s5 + $0x2a0] sm:$0xf] %vm3151_vm1, %v4073_v20  ;;  %v4076_v26 = vpack.c.bf16 %v2044_v22, %v2044_v22  ;;  %v2036_v28 = vadd.f32 %v4908_v39, %v2035_v24  ;;  %v4306_v29 = vpop.f32.mrf.mxu0 }
 0x15d   : > { %v4418_v30 = vpop.f32.mrf.mxu1  ;;  %3211 = vst.msk [vmem:[%s4921_s5 + $0xec] sm:$0xf] %vm3151_vm1, %v3964_v25  ;;  %v3962_v31 = vpack.c.bf16 %v1588_v27, %v1588_v27  ;;  %v1609_v33 = vadd.f32 %v4306_v29, %v4908_v39 }
 0x15e   : > { %3323 = vst.msk [vmem:[%s4921_s5 + $0x2ac] sm:$0xf] %vm3151_vm1, %v4076_v26  ;;  %v4074_v32 = vpack.c.bf16 %v2036_v28, %v2036_v28  ;;  %v2057_v34 = vadd.f32 %v4418_v30, %v4908_v39  ;;  %v1600_v35 = vpop.f32.mrf.mxu0 }
 0x15f   : > { %v2048_v36 = vpop.f32.mrf.mxu1  ;;  %3209 = vst.msk [vmem:[%s4921_s5 + $0xe4] sm:$0xf] %vm3151_vm1, %v3962_v31  ;;  %v3967_v37 = vpack.c.bf16 %v1609_v33, %v1609_v33  ;;  %v1601_v41 = vadd.f32 %v5306_v40, %v1600_v35 }
 0x160   : > { %3321 = vst.msk [vmem:[%s4921_s5 + $0x2a4] sm:$0xf] %vm3151_vm1, %v4074_v32  ;;  %v4079_v38 = vpack.c.bf16 %v2057_v34, %v2057_v34  ;;  %v2049_v42 = vadd.f32 %v5306_v40, %v2048_v36  ;;  %v4307_v39 = vpop.f32.mrf.mxu0 }
 0x161   : > { %v4419_v43 = vpop.f32.mrf.mxu1  ;;  %3214 = vst.msk [vmem:[%s4921_s5 + $0xf8] sm:$0xf] %vm3151_vm1, %v3967_v37  ;;  %v3965_v44 = vpack.c.bf16 %v1601_v41, %v1601_v41  ;;  %v1612_v46 = vadd.f32 %v5306_v40, %v4307_v39 }
 0x162   : > { %3326 = vst.msk [vmem:[%s4921_s5 + $0x2b8] sm:$0xf] %vm3151_vm1, %v4079_v38  ;;  %v4077_v45 = vpack.c.bf16 %v2049_v42, %v2049_v42  ;;  %v2060_v47 = vadd.f32 %v5306_v40, %v4419_v43  ;;  %v1603_v48 = vpop.f32.mrf.mxu0 }
 0x163   : > { %v2051_v49 = vpop.f32.mrf.mxu1  ;;  %3212 = vst.msk [vmem:[%s4921_s5 + $0xf0] sm:$0xf] %vm3151_vm1, %v3965_v44  ;;  %v3968_v50 = vpack.c.bf16 %v1612_v46, %v1612_v46  ;;  %v1604_v52 = vadd.f32 %v5306_v40, %v1603_v48 }
 0x164   : > { %3324 = vst.msk [vmem:[%s4921_s5 + $0x2b0] sm:$0xf] %vm3151_vm1, %v4077_v45  ;;  %v4080_v51 = vpack.c.bf16 %v2060_v47, %v2060_v47  ;;  %v2052_v53 = vadd.f32 %v5306_v40, %v2051_v49  ;;  %v4310_v54 = vpop.f32.mrf.mxu0 }
 0x165   : > { %v4422_v55 = vpop.f32.mrf.mxu1  ;;  %3215 = vst.msk [vmem:[%s4921_s5 + $0xfc] sm:$0xf] %vm3151_vm1, %v3968_v50  ;;  %v3966_v56 = vpack.c.bf16 %v1604_v52, %v1604_v52  ;;  %v1625_v58 = vadd.f32 %v5306_v40, %v4310_v54 }
 0x166   : > { %3327 = vst.msk [vmem:[%s4921_s5 + $0x2bc] sm:$0xf] %vm3151_vm1, %v4080_v51  ;;  %v4078_v57 = vpack.c.bf16 %v2052_v53, %v2052_v53  ;;  %v2073_v59 = vadd.f32 %v5306_v40, %v4422_v55  ;;  %v1616_v60 = vpop.f32.mrf.mxu0 }
 0x167   : > { %v2064_v61 = vpop.f32.mrf.mxu1  ;;  %3213 = vst.msk [vmem:[%s4921_s5 + $0xf4] sm:$0xf] %vm3151_vm1, %v3966_v56  ;;  %v3971_v62 = vpack.c.bf16 %v1625_v58, %v1625_v58  ;;  %v1617_v0 = vadd.f32 %v5306_v40, %v1616_v60 }
 0x168   : > { %3325 = vst.msk [vmem:[%s4921_s5 + $0x2b4] sm:$0xf] %vm3151_vm1, %v4078_v57  ;;  %v4083_v63 = vpack.c.bf16 %v2073_v59, %v2073_v59  ;;  %v2065_v1 = vadd.f32 %v5306_v40, %v2064_v61  ;;  %v4311_v2 = vpop.f32.mrf.mxu0 }
 0x169   : > { %v4423_v3 = vpop.f32.mrf.mxu1  ;;  %3218 = vst.msk [vmem:[%s4921_s5 + $0x108] sm:$0xf] %vm3151_vm1, %v3971_v62  ;;  %v3969_v4 = vpack.c.bf16 %v1617_v0, %v1617_v0  ;;  %v1628_v6 = vadd.f32 %v5306_v40, %v4311_v2 }
 0x16a   : > { %3330 = vst.msk [vmem:[%s4921_s5 + $0x2c8] sm:$0xf] %vm3151_vm1, %v4083_v63  ;;  %v4081_v5 = vpack.c.bf16 %v2065_v1, %v2065_v1  ;;  %v2076_v7 = vadd.f32 %v5306_v40, %v4423_v3  ;;  %v1619_v8 = vpop.f32.mrf.mxu0 }
 0x16b   : > { %v2067_v9 = vpop.f32.mrf.mxu1  ;;  %3216 = vst.msk [vmem:[%s4921_s5 + $0x100] sm:$0xf] %vm3151_vm1, %v3969_v4  ;;  %v3972_v10 = vpack.c.bf16 %v1628_v6, %v1628_v6  ;;  %v1620_v12 = vadd.f32 %v5306_v40, %v1619_v8 }
 0x16c   : > { %3328 = vst.msk [vmem:[%s4921_s5 + $0x2c0] sm:$0xf] %vm3151_vm1, %v4081_v5  ;;  %v4084_v11 = vpack.c.bf16 %v2076_v7, %v2076_v7  ;;  %v2068_v13 = vadd.f32 %v5306_v40, %v2067_v9  ;;  %v4314_v14 = vpop.f32.mrf.mxu0 }
 0x16d   : > { %v4426_v15 = vpop.f32.mrf.mxu1  ;;  %3219 = vst.msk [vmem:[%s4921_s5 + $0x10c] sm:$0xf] %vm3151_vm1, %v3972_v10  ;;  %v3970_v16 = vpack.c.bf16 %v1620_v12, %v1620_v12  ;;  %v1641_v18 = vadd.f32 %v5306_v40, %v4314_v14 }
 0x16e   : > { %3331 = vst.msk [vmem:[%s4921_s5 + $0x2cc] sm:$0xf] %vm3151_vm1, %v4084_v11  ;;  %v4082_v17 = vpack.c.bf16 %v2068_v13, %v2068_v13  ;;  %v2089_v19 = vadd.f32 %v5306_v40, %v4426_v15  ;;  %v1632_v20 = vpop.f32.mrf.mxu0 }
 0x16f   : > { %v2080_v21 = vpop.f32.mrf.mxu1  ;;  %3217 = vst.msk [vmem:[%s4921_s5 + $0x104] sm:$0xf] %vm3151_vm1, %v3970_v16  ;;  %v3975_v22 = vpack.c.bf16 %v1641_v18, %v1641_v18  ;;  %v1633_v24 = vadd.f32 %v5306_v40, %v1632_v20 }
 0x170   : > { %3329 = vst.msk [vmem:[%s4921_s5 + $0x2c4] sm:$0xf] %vm3151_vm1, %v4082_v17  ;;  %v4087_v23 = vpack.c.bf16 %v2089_v19, %v2089_v19  ;;  %v2081_v25 = vadd.f32 %v5306_v40, %v2080_v21  ;;  %v4315_v26 = vpop.f32.mrf.mxu0 }
 0x171   : > { %v4427_v27 = vpop.f32.mrf.mxu1  ;;  %3222 = vst.msk [vmem:[%s4921_s5 + $0x118] sm:$0xf] %vm3151_vm1, %v3975_v22  ;;  %v3973_v28 = vpack.c.bf16 %v1633_v24, %v1633_v24  ;;  %v1644_v30 = vadd.f32 %v5306_v40, %v4315_v26 }
 0x172   : > { %3334 = vst.msk [vmem:[%s4921_s5 + $0x2d8] sm:$0xf] %vm3151_vm1, %v4087_v23  ;;  %v4085_v29 = vpack.c.bf16 %v2081_v25, %v2081_v25  ;;  %v2092_v31 = vadd.f32 %v5306_v40, %v4427_v27  ;;  %v1635_v32 = vpop.f32.mrf.mxu0 }
 0x173   : > { %v2083_v33 = vpop.f32.mrf.mxu1  ;;  %3220 = vst.msk [vmem:[%s4921_s5 + $0x110] sm:$0xf] %vm3151_vm1, %v3973_v28  ;;  %v3976_v34 = vpack.c.bf16 %v1644_v30, %v1644_v30  ;;  %v1636_v36 = vadd.f32 %v5306_v40, %v1635_v32 }
 0x174   : > { %3332 = vst.msk [vmem:[%s4921_s5 + $0x2d0] sm:$0xf] %vm3151_vm1, %v4085_v29  ;;  %v4088_v35 = vpack.c.bf16 %v2092_v31, %v2092_v31  ;;  %v2084_v37 = vadd.f32 %v5306_v40, %v2083_v33  ;;  %v4318_v38 = vpop.f32.mrf.mxu0 }
 0x175   : > { %v4430_v41 = vpop.f32.mrf.mxu1  ;;  %3223 = vst.msk [vmem:[%s4921_s5 + $0x11c] sm:$0xf] %vm3151_vm1, %v3976_v34  ;;  %v3974_v42 = vpack.c.bf16 %v1636_v36, %v1636_v36  ;;  %v1657_v43 = vadd.f32 %v5306_v40, %v4318_v38 }
 0x176   : > { %3335 = vst.msk [vmem:[%s4921_s5 + $0x2dc] sm:$0xf] %vm3151_vm1, %v4088_v35  ;;  %v4086_v39 = vpack.c.bf16 %v2084_v37, %v2084_v37  ;;  %v2105_v44 = vadd.f32 %v5306_v40, %v4430_v41  ;;  %v1648_v45 = vpop.f32.mrf.mxu0 }
 0x177   : > { %v2096_v46 = vpop.f32.mrf.mxu1  ;;  %3221 = vst.msk [vmem:[%s4921_s5 + $0x114] sm:$0xf] %vm3151_vm1, %v3974_v42  ;;  %v3979_v47 = vpack.c.bf16 %v1657_v43, %v1657_v43  ;;  %v1649_v49 = vadd.f32 %v5306_v40, %v1648_v45 }
 0x178   : > { %3333 = vst.msk [vmem:[%s4921_s5 + $0x2d4] sm:$0xf] %vm3151_vm1, %v4086_v39  ;;  %v4091_v48 = vpack.c.bf16 %v2105_v44, %v2105_v44  ;;  %v2097_v50 = vadd.f32 %v5306_v40, %v2096_v46  ;;  %v4319_v51 = vpop.f32.mrf.mxu0 }
 0x179   : > { %v4431_v52 = vpop.f32.mrf.mxu1  ;;  %3226 = vst.msk [vmem:[%s4921_s5 + $0x128] sm:$0xf] %vm3151_vm1, %v3979_v47  ;;  %v3977_v53 = vpack.c.bf16 %v1649_v49, %v1649_v49  ;;  %v1660_v55 = vadd.f32 %v5306_v40, %v4319_v51 }
 0x17a   : > { %3338 = vst.msk [vmem:[%s4921_s5 + $0x2e8] sm:$0xf] %vm3151_vm1, %v4091_v48  ;;  %v4089_v54 = vpack.c.bf16 %v2097_v50, %v2097_v50  ;;  %v2108_v56 = vadd.f32 %v5306_v40, %v4431_v52  ;;  %v1651_v57 = vpop.f32.mrf.mxu0 }
 0x17b   : > { %v2099_v58 = vpop.f32.mrf.mxu1  ;;  %3224 = vst.msk [vmem:[%s4921_s5 + $0x120] sm:$0xf] %vm3151_vm1, %v3977_v53  ;;  %v3980_v59 = vpack.c.bf16 %v1660_v55, %v1660_v55  ;;  %v1652_v61 = vadd.f32 %v5306_v40, %v1651_v57 }
 0x17c   : > { %3336 = vst.msk [vmem:[%s4921_s5 + $0x2e0] sm:$0xf] %vm3151_vm1, %v4089_v54  ;;  %v4092_v60 = vpack.c.bf16 %v2108_v56, %v2108_v56  ;;  %v2100_v62 = vadd.f32 %v5306_v40, %v2099_v58  ;;  %v4322_v63 = vpop.f32.mrf.mxu0 }
 0x17d   : > { %v4434_v0 = vpop.f32.mrf.mxu1  ;;  %3227 = vst.msk [vmem:[%s4921_s5 + $0x12c] sm:$0xf] %vm3151_vm1, %v3980_v59  ;;  %v3978_v1 = vpack.c.bf16 %v1652_v61, %v1652_v61  ;;  %v1673_v3 = vadd.f32 %v5306_v40, %v4322_v63 }
 0x17e   : > { %3339 = vst.msk [vmem:[%s4921_s5 + $0x2ec] sm:$0xf] %vm3151_vm1, %v4092_v60  ;;  %v4090_v2 = vpack.c.bf16 %v2100_v62, %v2100_v62  ;;  %v2121_v4 = vadd.f32 %v5306_v40, %v4434_v0  ;;  %v1664_v5 = vpop.f32.mrf.mxu0 }
 0x17f   : > { %v2112_v6 = vpop.f32.mrf.mxu1  ;;  %3225 = vst.msk [vmem:[%s4921_s5 + $0x124] sm:$0xf] %vm3151_vm1, %v3978_v1  ;;  %v3983_v7 = vpack.c.bf16 %v1673_v3, %v1673_v3  ;;  %v1665_v9 = vadd.f32 %v5306_v40, %v1664_v5 }
 0x180   : > { %3337 = vst.msk [vmem:[%s4921_s5 + $0x2e4] sm:$0xf] %vm3151_vm1, %v4090_v2  ;;  %v4095_v8 = vpack.c.bf16 %v2121_v4, %v2121_v4  ;;  %v2113_v10 = vadd.f32 %v5306_v40, %v2112_v6  ;;  %v4323_v11 = vpop.f32.mrf.mxu0 }
 0x181   : > { %v4435_v12 = vpop.f32.mrf.mxu1  ;;  %3230 = vst.msk [vmem:[%s4921_s5 + $0x138] sm:$0xf] %vm3151_vm1, %v3983_v7  ;;  %v3981_v13 = vpack.c.bf16 %v1665_v9, %v1665_v9  ;;  %v1676_v15 = vadd.f32 %v5306_v40, %v4323_v11 }
 0x182   : > { %3342 = vst.msk [vmem:[%s4921_s5 + $0x2f8] sm:$0xf] %vm3151_vm1, %v4095_v8  ;;  %v4093_v14 = vpack.c.bf16 %v2113_v10, %v2113_v10  ;;  %v2124_v16 = vadd.f32 %v5306_v40, %v4435_v12  ;;  %v1667_v17 = vpop.f32.mrf.mxu0 }
 0x183   : > { %v2115_v18 = vpop.f32.mrf.mxu1  ;;  %3228 = vst.msk [vmem:[%s4921_s5 + $0x130] sm:$0xf] %vm3151_vm1, %v3981_v13  ;;  %v3984_v19 = vpack.c.bf16 %v1676_v15, %v1676_v15  ;;  %v1668_v21 = vadd.f32 %v5306_v40, %v1667_v17 }
 0x184   : > { %3340 = vst.msk [vmem:[%s4921_s5 + $0x2f0] sm:$0xf] %vm3151_vm1, %v4093_v14  ;;  %v4096_v20 = vpack.c.bf16 %v2124_v16, %v2124_v16  ;;  %v2116_v22 = vadd.f32 %v5306_v40, %v2115_v18  ;;  %v4326_v23 = vpop.f32.mrf.mxu0 }
 0x185   : > { %v4438_v24 = vpop.f32.mrf.mxu1  ;;  %3231 = vst.msk [vmem:[%s4921_s5 + $0x13c] sm:$0xf] %vm3151_vm1, %v3984_v19  ;;  %v3982_v25 = vpack.c.bf16 %v1668_v21, %v1668_v21  ;;  %v1689_v27 = vadd.f32 %v5306_v40, %v4326_v23 }
 0x186   : > { %3343 = vst.msk [vmem:[%s4921_s5 + $0x2fc] sm:$0xf] %vm3151_vm1, %v4096_v20  ;;  %v4094_v26 = vpack.c.bf16 %v2116_v22, %v2116_v22  ;;  %v2137_v28 = vadd.f32 %v5306_v40, %v4438_v24  ;;  %v1680_v29 = vpop.f32.mrf.mxu0 }
 0x187   : > { %v2128_v30 = vpop.f32.mrf.mxu1  ;;  %3229 = vst.msk [vmem:[%s4921_s5 + $0x134] sm:$0xf] %vm3151_vm1, %v3982_v25  ;;  %v3987_v31 = vpack.c.bf16 %v1689_v27, %v1689_v27  ;;  %v1681_v33 = vadd.f32 %v5306_v40, %v1680_v29 }
 0x188   : > { %3341 = vst.msk [vmem:[%s4921_s5 + $0x2f4] sm:$0xf] %vm3151_vm1, %v4094_v26  ;;  %v4099_v32 = vpack.c.bf16 %v2137_v28, %v2137_v28  ;;  %v2129_v34 = vadd.f32 %v5306_v40, %v2128_v30  ;;  %v4327_v35 = vpop.f32.mrf.mxu0 }
 0x189   : > { %v4439_v36 = vpop.f32.mrf.mxu1  ;;  %3234 = vst.msk [vmem:[%s4921_s5 + $0x148] sm:$0xf] %vm3151_vm1, %v3987_v31  ;;  %v3985_v37 = vpack.c.bf16 %v1681_v33, %v1681_v33  ;;  %v1692_v41 = vadd.f32 %v5306_v40, %v4327_v35 }
 0x18a   : > { %3346 = vst.msk [vmem:[%s4921_s5 + $0x308] sm:$0xf] %vm3151_vm1, %v4099_v32  ;;  %v4097_v38 = vpack.c.bf16 %v2129_v34, %v2129_v34  ;;  %v2140_v42 = vadd.f32 %v5306_v40, %v4439_v36  ;;  %v1683_v39 = vpop.f32.mrf.mxu0 }
 0x18b   : > { %v2131_v43 = vpop.f32.mrf.mxu1  ;;  %3232 = vst.msk [vmem:[%s4921_s5 + $0x140] sm:$0xf] %vm3151_vm1, %v3985_v37  ;;  %v3988_v44 = vpack.c.bf16 %v1692_v41, %v1692_v41  ;;  %v1684_v46 = vadd.f32 %v5306_v40, %v1683_v39 }
 0x18c   : > { %3344 = vst.msk [vmem:[%s4921_s5 + $0x300] sm:$0xf] %vm3151_vm1, %v4097_v38  ;;  %v4100_v45 = vpack.c.bf16 %v2140_v42, %v2140_v42  ;;  %v2132_v47 = vadd.f32 %v5306_v40, %v2131_v43  ;;  %v4330_v48 = vpop.f32.mrf.mxu0 }
 0x18d   : > { %v4442_v49 = vpop.f32.mrf.mxu1  ;;  %3235 = vst.msk [vmem:[%s4921_s5 + $0x14c] sm:$0xf] %vm3151_vm1, %v3988_v44  ;;  %v3986_v50 = vpack.c.bf16 %v1684_v46, %v1684_v46  ;;  %v1705_v52 = vadd.f32 %v5306_v40, %v4330_v48 }
 0x18e   : > { %3347 = vst.msk [vmem:[%s4921_s5 + $0x30c] sm:$0xf] %vm3151_vm1, %v4100_v45  ;;  %v4098_v51 = vpack.c.bf16 %v2132_v47, %v2132_v47  ;;  %v2153_v53 = vadd.f32 %v5306_v40, %v4442_v49  ;;  %v1696_v54 = vpop.f32.mrf.mxu0 }
 0x18f   : > { %v2144_v55 = vpop.f32.mrf.mxu1  ;;  %3233 = vst.msk [vmem:[%s4921_s5 + $0x144] sm:$0xf] %vm3151_vm1, %v3986_v50  ;;  %v3991_v56 = vpack.c.bf16 %v1705_v52, %v1705_v52  ;;  %v1697_v58 = vadd.f32 %v5306_v40, %v1696_v54 }
 0x190   : > { %3345 = vst.msk [vmem:[%s4921_s5 + $0x304] sm:$0xf] %vm3151_vm1, %v4098_v51  ;;  %v4103_v57 = vpack.c.bf16 %v2153_v53, %v2153_v53  ;;  %v2145_v59 = vadd.f32 %v5306_v40, %v2144_v55  ;;  %v4331_v60 = vpop.f32.mrf.mxu0 }
 0x191   : > { %v4443_v61 = vpop.f32.mrf.mxu1  ;;  %3238 = vst.msk [vmem:[%s4921_s5 + $0x158] sm:$0xf] %vm3151_vm1, %v3991_v56  ;;  %v3989_v62 = vpack.c.bf16 %v1697_v58, %v1697_v58  ;;  %v1708_v0 = vadd.f32 %v5306_v40, %v4331_v60 }
 0x192   : > { %3350 = vst.msk [vmem:[%s4921_s5 + $0x318] sm:$0xf] %vm3151_vm1, %v4103_v57  ;;  %v4101_v63 = vpack.c.bf16 %v2145_v59, %v2145_v59  ;;  %v2156_v1 = vadd.f32 %v5306_v40, %v4443_v61  ;;  %v1699_v2 = vpop.f32.mrf.mxu0 }
 0x193   : > { %v2147_v3 = vpop.f32.mrf.mxu1  ;;  %3236 = vst.msk [vmem:[%s4921_s5 + $0x150] sm:$0xf] %vm3151_vm1, %v3989_v62  ;;  %v3992_v4 = vpack.c.bf16 %v1708_v0, %v1708_v0  ;;  %v1700_v6 = vadd.f32 %v5306_v40, %v1699_v2 }
 0x194   : > { %3348 = vst.msk [vmem:[%s4921_s5 + $0x310] sm:$0xf] %vm3151_vm1, %v4101_v63  ;;  %v4104_v5 = vpack.c.bf16 %v2156_v1, %v2156_v1  ;;  %v2148_v7 = vadd.f32 %v5306_v40, %v2147_v3  ;;  %v4334_v8 = vpop.f32.mrf.mxu0 }
 0x195   : > { %v4446_v9 = vpop.f32.mrf.mxu1  ;;  %3239 = vst.msk [vmem:[%s4921_s5 + $0x15c] sm:$0xf] %vm3151_vm1, %v3992_v4  ;;  %v3990_v10 = vpack.c.bf16 %v1700_v6, %v1700_v6  ;;  %v1721_v12 = vadd.f32 %v5306_v40, %v4334_v8 }
 0x196   : > { %3351 = vst.msk [vmem:[%s4921_s5 + $0x31c] sm:$0xf] %vm3151_vm1, %v4104_v5  ;;  %v4102_v11 = vpack.c.bf16 %v2148_v7, %v2148_v7  ;;  %v2169_v13 = vadd.f32 %v5306_v40, %v4446_v9  ;;  %v1712_v14 = vpop.f32.mrf.mxu0 }
 0x197   : > { %v2160_v15 = vpop.f32.mrf.mxu1  ;;  %3237 = vst.msk [vmem:[%s4921_s5 + $0x154] sm:$0xf] %vm3151_vm1, %v3990_v10  ;;  %v3995_v16 = vpack.c.bf16 %v1721_v12, %v1721_v12  ;;  %v1713_v18 = vadd.f32 %v5306_v40, %v1712_v14 }
 0x198   : > { %3349 = vst.msk [vmem:[%s4921_s5 + $0x314] sm:$0xf] %vm3151_vm1, %v4102_v11  ;;  %v4107_v17 = vpack.c.bf16 %v2169_v13, %v2169_v13  ;;  %v2161_v19 = vadd.f32 %v5306_v40, %v2160_v15  ;;  %v4335_v20 = vpop.f32.mrf.mxu0 }
 0x199   : > { %v4447_v21 = vpop.f32.mrf.mxu1  ;;  %3242 = vst.msk [vmem:[%s4921_s5 + $0x168] sm:$0xf] %vm3151_vm1, %v3995_v16  ;;  %v3993_v22 = vpack.c.bf16 %v1713_v18, %v1713_v18  ;;  %v1724_v24 = vadd.f32 %v5306_v40, %v4335_v20 }
 0x19a   : > { %3354 = vst.msk [vmem:[%s4921_s5 + $0x328] sm:$0xf] %vm3151_vm1, %v4107_v17  ;;  %v4105_v23 = vpack.c.bf16 %v2161_v19, %v2161_v19  ;;  %v2172_v25 = vadd.f32 %v5306_v40, %v4447_v21  ;;  %v1715_v26 = vpop.f32.mrf.mxu0 }
 0x19b   : > { %v2163_v27 = vpop.f32.mrf.mxu1  ;;  %3240 = vst.msk [vmem:[%s4921_s5 + $0x160] sm:$0xf] %vm3151_vm1, %v3993_v22  ;;  %v3996_v28 = vpack.c.bf16 %v1724_v24, %v1724_v24  ;;  %v1716_v30 = vadd.f32 %v5306_v40, %v1715_v26 }
 0x19c   : > { %3352 = vst.msk [vmem:[%s4921_s5 + $0x320] sm:$0xf] %vm3151_vm1, %v4105_v23  ;;  %v4108_v29 = vpack.c.bf16 %v2172_v25, %v2172_v25  ;;  %v2164_v31 = vadd.f32 %v5306_v40, %v2163_v27  ;;  %v4338_v32 = vpop.f32.mrf.mxu0 }
 0x19d   : > { %v4450_v33 = vpop.f32.mrf.mxu1  ;;  %3243 = vst.msk [vmem:[%s4921_s5 + $0x16c] sm:$0xf] %vm3151_vm1, %v3996_v28  ;;  %v3994_v34 = vpack.c.bf16 %v1716_v30, %v1716_v30  ;;  %v1737_v36 = vadd.f32 %v5306_v40, %v4338_v32 }
 0x19e   : > { %3355 = vst.msk [vmem:[%s4921_s5 + $0x32c] sm:$0xf] %vm3151_vm1, %v4108_v29  ;;  %v4106_v35 = vpack.c.bf16 %v2164_v31, %v2164_v31  ;;  %v2185_v37 = vadd.f32 %v5306_v40, %v4450_v33  ;;  %v1728_v38 = vpop.f32.mrf.mxu0 }
 0x19f   : > { %v2176_v41 = vpop.f32.mrf.mxu1  ;;  %3241 = vst.msk [vmem:[%s4921_s5 + $0x164] sm:$0xf] %vm3151_vm1, %v3994_v34  ;;  %v3999_v42 = vpack.c.bf16 %v1737_v36, %v1737_v36  ;;  %v1729_v43 = vadd.f32 %v5306_v40, %v1728_v38 }
 0x1a0   : > { %3353 = vst.msk [vmem:[%s4921_s5 + $0x324] sm:$0xf] %vm3151_vm1, %v4106_v35  ;;  %v4111_v39 = vpack.c.bf16 %v2185_v37, %v2185_v37  ;;  %v2177_v44 = vadd.f32 %v5306_v40, %v2176_v41  ;;  %v4339_v45 = vpop.f32.mrf.mxu0 }
 0x1a1   : > { %v4451_v46 = vpop.f32.mrf.mxu1  ;;  %3246 = vst.msk [vmem:[%s4921_s5 + $0x178] sm:$0xf] %vm3151_vm1, %v3999_v42  ;;  %v3997_v47 = vpack.c.bf16 %v1729_v43, %v1729_v43  ;;  %v1740_v49 = vadd.f32 %v5306_v40, %v4339_v45 }
 0x1a2   : > { %3358 = vst.msk [vmem:[%s4921_s5 + $0x338] sm:$0xf] %vm3151_vm1, %v4111_v39  ;;  %v4109_v48 = vpack.c.bf16 %v2177_v44, %v2177_v44  ;;  %v2188_v50 = vadd.f32 %v5306_v40, %v4451_v46  ;;  %v1731_v51 = vpop.f32.mrf.mxu0 }
 0x1a3   : > { %v2179_v52 = vpop.f32.mrf.mxu1  ;;  %3244 = vst.msk [vmem:[%s4921_s5 + $0x170] sm:$0xf] %vm3151_vm1, %v3997_v47  ;;  %v4000_v53 = vpack.c.bf16 %v1740_v49, %v1740_v49  ;;  %v1732_v55 = vadd.f32 %v5306_v40, %v1731_v51 }
 0x1a4   : > { %3356 = vst.msk [vmem:[%s4921_s5 + $0x330] sm:$0xf] %vm3151_vm1, %v4109_v48  ;;  %v4112_v54 = vpack.c.bf16 %v2188_v50, %v2188_v50  ;;  %v2180_v56 = vadd.f32 %v5306_v40, %v2179_v52  ;;  %v4342_v57 = vpop.f32.mrf.mxu0 }
 0x1a5   : > { %v4454_v58 = vpop.f32.mrf.mxu1  ;;  %3247 = vst.msk [vmem:[%s4921_s5 + $0x17c] sm:$0xf] %vm3151_vm1, %v4000_v53  ;;  %v3998_v59 = vpack.c.bf16 %v1732_v55, %v1732_v55  ;;  %v1753_v61 = vadd.f32 %v5306_v40, %v4342_v57 }
 0x1a6   : > { %3359 = vst.msk [vmem:[%s4921_s5 + $0x33c] sm:$0xf] %vm3151_vm1, %v4112_v54  ;;  %v4110_v60 = vpack.c.bf16 %v2180_v56, %v2180_v56  ;;  %v2201_v62 = vadd.f32 %v5306_v40, %v4454_v58  ;;  %v1744_v63 = vpop.f32.mrf.mxu0 }
 0x1a7   : > { %v2192_v0 = vpop.f32.mrf.mxu1  ;;  %3245 = vst.msk [vmem:[%s4921_s5 + $0x174] sm:$0xf] %vm3151_vm1, %v3998_v59  ;;  %v4003_v1 = vpack.c.bf16 %v1753_v61, %v1753_v61  ;;  %v1745_v3 = vadd.f32 %v5306_v40, %v1744_v63 }
 0x1a8   : > { %3357 = vst.msk [vmem:[%s4921_s5 + $0x334] sm:$0xf] %vm3151_vm1, %v4110_v60  ;;  %v4115_v2 = vpack.c.bf16 %v2201_v62, %v2201_v62  ;;  %v2193_v4 = vadd.f32 %v5306_v40, %v2192_v0  ;;  %v4343_v5 = vpop.f32.mrf.mxu0 }
 0x1a9   : > { %v4455_v6 = vpop.f32.mrf.mxu1  ;;  %3250 = vst.msk [vmem:[%s4921_s5 + $0x188] sm:$0xf] %vm3151_vm1, %v4003_v1  ;;  %v4001_v7 = vpack.c.bf16 %v1745_v3, %v1745_v3  ;;  %v1756_v9 = vadd.f32 %v5306_v40, %v4343_v5 }
 0x1aa   : > { %3362 = vst.msk [vmem:[%s4921_s5 + $0x348] sm:$0xf] %vm3151_vm1, %v4115_v2  ;;  %v4113_v8 = vpack.c.bf16 %v2193_v4, %v2193_v4  ;;  %v2204_v10 = vadd.f32 %v5306_v40, %v4455_v6  ;;  %v1747_v11 = vpop.f32.mrf.mxu0 }
 0x1ab   : > { %v2195_v12 = vpop.f32.mrf.mxu1  ;;  %3248 = vst.msk [vmem:[%s4921_s5 + $0x180] sm:$0xf] %vm3151_vm1, %v4001_v7  ;;  %v4004_v13 = vpack.c.bf16 %v1756_v9, %v1756_v9  ;;  %v1748_v15 = vadd.f32 %v5306_v40, %v1747_v11 }
 0x1ac   : > { %3360 = vst.msk [vmem:[%s4921_s5 + $0x340] sm:$0xf] %vm3151_vm1, %v4113_v8  ;;  %v4116_v14 = vpack.c.bf16 %v2204_v10, %v2204_v10  ;;  %v2196_v16 = vadd.f32 %v5306_v40, %v2195_v12  ;;  %v4346_v17 = vpop.f32.mrf.mxu0 }
 0x1ad   : > { %v4458_v18 = vpop.f32.mrf.mxu1  ;;  %3251 = vst.msk [vmem:[%s4921_s5 + $0x18c] sm:$0xf] %vm3151_vm1, %v4004_v13  ;;  %v4002_v19 = vpack.c.bf16 %v1748_v15, %v1748_v15  ;;  %v1769_v21 = vadd.f32 %v5306_v40, %v4346_v17 }
 0x1ae   : > { %3363 = vst.msk [vmem:[%s4921_s5 + $0x34c] sm:$0xf] %vm3151_vm1, %v4116_v14  ;;  %v4114_v20 = vpack.c.bf16 %v2196_v16, %v2196_v16  ;;  %v2217_v22 = vadd.f32 %v5306_v40, %v4458_v18  ;;  %v1760_v23 = vpop.f32.mrf.mxu0 }
 0x1af   : > { %v2208_v24 = vpop.f32.mrf.mxu1  ;;  %3249 = vst.msk [vmem:[%s4921_s5 + $0x184] sm:$0xf] %vm3151_vm1, %v4002_v19  ;;  %v4007_v25 = vpack.c.bf16 %v1769_v21, %v1769_v21  ;;  %v1761_v27 = vadd.f32 %v5306_v40, %v1760_v23 }
 0x1b0   : > { %3361 = vst.msk [vmem:[%s4921_s5 + $0x344] sm:$0xf] %vm3151_vm1, %v4114_v20  ;;  %v4119_v26 = vpack.c.bf16 %v2217_v22, %v2217_v22  ;;  %v2209_v28 = vadd.f32 %v5306_v40, %v2208_v24  ;;  %v4347_v29 = vpop.f32.mrf.mxu0 }
 0x1b1   : > { %v4459_v30 = vpop.f32.mrf.mxu1  ;;  %3254 = vst.msk [vmem:[%s4921_s5 + $0x198] sm:$0xf] %vm3151_vm1, %v4007_v25  ;;  %v4005_v31 = vpack.c.bf16 %v1761_v27, %v1761_v27  ;;  %v1772_v33 = vadd.f32 %v5306_v40, %v4347_v29 }
 0x1b2   : > { %3366 = vst.msk [vmem:[%s4921_s5 + $0x358] sm:$0xf] %vm3151_vm1, %v4119_v26  ;;  %v4117_v32 = vpack.c.bf16 %v2209_v28, %v2209_v28  ;;  %v2220_v34 = vadd.f32 %v5306_v40, %v4459_v30  ;;  %v1763_v35 = vpop.f32.mrf.mxu0 }
 0x1b3   : > { %v2211_v36 = vpop.f32.mrf.mxu1  ;;  %3252 = vst.msk [vmem:[%s4921_s5 + $0x190] sm:$0xf] %vm3151_vm1, %v4005_v31  ;;  %v4008_v37 = vpack.c.bf16 %v1772_v33, %v1772_v33  ;;  %v1764_v41 = vadd.f32 %v5306_v40, %v1763_v35 }
 0x1b4   : > { %3364 = vst.msk [vmem:[%s4921_s5 + $0x350] sm:$0xf] %vm3151_vm1, %v4117_v32  ;;  %v4120_v38 = vpack.c.bf16 %v2220_v34, %v2220_v34  ;;  %v2212_v42 = vadd.f32 %v5306_v40, %v2211_v36  ;;  %v4350_v39 = vpop.f32.mrf.mxu0 }
 0x1b5   : > { %v4462_v43 = vpop.f32.mrf.mxu1  ;;  %3255 = vst.msk [vmem:[%s4921_s5 + $0x19c] sm:$0xf] %vm3151_vm1, %v4008_v37  ;;  %v4006_v44 = vpack.c.bf16 %v1764_v41, %v1764_v41  ;;  %v1785_v46 = vadd.f32 %v5306_v40, %v4350_v39 }
 0x1b6   : > { %3367 = vst.msk [vmem:[%s4921_s5 + $0x35c] sm:$0xf] %vm3151_vm1, %v4120_v38  ;;  %v4118_v45 = vpack.c.bf16 %v2212_v42, %v2212_v42  ;;  %v2233_v47 = vadd.f32 %v5306_v40, %v4462_v43  ;;  %v1776_v48 = vpop.f32.mrf.mxu0 }
 0x1b7   : > { %v2224_v49 = vpop.f32.mrf.mxu1  ;;  %3253 = vst.msk [vmem:[%s4921_s5 + $0x194] sm:$0xf] %vm3151_vm1, %v4006_v44  ;;  %v4011_v50 = vpack.c.bf16 %v1785_v46, %v1785_v46  ;;  %v1777_v52 = vadd.f32 %v5306_v40, %v1776_v48 }
 0x1b8   : > { %3365 = vst.msk [vmem:[%s4921_s5 + $0x354] sm:$0xf] %vm3151_vm1, %v4118_v45  ;;  %v4123_v51 = vpack.c.bf16 %v2233_v47, %v2233_v47  ;;  %v2225_v53 = vadd.f32 %v5306_v40, %v2224_v49  ;;  %v4351_v54 = vpop.f32.mrf.mxu0 }
 0x1b9   : > { %v4463_v55 = vpop.f32.mrf.mxu1  ;;  %3258 = vst.msk [vmem:[%s4921_s5 + $0x1a8] sm:$0xf] %vm3151_vm1, %v4011_v50  ;;  %v4009_v56 = vpack.c.bf16 %v1777_v52, %v1777_v52  ;;  %v1788_v58 = vadd.f32 %v5306_v40, %v4351_v54 }
 0x1ba   : > { %3370 = vst.msk [vmem:[%s4921_s5 + $0x368] sm:$0xf] %vm3151_vm1, %v4123_v51  ;;  %v4121_v57 = vpack.c.bf16 %v2225_v53, %v2225_v53  ;;  %v2236_v59 = vadd.f32 %v5306_v40, %v4463_v55  ;;  %v1779_v60 = vpop.f32.mrf.mxu0 }
 0x1bb   : > { %v2227_v61 = vpop.f32.mrf.mxu1  ;;  %3256 = vst.msk [vmem:[%s4921_s5 + $0x1a0] sm:$0xf] %vm3151_vm1, %v4009_v56  ;;  %v4012_v62 = vpack.c.bf16 %v1788_v58, %v1788_v58  ;;  %v1780_v0 = vadd.f32 %v5306_v40, %v1779_v60 }
 0x1bc   : > { %3368 = vst.msk [vmem:[%s4921_s5 + $0x360] sm:$0xf] %vm3151_vm1, %v4121_v57  ;;  %v4124_v63 = vpack.c.bf16 %v2236_v59, %v2236_v59  ;;  %v2228_v1 = vadd.f32 %v5306_v40, %v2227_v61  ;;  %v4354_v2 = vpop.f32.mrf.mxu0 }
 0x1bd   : > { %v4466_v3 = vpop.f32.mrf.mxu1  ;;  %3259 = vst.msk [vmem:[%s4921_s5 + $0x1ac] sm:$0xf] %vm3151_vm1, %v4012_v62  ;;  %v4010_v4 = vpack.c.bf16 %v1780_v0, %v1780_v0  ;;  %v1801_v6 = vadd.f32 %v5306_v40, %v4354_v2 }
 0x1be   : > { %3371 = vst.msk [vmem:[%s4921_s5 + $0x36c] sm:$0xf] %vm3151_vm1, %v4124_v63  ;;  %v4122_v5 = vpack.c.bf16 %v2228_v1, %v2228_v1  ;;  %v2249_v7 = vadd.f32 %v5306_v40, %v4466_v3  ;;  %v1792_v8 = vpop.f32.mrf.mxu0 }
 0x1bf   : > { %v2240_v9 = vpop.f32.mrf.mxu1  ;;  %3257 = vst.msk [vmem:[%s4921_s5 + $0x1a4] sm:$0xf] %vm3151_vm1, %v4010_v4  ;;  %v4015_v10 = vpack.c.bf16 %v1801_v6, %v1801_v6  ;;  %v1793_v12 = vadd.f32 %v5306_v40, %v1792_v8 }
 0x1c0   : > { %3369 = vst.msk [vmem:[%s4921_s5 + $0x364] sm:$0xf] %vm3151_vm1, %v4122_v5  ;;  %v4127_v11 = vpack.c.bf16 %v2249_v7, %v2249_v7  ;;  %v2241_v13 = vadd.f32 %v5306_v40, %v2240_v9  ;;  %v4355_v14 = vpop.f32.mrf.mxu0 }
 0x1c1   : > { %v4467_v15 = vpop.f32.mrf.mxu1  ;;  %3262 = vst.msk [vmem:[%s4921_s5 + $0x1b8] sm:$0xf] %vm3151_vm1, %v4015_v10  ;;  %v4013_v16 = vpack.c.bf16 %v1793_v12, %v1793_v12  ;;  %v1804_v18 = vadd.f32 %v5306_v40, %v4355_v14 }
 0x1c2   : > { %3374 = vst.msk [vmem:[%s4921_s5 + $0x378] sm:$0xf] %vm3151_vm1, %v4127_v11  ;;  %v4125_v17 = vpack.c.bf16 %v2241_v13, %v2241_v13  ;;  %v2252_v19 = vadd.f32 %v5306_v40, %v4467_v15  ;;  %v1795_v20 = vpop.f32.mrf.mxu0 }
 0x1c3   : > { %v2243_v21 = vpop.f32.mrf.mxu1  ;;  %3260 = vst.msk [vmem:[%s4921_s5 + $0x1b0] sm:$0xf] %vm3151_vm1, %v4013_v16  ;;  %v4016_v22 = vpack.c.bf16 %v1804_v18, %v1804_v18  ;;  %v1796_v24 = vadd.f32 %v5306_v40, %v1795_v20 }
 0x1c4   : > { %3372 = vst.msk [vmem:[%s4921_s5 + $0x370] sm:$0xf] %vm3151_vm1, %v4125_v17  ;;  %v4128_v23 = vpack.c.bf16 %v2252_v19, %v2252_v19  ;;  %v2244_v25 = vadd.f32 %v5306_v40, %v2243_v21 }
 0x1c5   : > { %3263 = vst.msk [vmem:[%s4921_s5 + $0x1bc] sm:$0xf] %vm3151_vm1, %v4016_v22  ;;  %v4014_v26 = vpack.c.bf16 %v1796_v24, %v1796_v24 }
 0x1c6   : > { %3375 = vst.msk [vmem:[%s4921_s5 + $0x37c] sm:$0xf] %vm3151_vm1, %v4128_v23  ;;  %v4126_v27 = vpack.c.bf16 %v2244_v25, %v2244_v25 }
 0x1c7   : > { %3261 = vst.msk [vmem:[%s4921_s5 + $0x1b4] sm:$0xf] %vm3151_vm1, %v4014_v26 }
 0x1c8   : > { %3373 = vst.msk [vmem:[%s4921_s5 + $0x374] sm:$0xf] %vm3151_vm1, %v4126_v27 }
 0x1c9 PF: > { %s14_s12 = sadd.s32 1, %s4641_s12  }
 0x1ca   : > { %p11_p1 = scmp.ge.s32.totalorder %s14_s12, 16  }
 0x1cc   :  { %13 = sbr.rel (!%p11_p1) target bundleno = 1 (0x1), region = 67 }
 0x1d1   :  { %3398 = vsyncpa [#allocation3], 1 }
 0x1d2   :  { %3400 = vsyncpa [#allocation3 + $0x1], 1 }

</bundles_post_ra>
